<compile_context>
chip_gen: v6e
topology: v6e:2x2x1
jax: 0.10.0
libtpu: 0.0.40
codegen_flags: <defaults>
</compile_context>

<pallas_src>
import functools
import math

import jax
import jax.numpy as jnp
from jax.experimental import pallas as pl
from jax.experimental.pallas import tpu as pltpu

HIDDEN = 128         # featurefusion_network.d_model (real TransT: 256)
NUM_CHANNELS = 128   # backbone.num_channels (real TransT: 1024)
NUM_CLASSES = 1      # single object tracking
NUM_HEADS = 4
HEAD_DIM = HIDDEN // NUM_HEADS
FF_DIM = 256         # feedforward dim (real TransT: 2048)
PATCH = 8            # synthetic backbone downsampling stride
HEAD_OUT_PAD = 128   # lane-dense padded width for the fused class/bbox head

# TODO(synk): flip MATMUL_DTYPE to jnp.bfloat16 (keep f32 accumulation) when
# scaling to real TransT dims (d_model=256, dim_ff=2048, Ls~1024): there the
# MXU is the binding unit and f32 operands halve throughput.  Also budget VMEM
# explicitly then (pltpu.CompilerParams(vmem_limit_bytes=...); v7x has 64 MiB
# physical, v5e 16 MiB default scoped) and tile Lq / M.
MATMUL_DTYPE = jnp.float32


def _mm(a, b):
    """Matmul with configurable operand dtype, f32 accumulation."""
    return jnp.dot(a.astype(MATMUL_DTYPE), b.astype(MATMUL_DTYPE),
                   preferred_element_type=jnp.float32)


def _multi_tensorcore_chip():
    """True on chips where a 'parallel' grid axis shards across TensorCores."""
    try:
        kind = jax.devices()[0].device_kind.lower()
    except Exception:
        return False
    # v4 / v5p megacore and v7x expose 2 TensorCores per device.
    return ('v4' in kind) or ('v5p' in kind) or ('7' in kind)


# ----------------------------- Pallas kernels ------------------------------

def _embed_kernel(tok_ref, w1_ref, b1_ref, w2_ref, b2_ref, o_ref):
    """Fused backbone patch-embed (matmul+relu) + 1x1 input_proj (matmul)."""
    feat = _mm(tok_ref[...], w1_ref[...]) + b1_ref[...]
    feat = jnp.maximum(feat, 0.0)
    o_ref[...] = (_mm(feat, w2_ref[...]) + b2_ref[...]).astype(o_ref.dtype)


def embed(tokens, p):
    """tokens: [M, Cin*P*P] -> src: [M, HIDDEN].

    One pallas_call: the caller concatenates search + template patches along M
    so both images share a single launch."""
    M, K = tokens.shape
    C = p['embed_w1'].shape[1]
    H = p['embed_w2'].shape[1]
    return pl.pallas_call(
        _embed_kernel,
        out_shape=jax.ShapeDtypeStruct((M, H), jnp.float32),
        grid=(1,),
        in_specs=[pl.BlockSpec((M, K), lambda i: (0, 0)),
                  pl.BlockSpec((K, C), lambda i: (0, 0)),
                  pl.BlockSpec((1, C), lambda i: (0, 0)),
                  pl.BlockSpec((C, H), lambda i: (0, 0)),
                  pl.BlockSpec((1, H), lambda i: (0, 0))],
        out_specs=pl.BlockSpec((M, H), lambda i: (0, 0)),
    )(tokens, p['embed_w1'], p['embed_b1'], p['embed_w2'], p['embed_b2'])


def _fusion_block_kernel(q_tok_ref, q_pos_ref, kv_tok_ref, kv_pos_ref, mask_ref,
                         wqkvo_ref, bqkvo_ref, w1_ref, b1_ref, w2_ref, b2_ref,
                         ln_ref, o_ref, *, num_heads, head_dim, eps, bb):
    """Full cross-attention fusion block for a block of `bb` batch elements."""
    h_dim = num_heads * head_dim
    scale = 1.0 / math.sqrt(head_dim)

    def layer_norm(x, g, b):
        mu = jnp.mean(x, axis=-1, keepdims=True)
        var = jnp.mean((x - mu) ** 2, axis=-1, keepdims=True)
        return (x - mu) * jax.lax.rsqrt(var + eps) * g + b

    bo = bqkvo_ref[:, 3 * h_dim:4 * h_dim]                 # (1, H)

    for b in range(bb):                                    # static unroll
        q_tok = q_tok_ref[b]                               # (Lq, H)
        q_in = q_tok + q_pos_ref[b]                        # pos added to q
        k_in = kv_tok_ref[b] + kv_pos_ref[b]               # pos added to k
        v_in = kv_tok_ref[b]                               # no pos on v
        # additive key-padding bias built in-kernel (no HBM [BH,Lq,Lk] tensor)
        bias = mask_ref[b] * (-1e9)                        # (1, Lk); 1.0 = pad

        attn_out = None
        for hh in range(num_heads):                        # static unroll
            lo = hh * head_dim
            # all weights taken as static slices of the packed weight refs
            wq_h = wqkvo_ref[:, 0 * h_dim + lo:0 * h_dim + lo + head_dim]
            wk_h = wqkvo_ref[:, 1 * h_dim + lo:1 * h_dim + lo + head_dim]
            wv_h = wqkvo_ref[:, 2 * h_dim + lo:2 * h_dim + lo + head_dim]
            wo_h = wqkvo_ref[lo:lo + head_dim, 3 * h_dim:4 * h_dim]
            bq_h = bqkvo_ref[:, 0 * h_dim + lo:0 * h_dim + lo + head_dim]
            bk_h = bqkvo_ref[:, 1 * h_dim + lo:1 * h_dim + lo + head_dim]
            bv_h = bqkvo_ref[:, 2 * h_dim + lo:2 * h_dim + lo + head_dim]

            qh = _mm(q_in, wq_h) + bq_h                    # (Lq, hd)
            kh = _mm(k_in, wk_h) + bk_h                    # (Lk, hd)
            vh = _mm(v_in, wv_h) + bv_h                    # (Lk, hd)

            s = jax.lax.dot_general(                       # (Lq, Lk)
                qh.astype(MATMUL_DTYPE), kh.astype(MATMUL_DTYPE),
                (((1,), (1,)), ((), ())),
                preferred_element_type=jnp.float32) * scale + bias
            s = s - jnp.max(s, axis=-1, keepdims=True)
            e = jnp.exp(s)
            pattn = e * pl.reciprocal(jnp.sum(e, axis=-1, keepdims=True),
                                      approx=True)
            ho = _mm(pattn, vh)                            # (Lq, hd)
            contrib = _mm(ho, wo_h)                        # (Lq, H)
            attn_out = contrib if attn_out is None else attn_out + contrib
        attn_out = attn_out + bo

        x = layer_norm(q_tok + attn_out, ln_ref[0:1, :], ln_ref[1:2, :])
        ff = jnp.maximum(_mm(x, w1_ref[...]) + b1_ref[...], 0.0)
        ff = _mm(ff, w2_ref[...]) + b2_ref[...]
        x = layer_norm(x + ff, ln_ref[2:3, :], ln_ref[3:4, :])
        o_ref[b] = x.astype(o_ref.dtype)                   # lane-dense store


def fusion_block(p, name, q_tok, q_pos, kv_tok, kv_pos, kv_maskf):
    """q_tok/q_pos: [B, Lq, H]; kv_*: [B, Lk, H]; kv_maskf: [B, 1, Lk] float."""
    B, Lq, H = q_tok.shape
    Lk = kv_tok.shape[1]
    # On 1-TC chips (v5e/v6e) a per-batch grid is a serial loop whose per-step
    # overhead exceeds the tiny per-step compute -> whole batch in one step.
    # On multi-TC chips keep grid=(B,) + "parallel" so each core gets a batch.
    parallel = _multi_tensorcore_chip() and B >= 2
    num_blocks = B if parallel else 1
    bb = B // num_blocks
    kernel = functools.partial(_fusion_block_kernel, num_heads=NUM_HEADS,
                               head_dim=HEAD_DIM, eps=1e-5, bb=bb)
    return pl.pallas_call(
        kernel,
        out_shape=jax.ShapeDtypeStruct((B, Lq, H), jnp.float32),
        grid=(num_blocks,),
        in_specs=[
            pl.BlockSpec((bb, Lq, H), lambda i: (i, 0, 0)),      # q tokens
            pl.BlockSpec((bb, Lq, H), lambda i: (i, 0, 0)),      # q pos
            pl.BlockSpec((bb, Lk, H), lambda i: (i, 0, 0)),      # kv tokens
            pl.BlockSpec((bb, Lk, H), lambda i: (i, 0, 0)),      # kv pos
            pl.BlockSpec((bb, 1, Lk), lambda i: (i, 0, 0)),      # key-pad mask
            pl.BlockSpec((H, 4 * H), lambda i: (0, 0)),          # wq|wk|wv|wo
            pl.BlockSpec((1, 4 * H), lambda i: (0, 0)),          # bq|bk|bv|bo
            pl.BlockSpec((H, FF_DIM), lambda i: (0, 0)),         # ffn w1
            pl.BlockSpec((1, FF_DIM), lambda i: (0, 0)),         # ffn b1
            pl.BlockSpec((FF_DIM, H), lambda i: (0, 0)),         # ffn w2
            pl.BlockSpec((1, H), lambda i: (0, 0)),              # ffn b2
            pl.BlockSpec((4, H), lambda i: (0, 0)),              # LN params
        ],
        out_specs=pl.BlockSpec((bb, Lq, H), lambda i: (i, 0, 0)),
        compiler_params=pltpu.CompilerParams(
            dimension_semantics=(("parallel",) if parallel else ("arbitrary",))),
    )(q_tok, q_pos, kv_tok, kv_pos, kv_maskf,
      p[name + '_wqkvo'], p[name + '_bqkvo'],
      p[name + '_w1'], p[name + '_b1'],
      p[name + '_w2'], p[name + '_b2'],
      p[name + '_ln'])


def _heads_kernel(x_ref, w0_ref, b0_ref, w1_ref, b1_ref, w2_ref, b2_ref, o_ref,
                  *, nc1):
    """Fused class_embed + bbox_embed MLPs; lane-dense 128-wide packed output.

    The two 3-layer MLPs run as two ref-indexed paths accumulated into one
    output slab (no block-diagonal half-zero weights)."""
    x = x_ref[...]
    acc = None
    for i in range(2):                      # 0 = class path, 1 = bbox path
        h = jnp.maximum(_mm(x, w0_ref[i]) + b0_ref[i], 0.0)
        h = jnp.maximum(_mm(h, w1_ref[i]) + b1_ref[i], 0.0)
        c = _mm(h, w2_ref[i])               # (M, 128), paths hit disjoint cols
        acc = c if acc is None else acc + c
    y = acc + b2_ref[...]
    # columns [0, nc1) = class logits (raw), [nc1, nc1+4) = boxes (sigmoid)
    col = jax.lax.broadcasted_iota(jnp.int32, y.shape, 1)
    is_box = jnp.logical_and(col >= nc1, col < nc1 + 4)
    o_ref[...] = jnp.where(is_box, jax.nn.sigmoid(y), y)


def heads(x, p):
    """x: [M, HIDDEN] -> [M, HEAD_OUT_PAD] packed (logits | sigmoid boxes | 0)."""
    M, H = x.shape
    # TODO(synk): tile M with a "parallel" grid when M grows to B*1024.
    return pl.pallas_call(
        functools.partial(_heads_kernel, nc1=NUM_CLASSES + 1),
        out_shape=jax.ShapeDtypeStruct((M, HEAD_OUT_PAD), jnp.float32),
        grid=(1,),
        in_specs=[pl.BlockSpec((M, H), lambda i: (0, 0)),
                  pl.BlockSpec((2, H, H), lambda i: (0, 0, 0)),
                  pl.BlockSpec((2, 1, H), lambda i: (0, 0, 0)),
                  pl.BlockSpec((2, H, H), lambda i: (0, 0, 0)),
                  pl.BlockSpec((2, 1, H), lambda i: (0, 0, 0)),
                  pl.BlockSpec((2, H, HEAD_OUT_PAD), lambda i: (0, 0, 0)),
                  pl.BlockSpec((1, HEAD_OUT_PAD), lambda i: (0, 0))],
        out_specs=pl.BlockSpec((M, HEAD_OUT_PAD), lambda i: (0, 0)),
    )(x, p['head_w0'], p['head_b0'], p['head_w1'], p['head_b1'],
      p['head_w2'], p['head_b2'])


# ------------------------------- glue (JAX) --------------------------------

def sine_pos_embed(mask, num_pos_feats=HIDDEN // 2, temperature=10000.0):
    """DETR-style sine positional embedding. mask: [B, H, W] bool (True = pad)."""
    not_mask = (~mask).astype(jnp.float32)
    y_embed = jnp.cumsum(not_mask, axis=1)
    x_embed = jnp.cumsum(not_mask, axis=2)
    eps = 1e-6
    scale = 2 * math.pi
    y_embed = y_embed / (y_embed[:, -1:, :] + eps) * scale
    x_embed = x_embed / (x_embed[:, :, -1:] + eps) * scale
    dim_t = jnp.arange(num_pos_feats, dtype=jnp.float32)
    dim_t = temperature ** (2.0 * jnp.floor(dim_t / 2.0) / num_pos_feats)
    pos_x = x_embed[..., None] / dim_t
    pos_y = y_embed[..., None] / dim_t
    pos_x = jnp.stack([jnp.sin(pos_x[..., 0::2]), jnp.cos(pos_x[..., 1::2])],
                      axis=-1).reshape(*x_embed.shape, -1)
    pos_y = jnp.stack([jnp.sin(pos_y[..., 0::2]), jnp.cos(pos_y[..., 1::2])],
                      axis=-1).reshape(*y_embed.shape, -1)
    pos = jnp.concatenate([pos_y, pos_x], axis=-1)   # [B, H, W, HIDDEN]
    B, H, W, C = pos.shape
    return pos.reshape(B, H * W, C)


def patchify(img):
    """NCHW image -> flattened non-overlapping patches [B*Hf*Wf, C*P*P]."""
    B, C, H, W = img.shape
    Hf, Wf = H // PATCH, W // PATCH
    x = img.reshape(B, C, Hf, PATCH, Wf, PATCH)
    x = jnp.transpose(x, (0, 2, 4, 1, 3, 5))          # [B, Hf, Wf, C, P, P]
    return x.reshape(B * Hf * Wf, C * PATCH * PATCH), Hf, Wf


def transt_forward(p, search_img, search_mask, template_img, template_mask):
    B = search_img.shape[0]

    # backbone (synthetic patch embed) + input_proj, fused; search + template
    # tokens concatenated along M so the embed path is a single launch.
    tok_s, Hs, Ws = patchify(search_img)
    tok_t, Ht, Wt = patchify(template_img)
    Ls, Lt = Hs * Ws, Ht * Wt
    src = embed(jnp.concatenate([tok_s, tok_t], axis=0), p)
    src_s = src[:B * Ls].reshape(B, Ls, HIDDEN)
    src_t = src[B * Ls:].reshape(B, Lt, HIDDEN)

    # TODO(synk): mask downsampling uses strided slicing instead of
    # interpolate-then-bool as in the PyTorch NestedTensor backbone.
    mask_s_ds = search_mask[:, ::PATCH, ::PATCH]
    mask_t_ds = template_mask[:, ::PATCH, ::PATCH]
    pos_s = sine_pos_embed(mask_s_ds)                  # [B, Ls, HIDDEN]
    pos_t = sine_pos_embed(mask_t_ds)                  # [B, Lt, HIDDEN]
    kv_maskf = mask_t_ds.reshape(B, 1, Lt).astype(jnp.float32)

    # featurefusion_network
    # TODO(synk): full symmetric ECA/CFA fusion stack reduced to two
    # search->template cross-attention blocks (fusion layer + decoder CFA).
    x = fusion_block(p, 'fusion', src_s, pos_s, src_t, pos_t, kv_maskf)
    x = fusion_block(p, 'decoder', x, pos_s, src_t, pos_t, kv_maskf)

    # fused class_embed + bbox_embed heads (single lane-dense output slab)
    flat = x.reshape(B * Ls, HIDDEN)
    packed = heads(flat, p)                            # [B*Ls, 128]
    nc1 = NUM_CLASSES + 1
    outputs_class = packed[:, :nc1].reshape(B, Ls, nc1)
    outputs_coord = packed[:, nc1:nc1 + 4].reshape(B, Ls, 4)

    return {'pred_logits': outputs_class, 'pred_boxes': outputs_coord}


# ----------------------------- parameter init ------------------------------

def init_params(key):
    keys = jax.random.split(key, 64)
    it = iter(range(64))

    def w(shape, scale=0.02):
        return scale * jax.random.normal(keys[next(it)], shape, jnp.float32)

    def zeros(n):
        return jnp.zeros((n,), jnp.float32)

    p = {}
    p['backbone_w'] = w((3 * PATCH * PATCH, NUM_CHANNELS))
    p['backbone_b'] = zeros(NUM_CHANNELS)
    p['proj_w'] = w((NUM_CHANNELS, HIDDEN))
    p['proj_b'] = zeros(HIDDEN)
    for pre in ('fusion', 'decoder'):
        for n in ('q', 'k', 'v', 'o'):
            p[f'{pre}_w{n}'] = w((HIDDEN, HIDDEN))
            p[f'{pre}_b{n}'] = zeros(HIDDEN)
        p[f'{pre}_w1'] = w((HIDDEN, FF_DIM)); p[f'{pre}_b1'] = zeros(FF_DIM)
        p[f'{pre}_w2'] = w((FF_DIM, HIDDEN)); p[f'{pre}_b2'] = zeros(HIDDEN)
        p[f'{pre}_ln1_g'] = jnp.ones((HIDDEN,), jnp.float32)
        p[f'{pre}_ln1_b'] = zeros(HIDDEN)
        p[f'{pre}_ln2_g'] = jnp.ones((HIDDEN,), jnp.float32)
        p[f'{pre}_ln2_b'] = zeros(HIDDEN)
    p['cls_w0'] = w((HIDDEN, HIDDEN)); p['cls_b0'] = zeros(HIDDEN)
    p['cls_w1'] = w((HIDDEN, HIDDEN)); p['cls_b1'] = zeros(HIDDEN)
    p['cls_w2'] = w((HIDDEN, NUM_CLASSES + 1)); p['cls_b2'] = zeros(NUM_CLASSES + 1)
    p['box_w0'] = w((HIDDEN, HIDDEN)); p['box_b0'] = zeros(HIDDEN)
    p['box_w1'] = w((HIDDEN, HIDDEN)); p['box_b1'] = zeros(HIDDEN)
    p['box_w2'] = w((HIDDEN, 4)); p['box_b2'] = zeros(4)
    return p


def pack_params(p):
    """Pack raw per-layer params into fused weight slabs for the kernels."""
    H = HIDDEN
    nc1 = NUM_CLASSES + 1
    q = {}
    # fused backbone + input_proj
    q['embed_w1'] = p['backbone_w']
    q['embed_b1'] = p['backbone_b'].reshape(1, -1)
    q['embed_w2'] = p['proj_w']
    q['embed_b2'] = p['proj_b'].reshape(1, -1)
    # fused cross-attention blocks
    for pre in ('fusion', 'decoder'):
        q[pre + '_wqkvo'] = jnp.concatenate(
            [p[pre + '_wq'], p[pre + '_wk'], p[pre + '_wv'], p[pre + '_wo']], axis=1)
        q[pre + '_bqkvo'] = jnp.concatenate(
            [p[pre + '_bq'], p[pre + '_bk'], p[pre + '_bv'], p[pre + '_bo']]).reshape(1, -1)
        q[pre + '_w1'] = p[pre + '_w1']
        q[pre + '_b1'] = p[pre + '_b1'].reshape(1, -1)
        q[pre + '_w2'] = p[pre + '_w2']
        q[pre + '_b2'] = p[pre + '_b2'].reshape(1, -1)
        q[pre + '_ln'] = jnp.stack([p[pre + '_ln1_g'], p[pre + '_ln1_b'],
                                    p[pre + '_ln2_g'], p[pre + '_ln2_b']])
    # fused class/bbox heads: two stacked paths (no block-diagonal zeros);
    # final layer padded into disjoint columns of a lane-dense 128-wide slab.
    q['head_w0'] = jnp.stack([p['cls_w0'], p['box_w0']])          # (2, H, H)
    q['head_b0'] = jnp.stack([p['cls_b0'], p['box_b0']]).reshape(2, 1, H)
    q['head_w1'] = jnp.stack([p['cls_w1'], p['box_w1']])          # (2, H, H)
    q['head_b1'] = jnp.stack([p['cls_b1'], p['box_b1']]).reshape(2, 1, H)
    w2 = jnp.zeros((2, H, HEAD_OUT_PAD), jnp.float32)
    w2 = w2.at[0, :, 0:nc1].set(p['cls_w2'])
    w2 = w2.at[1, :, nc1:nc1 + 4].set(p['box_w2'])
    q['head_w2'] = w2
    b2 = jnp.zeros((1, HEAD_OUT_PAD), jnp.float32)
    b2 = b2.at[0, 0:nc1].set(p['cls_b2']).at[0, nc1:nc1 + 4].set(p['box_b2'])
    q['head_b2'] = b2
    return q


# ---------------------------------- main -----------------------------------

if __name__ == "__main__":
    key = jax.random.PRNGKey(0)
    kp, ks, kt = jax.random.split(key, 3)
    params = pack_params(init_params(kp))

    B = 2
    search = jax.random.normal(ks, (B, 3, 32, 32), jnp.float32)      # NCHW
    template = jax.random.normal(kt, (B, 3, 16, 16), jnp.float32)    # NCHW
    search_mask = jnp.zeros((B, 32, 32), jnp.bool_)                  # no padding
    template_mask = jnp.zeros((B, 16, 16), jnp.bool_)

    fwd = jax.jit(transt_forward)
    out = fwd(params, search, search_mask, template, template_mask)
    out = jax.block_until_ready(out)

    Ls = (32 // PATCH) * (32 // PATCH)
    assert out['pred_logits'].shape == (B, Ls, NUM_CLASSES + 1)
    assert out['pred_boxes'].shape == (B, Ls, 4)
    assert bool(jnp.all(jnp.isfinite(out['pred_logits'])))
    assert bool(jnp.all((out['pred_boxes'] >= 0) & (out['pred_boxes'] <= 1)))
    print("KERNEL_OK")
</pallas_src>

<mosaic_0001>
module attributes {stable_mosaic.version = 11 : i64} {
  func.func @_embed_kernel(%arg0: i32, %arg1: memref<40x192xf32, #tpu.memory_space<vmem>>, %arg2: memref<192x128xf32, #tpu.memory_space<vmem>>, %arg3: memref<1x128xf32, #tpu.memory_space<vmem>>, %arg4: memref<128x128xf32, #tpu.memory_space<vmem>>, %arg5: memref<1x128xf32, #tpu.memory_space<vmem>>, %arg6: memref<40x128xf32, #tpu.memory_space<vmem>>) attributes {dimension_semantics = [#tpu.dimension_semantics<arbitrary>], iteration_bounds = array<i64: 1>, scalar_prefetch = 0 : i64, scratch_operands = 0 : i64, tpu.core_type = #tpu.core_type<tc>, window_params = [{pipeline_mode = #tpu.pipeline_mode<synchronous>, transform_indices = @transform_0, window_bounds = array<i64: 40, 192>}, {pipeline_mode = #tpu.pipeline_mode<synchronous>, transform_indices = @transform_1, window_bounds = array<i64: 192, 128>}, {pipeline_mode = #tpu.pipeline_mode<synchronous>, transform_indices = @transform_2, window_bounds = array<i64: 1, 128>}, {pipeline_mode = #tpu.pipeline_mode<synchronous>, transform_indices = @transform_3, window_bounds = array<i64: 128, 128>}, {pipeline_mode = #tpu.pipeline_mode<synchronous>, transform_indices = @transform_4, window_bounds = array<i64: 1, 128>}, {pipeline_mode = #tpu.pipeline_mode<synchronous>, transform_indices = @transform_5, window_bounds = array<i64: 40, 128>}]} {
    %c0 = arith.constant 0 : index
    %c0_0 = arith.constant 0 : index
    %0 = vector.load %arg1[%c0, %c0_0] : memref<40x192xf32, #tpu.memory_space<vmem>>, vector<40x192xf32>
    %c0_1 = arith.constant 0 : index
    %c0_2 = arith.constant 0 : index
    %1 = vector.load %arg2[%c0_1, %c0_2] : memref<192x128xf32, #tpu.memory_space<vmem>>, vector<192x128xf32>
    %cst = arith.constant dense<0.000000e+00> : vector<40x128xf32>
    %2 = tpu.matmul %0, %1, %cst {dimension_numbers = #tpu.dot_dimension_numbers<[1], [0], [0], [1], [0, 0, 1, 1], [], []>} : vector<40x192xf32>, vector<192x128xf32>, vector<40x128xf32> -> vector<40x128xf32>
    %c0_3 = arith.constant 0 : index
    %c0_4 = arith.constant 0 : index
    %3 = vector.load %arg3[%c0_3, %c0_4] : memref<1x128xf32, #tpu.memory_space<vmem>>, vector<1x128xf32>
    %4 = vector.broadcast %3 : vector<1x128xf32> to vector<40x128xf32>
    %5 = arith.addf %2, %4 : vector<40x128xf32>
    %cst_5 = arith.constant 0.000000e+00 : f32
    %6 = vector.broadcast %cst_5 : f32 to vector<40x128xf32>
    %7 = arith.maximumf %5, %6 : vector<40x128xf32>
    %c0_6 = arith.constant 0 : index
    %c0_7 = arith.constant 0 : index
    %8 = vector.load %arg4[%c0_6, %c0_7] : memref<128x128xf32, #tpu.memory_space<vmem>>, vector<128x128xf32>
    %cst_8 = arith.constant dense<0.000000e+00> : vector<40x128xf32>
    %9 = tpu.matmul %7, %8, %cst_8 {dimension_numbers = #tpu.dot_dimension_numbers<[1], [0], [0], [1], [0, 0, 1, 1], [], []>} : vector<40x128xf32>, vector<128x128xf32>, vector<40x128xf32> -> vector<40x128xf32>
    %c0_9 = arith.constant 0 : index
    %c0_10 = arith.constant 0 : index
    %10 = vector.load %arg5[%c0_9, %c0_10] : memref<1x128xf32, #tpu.memory_space<vmem>>, vector<1x128xf32>
    %11 = vector.broadcast %10 : vector<1x128xf32> to vector<40x128xf32>
    %12 = arith.addf %9, %11 : vector<40x128xf32>
    %c0_11 = arith.constant 0 : index
    %c0_12 = arith.constant 0 : index
    %13 = vector.load %arg6[%c0_11, %c0_12] : memref<40x128xf32, #tpu.memory_space<vmem>>, vector<40x128xf32>
    tpu.vector_store %arg6[%c0_11, %c0_12], %12 {strides = array<i32>} : memref<40x128xf32, #tpu.memory_space<vmem>>, vector<40x128xf32>,
    return
  }
  func.func @transform_0(%arg0: i32) -> (i32, i32) {
    %c0_i32 = arith.constant 0 : i32
    %c0_i32_0 = arith.constant 0 : i32
    %c0_i32_1 = arith.constant 0 : i32
    return %c0_i32, %c0_i32_0 : i32, i32
  }
  func.func @transform_1(%arg0: i32) -> (i32, i32) {
    %c0_i32 = arith.constant 0 : i32
    %c0_i32_0 = arith.constant 0 : i32
    %c0_i32_1 = arith.constant 0 : i32
    return %c0_i32, %c0_i32_0 : i32, i32
  }
  func.func @transform_2(%arg0: i32) -> (i32, i32) {
    %c0_i32 = arith.constant 0 : i32
    %c0_i32_0 = arith.constant 0 : i32
    %c0_i32_1 = arith.constant 0 : i32
    return %c0_i32, %c0_i32_0 : i32, i32
  }
  func.func @transform_3(%arg0: i32) -> (i32, i32) {
    %c0_i32 = arith.constant 0 : i32
    %c0_i32_0 = arith.constant 0 : i32
    %c0_i32_1 = arith.constant 0 : i32
    return %c0_i32, %c0_i32_0 : i32, i32
  }
  func.func @transform_4(%arg0: i32) -> (i32, i32) {
    %c0_i32 = arith.constant 0 : i32
    %c0_i32_0 = arith.constant 0 : i32
    %c0_i32_1 = arith.constant 0 : i32
    return %c0_i32, %c0_i32_0 : i32, i32
  }
  func.func @transform_5(%arg0: i32) -> (i32, i32) {
    %c0_i32 = arith.constant 0 : i32
    %c0_i32_0 = arith.constant 0 : i32
    %c0_i32_1 = arith.constant 0 : i32
    return %c0_i32, %c0_i32_0 : i32, i32
  }
}

module attributes {stable_mosaic.version = 11 : i64} {
  func.func @_heads_kernel(%arg0: i32, %arg1: memref<32x128xf32, #tpu.memory_space<vmem>>, %arg2: memref<2x128x128xf32, #tpu.memory_space<vmem>>, %arg3: memref<2x1x128xf32, #tpu.memory_space<vmem>>, %arg4: memref<2x128x128xf32, #tpu.memory_space<vmem>>, %arg5: memref<2x1x128xf32, #tpu.memory_space<vmem>>, %arg6: memref<2x128x128xf32, #tpu.memory_space<vmem>>, %arg7: memref<1x128xf32, #tpu.memory_space<vmem>>, %arg8: memref<32x128xf32, #tpu.memory_space<vmem>>) attributes {dimension_semantics = [#tpu.dimension_semantics<arbitrary>], iteration_bounds = array<i64: 1>, scalar_prefetch = 0 : i64, scratch_operands = 0 : i64, tpu.core_type = #tpu.core_type<tc>, window_params = [{pipeline_mode = #tpu.pipeline_mode<synchronous>, transform_indices = @transform_0, window_bounds = array<i64: 32, 128>}, {pipeline_mode = #tpu.pipeline_mode<synchronous>, transform_indices = @transform_1, window_bounds = array<i64: 2, 128, 128>}, {pipeline_mode = #tpu.pipeline_mode<synchronous>, transform_indices = @transform_2, window_bounds = array<i64: 2, 1, 128>}, {pipeline_mode = #tpu.pipeline_mode<synchronous>, transform_indices = @transform_3, window_bounds = array<i64: 2, 128, 128>}, {pipeline_mode = #tpu.pipeline_mode<synchronous>, transform_indices = @transform_4, window_bounds = array<i64: 2, 1, 128>}, {pipeline_mode = #tpu.pipeline_mode<synchronous>, transform_indices = @transform_5, window_bounds = array<i64: 2, 128, 128>}, {pipeline_mode = #tpu.pipeline_mode<synchronous>, transform_indices = @transform_6, window_bounds = array<i64: 1, 128>}, {pipeline_mode = #tpu.pipeline_mode<synchronous>, transform_indices = @transform_7, window_bounds = array<i64: 32, 128>}]} {
    %c0 = arith.constant 0 : index
    %c0_0 = arith.constant 0 : index
    %0 = vector.load %arg1[%c0, %c0_0] : memref<32x128xf32, #tpu.memory_space<vmem>>, vector<32x128xf32>
    %c0_1 = arith.constant 0 : index
    %c0_2 = arith.constant 0 : index
    %c0_3 = arith.constant 0 : index
    %1 = vector.load %arg2[%c0_1, %c0_2, %c0_3] : memref<2x128x128xf32, #tpu.memory_space<vmem>>, vector<1x128x128xf32>
    %2 = vector.shape_cast %1 : vector<1x128x128xf32> to vector<128x128xf32>
    %cst = arith.constant dense<0.000000e+00> : vector<32x128xf32>
    %3 = tpu.matmul %0, %2, %cst {dimension_numbers = #tpu.dot_dimension_numbers<[1], [0], [0], [1], [0, 0, 1, 1], [], []>} : vector<32x128xf32>, vector<128x128xf32>, vector<32x128xf32> -> vector<32x128xf32>
    %c0_4 = arith.constant 0 : index
    %c0_5 = arith.constant 0 : index
    %c0_6 = arith.constant 0 : index
    %4 = vector.load %arg3[%c0_4, %c0_5, %c0_6] : memref<2x1x128xf32, #tpu.memory_space<vmem>>, vector<1x1x128xf32>
    %5 = vector.shape_cast %4 : vector<1x1x128xf32> to vector<1x128xf32>
    %6 = vector.broadcast %5 : vector<1x128xf32> to vector<32x128xf32>
    %7 = arith.addf %3, %6 : vector<32x128xf32>
    %cst_7 = arith.constant 0.000000e+00 : f32
    %8 = vector.broadcast %cst_7 : f32 to vector<32x128xf32>
    %9 = arith.maximumf %7, %8 : vector<32x128xf32>
    %c0_8 = arith.constant 0 : index
    %c0_9 = arith.constant 0 : index
    %c0_10 = arith.constant 0 : index
    %10 = vector.load %arg4[%c0_8, %c0_9, %c0_10] : memref<2x128x128xf32, #tpu.memory_space<vmem>>, vector<1x128x128xf32>
    %11 = vector.shape_cast %10 : vector<1x128x128xf32> to vector<128x128xf32>
    %cst_11 = arith.constant dense<0.000000e+00> : vector<32x128xf32>
    %12 = tpu.matmul %9, %11, %cst_11 {dimension_numbers = #tpu.dot_dimension_numbers<[1], [0], [0], [1], [0, 0, 1, 1], [], []>} : vector<32x128xf32>, vector<128x128xf32>, vector<32x128xf32> -> vector<32x128xf32>
    %c0_12 = arith.constant 0 : index
    %c0_13 = arith.constant 0 : index
    %c0_14 = arith.constant 0 : index
    %13 = vector.load %arg5[%c0_12, %c0_13, %c0_14] : memref<2x1x128xf32, #tpu.memory_space<vmem>>, vector<1x1x128xf32>
    %14 = vector.shape_cast %13 : vector<1x1x128xf32> to vector<1x128xf32>
    %15 = vector.broadcast %14 : vector<1x128xf32> to vector<32x128xf32>
    %16 = arith.addf %12, %15 : vector<32x128xf32>
    %cst_15 = arith.constant 0.000000e+00 : f32
    %17 = vector.broadcast %cst_15 : f32 to vector<32x128xf32>
    %18 = arith.maximumf %16, %17 : vector<32x128xf32>
    %c0_16 = arith.constant 0 : index
    %c0_17 = arith.constant 0 : index
    %c0_18 = arith.constant 0 : index
    %19 = vector.load %arg6[%c0_16, %c0_17, %c0_18] : memref<2x128x128xf32, #tpu.memory_space<vmem>>, vector<1x128x128xf32>
    %20 = vector.shape_cast %19 : vector<1x128x128xf32> to vector<128x128xf32>
    %cst_19 = arith.constant dense<0.000000e+00> : vector<32x128xf32>
    %21 = tpu.matmul %18, %20, %cst_19 {dimension_numbers = #tpu.dot_dimension_numbers<[1], [0], [0], [1], [0, 0, 1, 1], [], []>} : vector<32x128xf32>, vector<128x128xf32>, vector<32x128xf32> -> vector<32x128xf32>
    %c1 = arith.constant 1 : index
    %c0_20 = arith.constant 0 : index
    %c0_21 = arith.constant 0 : index
    %22 = vector.load %arg2[%c1, %c0_20, %c0_21] : memref<2x128x128xf32, #tpu.memory_space<vmem>>, vector<1x128x128xf32>
    %23 = vector.shape_cast %22 : vector<1x128x128xf32> to vector<128x128xf32>
    %cst_22 = arith.constant dense<0.000000e+00> : vector<32x128xf32>
    %24 = tpu.matmul %0, %23, %cst_22 {dimension_numbers = #tpu.dot_dimension_numbers<[1], [0], [0], [1], [0, 0, 1, 1], [], []>} : vector<32x128xf32>, vector<128x128xf32>, vector<32x128xf32> -> vector<32x128xf32>
    %c1_23 = arith.constant 1 : index
    %c0_24 = arith.constant 0 : index
    %c0_25 = arith.constant 0 : index
    %25 = vector.load %arg3[%c1_23, %c0_24, %c0_25] : memref<2x1x128xf32, #tpu.memory_space<vmem>>, vector<1x1x128xf32>
    %26 = vector.shape_cast %25 : vector<1x1x128xf32> to vector<1x128xf32>
    %27 = vector.broadcast %26 : vector<1x128xf32> to vector<32x128xf32>
    %28 = arith.addf %24, %27 : vector<32x128xf32>
    %cst_26 = arith.constant 0.000000e+00 : f32
    %29 = vector.broadcast %cst_26 : f32 to vector<32x128xf32>
    %30 = arith.maximumf %28, %29 : vector<32x128xf32>
    %c1_27 = arith.constant 1 : index
    %c0_28 = arith.constant 0 : index
    %c0_29 = arith.constant 0 : index
    %31 = vector.load %arg4[%c1_27, %c0_28, %c0_29] : memref<2x128x128xf32, #tpu.memory_space<vmem>>, vector<1x128x128xf32>
    %32 = vector.shape_cast %31 : vector<1x128x128xf32> to vector<128x128xf32>
    %cst_30 = arith.constant dense<0.000000e+00> : vector<32x128xf32>
    %33 = tpu.matmul %30, %32, %cst_30 {dimension_numbers = #tpu.dot_dimension_numbers<[1], [0], [0], [1], [0, 0, 1, 1], [], []>} : vector<32x128xf32>, vector<128x128xf32>, vector<32x128xf32> -> vector<32x128xf32>
    %c1_31 = arith.constant 1 : index
    %c0_32 = arith.constant 0 : index
    %c0_33 = arith.constant 0 : index
    %34 = vector.load %arg5[%c1_31, %c0_32, %c0_33] : memref<2x1x128xf32, #tpu.memory_space<vmem>>, vector<1x1x128xf32>
    %35 = vector.shape_cast %34 : vector<1x1x128xf32> to vector<1x128xf32>
    %36 = vector.broadcast %35 : vector<1x128xf32> to vector<32x128xf32>
    %37 = arith.addf %33, %36 : vector<32x128xf32>
    %cst_34 = arith.constant 0.000000e+00 : f32
    %38 = vector.broadcast %cst_34 : f32 to vector<32x128xf32>
    %39 = arith.maximumf %37, %38 : vector<32x128xf32>
    %c1_35 = arith.constant 1 : index
    %c0_36 = arith.constant 0 : index
    %c0_37 = arith.constant 0 : index
    %40 = vector.load %arg6[%c1_35, %c0_36, %c0_37] : memref<2x128x128xf32, #tpu.memory_space<vmem>>, vector<1x128x128xf32>
    %41 = vector.shape_cast %40 : vector<1x128x128xf32> to vector<128x128xf32>
    %cst_38 = arith.constant dense<0.000000e+00> : vector<32x128xf32>
    %42 = tpu.matmul %39, %41, %cst_38 {dimension_numbers = #tpu.dot_dimension_numbers<[1], [0], [0], [1], [0, 0, 1, 1], [], []>} : vector<32x128xf32>, vector<128x128xf32>, vector<32x128xf32> -> vector<32x128xf32>
    %43 = arith.addf %21, %42 : vector<32x128xf32>
    %c0_39 = arith.constant 0 : index
    %c0_40 = arith.constant 0 : index
    %44 = vector.load %arg7[%c0_39, %c0_40] : memref<1x128xf32, #tpu.memory_space<vmem>>, vector<1x128xf32>
    %45 = vector.broadcast %44 : vector<1x128xf32> to vector<32x128xf32>
    %46 = arith.addf %43, %45 : vector<32x128xf32>
    %47 = tpu.iota {dimensions = array<i32: 1>} : vector<32x128xi32>
    %c2_i32 = arith.constant 2 : i32
    %48 = vector.broadcast %c2_i32 : i32 to vector<32x128xi32>
    %49 = arith.cmpi sge, %47, %48 : vector<32x128xi32>
    %c6_i32 = arith.constant 6 : i32
    %50 = vector.broadcast %c6_i32 : i32 to vector<32x128xi32>
    %51 = arith.cmpi slt, %47, %50 : vector<32x128xi32>
    %52 = arith.andi %49, %51 : vector<32x128xi1>
    %53 = arith.negf %46 : vector<32x128xf32>
    %54 = math.exp %53 : vector<32x128xf32>
    %cst_41 = arith.constant 1.000000e+00 : f32
    %55 = vector.broadcast %cst_41 : f32 to vector<32x128xf32>
    %56 = arith.addf %55, %54 : vector<32x128xf32>
    %57 = arith.divf %55, %56 : vector<32x128xf32>
    %58 = arith.select %52, %57, %46 : vector<32x128xi1>, vector<32x128xf32>
    %c0_42 = arith.constant 0 : index
    %c0_43 = arith.constant 0 : index
    %59 = vector.load %arg8[%c0_42, %c0_43] : memref<32x128xf32, #tpu.memory_space<vmem>>, vector<32x128xf32>
    tpu.vector_store %arg8[%c0_42, %c0_43], %58 {strides = array<i32>} : memref<32x128xf32, #tpu.memory_space<vmem>>, vector<32x128xf32>,
    return
  }
  func.func @transform_0(%arg0: i32) -> (i32, i32) {
    %c0_i32 = arith.constant 0 : i32
    %c0_i32_0 = arith.constant 0 : i32
    %c0_i32_1 = arith.constant 0 : i32
    return %c0_i32, %c0_i32_0 : i32, i32
  }
  func.func @transform_1(%arg0: i32) -> (i32, i32, i32) {
    %c0_i32 = arith.constant 0 : i32
    %c0_i32_0 = arith.constant 0 : i32
    %c0_i32_1 = arith.constant 0 : i32
    %c0_i32_2 = arith.constant 0 : i32
    return %c0_i32, %c0_i32_0, %c0_i32_1 : i32, i32, i32
  }
  func.func @transform_2(%arg0: i32) -> (i32, i32, i32) {
    %c0_i32 = arith.constant 0 : i32
    %c0_i32_0 = arith.constant 0 : i32
    %c0_i32_1 = arith.constant 0 : i32
    %c0_i32_2 = arith.constant 0 : i32
    return %c0_i32, %c0_i32_0, %c0_i32_1 : i32, i32, i32
  }
  func.func @transform_3(%arg0: i32) -> (i32, i32, i32) {
    %c0_i32 = arith.constant 0 : i32
    %c0_i32_0 = arith.constant 0 : i32
    %c0_i32_1 = arith.constant 0 : i32
    %c0_i32_2 = arith.constant 0 : i32
    return %c0_i32, %c0_i32_0, %c0_i32_1 : i32, i32, i32
  }
  func.func @transform_4(%arg0: i32) -> (i32, i32, i32) {
    %c0_i32 = arith.constant 0 : i32
    %c0_i32_0 = arith.constant 0 : i32
    %c0_i32_1 = arith.constant 0 : i32
    %c0_i32_2 = arith.constant 0 : i32
    return %c0_i32, %c0_i32_0, %c0_i32_1 : i32, i32, i32
  }
  func.func @transform_5(%arg0: i32) -> (i32, i32, i32) {
    %c0_i32 = arith.constant 0 : i32
    %c0_i32_0 = arith.constant 0 : i32
    %c0_i32_1 = arith.constant 0 : i32
    %c0_i32_2 = arith.constant 0 : i32
    return %c0_i32, %c0_i32_0, %c0_i32_1 : i32, i32, i32
  }
  func.func @transform_6(%arg0: i32) -> (i32, i32) {
    %c0_i32 = arith.constant 0 : i32
    %c0_i32_0 = arith.constant 0 : i32
    %c0_i32_1 = arith.constant 0 : i32
    return %c0_i32, %c0_i32_0 : i32, i32
  }
  func.func @transform_7(%arg0: i32) -> (i32, i32) {
    %c0_i32 = arith.constant 0 : i32
    %c0_i32_0 = arith.constant 0 : i32
    %c0_i32_1 = arith.constant 0 : i32
    return %c0_i32, %c0_i32_0 : i32, i32
  }
}

module attributes {stable_mosaic.version = 11 : i64} {
  func.func @_fusion_block_kernel(%arg0: i32, %arg1: memref<2x16x128xf32, #tpu.memory_space<vmem>>, %arg2: memref<2x16x128xf32, #tpu.memory_space<vmem>>, %arg3: memref<2x4x128xf32, #tpu.memory_space<vmem>>, %arg4: memref<2x4x128xf32, #tpu.memory_space<vmem>>, %arg5: memref<2x1x4xf32, #tpu.memory_space<vmem>>, %arg6: memref<128x512xf32, #tpu.memory_space<vmem>>, %arg7: memref<1x512xf32, #tpu.memory_space<vmem>>, %arg8: memref<128x256xf32, #tpu.memory_space<vmem>>, %arg9: memref<1x256xf32, #tpu.memory_space<vmem>>, %arg10: memref<256x128xf32, #tpu.memory_space<vmem>>, %arg11: memref<1x128xf32, #tpu.memory_space<vmem>>, %arg12: memref<4x128xf32, #tpu.memory_space<vmem>>, %arg13: memref<2x16x128xf32, #tpu.memory_space<vmem>>) attributes {dimension_semantics = [#tpu.dimension_semantics<arbitrary>], iteration_bounds = array<i64: 1>, scalar_prefetch = 0 : i64, scratch_operands = 0 : i64, tpu.core_type = #tpu.core_type<tc>, window_params = [{transform_indices = @transform_0, window_bounds = array<i64: 2, 16, 128>}, {transform_indices = @transform_1, window_bounds = array<i64: 2, 16, 128>}, {transform_indices = @transform_2, window_bounds = array<i64: 2, 4, 128>}, {transform_indices = @transform_3, window_bounds = array<i64: 2, 4, 128>}, {transform_indices = @transform_4, window_bounds = array<i64: 2, 1, 4>}, {pipeline_mode = #tpu.pipeline_mode<synchronous>, transform_indices = @transform_5, window_bounds = array<i64: 128, 512>}, {pipeline_mode = #tpu.pipeline_mode<synchronous>, transform_indices = @transform_6, window_bounds = array<i64: 1, 512>}, {pipeline_mode = #tpu.pipeline_mode<synchronous>, transform_indices = @transform_7, window_bounds = array<i64: 128, 256>}, {pipeline_mode = #tpu.pipeline_mode<synchronous>, transform_indices = @transform_8, window_bounds = array<i64: 1, 256>}, {pipeline_mode = #tpu.pipeline_mode<synchronous>, transform_indices = @transform_9, window_bounds = array<i64: 256, 128>}, {pipeline_mode = #tpu.pipeline_mode<synchronous>, transform_indices = @transform_10, window_bounds = array<i64: 1, 128>}, {pipeline_mode = #tpu.pipeline_mode<synchronous>, transform_indices = @transform_11, window_bounds = array<i64: 4, 128>}, {transform_indices = @transform_12, window_bounds = array<i64: 2, 16, 128>}]} {
    %c0 = arith.constant 0 : index
    %c384 = arith.constant 384 : index
    %0 = vector.load %arg7[%c0, %c384] : memref<1x512xf32, #tpu.memory_space<vmem>>, vector<1x128xf32>
    %c0_0 = arith.constant 0 : index
    %c0_1 = arith.constant 0 : index
    %c0_2 = arith.constant 0 : index
    %1 = vector.load %arg1[%c0_0, %c0_1, %c0_2] : memref<2x16x128xf32, #tpu.memory_space<vmem>>, vector<1x16x128xf32>
    %2 = vector.shape_cast %1 : vector<1x16x128xf32> to vector<16x128xf32>
    %c0_3 = arith.constant 0 : index
    %c0_4 = arith.constant 0 : index
    %c0_5 = arith.constant 0 : index
    %3 = vector.load %arg2[%c0_3, %c0_4, %c0_5] : memref<2x16x128xf32, #tpu.memory_space<vmem>>, vector<1x16x128xf32>
    %4 = vector.shape_cast %3 : vector<1x16x128xf32> to vector<16x128xf32>
    %5 = arith.addf %2, %4 : vector<16x128xf32>
    %c0_6 = arith.constant 0 : index
    %c0_7 = arith.constant 0 : index
    %c0_8 = arith.constant 0 : index
    %6 = vector.load %arg3[%c0_6, %c0_7, %c0_8] : memref<2x4x128xf32, #tpu.memory_space<vmem>>, vector<1x4x128xf32>
    %7 = vector.shape_cast %6 : vector<1x4x128xf32> to vector<4x128xf32>
    %c0_9 = arith.constant 0 : index
    %c0_10 = arith.constant 0 : index
    %c0_11 = arith.constant 0 : index
    %8 = vector.load %arg4[%c0_9, %c0_10, %c0_11] : memref<2x4x128xf32, #tpu.memory_space<vmem>>, vector<1x4x128xf32>
    %9 = vector.shape_cast %8 : vector<1x4x128xf32> to vector<4x128xf32>
    %10 = arith.addf %7, %9 : vector<4x128xf32>
    %c0_12 = arith.constant 0 : index
    %c0_13 = arith.constant 0 : index
    %c0_14 = arith.constant 0 : index
    %11 = vector.load %arg3[%c0_12, %c0_13, %c0_14] : memref<2x4x128xf32, #tpu.memory_space<vmem>>, vector<1x4x128xf32>
    %12 = vector.shape_cast %11 : vector<1x4x128xf32> to vector<4x128xf32>
    %c0_15 = arith.constant 0 : index
    %c0_16 = arith.constant 0 : index
    %c0_17 = arith.constant 0 : index
    %13 = vector.load %arg5[%c0_15, %c0_16, %c0_17] : memref<2x1x4xf32, #tpu.memory_space<vmem>>, vector<1x1x4xf32>
    %14 = vector.shape_cast %13 : vector<1x1x4xf32> to vector<1x4xf32>
    %cst = arith.constant -1.000000e+09 : f32
    %15 = vector.broadcast %cst : f32 to vector<1x4xf32>
    %16 = arith.mulf %14, %15 : vector<1x4xf32>
    %c0_18 = arith.constant 0 : index
    %c0_19 = arith.constant 0 : index
    %17 = vector.load %arg6[%c0_18, %c0_19] : memref<128x512xf32, #tpu.memory_space<vmem>>, vector<128x32xf32>
    %c0_20 = arith.constant 0 : index
    %c128 = arith.constant 128 : index
    %18 = vector.load %arg6[%c0_20, %c128] : memref<128x512xf32, #tpu.memory_space<vmem>>, vector<128x32xf32>
    %c0_21 = arith.constant 0 : index
    %c256 = arith.constant 256 : index
    %19 = vector.load %arg6[%c0_21, %c256] : memref<128x512xf32, #tpu.memory_space<vmem>>, vector<128x32xf32>
    %c0_22 = arith.constant 0 : index
    %c384_23 = arith.constant 384 : index
    %20 = vector.load %arg6[%c0_22, %c384_23] : memref<128x512xf32, #tpu.memory_space<vmem>>, vector<32x128xf32>
    %c0_24 = arith.constant 0 : index
    %c0_25 = arith.constant 0 : index
    %21 = vector.load %arg7[%c0_24, %c0_25] : memref<1x512xf32, #tpu.memory_space<vmem>>, vector<1x32xf32>
    %c0_26 = arith.constant 0 : index
    %c128_27 = arith.constant 128 : index
    %22 = vector.load %arg7[%c0_26, %c128_27] : memref<1x512xf32, #tpu.memory_space<vmem>>, vector<1x32xf32>
    %c0_28 = arith.constant 0 : index
    %c256_29 = arith.constant 256 : index
    %23 = vector.load %arg7[%c0_28, %c256_29] : memref<1x512xf32, #tpu.memory_space<vmem>>, vector<1x32xf32>
    %cst_30 = arith.constant dense<0.000000e+00> : vector<16x32xf32>
    %24 = tpu.matmul %5, %17, %cst_30 {dimension_numbers = #tpu.dot_dimension_numbers<[1], [0], [0], [1], [0, 0, 1, 1], [], []>} : vector<16x128xf32>, vector<128x32xf32>, vector<16x32xf32> -> vector<16x32xf32>
    %25 = vector.broadcast %21 : vector<1x32xf32> to vector<16x32xf32>
    %26 = arith.addf %24, %25 : vector<16x32xf32>
    %cst_31 = arith.constant dense<0.000000e+00> : vector<4x32xf32>
    %27 = tpu.matmul %10, %18, %cst_31 {dimension_numbers = #tpu.dot_dimension_numbers<[1], [0], [0], [1], [0, 0, 1, 1], [], []>} : vector<4x128xf32>, vector<128x32xf32>, vector<4x32xf32> -> vector<4x32xf32>
    %28 = vector.broadcast %22 : vector<1x32xf32> to vector<4x32xf32>
    %29 = arith.addf %27, %28 : vector<4x32xf32>
    %cst_32 = arith.constant dense<0.000000e+00> : vector<4x32xf32>
    %30 = tpu.matmul %12, %19, %cst_32 {dimension_numbers = #tpu.dot_dimension_numbers<[1], [0], [0], [1], [0, 0, 1, 1], [], []>} : vector<4x128xf32>, vector<128x32xf32>, vector<4x32xf32> -> vector<4x32xf32>
    %31 = vector.broadcast %23 : vector<1x32xf32> to vector<4x32xf32>
    %32 = arith.addf %30, %31 : vector<4x32xf32>
    %cst_33 = arith.constant dense<0.000000e+00> : vector<16x4xf32>
    %33 = tpu.matmul %26, %29, %cst_33 {dimension_numbers = #tpu.dot_dimension_numbers<[1], [1], [0], [0], [0, 0, 1, 0], [], []>} : vector<16x32xf32>, vector<4x32xf32>, vector<16x4xf32> -> vector<16x4xf32>
    %cst_34 = arith.constant 0.176776692 : f32
    %34 = vector.broadcast %cst_34 : f32 to vector<16x4xf32>
    %35 = arith.mulf %33, %34 : vector<16x4xf32>
    %36 = vector.broadcast %16 : vector<1x4xf32> to vector<16x4xf32>
    %37 = arith.addf %35, %36 : vector<16x4xf32>
    %cst_35 = arith.constant dense<0xFF800000> : vector<16xf32>
    %38 = vector.multi_reduction <maximumf>, %37, %cst_35 [1] : vector<16x4xf32> to vector<16xf32>
    %39 = vector.shape_cast %38 : vector<16xf32> to vector<16x1xf32>
    %40 = vector.broadcast %39 : vector<16x1xf32> to vector<16x4xf32>
    %41 = arith.subf %37, %40 : vector<16x4xf32>
    %42 = math.exp %41 : vector<16x4xf32>
    %cst_36 = arith.constant dense<0.000000e+00> : vector<16xf32>
    %43 = vector.multi_reduction <add>, %42, %cst_36 [1] : vector<16x4xf32> to vector<16xf32>
    %44 = vector.shape_cast %43 : vector<16xf32> to vector<16x1xf32>
    %45 = tpu.reciprocal %44 {approx = true} : vector<16x1xf32> -> vector<16x1xf32>
    %46 = vector.broadcast %45 : vector<16x1xf32> to vector<16x4xf32>
    %47 = arith.mulf %42, %46 : vector<16x4xf32>
    %cst_37 = arith.constant dense<0.000000e+00> : vector<16x32xf32>
    %48 = tpu.matmul %47, %32, %cst_37 {dimension_numbers = #tpu.dot_dimension_numbers<[1], [0], [0], [1], [0, 0, 1, 1], [], []>} : vector<16x4xf32>, vector<4x32xf32>, vector<16x32xf32> -> vector<16x32xf32>
    %cst_38 = arith.constant dense<0.000000e+00> : vector<16x128xf32>
    %49 = tpu.matmul %48, %20, %cst_38 {dimension_numbers = #tpu.dot_dimension_numbers<[1], [0], [0], [1], [0, 0, 1, 1], [], []>} : vector<16x32xf32>, vector<32x128xf32>, vector<16x128xf32> -> vector<16x128xf32>
    %c0_39 = arith.constant 0 : index
    %c32 = arith.constant 32 : index
    %50 = vector.load %arg6[%c0_39, %c32] : memref<128x512xf32, #tpu.memory_space<vmem>>, vector<128x32xf32>
    %c0_40 = arith.constant 0 : index
    %c160 = arith.constant 160 : index
    %51 = vector.load %arg6[%c0_40, %c160] : memref<128x512xf32, #tpu.memory_space<vmem>>, vector<128x32xf32>
    %c0_41 = arith.constant 0 : index
    %c288 = arith.constant 288 : index
    %52 = vector.load %arg6[%c0_41, %c288] : memref<128x512xf32, #tpu.memory_space<vmem>>, vector<128x32xf32>
    %c32_42 = arith.constant 32 : index
    %c384_43 = arith.constant 384 : index
    %53 = vector.load %arg6[%c32_42, %c384_43] : memref<128x512xf32, #tpu.memory_space<vmem>>, vector<32x128xf32>
    %c0_44 = arith.constant 0 : index
    %c32_45 = arith.constant 32 : index
    %54 = vector.load %arg7[%c0_44, %c32_45] : memref<1x512xf32, #tpu.memory_space<vmem>>, vector<1x32xf32>
    %c0_46 = arith.constant 0 : index
    %c160_47 = arith.constant 160 : index
    %55 = vector.load %arg7[%c0_46, %c160_47] : memref<1x512xf32, #tpu.memory_space<vmem>>, vector<1x32xf32>
    %c0_48 = arith.constant 0 : index
    %c288_49 = arith.constant 288 : index
    %56 = vector.load %arg7[%c0_48, %c288_49] : memref<1x512xf32, #tpu.memory_space<vmem>>, vector<1x32xf32>
    %cst_50 = arith.constant dense<0.000000e+00> : vector<16x32xf32>
    %57 = tpu.matmul %5, %50, %cst_50 {dimension_numbers = #tpu.dot_dimension_numbers<[1], [0], [0], [1], [0, 0, 1, 1], [], []>} : vector<16x128xf32>, vector<128x32xf32>, vector<16x32xf32> -> vector<16x32xf32>
    %58 = vector.broadcast %54 : vector<1x32xf32> to vector<16x32xf32>
    %59 = arith.addf %57, %58 : vector<16x32xf32>
    %cst_51 = arith.constant dense<0.000000e+00> : vector<4x32xf32>
    %60 = tpu.matmul %10, %51, %cst_51 {dimension_numbers = #tpu.dot_dimension_numbers<[1], [0], [0], [1], [0, 0, 1, 1], [], []>} : vector<4x128xf32>, vector<128x32xf32>, vector<4x32xf32> -> vector<4x32xf32>
    %61 = vector.broadcast %55 : vector<1x32xf32> to vector<4x32xf32>
    %62 = arith.addf %60, %61 : vector<4x32xf32>
    %cst_52 = arith.constant dense<0.000000e+00> : vector<4x32xf32>
    %63 = tpu.matmul %12, %52, %cst_52 {dimension_numbers = #tpu.dot_dimension_numbers<[1], [0], [0], [1], [0, 0, 1, 1], [], []>} : vector<4x128xf32>, vector<128x32xf32>, vector<4x32xf32> -> vector<4x32xf32>
    %64 = vector.broadcast %56 : vector<1x32xf32> to vector<4x32xf32>
    %65 = arith.addf %63, %64 : vector<4x32xf32>
    %cst_53 = arith.constant dense<0.000000e+00> : vector<16x4xf32>
    %66 = tpu.matmul %59, %62, %cst_53 {dimension_numbers = #tpu.dot_dimension_numbers<[1], [1], [0], [0], [0, 0, 1, 0], [], []>} : vector<16x32xf32>, vector<4x32xf32>, vector<16x4xf32> -> vector<16x4xf32>
    %cst_54 = arith.constant 0.176776692 : f32
    %67 = vector.broadcast %cst_54 : f32 to vector<16x4xf32>
    %68 = arith.mulf %66, %67 : vector<16x4xf32>
    %69 = vector.broadcast %16 : vector<1x4xf32> to vector<16x4xf32>
    %70 = arith.addf %68, %69 : vector<16x4xf32>
    %cst_55 = arith.constant dense<0xFF800000> : vector<16xf32>
    %71 = vector.multi_reduction <maximumf>, %70, %cst_55 [1] : vector<16x4xf32> to vector<16xf32>
    %72 = vector.shape_cast %71 : vector<16xf32> to vector<16x1xf32>
    %73 = vector.broadcast %72 : vector<16x1xf32> to vector<16x4xf32>
    %74 = arith.subf %70, %73 : vector<16x4xf32>
    %75 = math.exp %74 : vector<16x4xf32>
    %cst_56 = arith.constant dense<0.000000e+00> : vector<16xf32>
    %76 = vector.multi_reduction <add>, %75, %cst_56 [1] : vector<16x4xf32> to vector<16xf32>
    %77 = vector.shape_cast %76 : vector<16xf32> to vector<16x1xf32>
    %78 = tpu.reciprocal %77 {approx = true} : vector<16x1xf32> -> vector<16x1xf32>
    %79 = vector.broadcast %78 : vector<16x1xf32> to vector<16x4xf32>
    %80 = arith.mulf %75, %79 : vector<16x4xf32>
    %cst_57 = arith.constant dense<0.000000e+00> : vector<16x32xf32>
    %81 = tpu.matmul %80, %65, %cst_57 {dimension_numbers = #tpu.dot_dimension_numbers<[1], [0], [0], [1], [0, 0, 1, 1], [], []>} : vector<16x4xf32>, vector<4x32xf32>, vector<16x32xf32> -> vector<16x32xf32>
    %cst_58 = arith.constant dense<0.000000e+00> : vector<16x128xf32>
    %82 = tpu.matmul %81, %53, %cst_58 {dimension_numbers = #tpu.dot_dimension_numbers<[1], [0], [0], [1], [0, 0, 1, 1], [], []>} : vector<16x32xf32>, vector<32x128xf32>, vector<16x128xf32> -> vector<16x128xf32>
    %83 = arith.addf %49, %82 : vector<16x128xf32>
    %c0_59 = arith.constant 0 : index
    %c64 = arith.constant 64 : index
    %84 = vector.load %arg6[%c0_59, %c64] : memref<128x512xf32, #tpu.memory_space<vmem>>, vector<128x32xf32>
    %c0_60 = arith.constant 0 : index
    %c192 = arith.constant 192 : index
    %85 = vector.load %arg6[%c0_60, %c192] : memref<128x512xf32, #tpu.memory_space<vmem>>, vector<128x32xf32>
    %c0_61 = arith.constant 0 : index
    %c320 = arith.constant 320 : index
    %86 = vector.load %arg6[%c0_61, %c320] : memref<128x512xf32, #tpu.memory_space<vmem>>, vector<128x32xf32>
    %c64_62 = arith.constant 64 : index
    %c384_63 = arith.constant 384 : index
    %87 = vector.load %arg6[%c64_62, %c384_63] : memref<128x512xf32, #tpu.memory_space<vmem>>, vector<32x128xf32>
    %c0_64 = arith.constant 0 : index
    %c64_65 = arith.constant 64 : index
    %88 = vector.load %arg7[%c0_64, %c64_65] : memref<1x512xf32, #tpu.memory_space<vmem>>, vector<1x32xf32>
    %c0_66 = arith.constant 0 : index
    %c192_67 = arith.constant 192 : index
    %89 = vector.load %arg7[%c0_66, %c192_67] : memref<1x512xf32, #tpu.memory_space<vmem>>, vector<1x32xf32>
    %c0_68 = arith.constant 0 : index
    %c320_69 = arith.constant 320 : index
    %90 = vector.load %arg7[%c0_68, %c320_69] : memref<1x512xf32, #tpu.memory_space<vmem>>, vector<1x32xf32>
    %cst_70 = arith.constant dense<0.000000e+00> : vector<16x32xf32>
    %91 = tpu.matmul %5, %84, %cst_70 {dimension_numbers = #tpu.dot_dimension_numbers<[1], [0], [0], [1], [0, 0, 1, 1], [], []>} : vector<16x128xf32>, vector<128x32xf32>, vector<16x32xf32> -> vector<16x32xf32>
    %92 = vector.broadcast %88 : vector<1x32xf32> to vector<16x32xf32>
    %93 = arith.addf %91, %92 : vector<16x32xf32>
    %cst_71 = arith.constant dense<0.000000e+00> : vector<4x32xf32>
    %94 = tpu.matmul %10, %85, %cst_71 {dimension_numbers = #tpu.dot_dimension_numbers<[1], [0], [0], [1], [0, 0, 1, 1], [], []>} : vector<4x128xf32>, vector<128x32xf32>, vector<4x32xf32> -> vector<4x32xf32>
    %95 = vector.broadcast %89 : vector<1x32xf32> to vector<4x32xf32>
    %96 = arith.addf %94, %95 : vector<4x32xf32>
    %cst_72 = arith.constant dense<0.000000e+00> : vector<4x32xf32>
    %97 = tpu.matmul %12, %86, %cst_72 {dimension_numbers = #tpu.dot_dimension_numbers<[1], [0], [0], [1], [0, 0, 1, 1], [], []>} : vector<4x128xf32>, vector<128x32xf32>, vector<4x32xf32> -> vector<4x32xf32>
    %98 = vector.broadcast %90 : vector<1x32xf32> to vector<4x32xf32>
    %99 = arith.addf %97, %98 : vector<4x32xf32>
    %cst_73 = arith.constant dense<0.000000e+00> : vector<16x4xf32>
    %100 = tpu.matmul %93, %96, %cst_73 {dimension_numbers = #tpu.dot_dimension_numbers<[1], [1], [0], [0], [0, 0, 1, 0], [], []>} : vector<16x32xf32>, vector<4x32xf32>, vector<16x4xf32> -> vector<16x4xf32>
    %cst_74 = arith.constant 0.176776692 : f32
    %101 = vector.broadcast %cst_74 : f32 to vector<16x4xf32>
    %102 = arith.mulf %100, %101 : vector<16x4xf32>
    %103 = vector.broadcast %16 : vector<1x4xf32> to vector<16x4xf32>
    %104 = arith.addf %102, %103 : vector<16x4xf32>
    %cst_75 = arith.constant dense<0xFF800000> : vector<16xf32>
    %105 = vector.multi_reduction <maximumf>, %104, %cst_75 [1] : vector<16x4xf32> to vector<16xf32>
    %106 = vector.shape_cast %105 : vector<16xf32> to vector<16x1xf32>
    %107 = vector.broadcast %106 : vector<16x1xf32> to vector<16x4xf32>
    %108 = arith.subf %104, %107 : vector<16x4xf32>
    %109 = math.exp %108 : vector<16x4xf32>
    %cst_76 = arith.constant dense<0.000000e+00> : vector<16xf32>
    %110 = vector.multi_reduction <add>, %109, %cst_76 [1] : vector<16x4xf32> to vector<16xf32>
    %111 = vector.shape_cast %110 : vector<16xf32> to vector<16x1xf32>
    %112 = tpu.reciprocal %111 {approx = true} : vector<16x1xf32> -> vector<16x1xf32>
    %113 = vector.broadcast %112 : vector<16x1xf32> to vector<16x4xf32>
    %114 = arith.mulf %109, %113 : vector<16x4xf32>
    %cst_77 = arith.constant dense<0.000000e+00> : vector<16x32xf32>
    %115 = tpu.matmul %114, %99, %cst_77 {dimension_numbers = #tpu.dot_dimension_numbers<[1], [0], [0], [1], [0, 0, 1, 1], [], []>} : vector<16x4xf32>, vector<4x32xf32>, vector<16x32xf32> -> vector<16x32xf32>
    %cst_78 = arith.constant dense<0.000000e+00> : vector<16x128xf32>
    %116 = tpu.matmul %115, %87, %cst_78 {dimension_numbers = #tpu.dot_dimension_numbers<[1], [0], [0], [1], [0, 0, 1, 1], [], []>} : vector<16x32xf32>, vector<32x128xf32>, vector<16x128xf32> -> vector<16x128xf32>
    %117 = arith.addf %83, %116 : vector<16x128xf32>
    %c0_79 = arith.constant 0 : index
    %c96 = arith.constant 96 : index
    %118 = vector.load %arg6[%c0_79, %c96] : memref<128x512xf32, #tpu.memory_space<vmem>>, vector<128x32xf32>
    %c0_80 = arith.constant 0 : index
    %c224 = arith.constant 224 : index
    %119 = vector.load %arg6[%c0_80, %c224] : memref<128x512xf32, #tpu.memory_space<vmem>>, vector<128x32xf32>
    %c0_81 = arith.constant 0 : index
    %c352 = arith.constant 352 : index
    %120 = vector.load %arg6[%c0_81, %c352] : memref<128x512xf32, #tpu.memory_space<vmem>>, vector<128x32xf32>
    %c96_82 = arith.constant 96 : index
    %c384_83 = arith.constant 384 : index
    %121 = vector.load %arg6[%c96_82, %c384_83] : memref<128x512xf32, #tpu.memory_space<vmem>>, vector<32x128xf32>
    %c0_84 = arith.constant 0 : index
    %c96_85 = arith.constant 96 : index
    %122 = vector.load %arg7[%c0_84, %c96_85] : memref<1x512xf32, #tpu.memory_space<vmem>>, vector<1x32xf32>
    %c0_86 = arith.constant 0 : index
    %c224_87 = arith.constant 224 : index
    %123 = vector.load %arg7[%c0_86, %c224_87] : memref<1x512xf32, #tpu.memory_space<vmem>>, vector<1x32xf32>
    %c0_88 = arith.constant 0 : index
    %c352_89 = arith.constant 352 : index
    %124 = vector.load %arg7[%c0_88, %c352_89] : memref<1x512xf32, #tpu.memory_space<vmem>>, vector<1x32xf32>
    %cst_90 = arith.constant dense<0.000000e+00> : vector<16x32xf32>
    %125 = tpu.matmul %5, %118, %cst_90 {dimension_numbers = #tpu.dot_dimension_numbers<[1], [0], [0], [1], [0, 0, 1, 1], [], []>} : vector<16x128xf32>, vector<128x32xf32>, vector<16x32xf32> -> vector<16x32xf32>
    %126 = vector.broadcast %122 : vector<1x32xf32> to vector<16x32xf32>
    %127 = arith.addf %125, %126 : vector<16x32xf32>
    %cst_91 = arith.constant dense<0.000000e+00> : vector<4x32xf32>
    %128 = tpu.matmul %10, %119, %cst_91 {dimension_numbers = #tpu.dot_dimension_numbers<[1], [0], [0], [1], [0, 0, 1, 1], [], []>} : vector<4x128xf32>, vector<128x32xf32>, vector<4x32xf32> -> vector<4x32xf32>
    %129 = vector.broadcast %123 : vector<1x32xf32> to vector<4x32xf32>
    %130 = arith.addf %128, %129 : vector<4x32xf32>
    %cst_92 = arith.constant dense<0.000000e+00> : vector<4x32xf32>
    %131 = tpu.matmul %12, %120, %cst_92 {dimension_numbers = #tpu.dot_dimension_numbers<[1], [0], [0], [1], [0, 0, 1, 1], [], []>} : vector<4x128xf32>, vector<128x32xf32>, vector<4x32xf32> -> vector<4x32xf32>
    %132 = vector.broadcast %124 : vector<1x32xf32> to vector<4x32xf32>
    %133 = arith.addf %131, %132 : vector<4x32xf32>
    %cst_93 = arith.constant dense<0.000000e+00> : vector<16x4xf32>
    %134 = tpu.matmul %127, %130, %cst_93 {dimension_numbers = #tpu.dot_dimension_numbers<[1], [1], [0], [0], [0, 0, 1, 0], [], []>} : vector<16x32xf32>, vector<4x32xf32>, vector<16x4xf32> -> vector<16x4xf32>
    %cst_94 = arith.constant 0.176776692 : f32
    %135 = vector.broadcast %cst_94 : f32 to vector<16x4xf32>
    %136 = arith.mulf %134, %135 : vector<16x4xf32>
    %137 = vector.broadcast %16 : vector<1x4xf32> to vector<16x4xf32>
    %138 = arith.addf %136, %137 : vector<16x4xf32>
    %cst_95 = arith.constant dense<0xFF800000> : vector<16xf32>
    %139 = vector.multi_reduction <maximumf>, %138, %cst_95 [1] : vector<16x4xf32> to vector<16xf32>
    %140 = vector.shape_cast %139 : vector<16xf32> to vector<16x1xf32>
    %141 = vector.broadcast %140 : vector<16x1xf32> to vector<16x4xf32>
    %142 = arith.subf %138, %141 : vector<16x4xf32>
    %143 = math.exp %142 : vector<16x4xf32>
    %cst_96 = arith.constant dense<0.000000e+00> : vector<16xf32>
    %144 = vector.multi_reduction <add>, %143, %cst_96 [1] : vector<16x4xf32> to vector<16xf32>
    %145 = vector.shape_cast %144 : vector<16xf32> to vector<16x1xf32>
    %146 = tpu.reciprocal %145 {approx = true} : vector<16x1xf32> -> vector<16x1xf32>
    %147 = vector.broadcast %146 : vector<16x1xf32> to vector<16x4xf32>
    %148 = arith.mulf %143, %147 : vector<16x4xf32>
    %cst_97 = arith.constant dense<0.000000e+00> : vector<16x32xf32>
    %149 = tpu.matmul %148, %133, %cst_97 {dimension_numbers = #tpu.dot_dimension_numbers<[1], [0], [0], [1], [0, 0, 1, 1], [], []>} : vector<16x4xf32>, vector<4x32xf32>, vector<16x32xf32> -> vector<16x32xf32>
    %cst_98 = arith.constant dense<0.000000e+00> : vector<16x128xf32>
    %150 = tpu.matmul %149, %121, %cst_98 {dimension_numbers = #tpu.dot_dimension_numbers<[1], [0], [0], [1], [0, 0, 1, 1], [], []>} : vector<16x32xf32>, vector<32x128xf32>, vector<16x128xf32> -> vector<16x128xf32>
    %151 = arith.addf %117, %150 : vector<16x128xf32>
    %152 = vector.broadcast %0 : vector<1x128xf32> to vector<16x128xf32>
    %153 = arith.addf %151, %152 : vector<16x128xf32>
    %154 = arith.addf %2, %153 : vector<16x128xf32>
    %c0_99 = arith.constant 0 : index
    %c0_100 = arith.constant 0 : index
    %155 = vector.load %arg12[%c0_99, %c0_100] : memref<4x128xf32, #tpu.memory_space<vmem>>, vector<1x128xf32>
    %c1 = arith.constant 1 : index
    %c0_101 = arith.constant 0 : index
    %156 = vector.load %arg12[%c1, %c0_101] : memref<4x128xf32, #tpu.memory_space<vmem>>, vector<1x128xf32>
    %cst_102 = arith.constant dense<0.000000e+00> : vector<16xf32>
    %157 = vector.multi_reduction <add>, %154, %cst_102 [1] : vector<16x128xf32> to vector<16xf32>
    %158 = vector.shape_cast %157 : vector<16xf32> to vector<16x1xf32>
    %cst_103 = arith.constant 1.280000e+02 : f32
    %159 = vector.broadcast %cst_103 : f32 to vector<16x1xf32>
    %160 = arith.divf %158, %159 : vector<16x1xf32>
    %161 = vector.broadcast %160 : vector<16x1xf32> to vector<16x128xf32>
    %162 = arith.subf %154, %161 : vector<16x128xf32>
    %163 = arith.mulf %162, %162 : vector<16x128xf32>
    %cst_104 = arith.constant dense<0.000000e+00> : vector<16xf32>
    %164 = vector.multi_reduction <add>, %163, %cst_104 [1] : vector<16x128xf32> to vector<16xf32>
    %165 = vector.shape_cast %164 : vector<16xf32> to vector<16x1xf32>
    %cst_105 = arith.constant 1.280000e+02 : f32
    %166 = vector.broadcast %cst_105 : f32 to vector<16x1xf32>
    %167 = arith.divf %165, %166 : vector<16x1xf32>
    %168 = vector.broadcast %160 : vector<16x1xf32> to vector<16x128xf32>
    %169 = arith.subf %154, %168 : vector<16x128xf32>
    %cst_106 = arith.constant 9.99999974E-6 : f32
    %170 = vector.broadcast %cst_106 : f32 to vector<16x1xf32>
    %171 = arith.addf %167, %170 : vector<16x1xf32>
    %172 = math.rsqrt %171 : vector<16x1xf32>
    %173 = vector.broadcast %172 : vector<16x1xf32> to vector<16x128xf32>
    %174 = arith.mulf %169, %173 : vector<16x128xf32>
    %175 = vector.broadcast %155 : vector<1x128xf32> to vector<16x128xf32>
    %176 = arith.mulf %174, %175 : vector<16x128xf32>
    %177 = vector.broadcast %156 : vector<1x128xf32> to vector<16x128xf32>
    %178 = arith.addf %176, %177 : vector<16x128xf32>
    %c0_107 = arith.constant 0 : index
    %c0_108 = arith.constant 0 : index
    %179 = vector.load %arg8[%c0_107, %c0_108] : memref<128x256xf32, #tpu.memory_space<vmem>>, vector<128x256xf32>
    %cst_109 = arith.constant dense<0.000000e+00> : vector<16x256xf32>
    %180 = tpu.matmul %178, %179, %cst_109 {dimension_numbers = #tpu.dot_dimension_numbers<[1], [0], [0], [1], [0, 0, 1, 1], [], []>} : vector<16x128xf32>, vector<128x256xf32>, vector<16x256xf32> -> vector<16x256xf32>
    %c0_110 = arith.constant 0 : index
    %c0_111 = arith.constant 0 : index
    %181 = vector.load %arg9[%c0_110, %c0_111] : memref<1x256xf32, #tpu.memory_space<vmem>>, vector<1x256xf32>
    %182 = vector.broadcast %181 : vector<1x256xf32> to vector<16x256xf32>
    %183 = arith.addf %180, %182 : vector<16x256xf32>
    %cst_112 = arith.constant 0.000000e+00 : f32
    %184 = vector.broadcast %cst_112 : f32 to vector<16x256xf32>
    %185 = arith.maximumf %183, %184 : vector<16x256xf32>
    %c0_113 = arith.constant 0 : index
    %c0_114 = arith.constant 0 : index
    %186 = vector.load %arg10[%c0_113, %c0_114] : memref<256x128xf32, #tpu.memory_space<vmem>>, vector<256x128xf32>
    %cst_115 = arith.constant dense<0.000000e+00> : vector<16x128xf32>
    %187 = tpu.matmul %185, %186, %cst_115 {dimension_numbers = #tpu.dot_dimension_numbers<[1], [0], [0], [1], [0, 0, 1, 1], [], []>} : vector<16x256xf32>, vector<256x128xf32>, vector<16x128xf32> -> vector<16x128xf32>
    %c0_116 = arith.constant 0 : index
    %c0_117 = arith.constant 0 : index
    %188 = vector.load %arg11[%c0_116, %c0_117] : memref<1x128xf32, #tpu.memory_space<vmem>>, vector<1x128xf32>
    %189 = vector.broadcast %188 : vector<1x128xf32> to vector<16x128xf32>
    %190 = arith.addf %187, %189 : vector<16x128xf32>
    %191 = arith.addf %178, %190 : vector<16x128xf32>
    %c2 = arith.constant 2 : index
    %c0_118 = arith.constant 0 : index
    %192 = vector.load %arg12[%c2, %c0_118] : memref<4x128xf32, #tpu.memory_space<vmem>>, vector<1x128xf32>
    %c3 = arith.constant 3 : index
    %c0_119 = arith.constant 0 : index
    %193 = vector.load %arg12[%c3, %c0_119] : memref<4x128xf32, #tpu.memory_space<vmem>>, vector<1x128xf32>
    %cst_120 = arith.constant dense<0.000000e+00> : vector<16xf32>
    %194 = vector.multi_reduction <add>, %191, %cst_120 [1] : vector<16x128xf32> to vector<16xf32>
    %195 = vector.shape_cast %194 : vector<16xf32> to vector<16x1xf32>
    %cst_121 = arith.constant 1.280000e+02 : f32
    %196 = vector.broadcast %cst_121 : f32 to vector<16x1xf32>
    %197 = arith.divf %195, %196 : vector<16x1xf32>
    %198 = vector.broadcast %197 : vector<16x1xf32> to vector<16x128xf32>
    %199 = arith.subf %191, %198 : vector<16x128xf32>
    %200 = arith.mulf %199, %199 : vector<16x128xf32>
    %cst_122 = arith.constant dense<0.000000e+00> : vector<16xf32>
    %201 = vector.multi_reduction <add>, %200, %cst_122 [1] : vector<16x128xf32> to vector<16xf32>
    %202 = vector.shape_cast %201 : vector<16xf32> to vector<16x1xf32>
    %cst_123 = arith.constant 1.280000e+02 : f32
    %203 = vector.broadcast %cst_123 : f32 to vector<16x1xf32>
    %204 = arith.divf %202, %203 : vector<16x1xf32>
    %205 = vector.broadcast %197 : vector<16x1xf32> to vector<16x128xf32>
    %206 = arith.subf %191, %205 : vector<16x128xf32>
    %cst_124 = arith.constant 9.99999974E-6 : f32
    %207 = vector.broadcast %cst_124 : f32 to vector<16x1xf32>
    %208 = arith.addf %204, %207 : vector<16x1xf32>
    %209 = math.rsqrt %208 : vector<16x1xf32>
    %210 = vector.broadcast %209 : vector<16x1xf32> to vector<16x128xf32>
    %211 = arith.mulf %206, %210 : vector<16x128xf32>
    %212 = vector.broadcast %192 : vector<1x128xf32> to vector<16x128xf32>
    %213 = arith.mulf %211, %212 : vector<16x128xf32>
    %214 = vector.broadcast %193 : vector<1x128xf32> to vector<16x128xf32>
    %215 = arith.addf %213, %214 : vector<16x128xf32>
    %c0_125 = arith.constant 0 : index
    %c0_126 = arith.constant 0 : index
    %c0_127 = arith.constant 0 : index
    %216 = vector.load %arg13[%c0_125, %c0_126, %c0_127] : memref<2x16x128xf32, #tpu.memory_space<vmem>>, vector<1x16x128xf32>
    %217 = vector.shape_cast %216 : vector<1x16x128xf32> to vector<16x128xf32>
    %218 = vector.shape_cast %215 : vector<16x128xf32> to vector<1x16x128xf32>
    tpu.vector_store %arg13[%c0_125, %c0_126, %c0_127], %218 {strides = array<i32>} : memref<2x16x128xf32, #tpu.memory_space<vmem>>, vector<1x16x128xf32>,
    %c1_128 = arith.constant 1 : index
    %c0_129 = arith.constant 0 : index
    %c0_130 = arith.constant 0 : index
    %219 = vector.load %arg1[%c1_128, %c0_129, %c0_130] : memref<2x16x128xf32, #tpu.memory_space<vmem>>, vector<1x16x128xf32>
    %220 = vector.shape_cast %219 : vector<1x16x128xf32> to vector<16x128xf32>
    %c1_131 = arith.constant 1 : index
    %c0_132 = arith.constant 0 : index
    %c0_133 = arith.constant 0 : index
    %221 = vector.load %arg2[%c1_131, %c0_132, %c0_133] : memref<2x16x128xf32, #tpu.memory_space<vmem>>, vector<1x16x128xf32>
    %222 = vector.shape_cast %221 : vector<1x16x128xf32> to vector<16x128xf32>
    %223 = arith.addf %220, %222 : vector<16x128xf32>
    %c1_134 = arith.constant 1 : index
    %c0_135 = arith.constant 0 : index
    %c0_136 = arith.constant 0 : index
    %224 = vector.load %arg3[%c1_134, %c0_135, %c0_136] : memref<2x4x128xf32, #tpu.memory_space<vmem>>, vector<1x4x128xf32>
    %225 = vector.shape_cast %224 : vector<1x4x128xf32> to vector<4x128xf32>
    %c1_137 = arith.constant 1 : index
    %c0_138 = arith.constant 0 : index
    %c0_139 = arith.constant 0 : index
    %226 = vector.load %arg4[%c1_137, %c0_138, %c0_139] : memref<2x4x128xf32, #tpu.memory_space<vmem>>, vector<1x4x128xf32>
    %227 = vector.shape_cast %226 : vector<1x4x128xf32> to vector<4x128xf32>
    %228 = arith.addf %225, %227 : vector<4x128xf32>
    %c1_140 = arith.constant 1 : index
    %c0_141 = arith.constant 0 : index
    %c0_142 = arith.constant 0 : index
    %229 = vector.load %arg3[%c1_140, %c0_141, %c0_142] : memref<2x4x128xf32, #tpu.memory_space<vmem>>, vector<1x4x128xf32>
    %230 = vector.shape_cast %229 : vector<1x4x128xf32> to vector<4x128xf32>
    %c1_143 = arith.constant 1 : index
    %c0_144 = arith.constant 0 : index
    %c0_145 = arith.constant 0 : index
    %231 = vector.load %arg5[%c1_143, %c0_144, %c0_145] : memref<2x1x4xf32, #tpu.memory_space<vmem>>, vector<1x1x4xf32>
    %232 = vector.shape_cast %231 : vector<1x1x4xf32> to vector<1x4xf32>
    %cst_146 = arith.constant -1.000000e+09 : f32
    %233 = vector.broadcast %cst_146 : f32 to vector<1x4xf32>
    %234 = arith.mulf %232, %233 : vector<1x4xf32>
    %c0_147 = arith.constant 0 : index
    %c0_148 = arith.constant 0 : index
    %235 = vector.load %arg6[%c0_147, %c0_148] : memref<128x512xf32, #tpu.memory_space<vmem>>, vector<128x32xf32>
    %c0_149 = arith.constant 0 : index
    %c128_150 = arith.constant 128 : index
    %236 = vector.load %arg6[%c0_149, %c128_150] : memref<128x512xf32, #tpu.memory_space<vmem>>, vector<128x32xf32>
    %c0_151 = arith.constant 0 : index
    %c256_152 = arith.constant 256 : index
    %237 = vector.load %arg6[%c0_151, %c256_152] : memref<128x512xf32, #tpu.memory_space<vmem>>, vector<128x32xf32>
    %c0_153 = arith.constant 0 : index
    %c384_154 = arith.constant 384 : index
    %238 = vector.load %arg6[%c0_153, %c384_154] : memref<128x512xf32, #tpu.memory_space<vmem>>, vector<32x128xf32>
    %c0_155 = arith.constant 0 : index
    %c0_156 = arith.constant 0 : index
    %239 = vector.load %arg7[%c0_155, %c0_156] : memref<1x512xf32, #tpu.memory_space<vmem>>, vector<1x32xf32>
    %c0_157 = arith.constant 0 : index
    %c128_158 = arith.constant 128 : index
    %240 = vector.load %arg7[%c0_157, %c128_158] : memref<1x512xf32, #tpu.memory_space<vmem>>, vector<1x32xf32>
    %c0_159 = arith.constant 0 : index
    %c256_160 = arith.constant 256 : index
    %241 = vector.load %arg7[%c0_159, %c256_160] : memref<1x512xf32, #tpu.memory_space<vmem>>, vector<1x32xf32>
    %cst_161 = arith.constant dense<0.000000e+00> : vector<16x32xf32>
    %242 = tpu.matmul %223, %235, %cst_161 {dimension_numbers = #tpu.dot_dimension_numbers<[1], [0], [0], [1], [0, 0, 1, 1], [], []>} : vector<16x128xf32>, vector<128x32xf32>, vector<16x32xf32> -> vector<16x32xf32>
    %243 = vector.broadcast %239 : vector<1x32xf32> to vector<16x32xf32>
    %244 = arith.addf %242, %243 : vector<16x32xf32>
    %cst_162 = arith.constant dense<0.000000e+00> : vector<4x32xf32>
    %245 = tpu.matmul %228, %236, %cst_162 {dimension_numbers = #tpu.dot_dimension_numbers<[1], [0], [0], [1], [0, 0, 1, 1], [], []>} : vector<4x128xf32>, vector<128x32xf32>, vector<4x32xf32> -> vector<4x32xf32>
    %246 = vector.broadcast %240 : vector<1x32xf32> to vector<4x32xf32>
    %247 = arith.addf %245, %246 : vector<4x32xf32>
    %cst_163 = arith.constant dense<0.000000e+00> : vector<4x32xf32>
    %248 = tpu.matmul %230, %237, %cst_163 {dimension_numbers = #tpu.dot_dimension_numbers<[1], [0], [0], [1], [0, 0, 1, 1], [], []>} : vector<4x128xf32>, vector<128x32xf32>, vector<4x32xf32> -> vector<4x32xf32>
    %249 = vector.broadcast %241 : vector<1x32xf32> to vector<4x32xf32>
    %250 = arith.addf %248, %249 : vector<4x32xf32>
    %cst_164 = arith.constant dense<0.000000e+00> : vector<16x4xf32>
    %251 = tpu.matmul %244, %247, %cst_164 {dimension_numbers = #tpu.dot_dimension_numbers<[1], [1], [0], [0], [0, 0, 1, 0], [], []>} : vector<16x32xf32>, vector<4x32xf32>, vector<16x4xf32> -> vector<16x4xf32>
    %cst_165 = arith.constant 0.176776692 : f32
    %252 = vector.broadcast %cst_165 : f32 to vector<16x4xf32>
    %253 = arith.mulf %251, %252 : vector<16x4xf32>
    %254 = vector.broadcast %234 : vector<1x4xf32> to vector<16x4xf32>
    %255 = arith.addf %253, %254 : vector<16x4xf32>
    %cst_166 = arith.constant dense<0xFF800000> : vector<16xf32>
    %256 = vector.multi_reduction <maximumf>, %255, %cst_166 [1] : vector<16x4xf32> to vector<16xf32>
    %257 = vector.shape_cast %256 : vector<16xf32> to vector<16x1xf32>
    %258 = vector.broadcast %257 : vector<16x1xf32> to vector<16x4xf32>
    %259 = arith.subf %255, %258 : vector<16x4xf32>
    %260 = math.exp %259 : vector<16x4xf32>
    %cst_167 = arith.constant dense<0.000000e+00> : vector<16xf32>
    %261 = vector.multi_reduction <add>, %260, %cst_167 [1] : vector<16x4xf32> to vector<16xf32>
    %262 = vector.shape_cast %261 : vector<16xf32> to vector<16x1xf32>
    %263 = tpu.reciprocal %262 {approx = true} : vector<16x1xf32> -> vector<16x1xf32>
    %264 = vector.broadcast %263 : vector<16x1xf32> to vector<16x4xf32>
    %265 = arith.mulf %260, %264 : vector<16x4xf32>
    %cst_168 = arith.constant dense<0.000000e+00> : vector<16x32xf32>
    %266 = tpu.matmul %265, %250, %cst_168 {dimension_numbers = #tpu.dot_dimension_numbers<[1], [0], [0], [1], [0, 0, 1, 1], [], []>} : vector<16x4xf32>, vector<4x32xf32>, vector<16x32xf32> -> vector<16x32xf32>
    %cst_169 = arith.constant dense<0.000000e+00> : vector<16x128xf32>
    %267 = tpu.matmul %266, %238, %cst_169 {dimension_numbers = #tpu.dot_dimension_numbers<[1], [0], [0], [1], [0, 0, 1, 1], [], []>} : vector<16x32xf32>, vector<32x128xf32>, vector<16x128xf32> -> vector<16x128xf32>
    %c0_170 = arith.constant 0 : index
    %c32_171 = arith.constant 32 : index
    %268 = vector.load %arg6[%c0_170, %c32_171] : memref<128x512xf32, #tpu.memory_space<vmem>>, vector<128x32xf32>
    %c0_172 = arith.constant 0 : index
    %c160_173 = arith.constant 160 : index
    %269 = vector.load %arg6[%c0_172, %c160_173] : memref<128x512xf32, #tpu.memory_space<vmem>>, vector<128x32xf32>
    %c0_174 = arith.constant 0 : index
    %c288_175 = arith.constant 288 : index
    %270 = vector.load %arg6[%c0_174, %c288_175] : memref<128x512xf32, #tpu.memory_space<vmem>>, vector<128x32xf32>
    %c32_176 = arith.constant 32 : index
    %c384_177 = arith.constant 384 : index
    %271 = vector.load %arg6[%c32_176, %c384_177] : memref<128x512xf32, #tpu.memory_space<vmem>>, vector<32x128xf32>
    %c0_178 = arith.constant 0 : index
    %c32_179 = arith.constant 32 : index
    %272 = vector.load %arg7[%c0_178, %c32_179] : memref<1x512xf32, #tpu.memory_space<vmem>>, vector<1x32xf32>
    %c0_180 = arith.constant 0 : index
    %c160_181 = arith.constant 160 : index
    %273 = vector.load %arg7[%c0_180, %c160_181] : memref<1x512xf32, #tpu.memory_space<vmem>>, vector<1x32xf32>
    %c0_182 = arith.constant 0 : index
    %c288_183 = arith.constant 288 : index
    %274 = vector.load %arg7[%c0_182, %c288_183] : memref<1x512xf32, #tpu.memory_space<vmem>>, vector<1x32xf32>
    %cst_184 = arith.constant dense<0.000000e+00> : vector<16x32xf32>
    %275 = tpu.matmul %223, %268, %cst_184 {dimension_numbers = #tpu.dot_dimension_numbers<[1], [0], [0], [1], [0, 0, 1, 1], [], []>} : vector<16x128xf32>, vector<128x32xf32>, vector<16x32xf32> -> vector<16x32xf32>
    %276 = vector.broadcast %272 : vector<1x32xf32> to vector<16x32xf32>
    %277 = arith.addf %275, %276 : vector<16x32xf32>
    %cst_185 = arith.constant dense<0.000000e+00> : vector<4x32xf32>
    %278 = tpu.matmul %228, %269, %cst_185 {dimension_numbers = #tpu.dot_dimension_numbers<[1], [0], [0], [1], [0, 0, 1, 1], [], []>} : vector<4x128xf32>, vector<128x32xf32>, vector<4x32xf32> -> vector<4x32xf32>
    %279 = vector.broadcast %273 : vector<1x32xf32> to vector<4x32xf32>
    %280 = arith.addf %278, %279 : vector<4x32xf32>
    %cst_186 = arith.constant dense<0.000000e+00> : vector<4x32xf32>
    %281 = tpu.matmul %230, %270, %cst_186 {dimension_numbers = #tpu.dot_dimension_numbers<[1], [0], [0], [1], [0, 0, 1, 1], [], []>} : vector<4x128xf32>, vector<128x32xf32>, vector<4x32xf32> -> vector<4x32xf32>
    %282 = vector.broadcast %274 : vector<1x32xf32> to vector<4x32xf32>
    %283 = arith.addf %281, %282 : vector<4x32xf32>
    %cst_187 = arith.constant dense<0.000000e+00> : vector<16x4xf32>
    %284 = tpu.matmul %277, %280, %cst_187 {dimension_numbers = #tpu.dot_dimension_numbers<[1], [1], [0], [0], [0, 0, 1, 0], [], []>} : vector<16x32xf32>, vector<4x32xf32>, vector<16x4xf32> -> vector<16x4xf32>
    %cst_188 = arith.constant 0.176776692 : f32
    %285 = vector.broadcast %cst_188 : f32 to vector<16x4xf32>
    %286 = arith.mulf %284, %285 : vector<16x4xf32>
    %287 = vector.broadcast %234 : vector<1x4xf32> to vector<16x4xf32>
    %288 = arith.addf %286, %287 : vector<16x4xf32>
    %cst_189 = arith.constant dense<0xFF800000> : vector<16xf32>
    %289 = vector.multi_reduction <maximumf>, %288, %cst_189 [1] : vector<16x4xf32> to vector<16xf32>
    %290 = vector.shape_cast %289 : vector<16xf32> to vector<16x1xf32>
    %291 = vector.broadcast %290 : vector<16x1xf32> to vector<16x4xf32>
    %292 = arith.subf %288, %291 : vector<16x4xf32>
    %293 = math.exp %292 : vector<16x4xf32>
    %cst_190 = arith.constant dense<0.000000e+00> : vector<16xf32>
    %294 = vector.multi_reduction <add>, %293, %cst_190 [1] : vector<16x4xf32> to vector<16xf32>
    %295 = vector.shape_cast %294 : vector<16xf32> to vector<16x1xf32>
    %296 = tpu.reciprocal %295 {approx = true} : vector<16x1xf32> -> vector<16x1xf32>
    %297 = vector.broadcast %296 : vector<16x1xf32> to vector<16x4xf32>
    %298 = arith.mulf %293, %297 : vector<16x4xf32>
    %cst_191 = arith.constant dense<0.000000e+00> : vector<16x32xf32>
    %299 = tpu.matmul %298, %283, %cst_191 {dimension_numbers = #tpu.dot_dimension_numbers<[1], [0], [0], [1], [0, 0, 1, 1], [], []>} : vector<16x4xf32>, vector<4x32xf32>, vector<16x32xf32> -> vector<16x32xf32>
    %cst_192 = arith.constant dense<0.000000e+00> : vector<16x128xf32>
    %300 = tpu.matmul %299, %271, %cst_192 {dimension_numbers = #tpu.dot_dimension_numbers<[1], [0], [0], [1], [0, 0, 1, 1], [], []>} : vector<16x32xf32>, vector<32x128xf32>, vector<16x128xf32> -> vector<16x128xf32>
    %301 = arith.addf %267, %300 : vector<16x128xf32>
    %c0_193 = arith.constant 0 : index
    %c64_194 = arith.constant 64 : index
    %302 = vector.load %arg6[%c0_193, %c64_194] : memref<128x512xf32, #tpu.memory_space<vmem>>, vector<128x32xf32>
    %c0_195 = arith.constant 0 : index
    %c192_196 = arith.constant 192 : index
    %303 = vector.load %arg6[%c0_195, %c192_196] : memref<128x512xf32, #tpu.memory_space<vmem>>, vector<128x32xf32>
    %c0_197 = arith.constant 0 : index
    %c320_198 = arith.constant 320 : index
    %304 = vector.load %arg6[%c0_197, %c320_198] : memref<128x512xf32, #tpu.memory_space<vmem>>, vector<128x32xf32>
    %c64_199 = arith.constant 64 : index
    %c384_200 = arith.constant 384 : index
    %305 = vector.load %arg6[%c64_199, %c384_200] : memref<128x512xf32, #tpu.memory_space<vmem>>, vector<32x128xf32>
    %c0_201 = arith.constant 0 : index
    %c64_202 = arith.constant 64 : index
    %306 = vector.load %arg7[%c0_201, %c64_202] : memref<1x512xf32, #tpu.memory_space<vmem>>, vector<1x32xf32>
    %c0_203 = arith.constant 0 : index
    %c192_204 = arith.constant 192 : index
    %307 = vector.load %arg7[%c0_203, %c192_204] : memref<1x512xf32, #tpu.memory_space<vmem>>, vector<1x32xf32>
    %c0_205 = arith.constant 0 : index
    %c320_206 = arith.constant 320 : index
    %308 = vector.load %arg7[%c0_205, %c320_206] : memref<1x512xf32, #tpu.memory_space<vmem>>, vector<1x32xf32>
    %cst_207 = arith.constant dense<0.000000e+00> : vector<16x32xf32>
    %309 = tpu.matmul %223, %302, %cst_207 {dimension_numbers = #tpu.dot_dimension_numbers<[1], [0], [0], [1], [0, 0, 1, 1], [], []>} : vector<16x128xf32>, vector<128x32xf32>, vector<16x32xf32> -> vector<16x32xf32>
    %310 = vector.broadcast %306 : vector<1x32xf32> to vector<16x32xf32>
    %311 = arith.addf %309, %310 : vector<16x32xf32>
    %cst_208 = arith.constant dense<0.000000e+00> : vector<4x32xf32>
    %312 = tpu.matmul %228, %303, %cst_208 {dimension_numbers = #tpu.dot_dimension_numbers<[1], [0], [0], [1], [0, 0, 1, 1], [], []>} : vector<4x128xf32>, vector<128x32xf32>, vector<4x32xf32> -> vector<4x32xf32>
    %313 = vector.broadcast %307 : vector<1x32xf32> to vector<4x32xf32>
    %314 = arith.addf %312, %313 : vector<4x32xf32>
    %cst_209 = arith.constant dense<0.000000e+00> : vector<4x32xf32>
    %315 = tpu.matmul %230, %304, %cst_209 {dimension_numbers = #tpu.dot_dimension_numbers<[1], [0], [0], [1], [0, 0, 1, 1], [], []>} : vector<4x128xf32>, vector<128x32xf32>, vector<4x32xf32> -> vector<4x32xf32>
    %316 = vector.broadcast %308 : vector<1x32xf32> to vector<4x32xf32>
    %317 = arith.addf %315, %316 : vector<4x32xf32>
    %cst_210 = arith.constant dense<0.000000e+00> : vector<16x4xf32>
    %318 = tpu.matmul %311, %314, %cst_210 {dimension_numbers = #tpu.dot_dimension_numbers<[1], [1], [0], [0], [0, 0, 1, 0], [], []>} : vector<16x32xf32>, vector<4x32xf32>, vector<16x4xf32> -> vector<16x4xf32>
    %cst_211 = arith.constant 0.176776692 : f32
    %319 = vector.broadcast %cst_211 : f32 to vector<16x4xf32>
    %320 = arith.mulf %318, %319 : vector<16x4xf32>
    %321 = vector.broadcast %234 : vector<1x4xf32> to vector<16x4xf32>
    %322 = arith.addf %320, %321 : vector<16x4xf32>
    %cst_212 = arith.constant dense<0xFF800000> : vector<16xf32>
    %323 = vector.multi_reduction <maximumf>, %322, %cst_212 [1] : vector<16x4xf32> to vector<16xf32>
    %324 = vector.shape_cast %323 : vector<16xf32> to vector<16x1xf32>
    %325 = vector.broadcast %324 : vector<16x1xf32> to vector<16x4xf32>
    %326 = arith.subf %322, %325 : vector<16x4xf32>
    %327 = math.exp %326 : vector<16x4xf32>
    %cst_213 = arith.constant dense<0.000000e+00> : vector<16xf32>
    %328 = vector.multi_reduction <add>, %327, %cst_213 [1] : vector<16x4xf32> to vector<16xf32>
    %329 = vector.shape_cast %328 : vector<16xf32> to vector<16x1xf32>
    %330 = tpu.reciprocal %329 {approx = true} : vector<16x1xf32> -> vector<16x1xf32>
    %331 = vector.broadcast %330 : vector<16x1xf32> to vector<16x4xf32>
    %332 = arith.mulf %327, %331 : vector<16x4xf32>
    %cst_214 = arith.constant dense<0.000000e+00> : vector<16x32xf32>
    %333 = tpu.matmul %332, %317, %cst_214 {dimension_numbers = #tpu.dot_dimension_numbers<[1], [0], [0], [1], [0, 0, 1, 1], [], []>} : vector<16x4xf32>, vector<4x32xf32>, vector<16x32xf32> -> vector<16x32xf32>
    %cst_215 = arith.constant dense<0.000000e+00> : vector<16x128xf32>
    %334 = tpu.matmul %333, %305, %cst_215 {dimension_numbers = #tpu.dot_dimension_numbers<[1], [0], [0], [1], [0, 0, 1, 1], [], []>} : vector<16x32xf32>, vector<32x128xf32>, vector<16x128xf32> -> vector<16x128xf32>
    %335 = arith.addf %301, %334 : vector<16x128xf32>
    %c0_216 = arith.constant 0 : index
    %c96_217 = arith.constant 96 : index
    %336 = vector.load %arg6[%c0_216, %c96_217] : memref<128x512xf32, #tpu.memory_space<vmem>>, vector<128x32xf32>
    %c0_218 = arith.constant 0 : index
    %c224_219 = arith.constant 224 : index
    %337 = vector.load %arg6[%c0_218, %c224_219] : memref<128x512xf32, #tpu.memory_space<vmem>>, vector<128x32xf32>
    %c0_220 = arith.constant 0 : index
    %c352_221 = arith.constant 352 : index
    %338 = vector.load %arg6[%c0_220, %c352_221] : memref<128x512xf32, #tpu.memory_space<vmem>>, vector<128x32xf32>
    %c96_222 = arith.constant 96 : index
    %c384_223 = arith.constant 384 : index
    %339 = vector.load %arg6[%c96_222, %c384_223] : memref<128x512xf32, #tpu.memory_space<vmem>>, vector<32x128xf32>
    %c0_224 = arith.constant 0 : index
    %c96_225 = arith.constant 96 : index
    %340 = vector.load %arg7[%c0_224, %c96_225] : memref<1x512xf32, #tpu.memory_space<vmem>>, vector<1x32xf32>
    %c0_226 = arith.constant 0 : index
    %c224_227 = arith.constant 224 : index
    %341 = vector.load %arg7[%c0_226, %c224_227] : memref<1x512xf32, #tpu.memory_space<vmem>>, vector<1x32xf32>
    %c0_228 = arith.constant 0 : index
    %c352_229 = arith.constant 352 : index
    %342 = vector.load %arg7[%c0_228, %c352_229] : memref<1x512xf32, #tpu.memory_space<vmem>>, vector<1x32xf32>
    %cst_230 = arith.constant dense<0.000000e+00> : vector<16x32xf32>
    %343 = tpu.matmul %223, %336, %cst_230 {dimension_numbers = #tpu.dot_dimension_numbers<[1], [0], [0], [1], [0, 0, 1, 1], [], []>} : vector<16x128xf32>, vector<128x32xf32>, vector<16x32xf32> -> vector<16x32xf32>
    %344 = vector.broadcast %340 : vector<1x32xf32> to vector<16x32xf32>
    %345 = arith.addf %343, %344 : vector<16x32xf32>
    %cst_231 = arith.constant dense<0.000000e+00> : vector<4x32xf32>
    %346 = tpu.matmul %228, %337, %cst_231 {dimension_numbers = #tpu.dot_dimension_numbers<[1], [0], [0], [1], [0, 0, 1, 1], [], []>} : vector<4x128xf32>, vector<128x32xf32>, vector<4x32xf32> -> vector<4x32xf32>
    %347 = vector.broadcast %341 : vector<1x32xf32> to vector<4x32xf32>
    %348 = arith.addf %346, %347 : vector<4x32xf32>
    %cst_232 = arith.constant dense<0.000000e+00> : vector<4x32xf32>
    %349 = tpu.matmul %230, %338, %cst_232 {dimension_numbers = #tpu.dot_dimension_numbers<[1], [0], [0], [1], [0, 0, 1, 1], [], []>} : vector<4x128xf32>, vector<128x32xf32>, vector<4x32xf32> -> vector<4x32xf32>
    %350 = vector.broadcast %342 : vector<1x32xf32> to vector<4x32xf32>
    %351 = arith.addf %349, %350 : vector<4x32xf32>
    %cst_233 = arith.constant dense<0.000000e+00> : vector<16x4xf32>
    %352 = tpu.matmul %345, %348, %cst_233 {dimension_numbers = #tpu.dot_dimension_numbers<[1], [1], [0], [0], [0, 0, 1, 0], [], []>} : vector<16x32xf32>, vector<4x32xf32>, vector<16x4xf32> -> vector<16x4xf32>
    %cst_234 = arith.constant 0.176776692 : f32
    %353 = vector.broadcast %cst_234 : f32 to vector<16x4xf32>
    %354 = arith.mulf %352, %353 : vector<16x4xf32>
    %355 = vector.broadcast %234 : vector<1x4xf32> to vector<16x4xf32>
    %356 = arith.addf %354, %355 : vector<16x4xf32>
    %cst_235 = arith.constant dense<0xFF800000> : vector<16xf32>
    %357 = vector.multi_reduction <maximumf>, %356, %cst_235 [1] : vector<16x4xf32> to vector<16xf32>
    %358 = vector.shape_cast %357 : vector<16xf32> to vector<16x1xf32>
    %359 = vector.broadcast %358 : vector<16x1xf32> to vector<16x4xf32>
    %360 = arith.subf %356, %359 : vector<16x4xf32>
    %361 = math.exp %360 : vector<16x4xf32>
    %cst_236 = arith.constant dense<0.000000e+00> : vector<16xf32>
    %362 = vector.multi_reduction <add>, %361, %cst_236 [1] : vector<16x4xf32> to vector<16xf32>
    %363 = vector.shape_cast %362 : vector<16xf32> to vector<16x1xf32>
    %364 = tpu.reciprocal %363 {approx = true} : vector<16x1xf32> -> vector<16x1xf32>
    %365 = vector.broadcast %364 : vector<16x1xf32> to vector<16x4xf32>
    %366 = arith.mulf %361, %365 : vector<16x4xf32>
    %cst_237 = arith.constant dense<0.000000e+00> : vector<16x32xf32>
    %367 = tpu.matmul %366, %351, %cst_237 {dimension_numbers = #tpu.dot_dimension_numbers<[1], [0], [0], [1], [0, 0, 1, 1], [], []>} : vector<16x4xf32>, vector<4x32xf32>, vector<16x32xf32> -> vector<16x32xf32>
    %cst_238 = arith.constant dense<0.000000e+00> : vector<16x128xf32>
    %368 = tpu.matmul %367, %339, %cst_238 {dimension_numbers = #tpu.dot_dimension_numbers<[1], [0], [0], [1], [0, 0, 1, 1], [], []>} : vector<16x32xf32>, vector<32x128xf32>, vector<16x128xf32> -> vector<16x128xf32>
    %369 = arith.addf %335, %368 : vector<16x128xf32>
    %370 = vector.broadcast %0 : vector<1x128xf32> to vector<16x128xf32>
    %371 = arith.addf %369, %370 : vector<16x128xf32>
    %372 = arith.addf %220, %371 : vector<16x128xf32>
    %c0_239 = arith.constant 0 : index
    %c0_240 = arith.constant 0 : index
    %373 = vector.load %arg12[%c0_239, %c0_240] : memref<4x128xf32, #tpu.memory_space<vmem>>, vector<1x128xf32>
    %c1_241 = arith.constant 1 : index
    %c0_242 = arith.constant 0 : index
    %374 = vector.load %arg12[%c1_241, %c0_242] : memref<4x128xf32, #tpu.memory_space<vmem>>, vector<1x128xf32>
    %cst_243 = arith.constant dense<0.000000e+00> : vector<16xf32>
    %375 = vector.multi_reduction <add>, %372, %cst_243 [1] : vector<16x128xf32> to vector<16xf32>
    %376 = vector.shape_cast %375 : vector<16xf32> to vector<16x1xf32>
    %cst_244 = arith.constant 1.280000e+02 : f32
    %377 = vector.broadcast %cst_244 : f32 to vector<16x1xf32>
    %378 = arith.divf %376, %377 : vector<16x1xf32>
    %379 = vector.broadcast %378 : vector<16x1xf32> to vector<16x128xf32>
    %380 = arith.subf %372, %379 : vector<16x128xf32>
    %381 = arith.mulf %380, %380 : vector<16x128xf32>
    %cst_245 = arith.constant dense<0.000000e+00> : vector<16xf32>
    %382 = vector.multi_reduction <add>, %381, %cst_245 [1] : vector<16x128xf32> to vector<16xf32>
    %383 = vector.shape_cast %382 : vector<16xf32> to vector<16x1xf32>
    %cst_246 = arith.constant 1.280000e+02 : f32
    %384 = vector.broadcast %cst_246 : f32 to vector<16x1xf32>
    %385 = arith.divf %383, %384 : vector<16x1xf32>
    %386 = vector.broadcast %378 : vector<16x1xf32> to vector<16x128xf32>
    %387 = arith.subf %372, %386 : vector<16x128xf32>
    %cst_247 = arith.constant 9.99999974E-6 : f32
    %388 = vector.broadcast %cst_247 : f32 to vector<16x1xf32>
    %389 = arith.addf %385, %388 : vector<16x1xf32>
    %390 = math.rsqrt %389 : vector<16x1xf32>
    %391 = vector.broadcast %390 : vector<16x1xf32> to vector<16x128xf32>
    %392 = arith.mulf %387, %391 : vector<16x128xf32>
    %393 = vector.broadcast %373 : vector<1x128xf32> to vector<16x128xf32>
    %394 = arith.mulf %392, %393 : vector<16x128xf32>
    %395 = vector.broadcast %374 : vector<1x128xf32> to vector<16x128xf32>
    %396 = arith.addf %394, %395 : vector<16x128xf32>
    %c0_248 = arith.constant 0 : index
    %c0_249 = arith.constant 0 : index
    %397 = vector.load %arg8[%c0_248, %c0_249] : memref<128x256xf32, #tpu.memory_space<vmem>>, vector<128x256xf32>
    %cst_250 = arith.constant dense<0.000000e+00> : vector<16x256xf32>
    %398 = tpu.matmul %396, %397, %cst_250 {dimension_numbers = #tpu.dot_dimension_numbers<[1], [0], [0], [1], [0, 0, 1, 1], [], []>} : vector<16x128xf32>, vector<128x256xf32>, vector<16x256xf32> -> vector<16x256xf32>
    %c0_251 = arith.constant 0 : index
    %c0_252 = arith.constant 0 : index
    %399 = vector.load %arg9[%c0_251, %c0_252] : memref<1x256xf32, #tpu.memory_space<vmem>>, vector<1x256xf32>
    %400 = vector.broadcast %399 : vector<1x256xf32> to vector<16x256xf32>
    %401 = arith.addf %398, %400 : vector<16x256xf32>
    %cst_253 = arith.constant 0.000000e+00 : f32
    %402 = vector.broadcast %cst_253 : f32 to vector<16x256xf32>
    %403 = arith.maximumf %401, %402 : vector<16x256xf32>
    %c0_254 = arith.constant 0 : index
    %c0_255 = arith.constant 0 : index
    %404 = vector.load %arg10[%c0_254, %c0_255] : memref<256x128xf32, #tpu.memory_space<vmem>>, vector<256x128xf32>
    %cst_256 = arith.constant dense<0.000000e+00> : vector<16x128xf32>
    %405 = tpu.matmul %403, %404, %cst_256 {dimension_numbers = #tpu.dot_dimension_numbers<[1], [0], [0], [1], [0, 0, 1, 1], [], []>} : vector<16x256xf32>, vector<256x128xf32>, vector<16x128xf32> -> vector<16x128xf32>
    %c0_257 = arith.constant 0 : index
    %c0_258 = arith.constant 0 : index
    %406 = vector.load %arg11[%c0_257, %c0_258] : memref<1x128xf32, #tpu.memory_space<vmem>>, vector<1x128xf32>
    %407 = vector.broadcast %406 : vector<1x128xf32> to vector<16x128xf32>
    %408 = arith.addf %405, %407 : vector<16x128xf32>
    %409 = arith.addf %396, %408 : vector<16x128xf32>
    %c2_259 = arith.constant 2 : index
    %c0_260 = arith.constant 0 : index
    %410 = vector.load %arg12[%c2_259, %c0_260] : memref<4x128xf32, #tpu.memory_space<vmem>>, vector<1x128xf32>
    %c3_261 = arith.constant 3 : index
    %c0_262 = arith.constant 0 : index
    %411 = vector.load %arg12[%c3_261, %c0_262] : memref<4x128xf32, #tpu.memory_space<vmem>>, vector<1x128xf32>
    %cst_263 = arith.constant dense<0.000000e+00> : vector<16xf32>
    %412 = vector.multi_reduction <add>, %409, %cst_263 [1] : vector<16x128xf32> to vector<16xf32>
    %413 = vector.shape_cast %412 : vector<16xf32> to vector<16x1xf32>
    %cst_264 = arith.constant 1.280000e+02 : f32
    %414 = vector.broadcast %cst_264 : f32 to vector<16x1xf32>
    %415 = arith.divf %413, %414 : vector<16x1xf32>
    %416 = vector.broadcast %415 : vector<16x1xf32> to vector<16x128xf32>
    %417 = arith.subf %409, %416 : vector<16x128xf32>
    %418 = arith.mulf %417, %417 : vector<16x128xf32>
    %cst_265 = arith.constant dense<0.000000e+00> : vector<16xf32>
    %419 = vector.multi_reduction <add>, %418, %cst_265 [1] : vector<16x128xf32> to vector<16xf32>
    %420 = vector.shape_cast %419 : vector<16xf32> to vector<16x1xf32>
    %cst_266 = arith.constant 1.280000e+02 : f32
    %421 = vector.broadcast %cst_266 : f32 to vector<16x1xf32>
    %422 = arith.divf %420, %421 : vector<16x1xf32>
    %423 = vector.broadcast %415 : vector<16x1xf32> to vector<16x128xf32>
    %424 = arith.subf %409, %423 : vector<16x128xf32>
    %cst_267 = arith.constant 9.99999974E-6 : f32
    %425 = vector.broadcast %cst_267 : f32 to vector<16x1xf32>
    %426 = arith.addf %422, %425 : vector<16x1xf32>
    %427 = math.rsqrt %426 : vector<16x1xf32>
    %428 = vector.broadcast %427 : vector<16x1xf32> to vector<16x128xf32>
    %429 = arith.mulf %424, %428 : vector<16x128xf32>
    %430 = vector.broadcast %410 : vector<1x128xf32> to vector<16x128xf32>
    %431 = arith.mulf %429, %430 : vector<16x128xf32>
    %432 = vector.broadcast %411 : vector<1x128xf32> to vector<16x128xf32>
    %433 = arith.addf %431, %432 : vector<16x128xf32>
    %c1_268 = arith.constant 1 : index
    %c0_269 = arith.constant 0 : index
    %c0_270 = arith.constant 0 : index
    %434 = vector.load %arg13[%c1_268, %c0_269, %c0_270] : memref<2x16x128xf32, #tpu.memory_space<vmem>>, vector<1x16x128xf32>
    %435 = vector.shape_cast %434 : vector<1x16x128xf32> to vector<16x128xf32>
    %436 = vector.shape_cast %433 : vector<16x128xf32> to vector<1x16x128xf32>
    tpu.vector_store %arg13[%c1_268, %c0_269, %c0_270], %436 {strides = array<i32>} : memref<2x16x128xf32, #tpu.memory_space<vmem>>, vector<1x16x128xf32>,
    return
  }
  func.func @transform_0(%arg0: i32) -> (i32, i32, i32) {
    %c0_i32 = arith.constant 0 : i32
    %c0_i32_0 = arith.constant 0 : i32
    %c0_i32_1 = arith.constant 0 : i32
    return %arg0, %c0_i32, %c0_i32_0 : i32, i32, i32
  }
  func.func @transform_1(%arg0: i32) -> (i32, i32, i32) {
    %c0_i32 = arith.constant 0 : i32
    %c0_i32_0 = arith.constant 0 : i32
    %c0_i32_1 = arith.constant 0 : i32
    return %arg0, %c0_i32, %c0_i32_0 : i32, i32, i32
  }
  func.func @transform_2(%arg0: i32) -> (i32, i32, i32) {
    %c0_i32 = arith.constant 0 : i32
    %c0_i32_0 = arith.constant 0 : i32
    %c0_i32_1 = arith.constant 0 : i32
    return %arg0, %c0_i32, %c0_i32_0 : i32, i32, i32
  }
  func.func @transform_3(%arg0: i32) -> (i32, i32, i32) {
    %c0_i32 = arith.constant 0 : i32
    %c0_i32_0 = arith.constant 0 : i32
    %c0_i32_1 = arith.constant 0 : i32
    return %arg0, %c0_i32, %c0_i32_0 : i32, i32, i32
  }
  func.func @transform_4(%arg0: i32) -> (i32, i32, i32) {
    %c0_i32 = arith.constant 0 : i32
    %c0_i32_0 = arith.constant 0 : i32
    %c0_i32_1 = arith.constant 0 : i32
    return %arg0, %c0_i32, %c0_i32_0 : i32, i32, i32
  }
  func.func @transform_5(%arg0: i32) -> (i32, i32) {
    %c0_i32 = arith.constant 0 : i32
    %c0_i32_0 = arith.constant 0 : i32
    %c0_i32_1 = arith.constant 0 : i32
    return %c0_i32, %c0_i32_0 : i32, i32
  }
  func.func @transform_6(%arg0: i32) -> (i32, i32) {
    %c0_i32 = arith.constant 0 : i32
    %c0_i32_0 = arith.constant 0 : i32
    %c0_i32_1 = arith.constant 0 : i32
    return %c0_i32, %c0_i32_0 : i32, i32
  }
  func.func @transform_7(%arg0: i32) -> (i32, i32) {
    %c0_i32 = arith.constant 0 : i32
    %c0_i32_0 = arith.constant 0 : i32
    %c0_i32_1 = arith.constant 0 : i32
    return %c0_i32, %c0_i32_0 : i32, i32
  }
  func.func @transform_8(%arg0: i32) -> (i32, i32) {
    %c0_i32 = arith.constant 0 : i32
    %c0_i32_0 = arith.constant 0 : i32
    %c0_i32_1 = arith.constant 0 : i32
    return %c0_i32, %c0_i32_0 : i32, i32
  }
  func.func @transform_9(%arg0: i32) -> (i32, i32) {
    %c0_i32 = arith.constant 0 : i32
    %c0_i32_0 = arith.constant 0 : i32
    %c0_i32_1 = arith.constant 0 : i32
    return %c0_i32, %c0_i32_0 : i32, i32
  }
  func.func @transform_10(%arg0: i32) -> (i32, i32) {
    %c0_i32 = arith.constant 0 : i32
    %c0_i32_0 = arith.constant 0 : i32
    %c0_i32_1 = arith.constant 0 : i32
    return %c0_i32, %c0_i32_0 : i32, i32
  }
  func.func @transform_11(%arg0: i32) -> (i32, i32) {
    %c0_i32 = arith.constant 0 : i32
    %c0_i32_0 = arith.constant 0 : i32
    %c0_i32_1 = arith.constant 0 : i32
    return %c0_i32, %c0_i32_0 : i32, i32
  }
  func.func @transform_12(%arg0: i32) -> (i32, i32, i32) {
    %c0_i32 = arith.constant 0 : i32
    %c0_i32_0 = arith.constant 0 : i32
    %c0_i32_1 = arith.constant 0 : i32
    return %arg0, %c0_i32, %c0_i32_0 : i32, i32, i32
  }
}

</mosaic_0001>

<bundles_post_ra>
// kernel: transt_forward.4
= control target key start
LH: loop header
LB: loop body
LE: loop exit
PB: predicated region body
PF: predicated region fallthrough
CT: control target
= control target key end

     0   :  { %v371_v0 = vmov 0.0   ;;  %vm61_vm0 = vcmask 523264   ;;  %vm372_vm1 = vmmov 0   ;;  %s629_s1 = inlined_call_operand.vmem [shape: f32[192,128], index: 1, kind: input, shape index: {}]   ;;  %s630_s0 = inlined_call_operand.vmem [shape: f32[40,192], index: 0, kind: input, shape index: {}]   ;;  %s631_s3 = inlined_call_operand.vmem [shape: f32[128,128], index: 3, kind: input, shape index: {}]   ;;  %s632_s2 = inlined_call_operand.vmem [shape: f32[1,128], index: 2, kind: input, shape index: {}]   ;;  %s633_s4 = inlined_call_operand.vmem [shape: f32[1,128], index: 4, kind: input, shape index: {}]   ;;  %s634_s5 = inlined_call_operand.vmem [shape: f32[40,128], index: 5, kind: output, shape index: {}]  }
   0x1   :  { %77 = vmatprep.subr.mxu0 %v371_v0  ;;  %v45_v1 = vld [vmem:[%s629_s1 + $0x78] sm:$0xff]  ;;  %v44_v2 = vld [vmem:[%s629_s1 + $0x70] sm:$0xff]  ;;  %322 = vmatprep.subr.mxu1 %v371_v0  ;;  %v43_v3 = vld [vmem:[%s629_s1 + $0x68] sm:$0xff] }
   0x2   :  { %78 = vmatpush1.msra.mxu0 %v45_v1  ;;  %v42_v4 = vld [vmem:[%s629_s1 + $0x60] sm:$0xff]  ;;  %v41_v5 = vld [vmem:[%s629_s1 + $0x58] sm:$0xff]  ;;  %v40_v6 = vld [vmem:[%s629_s1 + $0x50] sm:$0xff]  ;;  %354 = vmatprep.mubr.msk.f32.mxu1 %vm372_vm1, %v371_v0 }
   0x3   :  { %79 = vmatprep.subr.mxu0 %v371_v0  ;;  %v21_v7 = vld [vmem:[%s630_s0 + $0x8] sm:$0xff]  ;;  %v187_v9 = vld [vmem:[%s631_s3 + $0x78] sm:$0xff]  ;;  %v186_v10 = vld [vmem:[%s631_s3 + $0x70] sm:$0xff] }
   0x4   :  { %80 = vmatpush1.msra.mxu0 %v44_v2  ;;  %295 = vmatprep.mubr.msk.f32.mxu0 %vm61_vm0, %v21_v7  ;;  %v39_v8 = vld [vmem:[%s629_s1 + $0x48] sm:$0xff]  ;;  %v38_v11 = vld [vmem:[%s629_s1 + $0x40] sm:$0xff]  ;;  %v37_v13 = vld [vmem:[%s629_s1 + $0x38] sm:$0xff] }
   0x5   :  { %81 = vmatprep.subr.mxu0 %v371_v0  ;;  %323 = vmatpush3.msra.mxu1 %v187_v9  ;;  %v185_v12 = vld [vmem:[%s631_s3 + $0x68] sm:$0xff]  ;;  %v184_v14 = vld [vmem:[%s631_s3 + $0x60] sm:$0xff]  ;;  %v36_v15 = vld [vmem:[%s629_s1 + $0x30] sm:$0xff] }
   0x6   :  { %82 = vmatpush1.msra.mxu0 %v43_v3  ;;  %324 = vmatprep.subr.mxu1 %v371_v0  ;;  %v183_v16 = vld [vmem:[%s631_s3 + $0x58] sm:$0xff]  ;;  %v35_v17 = vld [vmem:[%s629_s1 + $0x28] sm:$0xff]  ;;  %v182_v18 = vld [vmem:[%s631_s3 + $0x50] sm:$0xff] }
   0x7   :  { %83 = vmatprep.subr.mxu0 %v371_v0  ;;  %325 = vmatpush3.msra.mxu1 %v186_v10  ;;  %v34_v19 = vld [vmem:[%s629_s1 + $0x20] sm:$0xff]  ;;  %v181_v20 = vld [vmem:[%s631_s3 + $0x48] sm:$0xff]  ;;  %v33_v21 = vld [vmem:[%s629_s1 + $0x18] sm:$0xff] }
   0x8   :  { %84 = vmatpush1.msra.mxu0 %v42_v4  ;;  %326 = vmatprep.subr.mxu1 %v371_v0  ;;  %v180_v22 = vld [vmem:[%s631_s3 + $0x40] sm:$0xff]  ;;  %v32_v23 = vld [vmem:[%s629_s1 + $0x10] sm:$0xff]  ;;  %v179_v24 = vld [vmem:[%s631_s3 + $0x38] sm:$0xff] }
   0x9   :  { %85 = vmatprep.subr.mxu0 %v371_v0  ;;  %327 = vmatpush3.msra.mxu1 %v185_v12  ;;  %v31_v25 = vld [vmem:[%s629_s1 + $0x8] sm:$0xff]  ;;  %v178_v26 = vld [vmem:[%s631_s3 + $0x30] sm:$0xff]  ;;  %v30_v27 = vld [vmem:[%s629_s1] sm:$0xff] }
   0xa   :  { %86 = vmatpush1.msra.mxu0 %v41_v5  ;;  %328 = vmatprep.subr.mxu1 %v371_v0  ;;  %v177_v28 = vld [vmem:[%s631_s3 + $0x28] sm:$0xff]  ;;  %v53_v29 = vld [vmem:[%s629_s1 + $0xb8] sm:$0xff]  ;;  %v176_v30 = vld [vmem:[%s631_s3 + $0x20] sm:$0xff] }
   0xb   :  { %87 = vmatprep.subr.mxu0 %v371_v0  ;;  %329 = vmatpush3.msra.mxu1 %v184_v14  ;;  %v52_v31 = vld [vmem:[%s629_s1 + $0xb0] sm:$0xff]  ;;  %v175_v32 = vld [vmem:[%s631_s3 + $0x18] sm:$0xff]  ;;  %v51_v33 = vld [vmem:[%s629_s1 + $0xa8] sm:$0xff] }
   0xc   :  { %88 = vmatpush1.msra.mxu0 %v40_v6  ;;  %330 = vmatprep.subr.mxu1 %v371_v0  ;;  %v50_v34 = vld [vmem:[%s629_s1 + $0xa0] sm:$0xff]  ;;  %v49_v35 = vld [vmem:[%s629_s1 + $0x98] sm:$0xff]  ;;  %v48_v36 = vld [vmem:[%s629_s1 + $0x90] sm:$0xff] }
   0xd   :  { %89 = vmatprep.subr.mxu0 %v371_v0  ;;  %331 = vmatpush3.msra.mxu1 %v183_v16  ;;  %v47_v37 = vld [vmem:[%s629_s1 + $0x88] sm:$0xff]  ;;  %v46_v38 = vld [vmem:[%s629_s1 + $0x80] sm:$0xff]  ;;  %v23_v40 = vld [vmem:[%s630_s0 + $0x18] sm:$0xff] }
   0xe   :  { %90 = vmatpush1.msra.mxu0 %v39_v8  ;;  %332 = vmatprep.subr.mxu1 %v371_v0  ;;  %v20_v39 = vld [vmem:[%s630_s0] sm:$0xff]  ;;  %v22_v41 = vld [vmem:[%s630_s0 + $0x10] sm:$0xff]  ;;  %v25_v42 = vld [vmem:[%s630_s0 + $0x28] sm:$0xff] }
   0xf   :  { %91 = vmatprep.subr.mxu0 %v371_v0  ;;  %333 = vmatpush3.msra.mxu1 %v182_v18  ;;  %v24_v43 = vld [vmem:[%s630_s0 + $0x20] sm:$0xff]  ;;  %v27_v44 = vld [vmem:[%s630_s0 + $0x38] sm:$0xff]  ;;  %v26_v45 = vld [vmem:[%s630_s0 + $0x30] sm:$0xff] }
  0x10   :  { %92 = vmatpush1.msra.mxu0 %v38_v11  ;;  %334 = vmatprep.subr.mxu1 %v371_v0  ;;  %v29_v46 = vld [vmem:[%s630_s0 + $0x48] sm:$0xff]  ;;  %v28_v47 = vld [vmem:[%s630_s0 + $0x40] sm:$0xff]  ;;  %v174_v48 = vld [vmem:[%s631_s3 + $0x10] sm:$0xff] }
  0x11   :  { %93 = vmatprep.subr.mxu0 %v371_v0  ;;  %335 = vmatpush3.msra.mxu1 %v181_v20  ;;  %v173_v49 = vld [vmem:[%s631_s3 + $0x8] sm:$0xff]  ;;  %v172_v50 = vld [vmem:[%s631_s3] sm:$0xff] }
  0x12   :  { %94 = vmatpush1.msra.mxu0 %v37_v13  ;;  %336 = vmatprep.subr.mxu1 %v371_v0  ;;  %v294_v51 = vld [vmem:[%s632_s2] ss:$0 sm:$0xff] }
  0x13   :  { %95 = vmatprep.subr.mxu0 %v371_v0  ;;  %337 = vmatpush3.msra.mxu1 %v180_v22  ;;  %v300_v9 = vld [vmem:[%s633_s4] ss:$0 sm:$0xff] }
  0x14   :  { %96 = vmatpush1.msra.mxu0 %v36_v15  ;;  %338 = vmatprep.subr.mxu1 %v371_v0 }
  0x15   :  { %97 = vmatprep.subr.mxu0 %v371_v0  ;;  %339 = vmatpush3.msra.mxu1 %v179_v24 }
  0x16   :  { %98 = vmatpush1.msra.mxu0 %v35_v17  ;;  %340 = vmatprep.subr.mxu1 %v371_v0 }
  0x17   :  { %99 = vmatprep.subr.mxu0 %v371_v0  ;;  %341 = vmatpush3.msra.mxu1 %v178_v26 }
  0x18   :  { %100 = vmatpush1.msra.mxu0 %v34_v19  ;;  %342 = vmatprep.subr.mxu1 %v371_v0 }
  0x19   :  { %101 = vmatprep.subr.mxu0 %v371_v0  ;;  %343 = vmatpush3.msra.mxu1 %v177_v28 }
  0x1a   :  { %102 = vmatpush1.msra.mxu0 %v33_v21  ;;  %344 = vmatprep.subr.mxu1 %v371_v0 }
  0x1b   :  { %103 = vmatprep.subr.mxu0 %v371_v0  ;;  %345 = vmatpush3.msra.mxu1 %v176_v30 }
  0x1c   :  { %104 = vmatpush1.msra.mxu0 %v32_v23  ;;  %346 = vmatprep.subr.mxu1 %v371_v0 }
  0x1d   :  { %105 = vmatprep.subr.mxu0 %v371_v0  ;;  %347 = vmatpush3.msra.mxu1 %v175_v32 }
  0x1e   :  { %106 = vmatpush1.msra.mxu0 %v31_v25  ;;  %348 = vmatprep.subr.mxu1 %v371_v0 }
  0x1f   :  { %107 = vmatprep.subr.mxu0 %v371_v0  ;;  %349 = vmatpush3.msra.mxu1 %v174_v48 }
  0x20   :  { %108 = vmatpush1.msra.mxu0 %v30_v27  ;;  %350 = vmatprep.subr.mxu1 %v371_v0 }
  0x21   :  { %125 = vmatprep.subr.mxu0 %v371_v0  ;;  %351 = vmatpush3.msra.mxu1 %v173_v49 }
  0x22   :  { %126 = vmatpush2.msra.mxu0 %v53_v29  ;;  %352 = vmatprep.subr.mxu1 %v371_v0 }
  0x23   :  { %127 = vmatprep.subr.mxu0 %v371_v0  ;;  %353 = vmatpush3.msra.mxu1 %v172_v50 }
  0x24   :  { %128 = vmatpush2.msra.mxu0 %v52_v31 }
  0x25   :  { %129 = vmatprep.subr.mxu0 %v371_v0 }
  0x26   :  { %130 = vmatpush2.msra.mxu0 %v51_v33 }
  0x27   :  { %131 = vmatprep.subr.mxu0 %v371_v0 }
  0x28   :  { %132 = vmatpush2.msra.mxu0 %v50_v34 }
  0x29   :  { %133 = vmatprep.subr.mxu0 %v371_v0 }
  0x2a   :  { %134 = vmatpush2.msra.mxu0 %v49_v35 }
  0x2b   :  { %135 = vmatprep.subr.mxu0 %v371_v0 }
  0x2c   :  { %136 = vmatpush2.msra.mxu0 %v48_v36 }
  0x2d   :  { %137 = vmatprep.subr.mxu0 %v371_v0 }
  0x2e   :  { %138 = vmatpush2.msra.mxu0 %v47_v37 }
  0x2f   :  { %139 = vmatprep.subr.mxu0 %v371_v0 }
  0x30   :  { %140 = vmatpush2.msra.mxu0 %v46_v38 }
  0x31   :  { %142 = vmatmul.mubr.f32.vlgmr.msra.gmra.mxu0 %v20_v39 }
  0x32   :  { %296 = vmatprep.mubr.msk.f32.mxu0 %vm61_vm0, %v23_v40 }
  0x35   :  { %147 = vmatmul.mubr.f32.gmra.mxu0 %v22_v41 }
  0x36   :  { %297 = vmatprep.mubr.msk.f32.mxu0 %vm61_vm0, %v25_v42 }
  0x39   :  { %152 = vmatmul.mubr.f32.gmra.mxu0 %v24_v43 }
  0x3a   :  { %298 = vmatprep.mubr.msk.f32.mxu0 %vm61_vm0, %v27_v44 }
  0x3d   :  { %157 = vmatmul.mubr.f32.gmra.mxu0 %v26_v45 }
  0x3e   :  { %299 = vmatprep.mubr.msk.f32.mxu0 %vm61_vm0, %v29_v46 }
  0x41   :  { %162 = vmatmul.mubr.f32.gmra.mxu0 %v28_v47 }
  0xf1   :  { %v143_v52 = vpop.f32.mrf.mxu0 }
  0xf2   :  { %v144_v53 = vadd.f32 %v294_v51, %v143_v52 }
  0xf3   :  { %v145_v54 = vpop.f32.mrf.mxu0 }
  0xf4   :  { %v167_v55 = vmax.f32 %v144_v53, 0.0 }
  0xf5   :  { %v148_v56 = vpop.f32.mrf.mxu0 }
  0xf6   :  { %v149_v57 = vadd.f32 %v294_v51, %v148_v56  ;;  %355 = vmatmul.mubr.f32.vlgmr.msra.gmra.mxu1 %v167_v55 }
  0xf7   :  { %v150_v58 = vpop.f32.mrf.mxu0  ;;  %357 = vmatprep.mubr.msk.f32.mxu1 %vm372_vm1, %v371_v0 }
  0xf8   :  { %v168_v59 = vmax.f32 %v149_v57, 0.0 }
  0xf9   :  { %v153_v60 = vpop.f32.mrf.mxu0 }
  0xfa   :  { %v154_v61 = vadd.f32 %v294_v51, %v153_v60  ;;  %358 = vmatmul.mubr.f32.gmra.mxu1 %v168_v59 }
  0xfb   :  { %v155_v62 = vpop.f32.mrf.mxu0  ;;  %360 = vmatprep.mubr.msk.f32.mxu1 %vm372_vm1, %v371_v0 }
  0xfc   :  { %v169_v63 = vmax.f32 %v154_v61, 0.0 }
  0xfd   :  { %v158_v1 = vpop.f32.mrf.mxu0 }
  0xfe   :  { %v159_v2 = vadd.f32 %v294_v51, %v158_v1  ;;  %361 = vmatmul.mubr.f32.gmra.mxu1 %v169_v63 }
  0xff   :  { %v160_v3 = vpop.f32.mrf.mxu0  ;;  %363 = vmatprep.mubr.msk.f32.mxu1 %vm372_vm1, %v371_v0 }
 0x100   :  { %v170_v4 = vmax.f32 %v159_v2, 0.0 }
 0x101   :  { %v163_v5 = vpop.f32.mrf.mxu0 }
 0x102   :  { %v164_v6 = vadd.f32 %v294_v51, %v163_v5  ;;  %364 = vmatmul.mubr.f32.gmra.mxu1 %v170_v4 }
 0x103   :  { %v165_v7 = vpop.f32.mrf.mxu0  ;;  %366 = vmatprep.mubr.msk.f32.mxu1 %vm372_vm1, %v371_v0 }
 0x104   :  { %v171_v8 = vmax.f32 %v164_v6, 0.0 }
 0x106   :  { %367 = vmatmul.mubr.f32.gmra.mxu1 %v171_v8 }
 0x1b6   :  { %v261_v10 = vpop.f32.mrf.mxu1 }
 0x1b7   :  { %v262_v11 = vadd.f32 %v300_v9, %v261_v10 }
 0x1b8   :  { %v356_v12 = vpop.f32.mrf.mxu1 }
 0x1b9   :  { %285 = vst [vmem:[%s634_s5] sm:$0xff] %v262_v11 }
 0x1ba   :  { %v266_v13 = vpop.f32.mrf.mxu1 }
 0x1bb   :  { %v267_v14 = vadd.f32 %v300_v9, %v266_v13 }
 0x1bc   :  { %v359_v15 = vpop.f32.mrf.mxu1 }
 0x1bd   :  { %286 = vst [vmem:[%s634_s5 + $0x8] sm:$0xff] %v267_v14 }
 0x1be   :  { %v271_v0 = vpop.f32.mrf.mxu1 }
 0x1bf   :  { %v272_v16 = vadd.f32 %v300_v9, %v271_v0 }
 0x1c0   :  { %v362_v17 = vpop.f32.mrf.mxu1 }
 0x1c1   :  { %287 = vst [vmem:[%s634_s5 + $0x10] sm:$0xff] %v272_v16 }
 0x1c2   :  { %v276_v18 = vpop.f32.mrf.mxu1 }
 0x1c3   :  { %v277_v19 = vadd.f32 %v300_v9, %v276_v18 }
 0x1c4   :  { %v365_v20 = vpop.f32.mrf.mxu1 }
 0x1c5   :  { %288 = vst [vmem:[%s634_s5 + $0x18] sm:$0xff] %v277_v19 }
 0x1c6   :  { %v281_v21 = vpop.f32.mrf.mxu1 }
 0x1c7   :  { %v282_v22 = vadd.f32 %v300_v9, %v281_v21 }
 0x1c8   :  { %v368_v23 = vpop.f32.mrf.mxu1 }
 0x1c9   :  { %289 = vst [vmem:[%s634_s5 + $0x20] sm:$0xff] %v282_v22 }

// kernel: transt_forward.7
= control target key start
LH: loop header
LB: loop body
LE: loop exit
PB: predicated region body
PF: predicated region fallthrough
CT: control target
= control target key end

     0   :  { %s1535_s1 = inlined_call_operand.vmem [shape: f32[2,128,128], index: 1, kind: input, shape index: {}]   ;;  %s1536_s0 = inlined_call_operand.vmem [shape: f32[32,128], index: 0, kind: input, shape index: {}]   ;;  %s1537_s3 = inlined_call_operand.vmem [shape: f32[2,128,128], index: 3, kind: input, shape index: {}]   ;;  %s1538_s2 = inlined_call_operand.vmem [shape: f32[2,1,128], index: 2, kind: input, shape index: {}]   ;;  %s1539_s5 = inlined_call_operand.vmem [shape: f32[2,128,128], index: 5, kind: input, shape index: {}]   ;;  %s1540_s4 = inlined_call_operand.vmem [shape: f32[2,1,128], index: 4, kind: input, shape index: {}]   ;;  %s1541_s6 = inlined_call_operand.vmem [shape: f32[1,128], index: 6, kind: input, shape index: {}]   ;;  %s1542_s7 = inlined_call_operand.vmem [shape: f32[32,128], index: 7, kind: output, shape index: {}]  }
   0x1   :  { %v45_v0 = vld [vmem:[%s1535_s1 + $0x78] sm:$0xff]  ;;  %v44_v1 = vld [vmem:[%s1535_s1 + $0x70] sm:$0xff]  ;;  %v43_v2 = vld [vmem:[%s1535_s1 + $0x68] sm:$0xff] }
   0x2   :  { %916 = vmatprep.subr.mxu0 %v45_v0  ;;  %v42_v3 = vld [vmem:[%s1535_s1 + $0x60] sm:$0xff]  ;;  %v41_v5 = vld [vmem:[%s1535_s1 + $0x58] sm:$0xff]  ;;  %v40_v6 = vld [vmem:[%s1535_s1 + $0x50] sm:$0xff] }
   0x3   :  { %917 = vmatpush3.msra.mxu0 %v45_v0  ;;  %v1215_v4 = vld [vmem:[%s1536_s0] sm:$0xff]  ;;  %v39_v7 = vld [vmem:[%s1535_s1 + $0x48] sm:$0xff]  ;;  %v157_v9 = vld [vmem:[%s1537_s3 + $0x78] sm:$0xff] }
   0x4   :  { %918 = vmatprep.subr.mxu0 %v44_v1  ;;  %948 = vmatprep.mubr.f32.mxu0 %v1215_v4  ;;  %v38_v8 = vld [vmem:[%s1535_s1 + $0x40] sm:$0xff]  ;;  %v156_v10 = vld [vmem:[%s1537_s3 + $0x70] sm:$0xff]  ;;  %v37_v11 = vld [vmem:[%s1535_s1 + $0x38] sm:$0xff] }
   0x5   :  { %919 = vmatpush3.msra.mxu0 %v44_v1  ;;  %954 = vmatprep.subr.mxu1 %v157_v9  ;;  %v155_v12 = vld [vmem:[%s1537_s3 + $0x68] sm:$0xff]  ;;  %v36_v13 = vld [vmem:[%s1535_s1 + $0x30] sm:$0xff]  ;;  %v154_v14 = vld [vmem:[%s1537_s3 + $0x60] sm:$0xff] }
   0x6   :  { %920 = vmatprep.subr.mxu0 %v43_v2  ;;  %955 = vmatpush3.msra.mxu1 %v157_v9  ;;  %v35_v15 = vld [vmem:[%s1535_s1 + $0x28] sm:$0xff]  ;;  %v153_v16 = vld [vmem:[%s1537_s3 + $0x58] sm:$0xff]  ;;  %v34_v17 = vld [vmem:[%s1535_s1 + $0x20] sm:$0xff] }
   0x7   :  { %921 = vmatpush3.msra.mxu0 %v43_v2  ;;  %956 = vmatprep.subr.mxu1 %v156_v10  ;;  %v152_v18 = vld [vmem:[%s1537_s3 + $0x50] sm:$0xff]  ;;  %v33_v19 = vld [vmem:[%s1535_s1 + $0x18] sm:$0xff]  ;;  %v151_v20 = vld [vmem:[%s1537_s3 + $0x48] sm:$0xff] }
   0x8   :  { %922 = vmatprep.subr.mxu0 %v42_v3  ;;  %957 = vmatpush3.msra.mxu1 %v156_v10  ;;  %v32_v21 = vld [vmem:[%s1535_s1 + $0x10] sm:$0xff]  ;;  %v150_v22 = vld [vmem:[%s1537_s3 + $0x40] sm:$0xff]  ;;  %v31_v23 = vld [vmem:[%s1535_s1 + $0x8] sm:$0xff] }
   0x9   :  { %923 = vmatpush3.msra.mxu0 %v42_v3  ;;  %958 = vmatprep.subr.mxu1 %v155_v12  ;;  %v149_v24 = vld [vmem:[%s1537_s3 + $0x38] sm:$0xff]  ;;  %v30_v25 = vld [vmem:[%s1535_s1] sm:$0xff]  ;;  %v148_v26 = vld [vmem:[%s1537_s3 + $0x30] sm:$0xff] }
   0xa   :  { %924 = vmatprep.subr.mxu0 %v41_v5  ;;  %959 = vmatpush3.msra.mxu1 %v155_v12  ;;  %v1287_v27 = vld [vmem:[%s1536_s0 + $0x8] sm:$0xff]  ;;  %v754_v28 = vld [vmem:[%s1535_s1 + $0xf8] sm:$0xff]  ;;  %v28_v29 = vld [vmem:[%s1536_s0 + $0x10] sm:$0xff] }
   0xb   :  { %925 = vmatpush3.msra.mxu0 %v41_v5  ;;  %960 = vmatprep.subr.mxu1 %v154_v14  ;;  %v753_v30 = vld [vmem:[%s1535_s1 + $0xf0] sm:$0xff]  ;;  %v147_v31 = vld [vmem:[%s1537_s3 + $0x28] sm:$0xff]  ;;  %v29_v33 = vld [vmem:[%s1536_s0 + $0x18] sm:$0xff] }
   0xc   :  { %926 = vmatprep.subr.mxu0 %v40_v6  ;;  %961 = vmatpush3.msra.mxu1 %v154_v14  ;;  %v752_v32 = vld [vmem:[%s1535_s1 + $0xe8] sm:$0xff]  ;;  %v751_v34 = vld [vmem:[%s1535_s1 + $0xe0] sm:$0xff]  ;;  %v750_v36 = vld [vmem:[%s1535_s1 + $0xd8] sm:$0xff] }
   0xd   :  { %927 = vmatpush3.msra.mxu0 %v40_v6  ;;  %962 = vmatprep.subr.mxu1 %v153_v16  ;;  %v146_v35 = vld [vmem:[%s1537_s3 + $0x20] sm:$0xff]  ;;  %v749_v37 = vld [vmem:[%s1535_s1 + $0xd0] sm:$0xff]  ;;  %v748_v38 = vld [vmem:[%s1535_s1 + $0xc8] sm:$0xff] }
   0xe   :  { %928 = vmatprep.subr.mxu0 %v39_v7  ;;  %963 = vmatpush3.msra.mxu1 %v153_v16  ;;  %v747_v39 = vld [vmem:[%s1535_s1 + $0xc0] sm:$0xff]  ;;  %v746_v40 = vld [vmem:[%s1535_s1 + $0xb8] sm:$0xff]  ;;  %v745_v41 = vld [vmem:[%s1535_s1 + $0xb0] sm:$0xff] }
   0xf   :  { %929 = vmatpush3.msra.mxu0 %v39_v7  ;;  %964 = vmatprep.subr.mxu1 %v152_v18  ;;  %v744_v42 = vld [vmem:[%s1535_s1 + $0xa8] sm:$0xff]  ;;  %v743_v43 = vld [vmem:[%s1535_s1 + $0xa0] sm:$0xff]  ;;  %v742_v44 = vld [vmem:[%s1535_s1 + $0x98] sm:$0xff] }
  0x10   :  { %930 = vmatprep.subr.mxu0 %v38_v8  ;;  %965 = vmatpush3.msra.mxu1 %v152_v18  ;;  %v741_v45 = vld [vmem:[%s1535_s1 + $0x90] sm:$0xff]  ;;  %v740_v46 = vld [vmem:[%s1535_s1 + $0x88] sm:$0xff]  ;;  %v739_v47 = vld [vmem:[%s1535_s1 + $0x80] sm:$0xff] }
  0x11   :  { %931 = vmatpush3.msra.mxu0 %v38_v8  ;;  %966 = vmatprep.subr.mxu1 %v151_v20  ;;  %v145_v48 = vld [vmem:[%s1537_s3 + $0x18] sm:$0xff]  ;;  %v144_v49 = vld [vmem:[%s1537_s3 + $0x10] sm:$0xff]  ;;  %v143_v50 = vld [vmem:[%s1537_s3 + $0x8] sm:$0xff] }
  0x12   :  { %932 = vmatprep.subr.mxu0 %v37_v11  ;;  %967 = vmatpush3.msra.mxu1 %v151_v20  ;;  %v142_v51 = vld [vmem:[%s1537_s3] sm:$0xff]  ;;  %v772_v52 = vld [vmem:[%s1537_s3 + $0xf8] sm:$0xff]  ;;  %v771_v63 = vld [vmem:[%s1537_s3 + $0xf0] sm:$0xff] }
  0x13   :  { %933 = vmatpush3.msra.mxu0 %v37_v11  ;;  %968 = vmatprep.subr.mxu1 %v150_v22  ;;  %v737_v53 = vld [vmem:[%s1538_s2] ss:$0 sm:$0xff]  ;;  %v770_v2 = vld [vmem:[%s1537_s3 + $0xe8] sm:$0xff]  ;;  %v768_v5 = vld [vmem:[%s1537_s3 + $0xd8] sm:$0xff] }
  0x14   :  { %934 = vmatprep.subr.mxu0 %v36_v13  ;;  %969 = vmatpush3.msra.mxu1 %v150_v22  ;;  %v767_v6 = vld [vmem:[%s1537_s3 + $0xd0] sm:$0xff]  ;;  %v766_v7 = vld [vmem:[%s1537_s3 + $0xc8] sm:$0xff]  ;;  %v765_v8 = vld [vmem:[%s1537_s3 + $0xc0] sm:$0xff] }
  0x15   :  { %935 = vmatpush3.msra.mxu0 %v36_v13  ;;  %970 = vmatprep.subr.mxu1 %v149_v24  ;;  %v764_v9 = vld [vmem:[%s1537_s3 + $0xb8] sm:$0xff]  ;;  %v763_v10 = vld [vmem:[%s1537_s3 + $0xb0] sm:$0xff]  ;;  %v762_v11 = vld [vmem:[%s1537_s3 + $0xa8] sm:$0xff] }
  0x16   :  { %936 = vmatprep.subr.mxu0 %v35_v15  ;;  %971 = vmatpush3.msra.mxu1 %v149_v24  ;;  %v761_v12 = vld [vmem:[%s1537_s3 + $0xa0] sm:$0xff]  ;;  %v760_v13 = vld [vmem:[%s1537_s3 + $0x98] sm:$0xff] }
  0x17   :  { %937 = vmatpush3.msra.mxu0 %v35_v15  ;;  %972 = vmatprep.subr.mxu1 %v148_v26  ;;  %v756_v14 = vld [vmem:[%s1538_s2 + $0x1] ss:$0 sm:$0xff]  ;;  %v759_v15 = vld [vmem:[%s1537_s3 + $0x90] sm:$0xff]  ;;  %v269_v24 = vld [vmem:[%s1539_s5 + $0x78] sm:$0xff] }
  0x18   :  { %938 = vmatprep.subr.mxu0 %v34_v17  ;;  %973 = vmatpush3.msra.mxu1 %v148_v26 }
  0x19   :  { %939 = vmatpush3.msra.mxu0 %v34_v17  ;;  %974 = vmatprep.subr.mxu1 %v147_v31  ;;  %v758_v17 = vld [vmem:[%s1537_s3 + $0x88] sm:$0xff] }
  0x1a   :  { %940 = vmatprep.subr.mxu0 %v33_v19  ;;  %975 = vmatpush3.msra.mxu1 %v147_v31  ;;  %v267_v31 = vld [vmem:[%s1539_s5 + $0x68] sm:$0xff] }
  0x1b   :  { %941 = vmatpush3.msra.mxu0 %v33_v19  ;;  %976 = vmatprep.subr.mxu1 %v146_v35 }
  0x1c   :  { %942 = vmatprep.subr.mxu0 %v32_v21  ;;  %977 = vmatpush3.msra.mxu1 %v146_v35  ;;  %v264_v35 = vld [vmem:[%s1539_s5 + $0x50] sm:$0xff] }
  0x1d   :  { %943 = vmatpush3.msra.mxu0 %v32_v21  ;;  %978 = vmatprep.subr.mxu1 %v145_v48  ;;  %v757_v21 = vld [vmem:[%s1537_s3 + $0x80] sm:$0xff] }
  0x1e   :  { %944 = vmatprep.subr.mxu0 %v31_v23  ;;  %979 = vmatpush3.msra.mxu1 %v145_v48  ;;  %v788_v48 = vld [vmem:[%s1539_s5 + $0xe8] sm:$0xff] }
  0x1f   :  { %945 = vmatpush3.msra.mxu0 %v31_v23  ;;  %980 = vmatprep.subr.mxu1 %v144_v49 }
  0x20   :  { %946 = vmatprep.subr.mxu0 %v30_v25  ;;  %981 = vmatpush3.msra.mxu1 %v144_v49  ;;  %v787_v49 = vld [vmem:[%s1539_s5 + $0xe0] sm:$0xff] }
  0x21   :  { %947 = vmatpush3.msra.mxu0 %v30_v25  ;;  %982 = vmatprep.subr.mxu1 %v143_v50 }
  0x22   :  { %949 = vmatmul.mubr.f32.vlgmr.msra.gmra.mxu0 %v1287_v27  ;;  %992 = vmatprep.subr.mxu0 %v754_v28 }
  0x23   :  { %993 = vmatpush3.msra.mxu0 %v754_v28  ;;  %951 = vmatprep.mubr.f32.mxu0 %v28_v29 }
  0x24   :  { %994 = vmatprep.subr.mxu0 %v753_v30  ;;  %983 = vmatpush3.msra.mxu1 %v143_v50  ;;  %v786_v50 = vld [vmem:[%s1539_s5 + $0xd8] sm:$0xff] }
  0x25   :  { %995 = vmatpush3.msra.mxu0 %v753_v30  ;;  %984 = vmatprep.subr.mxu1 %v142_v51 }
  0x26   :  { %996 = vmatprep.subr.mxu0 %v752_v32  ;;  %952 = vmatmul.mubr.f32.gmra.mxu0 %v29_v33 }
  0x27   :  { %997 = vmatpush3.msra.mxu0 %v752_v32  ;;  %1024 = vmatprep.mubr.f32.mxu0 %v1215_v4  ;;  %v769_v4 = vld [vmem:[%s1537_s3 + $0xe0] sm:$0xff] }
  0x28   :  { %998 = vmatprep.subr.mxu0 %v751_v34  ;;  %985 = vmatpush3.msra.mxu1 %v142_v51  ;;  %v785_v51 = vld [vmem:[%s1539_s5 + $0xd0] sm:$0xff] }
  0x29   :  { %999 = vmatpush3.msra.mxu0 %v751_v34  ;;  %1030 = vmatprep.subr.mxu1 %v772_v52  ;;  %v265_v34 = vld [vmem:[%s1539_s5 + $0x58] sm:$0xff] }
  0x2a   :  { %1000 = vmatprep.subr.mxu0 %v750_v36 }
  0x2b   :  { %1001 = vmatpush3.msra.mxu0 %v750_v36  ;;  %v263_v36 = vld [vmem:[%s1539_s5 + $0x48] sm:$0xff] }
  0x2c   :  { %1002 = vmatprep.subr.mxu0 %v749_v37 }
  0x2d   :  { %1003 = vmatpush3.msra.mxu0 %v749_v37  ;;  %v262_v37 = vld [vmem:[%s1539_s5 + $0x40] sm:$0xff] }
  0x2e   :  { %1004 = vmatprep.subr.mxu0 %v748_v38 }
  0x2f   :  { %1005 = vmatpush3.msra.mxu0 %v748_v38  ;;  %v261_v38 = vld [vmem:[%s1539_s5 + $0x38] sm:$0xff] }
  0x30   :  { %1006 = vmatprep.subr.mxu0 %v747_v39 }
  0x31   :  { %1007 = vmatpush3.msra.mxu0 %v747_v39  ;;  %v260_v39 = vld [vmem:[%s1539_s5 + $0x30] sm:$0xff] }
  0x32   :  { %1008 = vmatprep.subr.mxu0 %v746_v40 }
  0x33   :  { %1009 = vmatpush3.msra.mxu0 %v746_v40  ;;  %v259_v40 = vld [vmem:[%s1539_s5 + $0x28] sm:$0xff] }
  0x34   :  { %1010 = vmatprep.subr.mxu0 %v745_v41 }
  0x35   :  { %1011 = vmatpush3.msra.mxu0 %v745_v41  ;;  %v258_v41 = vld [vmem:[%s1539_s5 + $0x20] sm:$0xff] }
  0x36   :  { %1012 = vmatprep.subr.mxu0 %v744_v42 }
  0x37   :  { %1013 = vmatpush3.msra.mxu0 %v744_v42  ;;  %v257_v42 = vld [vmem:[%s1539_s5 + $0x18] sm:$0xff] }
  0x38   :  { %1014 = vmatprep.subr.mxu0 %v743_v43 }
  0x39   :  { %1015 = vmatpush3.msra.mxu0 %v743_v43  ;;  %v256_v43 = vld [vmem:[%s1539_s5 + $0x10] sm:$0xff] }
  0x3a   :  { %1016 = vmatprep.subr.mxu0 %v742_v44 }
  0x3b   :  { %1017 = vmatpush3.msra.mxu0 %v742_v44  ;;  %v255_v44 = vld [vmem:[%s1539_s5 + $0x8] sm:$0xff] }
  0x3c   :  { %1018 = vmatprep.subr.mxu0 %v741_v45 }
  0x3d   :  { %1019 = vmatpush3.msra.mxu0 %v741_v45  ;;  %v254_v45 = vld [vmem:[%s1539_s5] sm:$0xff] }
  0x3e   :  { %1020 = vmatprep.subr.mxu0 %v740_v46 }
  0x3f   :  { %1021 = vmatpush3.msra.mxu0 %v740_v46  ;;  %v790_v46 = vld [vmem:[%s1539_s5 + $0xf8] sm:$0xff] }
  0x40   :  { %1022 = vmatprep.subr.mxu0 %v739_v47 }
  0x41   :  { %1023 = vmatpush3.msra.mxu0 %v739_v47  ;;  %v789_v47 = vld [vmem:[%s1539_s5 + $0xf0] sm:$0xff] }
  0x42   :  { %1025 = vmatmul.mubr.f32.vlgmr.msra.gmra.mxu0 %v1287_v27  ;;  %1068 = vmatprep.subr.mxu0 %v790_v46 }
  0x43   :  { %1027 = vmatprep.mubr.f32.mxu0 %v28_v29  ;;  %v268_v29 = vld [vmem:[%s1539_s5 + $0x70] sm:$0xff]  ;;  %1069 = vmatpush3.msra.mxu0 %v790_v46 }
  0x44   :  { %1070 = vmatprep.subr.mxu0 %v789_v47 }
  0x45   :  { %1071 = vmatpush3.msra.mxu0 %v789_v47 }
  0x46   :  { %1028 = vmatmul.mubr.f32.gmra.mxu0 %v29_v33  ;;  %v266_v33 = vld [vmem:[%s1539_s5 + $0x60] sm:$0xff]  ;;  %1072 = vmatprep.subr.mxu0 %v788_v48 }
  0x47   :  { %1073 = vmatpush3.msra.mxu0 %v788_v48  ;;  %v696_v48 = vlaneseq }
  0x48   :  { %1074 = vmatprep.subr.mxu0 %v787_v49 }
  0x49   :  { %1075 = vmatpush3.msra.mxu0 %v787_v49 }
  0x4a   :  { %1076 = vmatprep.subr.mxu0 %v786_v50 }
  0x4b   :  { %1077 = vmatpush3.msra.mxu0 %v786_v50 }
  0x4c   :  { %1078 = vmatprep.subr.mxu0 %v785_v51 }
  0x4d   :  { %1079 = vmatpush3.msra.mxu0 %v785_v51 }
  0xe2   :  { %v950_v54 = vpop.f32.mrf.mxu0 }
  0xe3   :  { %v125_v55 = vadd.f32 %v950_v54, %v737_v53  ;;  %v782_v54 = vld [vmem:[%s1539_s5 + $0xb8] sm:$0xff] }
  0xe4   :  { %v119_v56 = vpop.f32.mrf.mxu0 }
  0xe5   :  { %v120_v57 = vadd.f32 %v737_v53, %v119_v56  ;;  %v139_v61 = vmax.f32 %v125_v55, 0.0  ;;  %v781_v55 = vld [vmem:[%s1539_s5 + $0xb0] sm:$0xff]  ;;  %v780_v56 = vld [vmem:[%s1539_s5 + $0xa8] sm:$0xff] }
  0xe6   :  { %v953_v58 = vpop.f32.mrf.mxu0 }
  0xe7   :  { %v138_v59 = vmax.f32 %v120_v57, 0.0  ;;  %v135_v60 = vadd.f32 %v953_v58, %v737_v53  ;;  %v779_v57 = vld [vmem:[%s1539_s5 + $0xa0] sm:$0xff]  ;;  %v778_v58 = vld [vmem:[%s1539_s5 + $0x98] sm:$0xff] }
  0xe8   :  { %v129_v62 = vpop.f32.mrf.mxu0 }
  0xe9   :  { %986 = vmatprep.mubr.f32.mxu1 %v138_v59  ;;  %v130_v0 = vadd.f32 %v737_v53, %v129_v62  ;;  %v141_v1 = vmax.f32 %v135_v60, 0.0  ;;  %v783_v53 = vld [vmem:[%s1539_s5 + $0xc0] sm:$0xff]  ;;  %v777_v59 = vld [vmem:[%s1539_s5 + $0x90] sm:$0xff]  ;;  %v776_v60 = vld [vmem:[%s1539_s5 + $0x88] sm:$0xff] }
  0xea   :  { %987 = vmatmul.mubr.f32.vlgmr.msra.gmra.mxu1 %v139_v61  ;;  %v775_v61 = vld [vmem:[%s1539_s5 + $0x80] sm:$0xff] }
  0xeb   :  { %1031 = vmatpush3.msra.mxu1 %v772_v52  ;;  %v140_v3 = vmax.f32 %v130_v0, 0.0  ;;  %v784_v52 = vld [vmem:[%s1539_s5 + $0xc8] sm:$0xff]  ;;  %v738_v62 = vld [vmem:[%s1540_s4] ss:$0 sm:$0xff] }
  0xec   :  { %1032 = vmatprep.subr.mxu1 %v771_v63  ;;  %1080 = vmatprep.subr.mxu0 %v784_v52 }
  0xed   :  { %1033 = vmatpush3.msra.mxu1 %v771_v63  ;;  %989 = vmatprep.mubr.f32.mxu1 %v140_v3 }
  0xee   :  { %1034 = vmatprep.subr.mxu1 %v770_v2  ;;  %990 = vmatmul.mubr.f32.gmra.mxu1 %v141_v1 }
  0xef   :  { %1035 = vmatpush3.msra.mxu1 %v770_v2  ;;  %1081 = vmatpush3.msra.mxu0 %v784_v52 }
  0xf0   :  { %1036 = vmatprep.subr.mxu1 %v769_v4  ;;  %1082 = vmatprep.subr.mxu0 %v783_v53 }
  0xf1   :  { %1037 = vmatpush3.msra.mxu1 %v769_v4  ;;  %1083 = vmatpush3.msra.mxu0 %v783_v53  ;;  %v697_v53 = vand.u32 127, %v696_v48 }
  0xf2   :  { %1038 = vmatprep.subr.mxu1 %v768_v5  ;;  %1084 = vmatprep.subr.mxu0 %v782_v54 }
  0xf3   :  { %1039 = vmatpush3.msra.mxu1 %v768_v5  ;;  %1085 = vmatpush3.msra.mxu0 %v782_v54  ;;  %vm698_vm0 = vcmp.ge.s32.totalorder %v697_v53, 2  ;;  %vm699_vm1 = vcmp.lt.s32.totalorder %v697_v53, 6 }
  0xf4   :  { %1040 = vmatprep.subr.mxu1 %v767_v6  ;;  %1086 = vmatprep.subr.mxu0 %v781_v55  ;;  %vm700_vm2 = vmand %vm698_vm0, %vm699_vm1 }
  0xf5   :  { %1041 = vmatpush3.msra.mxu1 %v767_v6  ;;  %1087 = vmatpush3.msra.mxu0 %v781_v55 }
  0xf6   :  { %1042 = vmatprep.subr.mxu1 %v766_v7  ;;  %1088 = vmatprep.subr.mxu0 %v780_v56 }
  0xf7   :  { %1043 = vmatpush3.msra.mxu1 %v766_v7  ;;  %1089 = vmatpush3.msra.mxu0 %v780_v56 }
  0xf8   :  { %1044 = vmatprep.subr.mxu1 %v765_v8  ;;  %1090 = vmatprep.subr.mxu0 %v779_v57 }
  0xf9   :  { %1045 = vmatpush3.msra.mxu1 %v765_v8  ;;  %1091 = vmatpush3.msra.mxu0 %v779_v57 }
  0xfa   :  { %1046 = vmatprep.subr.mxu1 %v764_v9  ;;  %1092 = vmatprep.subr.mxu0 %v778_v58 }
  0xfb   :  { %1047 = vmatpush3.msra.mxu1 %v764_v9  ;;  %1093 = vmatpush3.msra.mxu0 %v778_v58 }
  0xfc   :  { %1048 = vmatprep.subr.mxu1 %v763_v10  ;;  %1094 = vmatprep.subr.mxu0 %v777_v59 }
  0xfd   :  { %1049 = vmatpush3.msra.mxu1 %v763_v10  ;;  %1095 = vmatpush3.msra.mxu0 %v777_v59 }
  0xfe   :  { %1050 = vmatprep.subr.mxu1 %v762_v11  ;;  %1096 = vmatprep.subr.mxu0 %v776_v60 }
  0xff   :  { %1051 = vmatpush3.msra.mxu1 %v762_v11  ;;  %1097 = vmatpush3.msra.mxu0 %v776_v60  ;;  %v774_v11 = vld [vmem:[%s1540_s4 + $0x1] ss:$0 sm:$0xff] }
 0x100   :  { %1052 = vmatprep.subr.mxu1 %v761_v12  ;;  %1098 = vmatprep.subr.mxu0 %v775_v61 }
 0x101   :  { %1053 = vmatpush3.msra.mxu1 %v761_v12  ;;  %1099 = vmatpush3.msra.mxu0 %v775_v61 }
 0x102   :  { %v1026_v16 = vpop.f32.mrf.mxu0  ;;  %1054 = vmatprep.subr.mxu1 %v760_v13 }
 0x103   :  { %1055 = vmatpush3.msra.mxu1 %v760_v13  ;;  %v367_v18 = vadd.f32 %v1026_v16, %v756_v14 }
 0x104   :  { %v361_v19 = vpop.f32.mrf.mxu0  ;;  %1056 = vmatprep.subr.mxu1 %v759_v15 }
 0x105   :  { %v362_v20 = vadd.f32 %v756_v14, %v361_v19  ;;  %1057 = vmatpush3.msra.mxu1 %v759_v15  ;;  %v381_v25 = vmax.f32 %v367_v18, 0.0 }
 0x106   :  { %v1029_v22 = vpop.f32.mrf.mxu0  ;;  %1058 = vmatprep.subr.mxu1 %v758_v17 }
 0x107   :  { %v380_v23 = vmax.f32 %v362_v20, 0.0  ;;  %1059 = vmatpush3.msra.mxu1 %v758_v17  ;;  %v377_v26 = vadd.f32 %v1029_v22, %v756_v14 }
 0x108   :  { %v371_v27 = vpop.f32.mrf.mxu0  ;;  %1060 = vmatprep.subr.mxu1 %v757_v21 }
 0x109   :  { %v372_v28 = vadd.f32 %v756_v14, %v371_v27  ;;  %1061 = vmatpush3.msra.mxu1 %v757_v21  ;;  %1062 = vmatprep.mubr.f32.mxu1 %v380_v23  ;;  %v383_v32 = vmax.f32 %v377_v26, 0.0  ;;  %v791_v27 = vld [vmem:[%s1541_s6] ss:$0 sm:$0xff] }
 0x10a   :  { %1063 = vmatmul.mubr.f32.vlgmr.msra.gmra.mxu1 %v381_v25  ;;  %1106 = vmatprep.subr.mxu1 %v269_v24 }
 0x10b   :  { %v382_v30 = vmax.f32 %v372_v28, 0.0  ;;  %1107 = vmatpush3.msra.mxu1 %v269_v24 }
 0x10c   :  { %1108 = vmatprep.subr.mxu1 %v268_v29 }
 0x10d   :  { %1065 = vmatprep.mubr.f32.mxu1 %v382_v30  ;;  %1109 = vmatpush3.msra.mxu1 %v268_v29 }
 0x10e   :  { %1066 = vmatmul.mubr.f32.gmra.mxu1 %v383_v32  ;;  %1110 = vmatprep.subr.mxu1 %v267_v31 }
 0x10f   :  { %1111 = vmatpush3.msra.mxu1 %v267_v31 }
 0x110   :  { %1112 = vmatprep.subr.mxu1 %v266_v33 }
 0x111   :  { %1113 = vmatpush3.msra.mxu1 %v266_v33 }
 0x112   :  { %1114 = vmatprep.subr.mxu1 %v265_v34 }
 0x113   :  { %1115 = vmatpush3.msra.mxu1 %v265_v34 }
 0x114   :  { %1116 = vmatprep.subr.mxu1 %v264_v35 }
 0x115   :  { %1117 = vmatpush3.msra.mxu1 %v264_v35 }
 0x116   :  { %1118 = vmatprep.subr.mxu1 %v263_v36 }
 0x117   :  { %1119 = vmatpush3.msra.mxu1 %v263_v36 }
 0x118   :  { %1120 = vmatprep.subr.mxu1 %v262_v37 }
 0x119   :  { %1121 = vmatpush3.msra.mxu1 %v262_v37 }
 0x11a   :  { %1122 = vmatprep.subr.mxu1 %v261_v38 }
 0x11b   :  { %1123 = vmatpush3.msra.mxu1 %v261_v38 }
 0x11c   :  { %1124 = vmatprep.subr.mxu1 %v260_v39 }
 0x11d   :  { %1125 = vmatpush3.msra.mxu1 %v260_v39 }
 0x11e   :  { %1126 = vmatprep.subr.mxu1 %v259_v40 }
 0x11f   :  { %1127 = vmatpush3.msra.mxu1 %v259_v40 }
 0x120   :  { %1128 = vmatprep.subr.mxu1 %v258_v41 }
 0x121   :  { %1129 = vmatpush3.msra.mxu1 %v258_v41 }
 0x122   :  { %1130 = vmatprep.subr.mxu1 %v257_v42 }
 0x123   :  { %1131 = vmatpush3.msra.mxu1 %v257_v42 }
 0x124   :  { %1132 = vmatprep.subr.mxu1 %v256_v43 }
 0x125   :  { %1133 = vmatpush3.msra.mxu1 %v256_v43 }
 0x126   :  { %1134 = vmatprep.subr.mxu1 %v255_v44 }
 0x127   :  { %1135 = vmatpush3.msra.mxu1 %v255_v44 }
 0x128   :  { %1136 = vmatprep.subr.mxu1 %v254_v45 }
 0x129   :  { %1137 = vmatpush3.msra.mxu1 %v254_v45 }
 0x1aa   :  { %v988_v63 = vpop.f32.mrf.mxu1 }
 0x1ab   :  { %v237_v0 = vadd.f32 %v988_v63, %v738_v62 }
 0x1ac   :  { %v231_v1 = vpop.f32.mrf.mxu1 }
 0x1ad   :  { %v232_v2 = vadd.f32 %v738_v62, %v231_v1  ;;  %v251_v6 = vmax.f32 %v237_v0, 0.0 }
 0x1ae   :  { %v991_v3 = vpop.f32.mrf.mxu1 }
 0x1af   :  { %v250_v4 = vmax.f32 %v232_v2, 0.0  ;;  %v247_v5 = vadd.f32 %v991_v3, %v738_v62 }
 0x1b0   :  { %v241_v7 = vpop.f32.mrf.mxu1 }
 0x1b1   :  { %1138 = vmatprep.mubr.f32.mxu1 %v250_v4  ;;  %v242_v8 = vadd.f32 %v738_v62, %v241_v7  ;;  %v253_v9 = vmax.f32 %v247_v5, 0.0 }
 0x1b2   :  { %1139 = vmatmul.mubr.f32.vlgmr.msra.gmra.mxu1 %v251_v6 }
 0x1b3   :  { %v252_v10 = vmax.f32 %v242_v8, 0.0 }
 0x1b5   :  { %1141 = vmatprep.mubr.f32.mxu1 %v252_v10 }
 0x1b6   :  { %1142 = vmatmul.mubr.f32.gmra.mxu1 %v253_v9 }
 0x1ca   :  { %v1064_v12 = vpop.f32.mrf.mxu1 }
 0x1cb   :  { %v481_v13 = vadd.f32 %v1064_v12, %v774_v11 }
 0x1cc   :  { %v475_v14 = vpop.f32.mrf.mxu1 }
 0x1cd   :  { %v476_v15 = vadd.f32 %v774_v11, %v475_v14  ;;  %v495_v18 = vmax.f32 %v481_v13, 0.0 }
 0x1ce   :  { %v1067_v16 = vpop.f32.mrf.mxu1 }
 0x1cf   :  { %v494_v17 = vmax.f32 %v476_v15, 0.0  ;;  %v491_v19 = vadd.f32 %v1067_v16, %v774_v11 }
 0x1d0   :  { %v485_v20 = vpop.f32.mrf.mxu1 }
 0x1d1   :  { %v486_v21 = vadd.f32 %v774_v11, %v485_v20  ;;  %1100 = vmatprep.mubr.f32.mxu0 %v494_v17  ;;  %v497_v23 = vmax.f32 %v491_v19, 0.0 }
 0x1d2   :  { %1101 = vmatmul.mubr.f32.vlgmr.msra.gmra.mxu0 %v495_v18 }
 0x1d3   :  { %v496_v22 = vmax.f32 %v486_v21, 0.0 }
 0x1d5   :  { %1103 = vmatprep.mubr.f32.mxu0 %v496_v22 }
 0x1d6   :  { %1104 = vmatmul.mubr.f32.gmra.mxu0 %v497_v23 }
 0x272   :  { %v1140_v24 = vpop.f32.mrf.mxu1 }
 0x274   :  { %v666_v25 = vpop.f32.mrf.mxu1 }
 0x276   :  { %v1143_v29 = vpop.f32.mrf.mxu1 }
 0x278   :  { %v676_v37 = vpop.f32.mrf.mxu1 }
 0x292   :  { %v1102_v26 = vpop.f32.mrf.mxu0 }
 0x293   :  { %v672_v28 = vadd.f32 %v1140_v24, %v1102_v26 }
 0x294   :  { %v581_v30 = vpop.f32.mrf.mxu0 }
 0x295   :  { %v693_v31 = vadd.f32 %v791_v27, %v672_v28  ;;  %v667_v32 = vadd.f32 %v666_v25, %v581_v30 }
 0x296   :  { %v1105_v33 = vpop.f32.mrf.mxu0 }
 0x297   :  { %v793_v34 = vmul.f32 -1.442695, %v693_v31  ;;  %v692_v35 = vadd.f32 %v791_v27, %v667_v32  ;;  %v682_v36 = vadd.f32 %v1143_v29, %v1105_v33 }
 0x298   :  { %v591_v38 = vpop.f32.mrf.mxu0 }
 0x299   :  { %1144 = vpow2.f32 %v793_v34  ;;  %v792_v39 = vmul.f32 -1.442695, %v692_v35  ;;  %v695_v40 = vadd.f32 %v791_v27, %v682_v36  ;;  %v677_v41 = vadd.f32 %v676_v37, %v591_v38 }
 0x29b   :  { %1146 = vpow2.f32 %v792_v39  ;;  %v795_v42 = vmul.f32 -1.442695, %v695_v40  ;;  %v694_v43 = vadd.f32 %v791_v27, %v677_v41 }
 0x29d   :  { %1148 = vpow2.f32 %v795_v42  ;;  %v794_v44 = vmul.f32 -1.442695, %v694_v43 }
 0x29f   :  { %1150 = vpow2.f32 %v794_v44 }
 0x2a6   :  { %v1145_v45 = vpop.eup %1144 }
 0x2a7   :  { %v714_v46 = vadd.f32 1.0, %v1145_v45 }
 0x2a8   :  { %v1147_v47 = vpop.eup %1146 }
 0x2a9   :  { %1152 = vrcp.f32 %v714_v46  ;;  %v713_v49 = vadd.f32 1.0, %v1147_v47 }
 0x2aa   :  { %v1149_v50 = vpop.eup %1148 }
 0x2ab   :  { %1154 = vrcp.f32 %v713_v49  ;;  %v716_v51 = vadd.f32 1.0, %v1149_v50 }
 0x2ac   :  { %v1151_v52 = vpop.eup %1150 }
 0x2ad   :  { %1156 = vrcp.f32 %v716_v51  ;;  %v715_v54 = vadd.f32 1.0, %v1151_v52 }
 0x2af   :  { %1158 = vrcp.f32 %v715_v54 }
 0x2b6   :  { %v1153_v55 = vpop.eup %1152 }
 0x2b7   :  { %v726_v56 = vsel %vm700_vm2, %v1153_v55, %v693_v31 }
 0x2b8   :  { %v1155_v57 = vpop.eup %1154  ;;  %730 = vst [vmem:[%s1542_s7 + $0x8] sm:$0xff] %v726_v56 }
 0x2b9   :  { %v725_v58 = vsel %vm700_vm2, %v1155_v57, %v692_v35 }
 0x2ba   :  { %v1157_v59 = vpop.eup %1156  ;;  %729 = vst [vmem:[%s1542_s7] sm:$0xff] %v725_v58 }
 0x2bb   :  { %v728_v60 = vsel %vm700_vm2, %v1157_v59, %v695_v40 }
 0x2bc   :  { %v1159_v61 = vpop.eup %1158  ;;  %732 = vst [vmem:[%s1542_s7 + $0x18] sm:$0xff] %v728_v60 }
 0x2bd   :  { %v727_v62 = vsel %vm700_vm2, %v1159_v61, %v694_v43 }
 0x2be   :  { %731 = vst [vmem:[%s1542_s7 + $0x10] sm:$0xff] %v727_v62 }

// kernel: transt_forward.5
= control target key start
LH: loop header
LB: loop body
LE: loop exit
PB: predicated region body
PF: predicated region fallthrough
CT: control target
= control target key end

     0   :  { %v10544_v0 = vmov 0.0   ;;  %vm7728_vm0 = vmmov 0   ;;  %vm341_vm1 = vcmask 261120   ;;  %s7729_s15 = smov 96   ;;  %vm436_vm2 = vcmask 31744   ;;  %s7730_s22 = smov 64   ;;  %s10531_s5 = inlined_call_operand.vmem [shape: f32[128,512], index: 5, kind: input, shape index: {}]   ;;  %s10532_s0 = inlined_call_operand.vmem [shape: f32[2,16,128], index: 0, kind: input, shape index: {}]   ;;  %s10533_s1 = inlined_call_operand.vmem [shape: f32[2,16,128], index: 1, kind: input, shape index: {}]   ;;  %s10534_s2 = inlined_call_operand.vmem [shape: f32[2,4,128], index: 2, kind: input, shape index: {}]   ;;  %s10535_s3 = inlined_call_operand.vmem [shape: f32[2,4,128], index: 3, kind: input, shape index: {}]   ;;  %s10536_s6 = inlined_call_operand.vmem [shape: f32[1,512], index: 6, kind: input, shape index: {}]   ;;  %s10537_s4 = inlined_call_operand.vmem [shape: f32[2,1,4], index: 4, kind: input, shape index: {}]   ;;  %s10538_s7 = inlined_call_operand.vmem [shape: f32[128,256], index: 7, kind: input, shape index: {}]   ;;  %s10539_s9 = inlined_call_operand.vmem [shape: f32[256,128], index: 9, kind: input, shape index: {}]   ;;  %s10540_s11 = inlined_call_operand.vmem [shape: f32[4,128], index: 11, kind: input, shape index: {}]   ;;  %s10541_s8 = inlined_call_operand.vmem [shape: f32[1,256], index: 8, kind: input, shape index: {}]   ;;  %s10542_s10 = inlined_call_operand.vmem [shape: f32[1,128], index: 10, kind: input, shape index: {}]   ;;  %s10543_s12 = inlined_call_operand.vmem [shape: f32[2,16,128], index: 12, kind: output, shape index: {}]  }
   0x1   :  { %6559 = vmatprep.subr.mxu1 %v10544_v0  ;;  %v7801_v1 = vld [vmem:[%s10531_s5 + $0x1e0] sm:$0xff]  ;;  %v7806_v2 = vld [vmem:[%s10531_s5 + $0x1e8] sm:$0xff]  ;;  %6591 = vmatprep.mubr.msk.f32.mxu1 %vm7728_vm0, %v10544_v0  ;;  %v8076_v51 = vld [vmem:[%s10531_s5 + $0x1f0] sm:$0xff]  ;;  %vm465_vm3 = vcmask 1043456   ;;  %s7731_s20 = smov 32  }
   0x2   :  { %v7811_v3 = vld [vmem:[%s10531_s5 + $0x1c0] sm:$0xff]  ;;  %6524 = vmatprep.subr.mxu0 %v7801_v1  ;;  %6560 = vmatpush3.msra.mxu1 %v7806_v2  ;;  %v7820_v4 = vld [vmem:[%s10531_s5 + $0x1c8] sm:$0xff]  ;;  %10588 = vst [vmem:[#allocation5_spill] sm:$0xff] %v8076_v51  ;;  %v8081_v52 = vld [vmem:[%s10531_s5 + $0x1d0] sm:$0xff] }
   0x3   :  { %6525 = vmatpush3.msra.mxu0 %v7801_v1  ;;  %6561 = vmatprep.subr.mxu1 %v10544_v0  ;;  %v7827_v5 = vld [vmem:[%s10531_s5 + $0x1a0] sm:$0xff]  ;;  %v7832_v6 = vld [vmem:[%s10531_s5 + $0x1a8] sm:$0xff]  ;;  %v8090_v53 = vld [vmem:[%s10531_s5 + $0x1b0] sm:$0xff] }
   0x4   :  { %6526 = vmatprep.subr.mxu0 %v7811_v3  ;;  %6562 = vmatpush3.msra.mxu1 %v7820_v4  ;;  %v7841_v7 = vld [vmem:[%s10531_s5 + $0x180] sm:$0xff]  ;;  %v7846_v8 = vld [vmem:[%s10531_s5 + $0x188] sm:$0xff]  ;;  %10589 = vst [vmem:[#allocation6_spill] sm:$0xff] %v8090_v53  ;;  %v8097_v54 = vld [vmem:[%s10531_s5 + $0x190] sm:$0xff] }
   0x5   :  { %6527 = vmatpush3.msra.mxu0 %v7811_v3  ;;  %6563 = vmatprep.subr.mxu1 %v10544_v0  ;;  %v7855_v9 = vld [vmem:[%s10531_s5 + $0x160] sm:$0xff]  ;;  %v7860_v10 = vld [vmem:[%s10531_s5 + $0x168] sm:$0xff]  ;;  %10590 = vst [vmem:[#allocation7_spill] sm:$0xff] %v8097_v54  ;;  %v8106_v55 = vld [vmem:[%s10531_s5 + $0x170] sm:$0xff] }
   0x6   :  { %6528 = vmatprep.subr.mxu0 %v7827_v5  ;;  %6564 = vmatpush3.msra.mxu1 %v7832_v6  ;;  %v7869_v11 = vld [vmem:[%s10531_s5 + $0x140] sm:$0xff]  ;;  %v7874_v12 = vld [vmem:[%s10531_s5 + $0x148] sm:$0xff]  ;;  %10591 = vst [vmem:[#allocation8_spill] sm:$0xff] %v8106_v55  ;;  %v8113_v56 = vld [vmem:[%s10531_s5 + $0x150] sm:$0xff] }
   0x7   :  { %6529 = vmatpush3.msra.mxu0 %v7827_v5  ;;  %6565 = vmatprep.subr.mxu1 %v10544_v0  ;;  %v7883_v13 = vld [vmem:[%s10531_s5 + $0x120] sm:$0xff]  ;;  %v7888_v14 = vld [vmem:[%s10531_s5 + $0x128] sm:$0xff]  ;;  %10592 = vst [vmem:[#allocation9_spill] sm:$0xff] %v8113_v56  ;;  %v8122_v57 = vld [vmem:[%s10531_s5 + $0x130] sm:$0xff] }
   0x8   :  { %6530 = vmatprep.subr.mxu0 %v7841_v7  ;;  %6566 = vmatpush3.msra.mxu1 %v7846_v8  ;;  %v7897_v15 = vld [vmem:[%s10531_s5 + $0x100] sm:$0xff]  ;;  %v7902_v16 = vld [vmem:[%s10531_s5 + $0x108] sm:$0xff]  ;;  %10593 = vst [vmem:[#allocation10_spill] sm:$0xff] %v8122_v57  ;;  %v8129_v58 = vld [vmem:[%s10531_s5 + $0x110] sm:$0xff] }
   0x9   :  { %6531 = vmatpush3.msra.mxu0 %v7841_v7  ;;  %6567 = vmatprep.subr.mxu1 %v10544_v0  ;;  %10585 = vst [vmem:[#allocation2_spill] sm:$0xff] %v7902_v16  ;;  %v7911_v17 = vld [vmem:[%s10531_s5 + $0xe0] sm:$0xff]  ;;  %v7916_v18 = vld [vmem:[%s10531_s5 + $0xe8] sm:$0xff]  ;;  %10594 = vst [vmem:[#allocation11_spill] sm:$0xff] %v8129_v58 }
   0xa   :  { %6532 = vmatprep.subr.mxu0 %v7855_v9  ;;  %6568 = vmatpush3.msra.mxu1 %v7860_v10  ;;  %10586 = vst [vmem:[#allocation3_spill] sm:$0xff] %v7916_v18  ;;  %v7925_v19 = vld [vmem:[%s10531_s5 + $0xc0] sm:$0xff]  ;;  %v7930_v20 = vld [vmem:[%s10531_s5 + $0xc8] sm:$0xff]  ;;  %v8138_v59 = vld [vmem:[%s10531_s5 + $0xf0] sm:$0xff] }
   0xb   :  { %6533 = vmatpush3.msra.mxu0 %v7855_v9  ;;  %6569 = vmatprep.subr.mxu1 %v10544_v0  ;;  %v7939_v21 = vld [vmem:[%s10531_s5 + $0xa0] sm:$0xff]  ;;  %v7944_v22 = vld [vmem:[%s10531_s5 + $0xa8] sm:$0xff]  ;;  %10595 = vst [vmem:[#allocation12_spill] sm:$0xff] %v8138_v59  ;;  %v8145_v60 = vld [vmem:[%s10531_s5 + $0xd0] sm:$0xff] }
   0xc   :  { %6534 = vmatprep.subr.mxu0 %v7869_v11  ;;  %6570 = vmatpush3.msra.mxu1 %v7874_v12  ;;  %v7953_v23 = vld [vmem:[%s10531_s5 + $0x80] sm:$0xff]  ;;  %v7958_v24 = vld [vmem:[%s10531_s5 + $0x88] sm:$0xff]  ;;  %10596 = vst [vmem:[#allocation13_spill] sm:$0xff] %v8145_v60  ;;  %v8154_v61 = vld [vmem:[%s10531_s5 + $0xb0] sm:$0xff] }
   0xd   :  { %6535 = vmatpush3.msra.mxu0 %v7869_v11  ;;  %6571 = vmatprep.subr.mxu1 %v10544_v0  ;;  %v7967_v25 = vld [vmem:[%s10531_s5 + $0x60] sm:$0xff]  ;;  %v7972_v26 = vld [vmem:[%s10531_s5 + $0x68] sm:$0xff]  ;;  %10597 = vst [vmem:[#allocation14_spill] sm:$0xff] %v8154_v61  ;;  %v8161_v62 = vld [vmem:[%s10531_s5 + $0x90] sm:$0xff] }
   0xe   :  { %6536 = vmatprep.subr.mxu0 %v7883_v13  ;;  %6572 = vmatpush3.msra.mxu1 %v7888_v14  ;;  %v7979_v27 = vld [vmem:[%s10531_s5 + $0x40] sm:$0xff]  ;;  %v7986_v28 = vld [vmem:[%s10531_s5 + $0x48] sm:$0xff]  ;;  %10598 = vst [vmem:[#allocation15_spill] sm:$0xff] %v8161_v62  ;;  %v8170_v63 = vld [vmem:[%s10531_s5 + $0x70] sm:$0xff] }
   0xf   :  { %6537 = vmatpush3.msra.mxu0 %v7883_v13  ;;  %6573 = vmatprep.subr.mxu1 %v10544_v0  ;;  %v7991_v29 = vld [vmem:[%s10531_s5 + $0x20] sm:$0xff]  ;;  %v7996_v30 = vld [vmem:[%s10531_s5 + $0x28] sm:$0xff]  ;;  %10599 = vst [vmem:[#allocation16_spill] sm:$0xff] %v8170_v63 }
  0x10   :  { %6538 = vmatprep.subr.mxu0 %v7897_v15  ;;  %6574 = vmatpush3.msra.mxu1 %v7902_v16  ;;  %v42_v31 = vld [vmem:[%s10532_s0] sm:$0xff]  ;;  %v43_v35 = vld [vmem:[%s10532_s0 + $0x8] sm:$0xff] }
  0x11   :  { %6539 = vmatpush3.msra.mxu0 %v7897_v15  ;;  %6575 = vmatprep.subr.mxu1 %v10544_v0  ;;  %v44_v32 = vld [vmem:[%s10533_s1] sm:$0xff]  ;;  %v45_v36 = vld [vmem:[%s10533_s1 + $0x8] sm:$0xff] }
  0x12   :  { %6540 = vmatprep.subr.mxu0 %v7911_v17  ;;  %6576 = vmatpush3.msra.mxu1 %v7916_v18  ;;  %v8009_v33 = vld [vmem:[%s10534_s2] sm:$0xf]  ;;  %v8034_v38 = vld [vmem:[%s10531_s5 + $0x8] sm:$0xff]  ;;  %v8036_v39 = vadd.f32 %v44_v32, %v42_v31  ;;  %v8043_v41 = vadd.f32 %v45_v36, %v43_v35  ;;  %v8177_v31 = vld [vmem:[%s10531_s5 + $0x50] sm:$0xff]  ;;  %v429_v35 = vlaneseq }
  0x13   :  { %6541 = vmatpush3.msra.mxu0 %v7911_v17  ;;  %6577 = vmatprep.subr.mxu1 %v10544_v0  ;;  %v49_v34 = vld [vmem:[%s10535_s3] sm:$0xf]  ;;  %10600 = vst [vmem:[#allocation17_spill] sm:$0xff] %v8177_v31  ;;  %v8186_v32 = vld [vmem:[%s10531_s5 + $0x30] sm:$0xff] }
  0x14   :  { %6542 = vmatprep.subr.mxu0 %v7925_v19  ;;  %6578 = vmatpush3.msra.mxu1 %v7930_v20  ;;  %v8029_v37 = vld [vmem:[%s10531_s5] sm:$0xff]  ;;  %v8041_v40 = vadd.f32 %v49_v34, %v8009_v33  ;;  %10601 = vst [vmem:[#allocation18_spill] sm:$0xff] %v8186_v32  ;;  %v8193_v34 = vld [vmem:[%s10531_s5 + $0x10] sm:$0xff]  ;;  %v8208_v36 = vshrl.u32 %v429_v35, 7 }
  0x15   :  { %6543 = vmatpush3.msra.mxu0 %v7925_v19  ;;  %6579 = vmatprep.subr.mxu1 %v10544_v0  ;;  %v8059_v42 = vld [vmem:[%s10536_s6 + $0x1] ss:$0 sm:$0xff]  ;;  %v8065_v46 = vld [vmem:[%s10536_s6] ss:$0 sm:$0xff]  ;;  %10602 = vst [vmem:[#allocation19_spill] sm:$0xff] %v8193_v34 }
  0x16   :  { %6544 = vmatprep.subr.mxu0 %v7939_v21  ;;  %6580 = vmatpush3.msra.mxu1 %v7944_v22  ;;  %10587 = vst [vmem:[#allocation4_spill] sm:$0xff] %v8059_v42  ;;  %10603 = vst [vmem:[#allocation20_spill] sm:$0xff] %v8208_v36 }
  0x17   :  { %6545 = vmatpush3.msra.mxu0 %v7939_v21  ;;  %6581 = vmatprep.subr.mxu1 %v10544_v0 }
  0x18   :  { %6546 = vmatprep.subr.mxu0 %v7953_v23  ;;  %6582 = vmatpush3.msra.mxu1 %v7958_v24 }
  0x19   :  { %6547 = vmatpush3.msra.mxu0 %v7953_v23  ;;  %6583 = vmatprep.subr.mxu1 %v10544_v0 }
  0x1a   :  { %6548 = vmatprep.subr.mxu0 %v7967_v25  ;;  %6584 = vmatpush3.msra.mxu1 %v7972_v26 }
  0x1b   :  { %6549 = vmatpush3.msra.mxu0 %v7967_v25  ;;  %6585 = vmatprep.subr.mxu1 %v10544_v0 }
  0x1c   :  { %6550 = vmatprep.subr.mxu0 %v7979_v27  ;;  %6586 = vmatpush3.msra.mxu1 %v7986_v28 }
  0x1d   :  { %6551 = vmatpush3.msra.mxu0 %v7979_v27  ;;  %6587 = vmatprep.subr.mxu1 %v10544_v0 }
  0x1e   :  { %6552 = vmatprep.subr.mxu0 %v7991_v29  ;;  %6588 = vmatpush3.msra.mxu1 %v7996_v30 }
  0x1f   :  { %6553 = vmatpush3.msra.mxu0 %v7991_v29  ;;  %6589 = vmatprep.subr.mxu1 %v10544_v0 }
  0x20   :  { %6554 = vmatprep.subr.mxu0 %v8029_v37  ;;  %6590 = vmatpush3.msra.mxu1 %v8034_v38 }
  0x21   :  { %6555 = vmatpush3.msra.mxu0 %v8029_v37  ;;  %6556 = vmatprep.mubr.f32.mxu0 %v8036_v39 }
  0x22   :  { %6592 = vmatmul.mubr.f32.vlgmr.msra.gmra.mxu1 %v8041_v40  ;;  %6557 = vmatmul.mubr.f32.vlgmr.msra.gmra.mxu0 %v8043_v41 }
  0x23   :  { %6594 = vmatprep.subr.mxu0 %v10544_v0  ;;  %6626 = vmatprep.mubr.msk.f32.mxu0 %vm7728_vm0, %v10544_v0 }
  0x24   :  { %6595 = vmatpush3.msra.mxu0 %v8076_v51  ;;  %736 = vrot.lane.b32.xlu1 %v7806_v2, %s7729_s15 }
  0x25   :  { %6596 = vmatprep.subr.mxu0 %v10544_v0 }
  0x26   :  { %6597 = vmatpush3.msra.mxu0 %v8081_v52 }
  0x27   :  { %6598 = vmatprep.subr.mxu0 %v10544_v0 }
  0x28   :  { %6599 = vmatpush3.msra.mxu0 %v8090_v53  ;;  %592 = vrot.lane.b32.xlu1 %v7811_v3, %s7729_s15 }
  0x29   :  { %6600 = vmatprep.subr.mxu0 %v10544_v0 }
  0x2a   :  { %6601 = vmatpush3.msra.mxu0 %v8097_v54 }
  0x2b   :  { %6602 = vmatprep.subr.mxu0 %v10544_v0 }
  0x2c   :  { %6603 = vmatpush3.msra.mxu0 %v8106_v55  ;;  %734 = vrot.lane.b32.xlu1 %v7820_v4, %s7729_s15 }
  0x2d   :  { %6604 = vmatprep.subr.mxu0 %v10544_v0 }
  0x2e   :  { %6605 = vmatpush3.msra.mxu0 %v8113_v56 }
  0x2f   :  { %6606 = vmatprep.subr.mxu0 %v10544_v0 }
  0x30   :  { %6607 = vmatpush3.msra.mxu0 %v8122_v57  ;;  %732 = vrot.lane.b32.xlu1 %v7832_v6, %s7729_s15 }
  0x31   :  { %6608 = vmatprep.subr.mxu0 %v10544_v0 }
  0x32   :  { %6609 = vmatpush3.msra.mxu0 %v8129_v58 }
  0x33   :  { %6610 = vmatprep.subr.mxu0 %v10544_v0 }
  0x34   :  { %6611 = vmatpush3.msra.mxu0 %v8138_v59  ;;  %730 = vrot.lane.b32.xlu1 %v7846_v8, %s7729_s15 }
  0x35   :  { %6612 = vmatprep.subr.mxu0 %v10544_v0 }
  0x36   :  { %6613 = vmatpush3.msra.mxu0 %v8145_v60 }
  0x37   :  { %6614 = vmatprep.subr.mxu0 %v10544_v0 }
  0x38   :  { %6615 = vmatpush3.msra.mxu0 %v8154_v61  ;;  %728 = vrot.lane.b32.xlu1 %v7860_v10, %s7729_s15 }
  0x39   :  { %6616 = vmatprep.subr.mxu0 %v10544_v0 }
  0x3a   :  { %6617 = vmatpush3.msra.mxu0 %v8161_v62 }
  0x3b   :  { %6618 = vmatprep.subr.mxu0 %v10544_v0 }
  0x3c   :  { %6619 = vmatpush3.msra.mxu0 %v8170_v63  ;;  %726 = vrot.lane.b32.xlu1 %v7874_v12, %s7729_s15 }
  0x3d   :  { %6620 = vmatprep.subr.mxu0 %v10544_v0 }
  0x3e   :  { %6621 = vmatpush3.msra.mxu0 %v8177_v31 }
  0x3f   :  { %6622 = vmatprep.subr.mxu0 %v10544_v0 }
  0x40   :  { %6623 = vmatpush3.msra.mxu0 %v8186_v32  ;;  %724 = vrot.lane.b32.xlu1 %v7888_v14, %s7729_s15 }
  0x41   :  { %6624 = vmatprep.subr.mxu0 %v10544_v0 }
  0x42   :  { %6625 = vmatpush3.msra.mxu0 %v8193_v34 }
  0x43   :  { %6627 = vmatmul.mubr.f32.vlgmr.msra.gmra.mxu0 %v8009_v33  ;;  %6674 = vmatprep.subr.mxu0 %v10544_v0 }
  0x44   :  { %722 = vrot.lane.b32.xlu1 %v7902_v16, %s7729_s15  ;;  %6706 = vmatprep.mubr.msk.f32.mxu0 %vm7728_vm0, %v10544_v0 }
  0x48   :  { %720 = vrot.lane.b32.xlu1 %v7916_v18, %s7729_s15 }
  0xe2   :  { %v261_v43 = vpop.f32.mrf.mxu1  ;;  %v6558_v44 = vpop.f32.mrf.mxu0 }
  0xe3   :  { %v262_v45 = vadd.f32 %v8059_v42, %v261_v43  ;;  %v186_v50 = vadd.f32 %v6558_v44, %v8065_v46  ;;  %v51_v43 = vld [vmem:[%s10537_s4] sm:$0x1] }
  0xe4   :  { %v6593_v47 = vpop.f32.mrf.mxu1  ;;  %v180_v48 = vpop.f32.mrf.mxu0  ;;  %v52_v44 = vmul.f32 -1e+09, %v51_v43 }
  0xe5   :  { %v181_v49 = vadd.f32 %v8065_v46, %v180_v48  ;;  %6629 = vmatprep.subr.msk.mxu1 %vm341_vm1, %v262_v45 }
  0xe6   :  { %6630 = vmatpush3.xpose.msk.msra.mxu1 %vm341_vm1, %v262_v45  ;;  %v8214_v45 = vsub.s32 0, %v8208_v36 }
  0xe7   :  { %6631 = vmatprep.mubr.msk.f32.mxu1 %vm341_vm1, %v181_v49 }
  0xe8   :  { %10604 = vst [vmem:[#allocation21_spill] sm:$0xff] %v8214_v45  ;;  %v8217_v0 = vrot.slane %v52_v44, %v8214_v45  ;;  %v737_v44 = vpop.permute.xlu1 %736 }
  0xe9   :  { %6632 = vmatmul.mubr.msk.f32.vlgmr.msra.gmra.mxu1 %vm341_vm1, %v186_v50  ;;  %6675 = vmatpush3.msra.mxu0 %v737_v44 }
 0x1a9   :  { %v6633_v47 = vpop.f32.mrf.mxu1 }
 0x1aa   :  { %v427_v49 = vmul.f32 0.17677669, %v6633_v47  ;;  %v10605_v47 = vmov 0.0  }
 0x1ab   :  { %v417_v48 = vpop.f32.mrf.mxu1  ;;  %6676 = vmatprep.subr.mxu0 %v10605_v47 }
 0x1ac   :  { %v426_v50 = vmul.f32 0.17677669, %v417_v48  ;;  %v8225_v16 = vadd.f32 %v8217_v0, %v427_v49  ;;  %v8242_v48 = vpop.permute.xlu1 %592 }
 0x1ae   :  { %v8220_v18 = vadd.f32 %v8217_v0, %v426_v50  ;;  %v440_v43 = vsel %vm436_vm2, %v8225_v16, -inf }
 0x1b0   :  { %v437_v35 = vsel %vm436_vm2, %v8220_v18, -inf  ;;  %v735_v49 = vpop.permute.xlu1 %734 }
 0x1b1   :  { %438 = vmax.xlane.f32.xlu0 %v437_v35  ;;  %6677 = vmatpush3.msra.mxu0 %v735_v49 }
 0x1b2   :  { %6678 = vmatprep.subr.mxu0 %v10605_v47 }
 0x1b4   :  { %v733_v50 = vpop.permute.xlu1 %732 }
 0x1b5   :  { %441 = vmax.xlane.f32.xlu0 %v440_v43  ;;  %6679 = vmatpush3.msra.mxu0 %v733_v50 }
 0x1b6   :  { %6680 = vmatprep.subr.mxu0 %v10605_v47 }
 0x1b8   :  { %v731_v35 = vpop.permute.xlu1 %730 }
 0x1b9   :  { %6681 = vmatpush3.msra.mxu0 %v731_v35 }
 0x1ba   :  { %6682 = vmatprep.subr.mxu0 %v10605_v47 }
 0x1bc   :  { %v729_v43 = vpop.permute.xlu1 %728 }
 0x1bd   :  { %6683 = vmatpush3.msra.mxu0 %v729_v43  ;;  %v8279_v43 = vld [vmem:[%s10536_s6 + $0x2] ss:$0 sm:$0xff] }
 0x1be   :  { %6684 = vmatprep.subr.mxu0 %v10605_v47 }
 0x1c0   :  { %v727_v44 = vpop.permute.xlu1 %726 }
 0x1c1   :  { %6685 = vmatpush3.msra.mxu0 %v727_v44  ;;  %v337_v44 = vpop.f32.mrf.mxu0 }
 0x1c2   :  { %6686 = vmatprep.subr.mxu0 %v10605_v47 }
 0x1c4   :  { %v725_v49 = vpop.permute.xlu1 %724 }
 0x1c5   :  { %6687 = vmatpush3.msra.mxu0 %v725_v49  ;;  %v338_v49 = vadd.f32 %v8279_v43, %v337_v44 }
 0x1c6   :  { %6688 = vmatprep.subr.mxu0 %v10605_v47 }
 0x1c7   :  { %6634 = vmatprep.subr.msk.mxu1 %vm465_vm3, %v338_v49 }
 0x1c8   :  { %v723_v50 = vpop.permute.xlu1 %722  ;;  %6635 = vmatpush3.msk.msra.mxu1 %vm465_vm3, %v338_v49 }
 0x1c9   :  { %6689 = vmatpush3.msra.mxu0 %v723_v50  ;;  %v6628_v50 = vpop.f32.mrf.mxu0 }
 0x1ca   :  { %6690 = vmatprep.subr.mxu0 %v10605_v47 }
 0x1cb   :  { %594 = vrot.lane.b32.xlu0 %v7801_v1, %s7729_s15 }
 0x1cc   :  { %v721_v35 = vpop.permute.xlu1 %720 }
 0x1cd   :  { %6691 = vmatpush3.msra.mxu0 %v721_v35 }
 0x1ce   :  { %6692 = vmatprep.subr.mxu0 %v10605_v47 }
 0x1cf   :  { %590 = vrot.lane.b32.xlu0 %v7827_v5, %s7729_s15 }
 0x1d3   :  { %588 = vrot.lane.b32.xlu0 %v7841_v7, %s7729_s15 }
 0x1d7   :  { %586 = vrot.lane.b32.xlu0 %v7855_v9, %s7729_s15 }
 0x1db   :  { %584 = vrot.lane.b32.xlu0 %v7869_v11, %s7729_s15 }
 0x1df   :  { %582 = vrot.lane.b32.xlu0 %v7883_v13, %s7729_s15 }
 0x1e3   :  { %580 = vrot.lane.b32.xlu0 %v7897_v15, %s7729_s15 }
 0x1e7   :  { %578 = vrot.lane.b32.xlu0 %v7911_v17, %s7729_s15 }
 0x1eb   :  { %576 = vrot.lane.b32.xlu0 %v7925_v19, %s7729_s15 }
 0x1ef   :  { %574 = vrot.lane.b32.xlu0 %v7939_v21, %s7729_s15 }
 0x1f3   :  { %572 = vrot.lane.b32.xlu0 %v7953_v23, %s7729_s15 }
 0x1f7   :  { %570 = vrot.lane.b32.xlu0 %v7967_v25, %s7729_s15 }
 0x1fb   :  { %568 = vrot.lane.b32.xlu0 %v7979_v27, %s7729_s15 }
 0x1ff   :  { %566 = vrot.lane.b32.xlu0 %v7991_v29, %s7729_s15 }
 0x203   :  { %564 = vrot.lane.b32.xlu0 %v8029_v37, %s7729_s15 }
 0x207   :  { %754 = vrot.lane.b32.xlu0 %v8059_v42, %s7729_s15 }
 0x20b   :  { %873 = vrot.lane.b32.xlu0 %v8076_v51, %s7729_s15 }
 0x20f   :  { %869 = vrot.lane.b32.xlu0 %v8090_v53, %s7729_s15 }
 0x213   :  { %865 = vrot.lane.b32.xlu0 %v8106_v55, %s7729_s15 }
 0x217   :  { %861 = vrot.lane.b32.xlu0 %v8122_v57, %s7729_s15 }
 0x21b   :  { %857 = vrot.lane.b32.xlu0 %v8138_v59, %s7729_s15 }
 0x21f   :  { %853 = vrot.lane.b32.xlu0 %v8154_v61, %s7729_s15 }
 0x223   :  { %849 = vrot.lane.b32.xlu0 %v8170_v63, %s7729_s15 }
 0x227   :  { %845 = vrot.lane.b32.xlu0 %v8186_v32, %s7729_s15 }
 0x23a   :  { %v439_v35 = vpop.xlane.xlu0 %438 }
 0x23b   :  { %v443_v44 = vsub.f32 %v8220_v18, %v439_v35 }
 0x23d   :  { %v445_v36 = vmul.f32 1.442695, %v443_v44 }
 0x23e   :  { %v442_v50 = vpop.xlane.xlu0 %441 }
 0x23f   :  { %v444_v45 = vsub.f32 %v8225_v16, %v442_v50 }
 0x241   :  { %v447_v49 = vmul.f32 1.442695, %v444_v45 }
 0x242   :  { %v595_v57 = vpop.permute.xlu0 %594 }
 0x243   :  { %7537 = vpow2.f32 %v447_v49  ;;  %6639 = vmatprep.subr.mxu1 %v595_v57 }
 0x244   :  { %7539 = vpow2.f32 %v445_v36 }
 0x246   :  { %v591_v16 = vpop.permute.xlu0 %590 }
 0x24a   :  { %v589_v18 = vpop.permute.xlu0 %588 }
 0x250   :  { %v7538_v59 = vpop.eup %7537 }
 0x251   :  { %v452_v61 = vsel %vm436_vm2, %v7538_v59, 0.0  ;;  %v7540_v55 = vpop.eup %7539 }
 0x252   :  { %453 = vadd.xlane.f32.xlu1 %v452_v61  ;;  %v449_v63 = vsel %vm436_vm2, %v7540_v55, 0.0  ;;  %v587_v61 = vpop.permute.xlu0 %586 }
 0x256   :  { %450 = vadd.xlane.f32.xlu1 %v449_v63  ;;  %v585_v63 = vpop.permute.xlu0 %584 }
 0x25a   :  { %v583_v36 = vpop.permute.xlu0 %582 }
 0x25e   :  { %v581_v45 = vpop.permute.xlu0 %580 }
 0x262   :  { %v579_v35 = vpop.permute.xlu0 %578 }
 0x266   :  { %v577_v44 = vpop.permute.xlu0 %576 }
 0x267   :  { %718 = vrot.lane.b32.xlu1 %v7930_v20, %s7729_s15 }
 0x26a   :  { %v575_v50 = vpop.permute.xlu0 %574 }
 0x26b   :  { %716 = vrot.lane.b32.xlu1 %v7944_v22, %s7729_s15 }
 0x26f   :  { %714 = vrot.lane.b32.xlu1 %v7958_v24, %s7729_s15 }
 0x273   :  { %712 = vrot.lane.b32.xlu1 %v7972_v26, %s7729_s15 }
 0x277   :  { %710 = vrot.lane.b32.xlu1 %v7986_v28, %s7729_s15 }
 0x27b   :  { %708 = vrot.lane.b32.xlu1 %v7996_v30, %s7729_s15 }
 0x27f   :  { %706 = vrot.lane.b32.xlu1 %v8034_v38, %s7729_s15 }
 0x283   :  { %612 = vrot.lane.b32.xlu1 %v8065_v46, %s7729_s15 }
 0x287   :  { %871 = vrot.lane.b32.xlu1 %v8081_v52, %s7729_s15 }
 0x28b   :  { %867 = vrot.lane.b32.xlu1 %v8097_v54, %s7729_s15 }
 0x28f   :  { %863 = vrot.lane.b32.xlu1 %v8113_v56, %s7729_s15 }
 0x293   :  { %859 = vrot.lane.b32.xlu1 %v8129_v58, %s7729_s15 }
 0x297   :  { %855 = vrot.lane.b32.xlu1 %v8145_v60, %s7729_s15  ;;  %v573_v60 = vpop.permute.xlu0 %572 }
 0x29b   :  { %851 = vrot.lane.b32.xlu1 %v8161_v62, %s7729_s15 }
 0x29f   :  { %847 = vrot.lane.b32.xlu1 %v8177_v31, %s7729_s15  ;;  %v571_v31 = vpop.permute.xlu0 %570 }
 0x2a3   :  { %843 = vrot.lane.b32.xlu1 %v8193_v34, %s7729_s15  ;;  %v569_v53 = vpop.permute.xlu0 %568 }
 0x2db   :  { %v454_v49 = vpop.xlane.xlu1 %453 }
 0x2dc   :  { %7541 = vrcp.f32 %v454_v49 }
 0x2df   :  { %v451_v32 = vpop.xlane.xlu1 %450 }
 0x2e0   :  { %7543 = vrcp.f32 %v451_v32 }
 0x2e3   :  { %v719_v62 = vpop.permute.xlu1 %718 }
 0x2e4   :  { %6693 = vmatpush3.msra.mxu0 %v719_v62  ;;  %v567_v62 = vpop.permute.xlu0 %566 }
 0x2e5   :  { %6694 = vmatprep.subr.mxu0 %v10605_v47 }
 0x2e7   :  { %v717_v34 = vpop.permute.xlu1 %716 }
 0x2e8   :  { %6695 = vmatpush3.msra.mxu0 %v717_v34 }
 0x2e9   :  { %6696 = vmatprep.subr.mxu0 %v10605_v47  ;;  %v7542_v56 = vpop.eup %7541 }
 0x2ea   :  { %v458_v54 = vmul.f32 %v7542_v56, %v7538_v59 }
 0x2eb   :  { %v715_v58 = vpop.permute.xlu1 %714 }
 0x2ec   :  { %6697 = vmatpush3.msra.mxu0 %v715_v58 }
 0x2ed   :  { %v7544_v51 = vpop.eup %7543  ;;  %6698 = vmatprep.subr.mxu0 %v10605_v47 }
 0x2ee   :  { %v457_v49 = vmul.f32 %v7544_v51, %v7540_v55  ;;  %v565_v51 = vpop.permute.xlu0 %564 }
 0x2ef   :  { %v713_v42 = vpop.permute.xlu1 %712 }
 0x2f0   :  { %6636 = vmatprep.mubr.msk.f32.mxu1 %vm436_vm2, %v457_v49  ;;  %6699 = vmatpush3.msra.mxu0 %v713_v42  ;;  %v103_v49 = vld [vmem:[%s10531_s5 + $0x58] sm:$0xff] }
 0x2f1   :  { %6637 = vmatmul.mubr.msk.f32.vlgmr.msra.gmra.mxu1 %vm436_vm2, %v458_v54  ;;  %6700 = vmatprep.subr.mxu0 %v10605_v47 }
 0x2f2   :  { %6640 = vmatpush3.msra.mxu1 %v595_v57  ;;  %6671 = vmatprep.mubr.f32.mxu1 %v8036_v39  ;;  %v8343_v55 = vpop.permute.xlu0 %754 }
 0x2f3   :  { %6641 = vmatprep.subr.mxu1 %v8242_v48  ;;  %v711_v58 = vpop.permute.xlu1 %710 }
 0x2f4   :  { %6642 = vmatpush3.msra.mxu1 %v8242_v48  ;;  %6701 = vmatpush3.msra.mxu0 %v711_v58  ;;  %v101_v58 = vld [vmem:[%s10531_s5 + $0x18] sm:$0xff] }
 0x2f5   :  { %6643 = vmatprep.subr.mxu1 %v591_v16  ;;  %6702 = vmatprep.subr.mxu0 %v10605_v47 }
 0x2f6   :  { %6644 = vmatpush3.msra.mxu1 %v591_v16  ;;  %v874_v57 = vpop.permute.xlu0 %873 }
 0x2f7   :  { %6645 = vmatprep.subr.mxu1 %v589_v18  ;;  %v709_v42 = vpop.permute.xlu1 %708 }
 0x2f8   :  { %6646 = vmatpush3.msra.mxu1 %v589_v18  ;;  %6703 = vmatpush3.msra.mxu0 %v709_v42 }
 0x2f9   :  { %6647 = vmatprep.subr.mxu1 %v587_v61  ;;  %6704 = vmatprep.subr.mxu0 %v10605_v47 }
 0x2fa   :  { %6648 = vmatpush3.msra.mxu1 %v587_v61  ;;  %v870_v32 = vpop.permute.xlu0 %869 }
 0x2fb   :  { %6649 = vmatprep.subr.mxu1 %v585_v63  ;;  %v707_v54 = vpop.permute.xlu1 %706 }
 0x2fc   :  { %6650 = vmatpush3.msra.mxu1 %v585_v63  ;;  %6705 = vmatpush3.msra.mxu0 %v707_v54 }
 0x2fd   :  { %6651 = vmatprep.subr.mxu1 %v583_v36  ;;  %6707 = vmatmul.mubr.f32.vlgmr.msra.gmra.mxu0 %v8041_v40 }
 0x2fe   :  { %6652 = vmatpush3.msra.mxu1 %v583_v36  ;;  %v866_v48 = vpop.permute.xlu0 %865 }
 0x2ff   :  { %6653 = vmatprep.subr.mxu1 %v581_v45  ;;  %v8346_v56 = vpop.permute.xlu1 %612 }
 0x300   :  { %6654 = vmatpush3.msra.mxu1 %v581_v45 }
 0x301   :  { %6655 = vmatprep.subr.mxu1 %v579_v35 }
 0x302   :  { %6656 = vmatpush3.msra.mxu1 %v579_v35 }
 0x303   :  { %6657 = vmatprep.subr.mxu1 %v577_v44  ;;  %v872_v59 = vpop.permute.xlu1 %871 }
 0x304   :  { %6658 = vmatpush3.msra.mxu1 %v577_v44 }
 0x305   :  { %6659 = vmatprep.subr.mxu1 %v575_v50 }
 0x306   :  { %6660 = vmatpush3.msra.mxu1 %v575_v50  ;;  %v104_v50 = vld [vmem:[%s10531_s5 + $0x78] sm:$0xff] }
 0x307   :  { %6661 = vmatprep.subr.mxu1 %v573_v60  ;;  %v868_v34 = vpop.permute.xlu1 %867 }
 0x308   :  { %6662 = vmatpush3.msra.mxu1 %v573_v60  ;;  %v862_v60 = vpop.permute.xlu0 %861 }
 0x309   :  { %6663 = vmatprep.subr.mxu1 %v571_v31 }
 0x30a   :  { %6664 = vmatpush3.msra.mxu1 %v571_v31 }
 0x30b   :  { %6665 = vmatprep.subr.mxu1 %v569_v53  ;;  %v864_v16 = vpop.permute.xlu1 %863 }
 0x30c   :  { %6666 = vmatpush3.msra.mxu1 %v569_v53  ;;  %v858_v31 = vpop.permute.xlu0 %857 }
 0x30d   :  { %6667 = vmatprep.subr.mxu1 %v567_v62 }
 0x30e   :  { %6668 = vmatpush3.msra.mxu1 %v567_v62  ;;  %v102_v62 = vld [vmem:[%s10531_s5 + $0x38] sm:$0xff] }
 0x30f   :  { %6669 = vmatprep.subr.mxu1 %v565_v51  ;;  %v860_v53 = vpop.permute.xlu1 %859 }
 0x310   :  { %6670 = vmatpush3.msra.mxu1 %v565_v51  ;;  %v854_v61 = vpop.permute.xlu0 %853 }
 0x311   :  { %6672 = vmatmul.mubr.f32.vlgmr.msra.gmra.mxu1 %v8043_v41  ;;  %6709 = vmatprep.subr.mxu1 %v10605_v47 }
 0x312   :  { %6710 = vmatpush3.msra.mxu1 %v874_v57  ;;  %6741 = vmatprep.mubr.msk.f32.mxu1 %vm7728_vm0, %v10605_v47 }
 0x313   :  { %6711 = vmatprep.subr.mxu1 %v10605_v47  ;;  %v856_v18 = vpop.permute.xlu1 %855 }
 0x314   :  { %6712 = vmatpush3.msra.mxu1 %v872_v59  ;;  %v850_v36 = vpop.permute.xlu0 %849 }
 0x315   :  { %6713 = vmatprep.subr.mxu1 %v10605_v47 }
 0x316   :  { %6714 = vmatpush3.msra.mxu1 %v870_v32 }
 0x317   :  { %6715 = vmatprep.subr.mxu1 %v10605_v47  ;;  %v852_v63 = vpop.permute.xlu1 %851 }
 0x318   :  { %6716 = vmatpush3.msra.mxu1 %v868_v34  ;;  %v846_v35 = vpop.permute.xlu0 %845 }
 0x319   :  { %6717 = vmatprep.subr.mxu1 %v10605_v47 }
 0x31a   :  { %6718 = vmatpush3.msra.mxu1 %v866_v48 }
 0x31b   :  { %6719 = vmatprep.subr.mxu1 %v10605_v47  ;;  %v848_v45 = vpop.permute.xlu1 %847 }
 0x31c   :  { %6720 = vmatpush3.msra.mxu1 %v864_v16 }
 0x31d   :  { %6721 = vmatprep.subr.mxu1 %v10605_v47 }
 0x31e   :  { %6722 = vmatpush3.msra.mxu1 %v862_v60 }
 0x31f   :  { %6723 = vmatprep.subr.mxu1 %v10605_v47  ;;  %v844_v44 = vpop.permute.xlu1 %843 }
 0x320   :  { %6724 = vmatpush3.msra.mxu1 %v860_v53 }
 0x321   :  { %6725 = vmatprep.subr.mxu1 %v10605_v47 }
 0x322   :  { %6726 = vmatpush3.msra.mxu1 %v858_v31 }
 0x323   :  { %6727 = vmatprep.subr.mxu1 %v10605_v47 }
 0x324   :  { %6728 = vmatpush3.msra.mxu1 %v856_v18 }
 0x325   :  { %6729 = vmatprep.subr.mxu1 %v10605_v47 }
 0x326   :  { %6730 = vmatpush3.msra.mxu1 %v854_v61 }
 0x327   :  { %6731 = vmatprep.subr.mxu1 %v10605_v47 }
 0x328   :  { %6732 = vmatpush3.msra.mxu1 %v852_v63 }
 0x329   :  { %6733 = vmatprep.subr.mxu1 %v10605_v47 }
 0x32a   :  { %6734 = vmatpush3.msra.mxu1 %v850_v36 }
 0x32b   :  { %6735 = vmatprep.subr.mxu1 %v10605_v47 }
 0x32c   :  { %6736 = vmatpush3.msra.mxu1 %v848_v45 }
 0x32d   :  { %6737 = vmatprep.subr.mxu1 %v10605_v47 }
 0x32e   :  { %6738 = vmatpush3.msra.mxu1 %v846_v35 }
 0x32f   :  { %6739 = vmatprep.subr.mxu1 %v10605_v47 }
 0x330   :  { %6740 = vmatpush3.msra.mxu1 %v844_v44 }
 0x331   :  { %6765 = vmatprep.subr.mxu1 %v104_v50  ;;  %6742 = vmatmul.mubr.f32.vlgmr.msra.gmra.mxu1 %v8009_v33 }
 0x332   :  { %6766 = vmatpush3.msra.mxu1 %v104_v50 }
 0x333   :  { %6767 = vmatprep.subr.mxu1 %v103_v49 }
 0x334   :  { %6768 = vmatpush3.msra.mxu1 %v103_v49 }
 0x335   :  { %6769 = vmatprep.subr.mxu1 %v102_v62 }
 0x336   :  { %6770 = vmatpush3.msra.mxu1 %v102_v62 }
 0x337   :  { %6771 = vmatprep.subr.mxu1 %v101_v58 }
 0x338   :  { %6772 = vmatpush3.msra.mxu1 %v101_v58 }
 0x339   :  { %6811 = vmatprep.subr.mxu1 %v10605_v47 }
 0x3b1   :  { %v6638_v42 = vpop.f32.mrf.mxu1 }
 0x3b3   :  { %v535_v51 = vpop.f32.mrf.mxu1 }
 0x3b4   :  { %6773 = vmatprep.mubr.msk.f32.mxu1 %vm341_vm1, %v535_v51 }
 0x3b5   :  { %6774 = vmatmul.mubr.msk.f32.vlgmr.msra.gmra.mxu1 %vm341_vm1, %v6638_v42 }
 0x3b6   :  { %6843 = vmatprep.mubr.msk.f32.mxu1 %vm7728_vm0, %v10605_v47 }
 0x3bd   :  { %v823_v33 = vpop.f32.mrf.mxu0 }
 0x3be   :  { %v824_v54 = vadd.f32 %v823_v33, %v8343_v55 }
 0x3bf   :  { %v6708_v57 = vpop.f32.mrf.mxu0 }
 0x3c0   :  { %6744 = vmatprep.subr.msk.mxu0 %vm341_vm1, %v824_v54  ;;  %v545_v57 = vld [vmem:[%s10531_s5 + $0xb8] sm:$0xff] }
 0x3c1   :  { %6745 = vmatpush3.xpose.msk.msra.mxu0 %vm341_vm1, %v824_v54  ;;  %v546_v54 = vld [vmem:[%s10531_s5 + $0xd8] sm:$0xff] }
 0x3d1   :  { %v6673_v59 = vpop.f32.mrf.mxu1 }
 0x3d2   :  { %v687_v48 = vadd.f32 %v6673_v59, %v8346_v56 }
 0x3d3   :  { %v681_v32 = vpop.f32.mrf.mxu1 }
 0x3d4   :  { %v682_v34 = vadd.f32 %v681_v32, %v8346_v56  ;;  %v544_v32 = vld [vmem:[%s10531_s5 + $0x98] sm:$0xff] }
 0x3d6   :  { %6746 = vmatprep.mubr.msk.f32.mxu0 %vm341_vm1, %v682_v34 }
 0x3d7   :  { %6747 = vmatmul.mubr.msk.f32.vlgmr.msra.gmra.mxu0 %vm341_vm1, %v687_v48 }
 0x3f1   :  { %v8392_v16 = vpop.f32.mrf.mxu1 }
 0x3f3   :  { %v6743_v60 = vpop.f32.mrf.mxu1 }
 0x497   :  { %v6748_v53 = vpop.f32.mrf.mxu0 }
 0x498   :  { %v1049_v55 = vmul.f32 0.17677669, %v6748_v53 }
 0x499   :  { %v1039_v31 = vpop.f32.mrf.mxu0 }
 0x49a   :  { %v1048_v18 = vmul.f32 0.17677669, %v1039_v31  ;;  %v1051_v61 = vadd.f32 %v1049_v55, %v8217_v0 }
 0x49c   :  { %v1055_v63 = vsel %vm436_vm2, %v1051_v61, -inf  ;;  %v1050_v36 = vadd.f32 %v1048_v18, %v8217_v0 }
 0x49d   :  { %1056 = vmax.xlane.f32.xlu1 %v1055_v63 }
 0x49e   :  { %v1052_v56 = vsel %vm436_vm2, %v1050_v36, -inf }
 0x49f   :  { %1053 = vmax.xlane.f32.xlu0 %v1052_v56 }
 0x4ae   :  { %1354 = vrot.lane.b32.xlu1 %v7801_v1, %s7730_s22  ;;  %v10606_v1 = vld [vmem:[#allocation2_spill] sm:$0xff] }
 0x4b2   :  { %1480 = vrot.lane.b32.xlu1 %v7806_v2, %s7730_s22  ;;  %v10607_v2 = vld [vmem:[#allocation3_spill] sm:$0xff] }
 0x4b6   :  { %1352 = vrot.lane.b32.xlu1 %v7811_v3, %s7730_s22  ;;  %v10608_v3 = vld [vmem:[#allocation4_spill] sm:$0xff] }
 0x4ba   :  { %1350 = vrot.lane.b32.xlu1 %v7827_v5, %s7730_s22  ;;  %v10610_v5 = vld [vmem:[#allocation5_spill] sm:$0xff] }
 0x4be   :  { %1348 = vrot.lane.b32.xlu1 %v7841_v7, %s7730_s22  ;;  %v10612_v7 = vld [vmem:[#allocation6_spill] sm:$0xff] }
 0x4c2   :  { %1346 = vrot.lane.b32.xlu1 %v7855_v9, %s7730_s22  ;;  %v10614_v9 = vld [vmem:[#allocation8_spill] sm:$0xff] }
 0x4c6   :  { %1344 = vrot.lane.b32.xlu1 %v7869_v11, %s7730_s22  ;;  %v10616_v11 = vld [vmem:[#allocation10_spill] sm:$0xff] }
 0x4ca   :  { %1342 = vrot.lane.b32.xlu1 %v7883_v13, %s7730_s22  ;;  %v10618_v13 = vld [vmem:[#allocation12_spill] sm:$0xff] }
 0x4ce   :  { %1340 = vrot.lane.b32.xlu1 %v7897_v15, %s7730_s22  ;;  %v10620_v15 = vld [vmem:[#allocation14_spill] sm:$0xff] }
 0x4d2   :  { %1338 = vrot.lane.b32.xlu1 %v7911_v17, %s7730_s22  ;;  %v10621_v17 = vld [vmem:[#allocation19_spill] sm:$0xff] }
 0x4d6   :  { %1336 = vrot.lane.b32.xlu1 %v7925_v19, %s7730_s22  ;;  %v10622_v19 = vld [vmem:[#allocation16_spill] sm:$0xff] }
 0x4da   :  { %1334 = vrot.lane.b32.xlu1 %v7939_v21, %s7730_s22 }
 0x4de   :  { %1332 = vrot.lane.b32.xlu1 %v7953_v23, %s7730_s22 }
 0x4e2   :  { %1330 = vrot.lane.b32.xlu1 %v7967_v25, %s7730_s22 }
 0x4e6   :  { %1328 = vrot.lane.b32.xlu1 %v7979_v27, %s7730_s22 }
 0x4ea   :  { %1326 = vrot.lane.b32.xlu1 %v7991_v29, %s7730_s22 }
 0x4ee   :  { %1324 = vrot.lane.b32.xlu1 %v8029_v37, %s7730_s22 }
 0x4f2   :  { %1498 = vrot.lane.b32.xlu1 %v10608_v3, %s7730_s22 }
 0x4f6   :  { %1601 = vrot.lane.b32.xlu1 %v10610_v5, %s7730_s22 }
 0x4fa   :  { %1597 = vrot.lane.b32.xlu1 %v10612_v7, %s7730_s22  ;;  %v8554_v7 = vpop.f32.mrf.mxu1 }
 0x4fe   :  { %1593 = vrot.lane.b32.xlu1 %v10614_v9, %s7730_s22 }
 0x502   :  { %1589 = vrot.lane.b32.xlu1 %v10616_v11, %s7730_s22 }
 0x506   :  { %1585 = vrot.lane.b32.xlu1 %v10618_v13, %s7730_s22 }
 0x50a   :  { %1581 = vrot.lane.b32.xlu1 %v10620_v15, %s7730_s22 }
 0x50e   :  { %1577 = vrot.lane.b32.xlu1 %v10622_v19, %s7730_s22 }
 0x526   :  { %v1057_v45 = vpop.xlane.xlu1 %1056 }
 0x527   :  { %v1059_v35 = vsub.f32 %v1051_v61, %v1057_v45 }
 0x528   :  { %v1054_v44 = vpop.xlane.xlu0 %1053 }
 0x529   :  { %v1062_v50 = vmul.f32 1.442695, %v1059_v35  ;;  %v1058_v49 = vsub.f32 %v1050_v36, %v1054_v44 }
 0x52a   :  { %v8509_v25 = vpop.permute.xlu1 %1354 }
 0x52b   :  { %7545 = vpow2.f32 %v1062_v50  ;;  %v1060_v62 = vmul.f32 1.442695, %v1058_v49 }
 0x52d   :  { %7547 = vpow2.f32 %v1060_v62 }
 0x538   :  { %v8398_v58 = vpop.eup %7545 }
 0x539   :  { %v1067_v42 = vsel %vm436_vm2, %v8398_v58, 0.0 }
 0x53a   :  { %v8402_v51 = vpop.eup %7547  ;;  %1068 = vadd.xlane.f32.xlu0 %v1067_v42 }
 0x53b   :  { %v1064_v33 = vsel %vm436_vm2, %v8402_v51, 0.0 }
 0x53e   :  { %1065 = vadd.xlane.f32.xlu0 %v1064_v33 }
 0x554   :  { %891 = vrot.lane.b32.xlu0 %v8279_v43, %s7729_s15 }
 0x558   :  { %1478 = vrot.lane.b32.xlu0 %v7820_v4, %s7730_s22  ;;  %v10609_v4 = vld [vmem:[#allocation7_spill] sm:$0xff] }
 0x55c   :  { %1476 = vrot.lane.b32.xlu0 %v7832_v6, %s7730_s22  ;;  %v10611_v6 = vld [vmem:[#allocation9_spill] sm:$0xff] }
 0x560   :  { %1474 = vrot.lane.b32.xlu0 %v7846_v8, %s7730_s22  ;;  %v10613_v8 = vld [vmem:[#allocation11_spill] sm:$0xff] }
 0x564   :  { %1472 = vrot.lane.b32.xlu0 %v7860_v10, %s7730_s22  ;;  %v10615_v10 = vld [vmem:[#allocation13_spill] sm:$0xff] }
 0x568   :  { %1470 = vrot.lane.b32.xlu0 %v7874_v12, %s7730_s22  ;;  %v10617_v12 = vld [vmem:[#allocation15_spill] sm:$0xff] }
 0x56c   :  { %1468 = vrot.lane.b32.xlu0 %v7888_v14, %s7730_s22  ;;  %v10619_v14 = vld [vmem:[#allocation17_spill] sm:$0xff] }
 0x570   :  { %1466 = vrot.lane.b32.xlu0 %v10606_v1, %s7730_s22 }
 0x574   :  { %1464 = vrot.lane.b32.xlu0 %v10607_v2, %s7730_s22 }
 0x578   :  { %1462 = vrot.lane.b32.xlu0 %v7930_v20, %s7730_s22  ;;  %v10623_v20 = vld [vmem:[#allocation18_spill] sm:$0xff] }
 0x579   :  { %1573 = vrot.lane.b32.xlu1 %v10623_v20, %s7730_s22 }
 0x57c   :  { %1460 = vrot.lane.b32.xlu0 %v7944_v22, %s7730_s22 }
 0x580   :  { %1458 = vrot.lane.b32.xlu0 %v7958_v24, %s7730_s22 }
 0x584   :  { %1456 = vrot.lane.b32.xlu0 %v7972_v26, %s7730_s22  ;;  %v547_v26 = vld [vmem:[%s10531_s5 + $0xf8] sm:$0xff] }
 0x588   :  { %1454 = vrot.lane.b32.xlu0 %v7986_v28, %s7730_s22  ;;  %v1481_v28 = vpop.permute.xlu1 %1480 }
 0x589   :  { %6812 = vmatpush3.msra.mxu1 %v1481_v28 }
 0x58a   :  { %6813 = vmatprep.subr.mxu1 %v10605_v47 }
 0x58c   :  { %1452 = vrot.lane.b32.xlu0 %v7996_v30, %s7730_s22  ;;  %v1353_v56 = vpop.permute.xlu1 %1352 }
 0x590   :  { %1450 = vrot.lane.b32.xlu0 %v8034_v38, %s7730_s22  ;;  %v1351_v45 = vpop.permute.xlu1 %1350 }
 0x594   :  { %1372 = vrot.lane.b32.xlu0 %v8065_v46, %s7730_s22  ;;  %v1349_v35 = vpop.permute.xlu1 %1348 }
 0x598   :  { %1599 = vrot.lane.b32.xlu0 %v8081_v52, %s7730_s22  ;;  %v1347_v44 = vpop.permute.xlu1 %1346 }
 0x59c   :  { %1595 = vrot.lane.b32.xlu0 %v10609_v4, %s7730_s22  ;;  %v1345_v50 = vpop.permute.xlu1 %1344 }
 0x5a0   :  { %1591 = vrot.lane.b32.xlu0 %v10611_v6, %s7730_s22  ;;  %v1343_v49 = vpop.permute.xlu1 %1342 }
 0x5a4   :  { %1587 = vrot.lane.b32.xlu0 %v10613_v8, %s7730_s22  ;;  %v1341_v62 = vpop.permute.xlu1 %1340  ;;  %v8556_v8 = vpop.f32.mrf.mxu1 }
 0x5a8   :  { %1583 = vrot.lane.b32.xlu0 %v10615_v10, %s7730_s22 }
 0x5ac   :  { %1579 = vrot.lane.b32.xlu0 %v10617_v12, %s7730_s22 }
 0x5b0   :  { %1575 = vrot.lane.b32.xlu0 %v10619_v14, %s7730_s22 }
 0x5b4   :  { %1571 = vrot.lane.b32.xlu0 %v10621_v17, %s7730_s22 }
 0x5c3   :  { %v1069_v21 = vpop.xlane.xlu0 %1068 }
 0x5c4   :  { %7549 = vrcp.f32 %v1069_v21 }
 0x5c7   :  { %v1066_v22 = vpop.xlane.xlu0 %1065 }
 0x5c8   :  { %7551 = vrcp.f32 %v1066_v22 }
 0x5cb   :  { %v892_v23 = vpop.permute.xlu0 %891 }
 0x5cc   :  { %v961_v24 = vadd.f32 %v8392_v16, %v892_v23 }
 0x5ce   :  { %6749 = vmatprep.subr.msk.mxu0 %vm465_vm3, %v961_v24 }
 0x5cf   :  { %6750 = vmatpush3.msk.msra.mxu0 %vm465_vm3, %v961_v24  ;;  %v1479_v27 = vpop.permute.xlu0 %1478 }
 0x5d0   :  { %6754 = vmatprep.subr.mxu0 %v547_v26  ;;  %6814 = vmatpush3.msra.mxu1 %v1479_v27 }
 0x5d1   :  { %v7550_v30 = vpop.eup %7549  ;;  %6815 = vmatprep.subr.mxu1 %v10605_v47 }
 0x5d2   :  { %v1073_v46 = vmul.f32 %v7550_v30, %v8398_v58  ;;  %v1339_v58 = vpop.permute.xlu1 %1338 }
 0x5d3   :  { %v1477_v29 = vpop.permute.xlu0 %1476 }
 0x5d4   :  { %6816 = vmatpush3.msra.mxu1 %v1477_v29 }
 0x5d5   :  { %v7552_v37 = vpop.eup %7551  ;;  %6817 = vmatprep.subr.mxu1 %v10605_v47 }
 0x5d6   :  { %v1072_v38 = vmul.f32 %v7552_v37, %v8402_v51  ;;  %v1337_v42 = vpop.permute.xlu1 %1336 }
 0x5d7   :  { %v1475_v52 = vpop.permute.xlu0 %1474 }
 0x5d8   :  { %6751 = vmatprep.mubr.msk.f32.mxu0 %vm436_vm2, %v1072_v38  ;;  %6818 = vmatpush3.msra.mxu1 %v1475_v52 }
 0x5d9   :  { %6752 = vmatmul.mubr.msk.f32.vlgmr.msra.gmra.mxu0 %vm436_vm2, %v1073_v46  ;;  %6819 = vmatprep.subr.mxu1 %v10605_v47 }
 0x5da   :  { %6755 = vmatpush3.msra.mxu0 %v547_v26  ;;  %v1335_v33 = vpop.permute.xlu1 %1334 }
 0x5db   :  { %6756 = vmatprep.subr.mxu0 %v546_v54  ;;  %v1473_v59 = vpop.permute.xlu0 %1472 }
 0x5dc   :  { %6757 = vmatpush3.msra.mxu0 %v546_v54  ;;  %6820 = vmatpush3.msra.mxu1 %v1473_v59 }
 0x5dd   :  { %6758 = vmatprep.subr.mxu0 %v545_v57  ;;  %6821 = vmatprep.subr.mxu1 %v10605_v47 }
 0x5de   :  { %6759 = vmatpush3.msra.mxu0 %v545_v57  ;;  %v1333_v2 = vpop.permute.xlu1 %1332 }
 0x5df   :  { %6760 = vmatprep.subr.mxu0 %v544_v32  ;;  %v1471_v34 = vpop.permute.xlu0 %1470 }
 0x5e0   :  { %6761 = vmatpush3.msra.mxu0 %v544_v32  ;;  %6822 = vmatpush3.msra.mxu1 %v1471_v34  ;;  %v8584_v32 = vld [vmem:[%s10534_s2] sm:$0xf] }
 0x5e1   :  { %6776 = vmatprep.subr.mxu0 %v8509_v25  ;;  %6823 = vmatprep.subr.mxu1 %v10605_v47 }
 0x5e2   :  { %v1331_v3 = vpop.permute.xlu1 %1330 }
 0x5e3   :  { %v1469_v48 = vpop.permute.xlu0 %1468 }
 0x5e4   :  { %6824 = vmatpush3.msra.mxu1 %v1469_v48 }
 0x5e5   :  { %6825 = vmatprep.subr.mxu1 %v10605_v47 }
 0x5e6   :  { %v1329_v4 = vpop.permute.xlu1 %1328 }
 0x5e7   :  { %v1467_v16 = vpop.permute.xlu0 %1466 }
 0x5e8   :  { %6826 = vmatpush3.msra.mxu1 %v1467_v16 }
 0x5e9   :  { %6827 = vmatprep.subr.mxu1 %v10605_v47 }
 0x5ea   :  { %v1327_v5 = vpop.permute.xlu1 %1326 }
 0x5eb   :  { %v1465_v60 = vpop.permute.xlu0 %1464 }
 0x5ec   :  { %6828 = vmatpush3.msra.mxu1 %v1465_v60 }
 0x5ed   :  { %6829 = vmatprep.subr.mxu1 %v10605_v47 }
 0x5ee   :  { %v1325_v6 = vpop.permute.xlu1 %1324 }
 0x5ef   :  { %v1463_v53 = vpop.permute.xlu0 %1462 }
 0x5f0   :  { %6830 = vmatpush3.msra.mxu1 %v1463_v53 }
 0x5f1   :  { %6831 = vmatprep.subr.mxu1 %v10605_v47 }
 0x5f2   :  { %v1499_v9 = vpop.permute.xlu1 %1498 }
 0x5f3   :  { %v1461_v55 = vpop.permute.xlu0 %1460 }
 0x5f4   :  { %6832 = vmatpush3.msra.mxu1 %v1461_v55 }
 0x5f5   :  { %6833 = vmatprep.subr.mxu1 %v10605_v47 }
 0x5f6   :  { %v1602_v22 = vpop.permute.xlu1 %1601 }
 0x5f7   :  { %v1459_v31 = vpop.permute.xlu0 %1458 }
 0x5f8   :  { %6834 = vmatpush3.msra.mxu1 %v1459_v31 }
 0x5f9   :  { %6835 = vmatprep.subr.mxu1 %v10605_v47 }
 0x5fa   :  { %v1598_v24 = vpop.permute.xlu1 %1597 }
 0x5fb   :  { %v1457_v18 = vpop.permute.xlu0 %1456 }
 0x5fc   :  { %6836 = vmatpush3.msra.mxu1 %v1457_v18 }
 0x5fd   :  { %6837 = vmatprep.subr.mxu1 %v10605_v47 }
 0x5fe   :  { %v1594_v26 = vpop.permute.xlu1 %1593 }
 0x5ff   :  { %v1455_v61 = vpop.permute.xlu0 %1454 }
 0x600   :  { %6838 = vmatpush3.msra.mxu1 %v1455_v61 }
 0x601   :  { %6839 = vmatprep.subr.mxu1 %v10605_v47 }
 0x602   :  { %v1590_v28 = vpop.permute.xlu1 %1589 }
 0x603   :  { %v1453_v63 = vpop.permute.xlu0 %1452 }
 0x604   :  { %6840 = vmatpush3.msra.mxu1 %v1453_v63 }
 0x605   :  { %6841 = vmatprep.subr.mxu1 %v10605_v47 }
 0x606   :  { %v1586_v30 = vpop.permute.xlu1 %1585 }
 0x607   :  { %v1451_v36 = vpop.permute.xlu0 %1450 }
 0x608   :  { %6842 = vmatpush3.msra.mxu1 %v1451_v36 }
 0x609   :  { %6844 = vmatmul.mubr.f32.vlgmr.msra.gmra.mxu1 %v8041_v40 }
 0x60a   :  { %v1582_v38 = vpop.permute.xlu1 %1581 }
 0x60b   :  { %v1373_v17 = vpop.permute.xlu0 %1372 }
 0x60e   :  { %v1578_v52 = vpop.permute.xlu1 %1577 }
 0x60f   :  { %v1600_v23 = vpop.permute.xlu0 %1599 }
 0x612   :  { %v1574_v57 = vpop.permute.xlu1 %1573 }
 0x699   :  { %v6753_v51 = vpop.f32.mrf.mxu0 }
 0x69b   :  { %v1149_v1 = vpop.f32.mrf.mxu0 }
 0x69c   :  { %6762 = vmatprep.mubr.msk.f32.mxu0 %vm341_vm1, %v1149_v1  ;;  %v7618_v1 = vld [vmem:[%s10531_s5 + $0x1e8] sm:$0xff] }
 0x69d   :  { %6763 = vmatmul.mubr.msk.f32.vlgmr.msra.gmra.mxu0 %vm341_vm1, %v6753_v51 }
 0x69e   :  { %6777 = vmatpush3.msra.mxu0 %v8509_v25  ;;  %6808 = vmatprep.mubr.f32.mxu0 %v8036_v39  ;;  %v1596_v25 = vpop.permute.xlu0 %1595 }
 0x69f   :  { %6778 = vmatprep.subr.mxu0 %v1353_v56 }
 0x6a0   :  { %6779 = vmatpush3.msra.mxu0 %v1353_v56 }
 0x6a1   :  { %6780 = vmatprep.subr.mxu0 %v1351_v45 }
 0x6a2   :  { %6781 = vmatpush3.msra.mxu0 %v1351_v45  ;;  %v1592_v27 = vpop.permute.xlu0 %1591 }
 0x6a3   :  { %6782 = vmatprep.subr.mxu0 %v1349_v35 }
 0x6a4   :  { %6783 = vmatpush3.msra.mxu0 %v1349_v35 }
 0x6a5   :  { %6784 = vmatprep.subr.mxu0 %v1347_v44 }
 0x6a6   :  { %6785 = vmatpush3.msra.mxu0 %v1347_v44  ;;  %v1588_v29 = vpop.permute.xlu0 %1587 }
 0x6a7   :  { %6786 = vmatprep.subr.mxu0 %v1345_v50 }
 0x6a8   :  { %6787 = vmatpush3.msra.mxu0 %v1345_v50 }
 0x6a9   :  { %6788 = vmatprep.subr.mxu0 %v1343_v49 }
 0x6aa   :  { %6789 = vmatpush3.msra.mxu0 %v1343_v49  ;;  %v1584_v37 = vpop.permute.xlu0 %1583 }
 0x6ab   :  { %6790 = vmatprep.subr.mxu0 %v1341_v62 }
 0x6ac   :  { %6791 = vmatpush3.msra.mxu0 %v1341_v62 }
 0x6ad   :  { %6792 = vmatprep.subr.mxu0 %v1339_v58 }
 0x6ae   :  { %6793 = vmatpush3.msra.mxu0 %v1339_v58  ;;  %v1580_v46 = vpop.permute.xlu0 %1579 }
 0x6af   :  { %6794 = vmatprep.subr.mxu0 %v1337_v42 }
 0x6b0   :  { %6795 = vmatpush3.msra.mxu0 %v1337_v42 }
 0x6b1   :  { %6796 = vmatprep.subr.mxu0 %v1335_v33 }
 0x6b2   :  { %6797 = vmatpush3.msra.mxu0 %v1335_v33  ;;  %v1576_v54 = vpop.permute.xlu0 %1575  ;;  %v8609_v33 = vld [vmem:[%s10531_s5 + $0x178] sm:$0xff] }
 0x6b3   :  { %6798 = vmatprep.subr.mxu0 %v1333_v2 }
 0x6b4   :  { %6799 = vmatpush3.msra.mxu0 %v1333_v2  ;;  %v7619_v2 = vld [vmem:[%s10531_s5 + $0x1e0] sm:$0xff] }
 0x6b5   :  { %6800 = vmatprep.subr.mxu0 %v1331_v3 }
 0x6b6   :  { %6801 = vmatpush3.msra.mxu0 %v1331_v3  ;;  %v1572_v59 = vpop.permute.xlu0 %1571  ;;  %v7620_v3 = vld [vmem:[%s10531_s5 + $0x1c0] sm:$0xff] }
 0x6b7   :  { %6802 = vmatprep.subr.mxu0 %v1329_v4 }
 0x6b8   :  { %6803 = vmatpush3.msra.mxu0 %v1329_v4  ;;  %v7621_v4 = vld [vmem:[%s10531_s5 + $0x1a0] sm:$0xff] }
 0x6b9   :  { %6804 = vmatprep.subr.mxu0 %v1327_v5 }
 0x6ba   :  { %6805 = vmatpush3.msra.mxu0 %v1327_v5  ;;  %v7622_v5 = vld [vmem:[%s10531_s5 + $0x1c8] sm:$0xff] }
 0x6bb   :  { %6806 = vmatprep.subr.mxu0 %v1325_v6 }
 0x6bc   :  { %6807 = vmatpush3.msra.mxu0 %v1325_v6  ;;  %v7623_v6 = vld [vmem:[%s10531_s5 + $0x180] sm:$0xff] }
 0x6bd   :  { %6809 = vmatmul.mubr.f32.vlgmr.msra.gmra.mxu0 %v8043_v41  ;;  %6846 = vmatprep.subr.mxu0 %v10605_v47 }
 0x6be   :  { %6878 = vmatprep.mubr.msk.f32.mxu0 %vm7728_vm0, %v10605_v47  ;;  %6847 = vmatpush3.msra.mxu0 %v1602_v22  ;;  %v7633_v22 = vld [vmem:[%s10531_s5 + $0xe0] sm:$0xff] }
 0x6bf   :  { %6848 = vmatprep.subr.mxu0 %v10605_v47 }
 0x6c0   :  { %6849 = vmatpush3.msra.mxu0 %v1600_v23  ;;  %v7634_v23 = vld [vmem:[%s10531_s5 + $0x108] sm:$0xff] }
 0x6c1   :  { %6850 = vmatprep.subr.mxu0 %v10605_v47 }
 0x6c2   :  { %6851 = vmatpush3.msra.mxu0 %v1598_v24  ;;  %v7635_v24 = vld [vmem:[%s10531_s5 + $0xc0] sm:$0xff] }
 0x6c3   :  { %6852 = vmatprep.subr.mxu0 %v10605_v47 }
 0x6c4   :  { %6853 = vmatpush3.msra.mxu0 %v1596_v25  ;;  %v7636_v25 = vld [vmem:[%s10531_s5 + $0xe8] sm:$0xff] }
 0x6c5   :  { %6854 = vmatprep.subr.mxu0 %v10605_v47 }
 0x6c6   :  { %6855 = vmatpush3.msra.mxu0 %v1594_v26  ;;  %v7637_v26 = vld [vmem:[%s10531_s5 + $0xa0] sm:$0xff] }
 0x6c7   :  { %6856 = vmatprep.subr.mxu0 %v10605_v47 }
 0x6c8   :  { %6857 = vmatpush3.msra.mxu0 %v1592_v27  ;;  %v7638_v27 = vld [vmem:[%s10531_s5 + $0xc8] sm:$0xff] }
 0x6c9   :  { %v1567_v10 = vpop.f32.mrf.mxu1  ;;  %6858 = vmatprep.subr.mxu0 %v10605_v47 }
 0x6ca   :  { %v1568_v11 = vadd.f32 %v1567_v10, %v1499_v9  ;;  %6859 = vmatpush3.msra.mxu0 %v1590_v28  ;;  %v7624_v9 = vld [vmem:[%s10531_s5 + $0x1a8] sm:$0xff]  ;;  %v7625_v10 = vld [vmem:[%s10531_s5 + $0x160] sm:$0xff] }
 0x6cb   :  { %v6845_v12 = vpop.f32.mrf.mxu1  ;;  %6860 = vmatprep.subr.mxu0 %v10605_v47  ;;  %v7639_v28 = vld [vmem:[%s10531_s5 + $0x80] sm:$0xff] }
 0x6cc   :  { %6881 = vmatprep.subr.msk.mxu1 %vm341_vm1, %v1568_v11  ;;  %6861 = vmatpush3.msra.mxu0 %v1588_v29  ;;  %v7627_v12 = vld [vmem:[%s10531_s5 + $0x140] sm:$0xff]  ;;  %v7640_v29 = vld [vmem:[%s10531_s5 + $0xa8] sm:$0xff] }
 0x6cd   :  { %6882 = vmatpush3.xpose.msk.msra.mxu1 %vm341_vm1, %v1568_v11  ;;  %6862 = vmatprep.subr.mxu0 %v10605_v47  ;;  %v7626_v11 = vld [vmem:[%s10531_s5 + $0x188] sm:$0xff] }
 0x6ce   :  { %6863 = vmatpush3.msra.mxu0 %v1586_v30  ;;  %v7641_v30 = vld [vmem:[%s10531_s5 + $0x60] sm:$0xff] }
 0x6cf   :  { %6864 = vmatprep.subr.mxu0 %v10605_v47 }
 0x6d0   :  { %6865 = vmatpush3.msra.mxu0 %v1584_v37  ;;  %v7642_v37 = vld [vmem:[%s10531_s5 + $0x88] sm:$0xff] }
 0x6d1   :  { %6866 = vmatprep.subr.mxu0 %v10605_v47 }
 0x6d2   :  { %6867 = vmatpush3.msra.mxu0 %v1582_v38  ;;  %v7643_v38 = vld [vmem:[%s10531_s5 + $0x40] sm:$0xff] }
 0x6d3   :  { %6868 = vmatprep.subr.mxu0 %v10605_v47 }
 0x6d4   :  { %6869 = vmatpush3.msra.mxu0 %v1580_v46  ;;  %v7644_v46 = vld [vmem:[%s10531_s5 + $0x68] sm:$0xff] }
 0x6d5   :  { %6870 = vmatprep.subr.mxu0 %v10605_v47 }
 0x6d6   :  { %6871 = vmatpush3.msra.mxu0 %v1578_v52  ;;  %v7645_v52 = vld [vmem:[%s10531_s5 + $0x20] sm:$0xff] }
 0x6d7   :  { %6872 = vmatprep.subr.mxu0 %v10605_v47 }
 0x6d8   :  { %6873 = vmatpush3.msra.mxu0 %v1576_v54  ;;  %v7646_v54 = vld [vmem:[%s10531_s5 + $0x48] sm:$0xff] }
 0x6d9   :  { %6874 = vmatprep.subr.mxu0 %v10605_v47 }
 0x6da   :  { %6875 = vmatpush3.msra.mxu0 %v1574_v57  ;;  %v7647_v57 = vld [vmem:[%s10531_s5] sm:$0xff] }
 0x6db   :  { %6876 = vmatprep.subr.mxu0 %v10605_v47 }
 0x6dc   :  { %6877 = vmatpush3.msra.mxu0 %v1572_v59  ;;  %v7648_v59 = vld [vmem:[%s10531_s5 + $0x28] sm:$0xff] }
 0x6dd   :  { %6879 = vmatmul.mubr.f32.vlgmr.msra.gmra.mxu0 %v8584_v32  ;;  %6937 = vmatprep.subr.mxu0 %v10605_v47 }
 0x6de   :  { %6969 = vmatprep.mubr.msk.f32.mxu0 %vm7728_vm0, %v10605_v47 }
 0x75d   :  { %v8560_v13 = vpop.f32.mrf.mxu0 }
 0x75f   :  { %v8562_v14 = vpop.f32.mrf.mxu0 }
 0x77d   :  { %v6810_v15 = vpop.f32.mrf.mxu0 }
 0x77e   :  { %v1447_v21 = vadd.f32 %v6810_v15, %v1373_v17  ;;  %v7628_v15 = vld [vmem:[%s10531_s5 + $0x168] sm:$0xff] }
 0x77f   :  { %v1441_v19 = vpop.f32.mrf.mxu0 }
 0x780   :  { %v1442_v20 = vadd.f32 %v1441_v19, %v1373_v17  ;;  %v7629_v17 = vld [vmem:[%s10531_s5 + $0x120] sm:$0xff]  ;;  %v7630_v19 = vld [vmem:[%s10531_s5 + $0x148] sm:$0xff] }
 0x782   :  { %6883 = vmatprep.mubr.msk.f32.mxu1 %vm341_vm1, %v1442_v20  ;;  %v7631_v20 = vld [vmem:[%s10531_s5 + $0x100] sm:$0xff] }
 0x783   :  { %6884 = vmatmul.mubr.msk.f32.vlgmr.msra.gmra.mxu1 %vm341_vm1, %v1447_v21  ;;  %v7632_v21 = vld [vmem:[%s10531_s5 + $0x128] sm:$0xff] }
 0x843   :  { %v6885_v34 = vpop.f32.mrf.mxu1 }
 0x844   :  { %v1777_v48 = vmul.f32 0.17677669, %v6885_v34  ;;  %v7649_v34 = vld [vmem:[%s10536_s6 + $0x1] ss:$0 sm:$0xff] }
 0x845   :  { %v1767_v16 = vpop.f32.mrf.mxu1 }
 0x846   :  { %v1779_v60 = vadd.f32 %v1777_v48, %v8217_v0  ;;  %v1776_v53 = vmul.f32 0.17677669, %v1767_v16  ;;  %v7650_v48 = vld [vmem:[%s10531_s5 + $0x8] sm:$0xff]  ;;  %v7651_v16 = vld [vmem:[%s10531_s5 + $0x1f0] sm:$0xff] }
 0x848   :  { %v1778_v55 = vadd.f32 %v1776_v53, %v8217_v0  ;;  %v1783_v31 = vsel %vm436_vm2, %v1779_v60, -inf  ;;  %v7653_v53 = vld [vmem:[%s10531_s5 + $0x1b0] sm:$0xff] }
 0x849   :  { %1784 = vmax.xlane.f32.xlu0 %v1783_v31  ;;  %v7655_v31 = vld [vmem:[%s10531_s5 + $0x170] sm:$0xff] }
 0x84a   :  { %v1780_v18 = vsel %vm436_vm2, %v1778_v55, -inf }
 0x84b   :  { %1781 = vmax.xlane.f32.xlu1 %v1780_v18  ;;  %v7656_v18 = vld [vmem:[%s10531_s5 + $0x190] sm:$0xff] }
 0x85c   :  { %1619 = vrot.lane.b32.xlu1 %v8279_v43, %s7730_s22  ;;  %v1688_v43 = vpop.f32.mrf.mxu0 }
 0x85e   :  { %v6880_v51 = vpop.f32.mrf.mxu0 }
 0x860   :  { %2129 = vrot.lane.b32.xlu1 %v7618_v1, %s7731_s20 }
 0x864   :  { %2001 = vrot.lane.b32.xlu1 %v7620_v3, %s7731_s20 }
 0x868   :  { %2127 = vrot.lane.b32.xlu1 %v7622_v5, %s7731_s20 }
 0x86c   :  { %2125 = vrot.lane.b32.xlu1 %v7624_v9, %s7731_s20 }
 0x870   :  { %2123 = vrot.lane.b32.xlu1 %v7626_v11, %s7731_s20  ;;  %v1322_v11 = vld [vmem:[%s10531_s5 + $0x158] sm:$0xff] }
 0x874   :  { %2121 = vrot.lane.b32.xlu1 %v7628_v15, %s7731_s20 }
 0x878   :  { %2119 = vrot.lane.b32.xlu1 %v7630_v19, %s7731_s20 }
 0x87c   :  { %2117 = vrot.lane.b32.xlu1 %v7632_v21, %s7731_s20 }
 0x880   :  { %2115 = vrot.lane.b32.xlu1 %v7634_v23, %s7731_s20 }
 0x884   :  { %2113 = vrot.lane.b32.xlu1 %v7636_v25, %s7731_s20 }
 0x888   :  { %2111 = vrot.lane.b32.xlu1 %v7638_v27, %s7731_s20 }
 0x88c   :  { %2109 = vrot.lane.b32.xlu1 %v7640_v29, %s7731_s20 }
 0x890   :  { %2107 = vrot.lane.b32.xlu1 %v7642_v37, %s7731_s20 }
 0x894   :  { %2105 = vrot.lane.b32.xlu1 %v7644_v46, %s7731_s20 }
 0x898   :  { %2103 = vrot.lane.b32.xlu1 %v7646_v54, %s7731_s20 }
 0x89c   :  { %2101 = vrot.lane.b32.xlu1 %v7648_v59, %s7731_s20 }
 0x8a0   :  { %2099 = vrot.lane.b32.xlu1 %v7650_v48, %s7731_s20 }
 0x8d2   :  { %v1785_v61 = vpop.xlane.xlu0 %1784 }
 0x8d3   :  { %v1787_v63 = vsub.f32 %v1779_v60, %v1785_v61  ;;  %v7652_v60 = vld [vmem:[%s10536_s6] ss:$0 sm:$0xff]  ;;  %v7657_v61 = vld [vmem:[%s10531_s5 + $0x130] sm:$0xff] }
 0x8d4   :  { %v1782_v36 = vpop.xlane.xlu1 %1781  ;;  %2021 = vrot.lane.b32.xlu1 %v7652_v60, %s7731_s20 }
 0x8d5   :  { %v1786_v56 = vsub.f32 %v1778_v55, %v1782_v36  ;;  %v1790_v45 = vmul.f32 1.442695, %v1787_v63  ;;  %v7654_v55 = vld [vmem:[%s10531_s5 + $0x1d0] sm:$0xff] }
 0x8d6   :  { %v7658_v63 = vld [vmem:[%s10531_s5 + $0x150] sm:$0xff] }
 0x8d7   :  { %v1788_v35 = vmul.f32 1.442695, %v1786_v56  ;;  %v7659_v36 = vld [vmem:[%s10531_s5 + $0xf0] sm:$0xff] }
 0x8d8   :  { %v1620_v58 = vpop.permute.xlu1 %1619  ;;  %2248 = vrot.lane.b32.xlu1 %v7654_v55, %s7731_s20  ;;  %v7660_v56 = vld [vmem:[%s10531_s5 + $0x110] sm:$0xff] }
 0x8d9   :  { %7553 = vpow2.f32 %v1788_v35  ;;  %v1689_v42 = vadd.f32 %v1688_v43, %v1620_v58  ;;  %v7662_v35 = vld [vmem:[%s10531_s5 + $0xd0] sm:$0xff] }
 0x8da   :  { %7555 = vpow2.f32 %v1790_v45  ;;  %v7661_v45 = vld [vmem:[%s10531_s5 + $0xb0] sm:$0xff] }
 0x8db   :  { %6886 = vmatprep.subr.msk.mxu1 %vm465_vm3, %v1689_v42  ;;  %v7665_v43 = vld [vmem:[%s10531_s5 + $0x30] sm:$0xff] }
 0x8dc   :  { %6887 = vmatpush3.msk.msra.mxu1 %vm465_vm3, %v1689_v42  ;;  %2244 = vrot.lane.b32.xlu1 %v7656_v18, %s7731_s20  ;;  %v7666_v58 = vld [vmem:[%s10531_s5 + $0x50] sm:$0xff] }
 0x8dd   :  { %6891 = vmatprep.subr.mxu1 %v8609_v33  ;;  %v7667_v42 = vld [vmem:[%s10531_s5 + $0x10] sm:$0xff] }
 0x8e0   :  { %2240 = vrot.lane.b32.xlu1 %v7658_v63, %s7731_s20 }
 0x8e4   :  { %2236 = vrot.lane.b32.xlu1 %v7660_v56, %s7731_s20 }
 0x8e6   :  { %v8596_v44 = vpop.eup %7553 }
 0x8e7   :  { %v1792_v50 = vsel %vm436_vm2, %v8596_v44, 0.0  ;;  %v8600_v49 = vpop.eup %7555 }
 0x8e8   :  { %1793 = vadd.xlane.f32.xlu0 %v1792_v50  ;;  %v1795_v62 = vsel %vm436_vm2, %v8600_v49, 0.0  ;;  %2232 = vrot.lane.b32.xlu1 %v7662_v35, %s7731_s20  ;;  %v7663_v50 = vld [vmem:[%s10531_s5 + $0x70] sm:$0xff] }
 0x8ec   :  { %1796 = vadd.xlane.f32.xlu0 %v1795_v62  ;;  %v7664_v62 = vld [vmem:[%s10531_s5 + $0x90] sm:$0xff] }
 0x8ed   :  { %2228 = vrot.lane.b32.xlu1 %v7664_v62, %s7731_s20 }
 0x8f1   :  { %2224 = vrot.lane.b32.xlu1 %v7666_v58, %s7731_s20 }
 0x8f5   :  { %2220 = vrot.lane.b32.xlu1 %v7667_v42, %s7731_s20 }
 0x902   :  { %2003 = vrot.lane.b32.xlu0 %v7619_v2, %s7731_s20  ;;  %v2130_v2 = vpop.permute.xlu1 %2129 }
 0x903   :  { %6938 = vmatpush3.msra.mxu0 %v2130_v2 }
 0x904   :  { %6939 = vmatprep.subr.mxu0 %v10605_v47 }
 0x906   :  { %1999 = vrot.lane.b32.xlu0 %v7621_v4, %s7731_s20  ;;  %v8813_v3 = vpop.permute.xlu1 %2001 }
 0x90a   :  { %1997 = vrot.lane.b32.xlu0 %v7623_v6, %s7731_s20  ;;  %v2128_v6 = vpop.permute.xlu1 %2127 }
 0x90b   :  { %6940 = vmatpush3.msra.mxu0 %v2128_v6 }
 0x90c   :  { %6941 = vmatprep.subr.mxu0 %v10605_v47 }
 0x90e   :  { %1995 = vrot.lane.b32.xlu0 %v7625_v10, %s7731_s20 }
 0x912   :  { %1993 = vrot.lane.b32.xlu0 %v7627_v12, %s7731_s20  ;;  %v2126_v12 = vpop.permute.xlu1 %2125 }
 0x913   :  { %6942 = vmatpush3.msra.mxu0 %v2126_v12 }
 0x914   :  { %6943 = vmatprep.subr.mxu0 %v10605_v47 }
 0x916   :  { %1991 = vrot.lane.b32.xlu0 %v7629_v17, %s7731_s20  ;;  %v2124_v15 = vpop.permute.xlu1 %2123 }
 0x917   :  { %6944 = vmatpush3.msra.mxu0 %v2124_v15 }
 0x918   :  { %6945 = vmatprep.subr.mxu0 %v10605_v47 }
 0x91a   :  { %1989 = vrot.lane.b32.xlu0 %v7631_v20, %s7731_s20 }
 0x91e   :  { %1987 = vrot.lane.b32.xlu0 %v7633_v22, %s7731_s20 }
 0x922   :  { %1985 = vrot.lane.b32.xlu0 %v7635_v24, %s7731_s20 }
 0x926   :  { %1983 = vrot.lane.b32.xlu0 %v7637_v26, %s7731_s20 }
 0x92a   :  { %1981 = vrot.lane.b32.xlu0 %v7639_v28, %s7731_s20 }
 0x92e   :  { %1979 = vrot.lane.b32.xlu0 %v7641_v30, %s7731_s20 }
 0x932   :  { %1977 = vrot.lane.b32.xlu0 %v7643_v38, %s7731_s20 }
 0x936   :  { %1975 = vrot.lane.b32.xlu0 %v7645_v52, %s7731_s20 }
 0x93a   :  { %1973 = vrot.lane.b32.xlu0 %v7647_v57, %s7731_s20 }
 0x93e   :  { %2147 = vrot.lane.b32.xlu0 %v7649_v34, %s7731_s20 }
 0x942   :  { %2250 = vrot.lane.b32.xlu0 %v7651_v16, %s7731_s20 }
 0x946   :  { %2246 = vrot.lane.b32.xlu0 %v7653_v53, %s7731_s20 }
 0x94a   :  { %2242 = vrot.lane.b32.xlu0 %v7655_v31, %s7731_s20 }
 0x94e   :  { %2238 = vrot.lane.b32.xlu0 %v7657_v61, %s7731_s20 }
 0x952   :  { %2234 = vrot.lane.b32.xlu0 %v7659_v36, %s7731_s20  ;;  %v1317_v36 = vadd.f32 %v8554_v7, %v8560_v13 }
 0x956   :  { %2230 = vrot.lane.b32.xlu0 %v7661_v45, %s7731_s20 }
 0x95a   :  { %2226 = vrot.lane.b32.xlu0 %v7663_v50, %s7731_s20 }
 0x95e   :  { %2222 = vrot.lane.b32.xlu0 %v7665_v43, %s7731_s20 }
 0x971   :  { %v1794_v51 = vpop.xlane.xlu0 %1793 }
 0x972   :  { %7557 = vrcp.f32 %v1794_v51 }
 0x975   :  { %v1797_v1 = vpop.xlane.xlu0 %1796 }
 0x976   :  { %7559 = vrcp.f32 %v1797_v1 }
 0x979   :  { %v2004_v17 = vpop.permute.xlu0 %2003 }
 0x97d   :  { %v2000_v30 = vpop.permute.xlu0 %1999 }
 0x97f   :  { %v7558_v4 = vpop.eup %7557 }
 0x980   :  { %v1800_v5 = vmul.f32 %v7558_v4, %v8596_v44  ;;  %v1321_v44 = vld [vmem:[%s10531_s5 + $0x138] sm:$0xff] }
 0x981   :  { %v1998_v37 = vpop.permute.xlu0 %1997 }
 0x982   :  { %6888 = vmatprep.mubr.msk.f32.mxu1 %vm436_vm2, %v1800_v5 }
 0x983   :  { %v7560_v9 = vpop.eup %7559 }
 0x984   :  { %v1801_v10 = vmul.f32 %v7560_v9, %v8600_v49  ;;  %v1320_v49 = vld [vmem:[%s10531_s5 + $0x118] sm:$0xff] }
 0x985   :  { %v1996_v38 = vpop.permute.xlu0 %1995 }
 0x986   :  { %6889 = vmatmul.mubr.msk.f32.vlgmr.msra.gmra.mxu1 %vm436_vm2, %v1801_v10 }
 0x987   :  { %6892 = vmatpush3.msra.mxu1 %v8609_v33  ;;  %v2122_v33 = vpop.permute.xlu1 %2121 }
 0x988   :  { %6893 = vmatprep.subr.mxu1 %v1322_v11  ;;  %6946 = vmatpush3.msra.mxu0 %v2122_v33 }
 0x989   :  { %6894 = vmatpush3.msra.mxu1 %v1322_v11  ;;  %6947 = vmatprep.subr.mxu0 %v10605_v47  ;;  %v1994_v46 = vpop.permute.xlu0 %1993 }
 0x98a   :  { %6895 = vmatprep.subr.mxu1 %v1321_v44 }
 0x98b   :  { %6896 = vmatpush3.msra.mxu1 %v1321_v44  ;;  %v2120_v19 = vpop.permute.xlu1 %2119 }
 0x98c   :  { %6897 = vmatprep.subr.mxu1 %v1320_v49  ;;  %6948 = vmatpush3.msra.mxu0 %v2120_v19 }
 0x98d   :  { %6898 = vmatpush3.msra.mxu1 %v1320_v49  ;;  %6949 = vmatprep.subr.mxu0 %v10605_v47  ;;  %v1992_v52 = vpop.permute.xlu0 %1991 }
 0x98e   :  { %6902 = vmatprep.subr.mxu1 %v2004_v17 }
 0x98f   :  { %v2118_v20 = vpop.permute.xlu1 %2117 }
 0x990   :  { %6950 = vmatpush3.msra.mxu0 %v2118_v20 }
 0x991   :  { %6951 = vmatprep.subr.mxu0 %v10605_v47  ;;  %v1990_v54 = vpop.permute.xlu0 %1989 }
 0x993   :  { %v2116_v21 = vpop.permute.xlu1 %2115 }
 0x994   :  { %6952 = vmatpush3.msra.mxu0 %v2116_v21 }
 0x995   :  { %6953 = vmatprep.subr.mxu0 %v10605_v47  ;;  %v1988_v57 = vpop.permute.xlu0 %1987 }
 0x997   :  { %v2114_v22 = vpop.permute.xlu1 %2113 }
 0x998   :  { %6954 = vmatpush3.msra.mxu0 %v2114_v22 }
 0x999   :  { %6955 = vmatprep.subr.mxu0 %v10605_v47  ;;  %v1986_v59 = vpop.permute.xlu0 %1985 }
 0x99b   :  { %v2112_v23 = vpop.permute.xlu1 %2111 }
 0x99c   :  { %6956 = vmatpush3.msra.mxu0 %v2112_v23 }
 0x99d   :  { %6957 = vmatprep.subr.mxu0 %v10605_v47  ;;  %v1984_v48 = vpop.permute.xlu0 %1983 }
 0x99f   :  { %v2110_v24 = vpop.permute.xlu1 %2109 }
 0x9a0   :  { %6958 = vmatpush3.msra.mxu0 %v2110_v24 }
 0x9a1   :  { %6959 = vmatprep.subr.mxu0 %v10605_v47 }
 0x9a3   :  { %v2108_v25 = vpop.permute.xlu1 %2107 }
 0x9a4   :  { %6960 = vmatpush3.msra.mxu0 %v2108_v25 }
 0x9a5   :  { %6961 = vmatprep.subr.mxu0 %v10605_v47 }
 0x9a7   :  { %v2106_v26 = vpop.permute.xlu1 %2105 }
 0x9a8   :  { %6962 = vmatpush3.msra.mxu0 %v2106_v26 }
 0x9a9   :  { %6963 = vmatprep.subr.mxu0 %v10605_v47 }
 0x9ab   :  { %v2104_v27 = vpop.permute.xlu1 %2103 }
 0x9ac   :  { %6964 = vmatpush3.msra.mxu0 %v2104_v27 }
 0x9ad   :  { %6965 = vmatprep.subr.mxu0 %v10605_v47 }
 0x9af   :  { %v2102_v28 = vpop.permute.xlu1 %2101 }
 0x9b0   :  { %6966 = vmatpush3.msra.mxu0 %v2102_v28 }
 0x9b1   :  { %6967 = vmatprep.subr.mxu0 %v10605_v47 }
 0x9b3   :  { %v2100_v29 = vpop.permute.xlu1 %2099 }
 0x9b4   :  { %6968 = vmatpush3.msra.mxu0 %v2100_v29 }
 0x9b5   :  { %6970 = vmatmul.mubr.f32.vlgmr.msra.gmra.mxu0 %v8041_v40  ;;  %v1982_v40 = vpop.permute.xlu0 %1981 }
 0x9b7   :  { %v2022_v43 = vpop.permute.xlu1 %2021 }
 0x9b9   :  { %v1980_v60 = vpop.permute.xlu0 %1979 }
 0x9bb   :  { %v2249_v7 = vpop.permute.xlu1 %2248 }
 0x9bd   :  { %v1978_v53 = vpop.permute.xlu0 %1977 }
 0x9bf   :  { %v2245_v13 = vpop.permute.xlu1 %2244 }
 0x9c3   :  { %v2241_v2 = vpop.permute.xlu1 %2240 }
 0x9c7   :  { %v2237_v4 = vpop.permute.xlu1 %2236 }
 0x9cb   :  { %v2233_v6 = vpop.permute.xlu1 %2232 }
 0x9cf   :  { %v2229_v10 = vpop.permute.xlu1 %2228 }
 0x9d3   :  { %v2225_v12 = vpop.permute.xlu1 %2224 }
 0x9d7   :  { %v2221_v49 = vpop.permute.xlu1 %2220 }
 0xa46   :  { %v6890_v34 = vpop.f32.mrf.mxu1 }
 0xa48   :  { %v1877_v16 = vpop.f32.mrf.mxu1 }
 0xa49   :  { %6899 = vmatprep.mubr.msk.f32.mxu1 %vm341_vm1, %v1877_v16 }
 0xa4a   :  { %6900 = vmatmul.mubr.msk.f32.vlgmr.msra.gmra.mxu1 %vm341_vm1, %v6890_v34 }
 0xa4b   :  { %6903 = vmatpush3.msra.mxu1 %v2004_v17  ;;  %6934 = vmatprep.mubr.f32.mxu1 %v8036_v39  ;;  %v1976_v39 = vpop.permute.xlu0 %1975 }
 0xa4c   :  { %6904 = vmatprep.subr.mxu1 %v8813_v3 }
 0xa4d   :  { %6905 = vmatpush3.msra.mxu1 %v8813_v3 }
 0xa4e   :  { %6906 = vmatprep.subr.mxu1 %v2000_v30 }
 0xa4f   :  { %6907 = vmatpush3.msra.mxu1 %v2000_v30  ;;  %v1974_v55 = vpop.permute.xlu0 %1973 }
 0xa50   :  { %6908 = vmatprep.subr.mxu1 %v1998_v37 }
 0xa51   :  { %6909 = vmatpush3.msra.mxu1 %v1998_v37 }
 0xa52   :  { %6910 = vmatprep.subr.mxu1 %v1996_v38 }
 0xa53   :  { %6911 = vmatpush3.msra.mxu1 %v1996_v38  ;;  %v2148_v31 = vpop.permute.xlu0 %2147 }
 0xa54   :  { %6912 = vmatprep.subr.mxu1 %v1994_v46 }
 0xa55   :  { %6913 = vmatpush3.msra.mxu1 %v1994_v46 }
 0xa56   :  { %6914 = vmatprep.subr.mxu1 %v1992_v52 }
 0xa57   :  { %6915 = vmatpush3.msra.mxu1 %v1992_v52  ;;  %v2251_v1 = vpop.permute.xlu0 %2250  ;;  %v7668_v52 = vld [vmem:[%s10536_s6 + $0x2] ss:$0 sm:$0xff] }
 0xa58   :  { %6916 = vmatprep.subr.mxu1 %v1990_v54 }
 0xa59   :  { %6917 = vmatpush3.msra.mxu1 %v1990_v54 }
 0xa5a   :  { %6918 = vmatprep.subr.mxu1 %v1988_v57 }
 0xa5b   :  { %6919 = vmatpush3.msra.mxu1 %v1988_v57 }
 0xa5c   :  { %6920 = vmatprep.subr.mxu1 %v1986_v59 }
 0xa5d   :  { %6921 = vmatpush3.msra.mxu1 %v1986_v59 }
 0xa5e   :  { %6922 = vmatprep.subr.mxu1 %v1984_v48 }
 0xa5f   :  { %6923 = vmatpush3.msra.mxu1 %v1984_v48  ;;  %v1972_v48 = vld [vmem:[%s10531_s5 + $0x1f8] sm:$0xff] }
 0xa60   :  { %6924 = vmatprep.subr.mxu1 %v1982_v40 }
 0xa61   :  { %6925 = vmatpush3.msra.mxu1 %v1982_v40 }
 0xa62   :  { %6926 = vmatprep.subr.mxu1 %v1980_v60 }
 0xa63   :  { %6927 = vmatpush3.msra.mxu1 %v1980_v60 }
 0xa64   :  { %6928 = vmatprep.subr.mxu1 %v1978_v53 }
 0xa65   :  { %6929 = vmatpush3.msra.mxu1 %v1978_v53 }
 0xa66   :  { %6930 = vmatprep.subr.mxu1 %v1976_v39 }
 0xa67   :  { %6931 = vmatpush3.msra.mxu1 %v1976_v39  ;;  %v1971_v39 = vld [vmem:[%s10531_s5 + $0x1d8] sm:$0xff] }
 0xa68   :  { %6932 = vmatprep.subr.mxu1 %v1974_v55 }
 0xa69   :  { %6933 = vmatpush3.msra.mxu1 %v1974_v55  ;;  %v1970_v55 = vld [vmem:[%s10531_s5 + $0x1b8] sm:$0xff] }
 0xa6a   :  { %6935 = vmatmul.mubr.f32.vlgmr.msra.gmra.mxu1 %v8043_v41  ;;  %6972 = vmatprep.subr.mxu1 %v10605_v47  ;;  %v1312_v41 = vadd.f32 %v8556_v8, %v8562_v14  ;;  %v2247_v8 = vpop.permute.xlu0 %2246 }
 0xa6b   :  { %7004 = vmatprep.mubr.msk.f32.mxu1 %vm7728_vm0, %v10605_v47  ;;  %6973 = vmatpush3.msra.mxu1 %v2251_v1 }
 0xa6c   :  { %6974 = vmatprep.subr.mxu1 %v10605_v47 }
 0xa6d   :  { %6975 = vmatpush3.msra.mxu1 %v2249_v7  ;;  %v2694_v7 = vld [vmem:[%s10538_s7 + $0xe8] sm:$0xff] }
 0xa6e   :  { %6976 = vmatprep.subr.mxu1 %v10605_v47  ;;  %v2243_v14 = vpop.permute.xlu0 %2242 }
 0xa6f   :  { %6977 = vmatpush3.msra.mxu1 %v2247_v8  ;;  %v2693_v8 = vld [vmem:[%s10538_s7 + $0xe0] sm:$0xff] }
 0xa70   :  { %6978 = vmatprep.subr.mxu1 %v10605_v47 }
 0xa71   :  { %6979 = vmatpush3.msra.mxu1 %v2245_v13  ;;  %v2692_v13 = vld [vmem:[%s10538_s7 + $0xd8] sm:$0xff] }
 0xa72   :  { %6980 = vmatprep.subr.mxu1 %v10605_v47  ;;  %v2239_v3 = vpop.permute.xlu0 %2238 }
 0xa73   :  { %6981 = vmatpush3.msra.mxu1 %v2243_v14  ;;  %v2691_v14 = vld [vmem:[%s10538_s7 + $0xd0] sm:$0xff] }
 0xa74   :  { %6982 = vmatprep.subr.mxu1 %v10605_v47 }
 0xa75   :  { %v2216_v18 = vpop.f32.mrf.mxu0  ;;  %6983 = vmatpush3.msra.mxu1 %v2241_v2  ;;  %v2690_v2 = vld [vmem:[%s10538_s7 + $0xc8] sm:$0xff] }
 0xa76   :  { %v2217_v61 = vadd.f32 %v2216_v18, %v2148_v31  ;;  %6984 = vmatprep.subr.mxu1 %v10605_v47  ;;  %v2235_v5 = vpop.permute.xlu0 %2234  ;;  %v1969_v31 = vld [vmem:[%s10531_s5 + $0x198] sm:$0xff] }
 0xa77   :  { %v6971_v63 = vpop.f32.mrf.mxu0  ;;  %6985 = vmatpush3.msra.mxu1 %v2239_v3  ;;  %v2689_v3 = vld [vmem:[%s10538_s7 + $0xc0] sm:$0xff] }
 0xa78   :  { %7007 = vmatprep.subr.msk.mxu0 %vm341_vm1, %v2217_v61  ;;  %6986 = vmatprep.subr.mxu1 %v10605_v47 }
 0xa79   :  { %7008 = vmatpush3.xpose.msk.msra.mxu0 %vm341_vm1, %v2217_v61  ;;  %6987 = vmatpush3.msra.mxu1 %v2237_v4 }
 0xa7a   :  { %6988 = vmatprep.subr.mxu1 %v10605_v47  ;;  %v2231_v9 = vpop.permute.xlu0 %2230 }
 0xa7b   :  { %6989 = vmatpush3.msra.mxu1 %v2235_v5 }
 0xa7c   :  { %6990 = vmatprep.subr.mxu1 %v10605_v47 }
 0xa7d   :  { %6991 = vmatpush3.msra.mxu1 %v2233_v6 }
 0xa7e   :  { %6992 = vmatprep.subr.mxu1 %v10605_v47  ;;  %v2227_v11 = vpop.permute.xlu0 %2226 }
 0xa7f   :  { %6993 = vmatpush3.msra.mxu1 %v2231_v9 }
 0xa80   :  { %6994 = vmatprep.subr.mxu1 %v10605_v47 }
 0xa81   :  { %6995 = vmatpush3.msra.mxu1 %v2229_v10 }
 0xa82   :  { %6996 = vmatprep.subr.mxu1 %v10605_v47  ;;  %v2223_v44 = vpop.permute.xlu0 %2222 }
 0xa83   :  { %6997 = vmatpush3.msra.mxu1 %v2227_v11 }
 0xa84   :  { %6998 = vmatprep.subr.mxu1 %v10605_v47 }
 0xa85   :  { %6999 = vmatpush3.msra.mxu1 %v2225_v12 }
 0xa86   :  { %7000 = vmatprep.subr.mxu1 %v10605_v47 }
 0xa87   :  { %7001 = vmatpush3.msra.mxu1 %v2223_v44 }
 0xa88   :  { %7002 = vmatprep.subr.mxu1 %v10605_v47 }
 0xa89   :  { %7003 = vmatpush3.msra.mxu1 %v2221_v49  ;;  %v2688_v49 = vld [vmem:[%s10538_s7 + $0xb8] sm:$0xff] }
 0xa8a   :  { %7005 = vmatmul.mubr.f32.vlgmr.msra.gmra.mxu1 %v8584_v32 }
 0xb0a   :  { %v6901_v56 = vpop.f32.mrf.mxu1 }
 0xb0b   :  { %v8859_v45 = vadd.f32 %v6901_v56, %v1317_v36 }
 0xb0c   :  { %v1958_v35 = vpop.f32.mrf.mxu1 }
 0xb0d   :  { %v8861_v50 = vadd.f32 %v1958_v35, %v1312_v41  ;;  %v5881_v35 = vld [vmem:[%s10536_s6 + $0x3] ss:$0 sm:$0xff] }
 0xb2a   :  { %v6936_v62 = vpop.f32.mrf.mxu1 }
 0xb2b   :  { %v2096_v51 = vadd.f32 %v6936_v62, %v2022_v43 }
 0xb2c   :  { %v2090_v58 = vpop.f32.mrf.mxu1 }
 0xb2d   :  { %v2091_v42 = vadd.f32 %v2090_v58, %v2022_v43  ;;  %v7669_v58 = vld [vmem:[%s10532_s0] sm:$0xff] }
 0xb2f   :  { %7009 = vmatprep.mubr.msk.f32.mxu0 %vm341_vm1, %v2091_v42 }
 0xb30   :  { %7010 = vmatmul.mubr.msk.f32.vlgmr.msra.gmra.mxu0 %vm341_vm1, %v2096_v51  ;;  %v7670_v51 = vld [vmem:[%s10532_s0 + $0x8] sm:$0xff] }
 0xb4a   :  { %v2337_v38 = vpop.f32.mrf.mxu1 }
 0xb4c   :  { %v7006_v46 = vpop.f32.mrf.mxu1 }
 0xb4d   :  { %v2668_v46 = vld [vmem:[%s10538_s7 + $0x18] sm:$0xff] }
 0xbf0   :  { %v7011_v15 = vpop.f32.mrf.mxu0 }
 0xbf1   :  { %v2426_v17 = vmul.f32 0.17677669, %v7011_v15  ;;  %v2687_v15 = vld [vmem:[%s10538_s7 + $0xb0] sm:$0xff] }
 0xbf2   :  { %v2416_v33 = vpop.f32.mrf.mxu0 }
 0xbf3   :  { %v2428_v19 = vadd.f32 %v2426_v17, %v8217_v0  ;;  %v2425_v20 = vmul.f32 0.17677669, %v2416_v33  ;;  %v2686_v17 = vld [vmem:[%s10538_s7 + $0xa8] sm:$0xff]  ;;  %v2685_v33 = vld [vmem:[%s10538_s7 + $0xa0] sm:$0xff] }
 0xbf5   :  { %v2427_v21 = vadd.f32 %v2425_v20, %v8217_v0  ;;  %v2432_v22 = vsel %vm436_vm2, %v2428_v19, -inf  ;;  %v2683_v20 = vld [vmem:[%s10538_s7 + $0x90] sm:$0xff] }
 0xbf6   :  { %2433 = vmax.xlane.f32.xlu1 %v2432_v22  ;;  %v2681_v22 = vld [vmem:[%s10538_s7 + $0x80] sm:$0xff] }
 0xbf7   :  { %v2429_v23 = vsel %vm436_vm2, %v2427_v21, -inf }
 0xbf8   :  { %2430 = vmax.xlane.f32.xlu0 %v2429_v23  ;;  %v2680_v23 = vld [vmem:[%s10538_s7 + $0x78] sm:$0xff] }
 0xc7f   :  { %v2434_v24 = vpop.xlane.xlu1 %2433 }
 0xc80   :  { %v2436_v25 = vsub.f32 %v2428_v19, %v2434_v24  ;;  %v2684_v19 = vld [vmem:[%s10538_s7 + $0x98] sm:$0xff]  ;;  %v2679_v24 = vld [vmem:[%s10538_s7 + $0x70] sm:$0xff] }
 0xc81   :  { %v2431_v26 = vpop.xlane.xlu0 %2430 }
 0xc82   :  { %v2439_v27 = vmul.f32 1.442695, %v2436_v25  ;;  %v2435_v28 = vsub.f32 %v2427_v21, %v2431_v26  ;;  %v2682_v21 = vld [vmem:[%s10538_s7 + $0x88] sm:$0xff]  ;;  %v2677_v26 = vld [vmem:[%s10538_s7 + $0x60] sm:$0xff] }
 0xc83   :  { %v2678_v25 = vld [vmem:[%s10538_s7 + $0x68] sm:$0xff] }
 0xc84   :  { %7561 = vpow2.f32 %v2439_v27  ;;  %v2437_v32 = vmul.f32 1.442695, %v2435_v28  ;;  %v2676_v27 = vld [vmem:[%s10538_s7 + $0x58] sm:$0xff]  ;;  %v2675_v28 = vld [vmem:[%s10538_s7 + $0x50] sm:$0xff] }
 0xc86   :  { %7563 = vpow2.f32 %v2437_v32  ;;  %v2674_v32 = vld [vmem:[%s10538_s7 + $0x48] sm:$0xff] }
 0xc91   :  { %v7562_v29 = vpop.eup %7561 }
 0xc92   :  { %v2444_v30 = vsel %vm436_vm2, %v7562_v29, 0.0 }
 0xc93   :  { %v7564_v37 = vpop.eup %7563  ;;  %2445 = vadd.xlane.f32.xlu0 %v2444_v30  ;;  %v2672_v30 = vld [vmem:[%s10538_s7 + $0x38] sm:$0xff] }
 0xc94   :  { %v2441_v0 = vsel %vm436_vm2, %v7564_v37, 0.0 }
 0xc97   :  { %2442 = vadd.xlane.f32.xlu0 %v2441_v0  ;;  %v2670_v0 = vld [vmem:[%s10538_s7 + $0x28] sm:$0xff] }
 0xcad   :  { %2268 = vrot.lane.b32.xlu0 %v7668_v52, %s7731_s20  ;;  %v2667_v52 = vld [vmem:[%s10538_s7 + $0x10] sm:$0xff] }
 0xd1c   :  { %v2446_v54 = vpop.xlane.xlu0 %2445 }
 0xd1d   :  { %7565 = vrcp.f32 %v2446_v54  ;;  %v2666_v54 = vld [vmem:[%s10538_s7 + $0x8] sm:$0xff] }
 0xd20   :  { %v2443_v57 = vpop.xlane.xlu0 %2442 }
 0xd21   :  { %7567 = vrcp.f32 %v2443_v57  ;;  %v2665_v57 = vld [vmem:[%s10538_s7] sm:$0xff] }
 0xd24   :  { %v2269_v59 = vpop.permute.xlu0 %2268 }
 0xd25   :  { %v2338_v34 = vadd.f32 %v2337_v38, %v2269_v59  ;;  %v2669_v38 = vld [vmem:[%s10538_s7 + $0x20] sm:$0xff]  ;;  %v2821_v59 = vld [vmem:[%s10539_s9 + $0xf8] sm:$0xff] }
 0xd26   :  { %6192 = vmatprep.subr.mxu1 %v2821_v59  ;;  %v9250_v59 = vld [vmem:[%s10531_s5 + $0x40] sm:$0xff] }
 0xd27   :  { %7012 = vmatprep.subr.msk.mxu0 %vm465_vm3, %v2338_v34 }
 0xd28   :  { %7013 = vmatpush3.msk.msra.mxu0 %vm465_vm3, %v2338_v34  ;;  %v2805_v34 = vld [vmem:[%s10539_s9 + $0x78] sm:$0xff] }
 0xd29   :  { %7017 = vmatprep.subr.mxu0 %v1972_v48  ;;  %6193 = vmatpush3.msra.mxu1 %v2805_v34  ;;  %v9257_v34 = vld [vmem:[%s10531_s5 + $0x20] sm:$0xff] }
 0xd2a   :  { %v7566_v16 = vpop.eup %7565 }
 0xd2b   :  { %v2450_v53 = vmul.f32 %v7566_v16, %v7562_v29  ;;  %v2673_v29 = vld [vmem:[%s10538_s7 + $0x40] sm:$0xff]  ;;  %v2804_v16 = vld [vmem:[%s10539_s9 + $0x70] sm:$0xff] }
 0xd2e   :  { %v7568_v40 = vpop.eup %7567 }
 0xd2f   :  { %v2449_v60 = vmul.f32 %v7568_v40, %v7564_v37  ;;  %v2671_v37 = vld [vmem:[%s10538_s7 + $0x30] sm:$0xff]  ;;  %v2819_v40 = vld [vmem:[%s10539_s9 + $0xe8] sm:$0xff] }
 0xd31   :  { %7014 = vmatprep.mubr.msk.f32.mxu0 %vm436_vm2, %v2449_v60  ;;  %v2803_v60 = vld [vmem:[%s10539_s9 + $0x68] sm:$0xff] }
 0xd32   :  { %7015 = vmatmul.mubr.msk.f32.vlgmr.msra.gmra.mxu0 %vm436_vm2, %v2450_v53  ;;  %v2818_v53 = vld [vmem:[%s10539_s9 + $0xe0] sm:$0xff] }
 0xd33   :  { %7018 = vmatpush3.msra.mxu0 %v1972_v48  ;;  %v2820_v48 = vld [vmem:[%s10539_s9 + $0xf0] sm:$0xff] }
 0xd34   :  { %7019 = vmatprep.subr.mxu0 %v1971_v39  ;;  %6194 = vmatprep.subr.mxu1 %v2820_v48  ;;  %v5887_v48 = vld [vmem:[%s10532_s0 + $0x10] sm:$0xff] }
 0xd35   :  { %7020 = vmatpush3.msra.mxu0 %v1971_v39  ;;  %6195 = vmatpush3.msra.mxu1 %v2804_v16  ;;  %v2802_v39 = vld [vmem:[%s10539_s9 + $0x60] sm:$0xff]  ;;  %v5889_v16 = vld [vmem:[%s10533_s1 + $0x10] sm:$0xff] }
 0xd36   :  { %7021 = vmatprep.subr.mxu0 %v1970_v55  ;;  %6196 = vmatprep.subr.mxu1 %v2819_v40  ;;  %v9270_v40 = vld [vmem:[%s10531_s5] sm:$0xff] }
 0xd37   :  { %7022 = vmatpush3.msra.mxu0 %v1970_v55  ;;  %6197 = vmatpush3.msra.mxu1 %v2803_v60  ;;  %v2817_v55 = vld [vmem:[%s10539_s9 + $0xd8] sm:$0xff]  ;;  %v9272_v60 = vadd.f32 %v5889_v16, %v5887_v48  ;;  %v9423_v48 = vld [vmem:[%s10531_s5 + $0x1f0] sm:$0xff] }
 0xd38   :  { %7023 = vmatprep.subr.mxu0 %v1969_v31  ;;  %6198 = vmatprep.subr.mxu1 %v2818_v53  ;;  %v5888_v53 = vld [vmem:[%s10532_s0 + $0x18] sm:$0xff]  ;;  %v9428_v16 = vld [vmem:[%s10531_s5 + $0x1d0] sm:$0xff] }
 0xd39   :  { %7024 = vmatpush3.msra.mxu0 %v1969_v31  ;;  %v2801_v31 = vld [vmem:[%s10539_s9 + $0x58] sm:$0xff]  ;;  %6199 = vmatpush3.msra.mxu1 %v2802_v39 }
 0xd3a   :  { %6200 = vmatprep.subr.mxu1 %v2817_v55  ;;  %v5890_v39 = vld [vmem:[%s10533_s1 + $0x18] sm:$0xff] }
 0xd3b   :  { %6201 = vmatpush3.msra.mxu1 %v2801_v31  ;;  %v9283_v55 = vadd.f32 %v5890_v39, %v5888_v53  ;;  %v2697_v31 = vld [vmem:[%s10541_s8] sm:$0x3]  ;;  %v9435_v53 = vld [vmem:[%s10531_s5 + $0x1b0] sm:$0xff] }
 0xd3c   :  { %v9442_v39 = vld [vmem:[%s10531_s5 + $0x190] sm:$0xff] }
 0xdf2   :  { %v7016_v18 = vpop.f32.mrf.mxu0 }
 0xdf4   :  { %v2526_v61 = vpop.f32.mrf.mxu0 }
 0xdf5   :  { %7025 = vmatprep.mubr.msk.f32.mxu0 %vm341_vm1, %v2526_v61  ;;  %v2800_v61 = vld [vmem:[%s10539_s9 + $0x50] sm:$0xff] }
 0xdf6   :  { %7026 = vmatmul.mubr.msk.f32.vlgmr.msra.gmra.mxu0 %vm341_vm1, %v7016_v18  ;;  %v2816_v18 = vld [vmem:[%s10539_s9 + $0xd0] sm:$0xff] }
 0xdf7   :  { %2773 = vmatprep.mubr.f32.mxu0 %v10605_v47  ;;  %6202 = vmatprep.subr.mxu1 %v2816_v18  ;;  %v10629_v18 = vld [vmem:[#allocation20_spill] sm:$0xff] }
 0xdf8   :  { %6203 = vmatpush3.msra.mxu1 %v2800_v61  ;;  %v10568_v61 = vsub.s32 1, %v10629_v18 }
 0xeb6   :  { %v7027_v63 = vpop.f32.mrf.mxu0 }
 0xeb7   :  { %v2617_v56 = vadd.f32 %v7027_v63, %v8859_v45  ;;  %v2696_v45 = vld [vmem:[%s10538_s7 + $0xf8] sm:$0xff]  ;;  %v2815_v63 = vld [vmem:[%s10539_s9 + $0xc8] sm:$0xff] }
 0xeb8   :  { %v2607_v36 = vpop.f32.mrf.mxu0  ;;  %2709 = vmatprep.subr.mxu0 %v2696_v45  ;;  %6204 = vmatprep.subr.mxu1 %v2815_v63  ;;  %v2794_v45 = vld [vmem:[%s10539_s9 + $0x20] sm:$0xff]  ;;  %v10630_v63 = vld [vmem:[#allocation21_spill] sm:$0xff] }
 0xeb9   :  { %v2616_v41 = vadd.f32 %v2607_v36, %v8861_v50  ;;  %v2625_v43 = vadd.f32 %v5881_v35, %v2617_v56  ;;  %v2695_v50 = vld [vmem:[%s10538_s7 + $0xf0] sm:$0xff]  ;;  %v2799_v36 = vld [vmem:[%s10539_s9 + $0x48] sm:$0xff]  ;;  %v2814_v56 = vld [vmem:[%s10539_s9 + $0xc0] sm:$0xff] }
 0xeba   :  { %2710 = vmatpush1.msra.mxu0 %v2695_v50  ;;  %6205 = vmatpush3.msra.mxu1 %v2799_v36  ;;  %v2809_v50 = vld [vmem:[%s10539_s9 + $0x98] sm:$0xff]  ;;  %v2702_v36 = vrot.slane %v2697_v31, %v10630_v63 }
 0xebb   :  { %v2624_v62 = vadd.f32 %v5881_v35, %v2616_v41  ;;  %v2627_v1 = vadd.f32 %v7670_v51, %v2625_v43  ;;  %2711 = vmatprep.subr.mxu0 %v2694_v7  ;;  %v2798_v41 = vld [vmem:[%s10539_s9 + $0x40] sm:$0xff]  ;;  %v2813_v35 = vld [vmem:[%s10539_s9 + $0xb8] sm:$0xff]  ;;  %6206 = vmatprep.subr.mxu1 %v2814_v56  ;;  %v2812_v43 = vld [vmem:[%s10539_s9 + $0xb0] sm:$0xff]  ;;  %v2706_v56 = vrot.slane %v2697_v31, %v10568_v61 }
 0xebc   :  { %2712 = vmatpush1.msra.mxu0 %v2693_v8  ;;  %6207 = vmatpush3.msra.mxu1 %v2798_v41  ;;  %v2795_v51 = vld [vmem:[%s10539_s9 + $0x28] sm:$0xff]  ;;  %v9449_v31 = vld [vmem:[%s10531_s5 + $0x170] sm:$0xff] }
 0xebd   :  { %v2626_v42 = vadd.f32 %v7669_v58, %v2624_v62  ;;  %2713 = vmatprep.subr.mxu0 %v2692_v13  ;;  %v2797_v62 = vld [vmem:[%s10539_s9 + $0x38] sm:$0xff]  ;;  %6208 = vmatprep.subr.mxu1 %v2813_v35  ;;  %v2796_v58 = vld [vmem:[%s10539_s9 + $0x30] sm:$0xff] }
 0xebe   :  { %2714 = vmatpush1.msra.mxu0 %v2691_v14  ;;  %6209 = vmatpush3.msra.mxu1 %v2797_v62 }
 0xebf   :  { %2630 = vadd.xlane.f32.xlu1 %v2626_v42  ;;  %2715 = vmatprep.subr.mxu0 %v2690_v2 }
 0xec0   :  { %2716 = vmatpush1.msra.mxu0 %v2689_v3  ;;  %6210 = vmatprep.subr.mxu1 %v2812_v43 }
 0xec1   :  { %2717 = vmatprep.subr.mxu0 %v2688_v49  ;;  %6211 = vmatpush3.msra.mxu1 %v2796_v58 }
 0xec2   :  { %2718 = vmatpush1.msra.mxu0 %v2687_v15 }
 0xec3   :  { %2632 = vadd.xlane.f32.xlu1 %v2627_v1  ;;  %2719 = vmatprep.subr.mxu0 %v2686_v17 }
 0xec4   :  { %2720 = vmatpush1.msra.mxu0 %v2685_v33 }
 0xec5   :  { %2721 = vmatprep.subr.mxu0 %v2684_v19  ;;  %v2808_v19 = vld [vmem:[%s10539_s9 + $0x90] sm:$0xff] }
 0xec6   :  { %2722 = vmatpush1.msra.mxu0 %v2683_v20  ;;  %v2807_v20 = vld [vmem:[%s10539_s9 + $0x88] sm:$0xff] }
 0xec7   :  { %2723 = vmatprep.subr.mxu0 %v2682_v21  ;;  %v2791_v21 = vld [vmem:[%s10539_s9 + $0x8] sm:$0xff] }
 0xec8   :  { %2724 = vmatpush1.msra.mxu0 %v2681_v22  ;;  %v2806_v22 = vld [vmem:[%s10539_s9 + $0x80] sm:$0xff] }
 0xec9   :  { %2725 = vmatprep.subr.mxu0 %v2680_v23  ;;  %v2790_v23 = vld [vmem:[%s10539_s9] sm:$0xff] }
 0xeca   :  { %2726 = vmatpush1.msra.mxu0 %v2679_v24  ;;  %v2975_v24 = vld [vmem:[%s10531_s5 + $0x1e0] sm:$0xff] }
 0xecb   :  { %2727 = vmatprep.subr.mxu0 %v2678_v25  ;;  %v9143_v25 = vld [vmem:[%s10531_s5 + $0x1c0] sm:$0xff] }
 0xecc   :  { %2728 = vmatpush1.msra.mxu0 %v2677_v26  ;;  %v9151_v26 = vld [vmem:[%s10531_s5 + $0x1c8] sm:$0xff] }
 0xecd   :  { %2729 = vmatprep.subr.mxu0 %v2676_v27  ;;  %v9156_v27 = vld [vmem:[%s10531_s5 + $0x1a0] sm:$0xff]  ;;  %3638 = vrot.lane.b32.xlu0 %v9151_v26, %s7729_s15 }
 0xece   :  { %2730 = vmatpush1.msra.mxu0 %v2675_v28  ;;  %v9161_v28 = vld [vmem:[%s10531_s5 + $0x1e8] sm:$0xff] }
 0xecf   :  { %2731 = vmatprep.subr.mxu0 %v2674_v32  ;;  %v9170_v32 = vld [vmem:[%s10531_s5 + $0x180] sm:$0xff] }
 0xed0   :  { %2732 = vmatpush1.msra.mxu0 %v2673_v29  ;;  %v9179_v29 = vld [vmem:[%s10531_s5 + $0x160] sm:$0xff] }
 0xed1   :  { %2733 = vmatprep.subr.mxu0 %v2672_v30  ;;  %v9186_v30 = vld [vmem:[%s10531_s5 + $0x140] sm:$0xff] }
 0xed2   :  { %2734 = vmatpush1.msra.mxu0 %v2671_v37  ;;  %10626 = vst [vmem:[#allocation4_spill] sm:$0xff] %v9186_v30  ;;  %3488 = vrot.lane.b32.xlu0 %v9186_v30, %s7729_s15  ;;  %v9197_v37 = vld [vmem:[%s10531_s5 + $0x120] sm:$0xff] }
 0xed3   :  { %2735 = vmatprep.subr.mxu0 %v2670_v0  ;;  %10627 = vst [vmem:[#allocation7_spill] sm:$0xff] %v9197_v37  ;;  %v9204_v0 = vld [vmem:[%s10531_s5 + $0x100] sm:$0xff] }
 0xed4   :  { %2736 = vmatpush1.msra.mxu0 %v2669_v38  ;;  %10628 = vst [vmem:[#allocation5_spill] sm:$0xff] %v9204_v0  ;;  %v9213_v38 = vld [vmem:[%s10531_s5 + $0xe0] sm:$0xff] }
 0xed5   :  { %2737 = vmatprep.subr.mxu0 %v2668_v46  ;;  %v9220_v46 = vld [vmem:[%s10531_s5 + $0xc0] sm:$0xff] }
 0xed6   :  { %2738 = vmatpush1.msra.mxu0 %v2667_v52  ;;  %3486 = vrot.lane.b32.xlu0 %v9197_v37, %s7729_s15  ;;  %v9229_v52 = vld [vmem:[%s10531_s5 + $0xa0] sm:$0xff] }
 0xed7   :  { %2739 = vmatprep.subr.mxu0 %v2666_v54  ;;  %v9236_v54 = vld [vmem:[%s10531_s5 + $0x80] sm:$0xff] }
 0xed8   :  { %2740 = vmatpush1.msra.mxu0 %v2665_v57  ;;  %v9243_v57 = vld [vmem:[%s10531_s5 + $0x60] sm:$0xff] }
 0xed9   :  { %7028 = vmatprep.subr.mxu0 %v2975_v24 }
 0xeda   :  { %3484 = vrot.lane.b32.xlu0 %v9204_v0, %s7729_s15 }
 0xf48   :  { %v2631_v4 = vpop.xlane.xlu1 %2630 }
 0xf49   :  { %v2635_v5 = vmul.f32 0.0078125, %v2631_v4 }
 0xf4b   :  { %v8945_v6 = vsub.f32 %v2626_v42, %v2635_v5  ;;  %v2811_v42 = vld [vmem:[%s10539_s9 + $0xa8] sm:$0xff]  ;;  %v5882_v5 = vld [vmem:[%s10540_s11] ss:$0 sm:$0xff] }
 0xf4c   :  { %v2633_v9 = vpop.xlane.xlu1 %2632  ;;  %6212 = vmatprep.subr.mxu1 %v2811_v42 }
 0xf4d   :  { %v2636_v10 = vmul.f32 0.0078125, %v2633_v9  ;;  %v2639_v11 = vmul.f32 %v8945_v6, %v8945_v6  ;;  %6213 = vmatpush3.msra.mxu1 %v2795_v51 }
 0xf4f   :  { %v8949_v12 = vsub.f32 %v2627_v1, %v2636_v10  ;;  %2641 = vadd.xlane.f32.xlu1 %v2639_v11  ;;  %v2810_v1 = vld [vmem:[%s10539_s9 + $0xa0] sm:$0xff] }
 0xf50   :  { %6214 = vmatprep.subr.mxu1 %v2810_v1  ;;  %v5883_v10 = vld [vmem:[%s10540_s11 + $0x1] ss:$0 sm:$0xff] }
 0xf51   :  { %v2640_v44 = vmul.f32 %v8949_v12, %v8949_v12  ;;  %6215 = vmatpush3.msra.mxu1 %v2794_v45 }
 0xf52   :  { %6216 = vmatprep.subr.mxu1 %v2809_v50 }
 0xf53   :  { %2643 = vadd.xlane.f32.xlu1 %v2640_v44 }
 0xf64   :  { %3498 = vrot.lane.b32.xlu1 %v2975_v24, %s7729_s15 }
 0xf68   :  { %3640 = vrot.lane.b32.xlu1 %v9161_v28, %s7729_s15 }
 0xf6c   :  { %3496 = vrot.lane.b32.xlu1 %v9143_v25, %s7729_s15 }
 0xfd8   :  { %v2642_v7 = vpop.xlane.xlu1 %2641 }
 0xfd9   :  { %v2645_v8 = vmul.f32 0.0078125, %v2642_v7 }
 0xfdb   :  { %v2647_v13 = vadd.f32 1e-05, %v2645_v8 }
 0xfdc   :  { %v2644_v14 = vpop.xlane.xlu1 %2643 }
 0xfdd   :  { %7569 = vrsqrt.f32 %v2647_v13  ;;  %v2646_v2 = vmul.f32 0.0078125, %v2644_v14  ;;  %v9301_v13 = vld [vmem:[%s10531_s5 + $0x1a8] sm:$0xff] }
 0xfde   :  { %v9308_v14 = vld [vmem:[%s10531_s5 + $0x188] sm:$0xff] }
 0xfdf   :  { %v2648_v3 = vadd.f32 1e-05, %v2646_v2  ;;  %v9317_v2 = vld [vmem:[%s10531_s5 + $0x168] sm:$0xff] }
 0xfe1   :  { %7571 = vrsqrt.f32 %v2648_v3  ;;  %v9324_v3 = vld [vmem:[%s10531_s5 + $0x148] sm:$0xff] }
 0xfe2   :  { %10631 = vst [vmem:[#allocation9_spill] sm:$0xff] %v9324_v3 }
 0xfea   :  { %v7570_v4 = vpop.eup %7569 }
 0xfeb   :  { %v2651_v9 = vmul.f32 %v7570_v4, %v8945_v6  ;;  %v2793_v6 = vld [vmem:[%s10539_s9 + $0x18] sm:$0xff]  ;;  %v9331_v4 = vld [vmem:[%s10531_s5 + $0x128] sm:$0xff] }
 0xfec   :  { %6217 = vmatpush3.msra.mxu1 %v2793_v6  ;;  %10632 = vst [vmem:[#allocation6_spill] sm:$0xff] %v9331_v4  ;;  %v9385_v6 = vld [vmem:[%s10534_s2 + $0x4] sm:$0xf] }
 0xfed   :  { %v2657_v11 = vmul.f32 %v5882_v5, %v2651_v9  ;;  %6218 = vmatprep.subr.mxu1 %v2808_v19  ;;  %v9345_v9 = vld [vmem:[%s10531_s5 + $0xe8] sm:$0xff]  ;;  %v5892_v19 = vld [vmem:[%s10535_s3 + $0x4] sm:$0xf] }
 0xfee   :  { %v7572_v44 = vpop.eup %7571 }
 0xfef   :  { %v9107_v49 = vadd.f32 %v5883_v10, %v2657_v11  ;;  %v2652_v15 = vmul.f32 %v7572_v44, %v8949_v12  ;;  %v2792_v12 = vld [vmem:[%s10539_s9 + $0x10] sm:$0xff]  ;;  %v9359_v11 = vld [vmem:[%s10531_s5 + $0xa8] sm:$0xff] }
 0xff0   :  { %6219 = vmatpush3.msra.mxu1 %v2792_v12  ;;  %v9366_v44 = vld [vmem:[%s10531_s5 + $0x88] sm:$0xff] }
 0xff1   :  { %10624 = vst [vmem:[#allocation2_spill] sm:$0xff] %v9107_v49  ;;  %2774 = vmatmul.mubr.f32.vlgmr.msra.gmra.mxu0 %v9107_v49  ;;  %v2658_v17 = vmul.f32 %v5882_v5, %v2652_v15  ;;  %6220 = vmatprep.subr.mxu1 %v2807_v20  ;;  %v9338_v5 = vld [vmem:[%s10531_s5 + $0x108] sm:$0xff]  ;;  %v9399_v20 = vadd.f32 %v5892_v19, %v9385_v6  ;;  %v9545_v49 = vld [vmem:[%s10536_s6 + $0x1] ss:$0 sm:$0xff] }
 0xff2   :  { %2779 = vmatprep.mubr.f32.mxu0 %v10605_v47  ;;  %6221 = vmatpush3.msra.mxu1 %v2791_v21  ;;  %10633 = vst [vmem:[#allocation11_spill] sm:$0xff] %v9338_v5  ;;  %v9373_v15 = vld [vmem:[%s10531_s5 + $0x68] sm:$0xff] }
 0xff3   :  { %v9112_v33 = vadd.f32 %v5883_v10, %v2658_v17  ;;  %6222 = vmatprep.subr.mxu1 %v2806_v22  ;;  %7029 = vmatpush3.msra.mxu0 %v2975_v24  ;;  %v9352_v10 = vld [vmem:[%s10531_s5 + $0xc8] sm:$0xff] }
 0xff4   :  { %6223 = vmatpush3.msra.mxu1 %v2790_v23  ;;  %7030 = vmatprep.subr.mxu0 %v9143_v25  ;;  %v9380_v17 = vld [vmem:[%s10531_s5 + $0x48] sm:$0xff]  ;;  %v9416_v23 = vld [vmem:[%s10536_s6] ss:$0 sm:$0xff] }
 0xff5   :  { %10625 = vst [vmem:[#allocation3_spill] sm:$0xff] %v9112_v33  ;;  %2780 = vmatmul.mubr.f32.gmra.mxu0 %v9112_v33  ;;  %7063 = vmatprep.subr.mxu1 %v10605_v47  ;;  %v9395_v12 = vld [vmem:[%s10531_s5 + $0x28] sm:$0xff] }
 0xff6   :  { %7031 = vmatpush3.msra.mxu0 %v9143_v25  ;;  %7060 = vmatprep.mubr.f32.mxu0 %v9272_v60  ;;  %v9405_v21 = vld [vmem:[%s10531_s5 + $0x8] sm:$0xff] }
 0xff7   :  { %7032 = vmatprep.subr.mxu0 %v9156_v27 }
 0xff8   :  { %7033 = vmatpush3.msra.mxu0 %v9156_v27 }
 0xff9   :  { %7034 = vmatprep.subr.mxu0 %v9170_v32 }
 0xffa   :  { %7035 = vmatpush3.msra.mxu0 %v9170_v32 }
 0xffb   :  { %7036 = vmatprep.subr.mxu0 %v9179_v29 }
 0xffc   :  { %7037 = vmatpush3.msra.mxu0 %v9179_v29 }
 0xffd   :  { %7038 = vmatprep.subr.mxu0 %v9186_v30 }
 0xffe   :  { %7039 = vmatpush3.msra.mxu0 %v9186_v30 }
 0xfff   :  { %7040 = vmatprep.subr.mxu0 %v9197_v37 }
0x1000   :  { %7041 = vmatpush3.msra.mxu0 %v9197_v37 }
0x1001   :  { %7042 = vmatprep.subr.mxu0 %v9204_v0 }
0x1002   :  { %7043 = vmatpush3.msra.mxu0 %v9204_v0 }
0x1003   :  { %7044 = vmatprep.subr.mxu0 %v9213_v38 }
0x1004   :  { %7045 = vmatpush3.msra.mxu0 %v9213_v38 }
0x1005   :  { %7046 = vmatprep.subr.mxu0 %v9220_v46 }
0x1006   :  { %7047 = vmatpush3.msra.mxu0 %v9220_v46 }
0x1007   :  { %7048 = vmatprep.subr.mxu0 %v9229_v52 }
0x1008   :  { %7049 = vmatpush3.msra.mxu0 %v9229_v52 }
0x1009   :  { %7050 = vmatprep.subr.mxu0 %v9236_v54 }
0x100a   :  { %7051 = vmatpush3.msra.mxu0 %v9236_v54 }
0x100b   :  { %7052 = vmatprep.subr.mxu0 %v9243_v57 }
0x100c   :  { %7053 = vmatpush3.msra.mxu0 %v9243_v57 }
0x100d   :  { %7054 = vmatprep.subr.mxu0 %v9250_v59 }
0x100e   :  { %7055 = vmatpush3.msra.mxu0 %v9250_v59 }
0x100f   :  { %7056 = vmatprep.subr.mxu0 %v9257_v34 }
0x1010   :  { %7057 = vmatpush3.msra.mxu0 %v9257_v34 }
0x1011   :  { %7058 = vmatprep.subr.mxu0 %v9270_v40 }
0x1012   :  { %7059 = vmatpush3.msra.mxu0 %v9270_v40 }
0x1013   :  { %7098 = vmatprep.subr.mxu0 %v10605_v47  ;;  %7061 = vmatmul.mubr.f32.vlgmr.msra.gmra.mxu0 %v9283_v55 }
0x1014   :  { %7130 = vmatprep.mubr.msk.f32.mxu0 %vm7728_vm0, %v10605_v47  ;;  %7099 = vmatpush3.msra.mxu0 %v9423_v48 }
0x1015   :  { %7100 = vmatprep.subr.mxu0 %v10605_v47 }
0x1016   :  { %7101 = vmatpush3.msra.mxu0 %v9428_v16 }
0x1017   :  { %7102 = vmatprep.subr.mxu0 %v10605_v47 }
0x1018   :  { %7103 = vmatpush3.msra.mxu0 %v9435_v53 }
0x1019   :  { %7104 = vmatprep.subr.mxu0 %v10605_v47 }
0x101a   :  { %7105 = vmatpush3.msra.mxu0 %v9442_v39 }
0x101b   :  { %7106 = vmatprep.subr.mxu0 %v10605_v47 }
0x101c   :  { %7107 = vmatpush3.msra.mxu0 %v9449_v31 }
0x101d   :  { %7108 = vmatprep.subr.mxu0 %v10605_v47 }
0x10b1   :  { %v2775_v41 = vpop.f32.mrf.mxu0 }
0x10b2   :  { %v2776_v35 = vadd.f32 %v2775_v41, %v2702_v36  ;;  %v9470_v41 = vld [vmem:[%s10531_s5 + $0x110] sm:$0xff] }
0x10b3   :  { %v2777_v62 = vpop.f32.mrf.mxu0  ;;  %10635 = vst [vmem:[#allocation13_spill] sm:$0xff] %v9470_v41 }
0x10b4   :  { %v2778_v43 = vadd.f32 %v2777_v62, %v2706_v56  ;;  %v2786_v51 = vmax.f32 %v2776_v35, 0.0  ;;  %v9477_v35 = vld [vmem:[%s10531_s5 + $0xf0] sm:$0xff] }
0x10b5   :  { %v2781_v58 = vpop.f32.mrf.mxu0  ;;  %v9484_v62 = vld [vmem:[%s10531_s5 + $0xd0] sm:$0xff] }
0x10b6   :  { %v2787_v42 = vmax.f32 %v2778_v43, 0.0  ;;  %v2782_v1 = vadd.f32 %v2781_v58, %v2702_v36  ;;  %v9456_v36 = vld [vmem:[%s10531_s5 + $0x150] sm:$0xff]  ;;  %10636 = vst [vmem:[#allocation10_spill] sm:$0xff] %v9484_v62 }
0x10b7   :  { %v2783_v45 = vpop.f32.mrf.mxu0  ;;  %10634 = vst [vmem:[#allocation8_spill] sm:$0xff] %v9456_v36  ;;  %7109 = vmatpush3.msra.mxu0 %v9456_v36  ;;  %v9491_v43 = vld [vmem:[%s10531_s5 + $0xb0] sm:$0xff] }
0x10b8   :  { %v2784_v50 = vadd.f32 %v2783_v45, %v2706_v56  ;;  %2893 = vmatprep.mubr.f32.mxu1 %v2787_v42  ;;  %v2788_v8 = vmax.f32 %v2782_v1, 0.0  ;;  %v9463_v56 = vld [vmem:[%s10531_s5 + $0x130] sm:$0xff]  ;;  %7110 = vmatprep.subr.mxu0 %v10605_v47 }
0x10b9   :  { %2894 = vmatmul.mubr.f32.vlgmr.msra.gmra.mxu1 %v2786_v51  ;;  %7111 = vmatpush3.msra.mxu0 %v9463_v56  ;;  %v9498_v58 = vld [vmem:[%s10531_s5 + $0x90] sm:$0xff] }
0x10ba   :  { %v2789_v7 = vmax.f32 %v2784_v50, 0.0  ;;  %7064 = vmatpush3.msra.mxu1 %v9161_v28  ;;  %7112 = vmatprep.subr.mxu0 %v10605_v47  ;;  %10637 = vst [vmem:[#allocation15_spill] sm:$0xff] %v9498_v58  ;;  %v9505_v42 = vld [vmem:[%s10531_s5 + $0x70] sm:$0xff] }
0x10bb   :  { %7065 = vmatprep.subr.mxu1 %v10605_v47  ;;  %7113 = vmatpush3.msra.mxu0 %v9470_v41  ;;  %v9512_v51 = vld [vmem:[%s10531_s5 + $0x50] sm:$0xff] }
0x10bc   :  { %7066 = vmatpush3.msra.mxu1 %v9151_v26  ;;  %2898 = vmatprep.mubr.f32.mxu1 %v2789_v7  ;;  %10638 = vst [vmem:[#allocation12_spill] sm:$0xff] %v9512_v51  ;;  %v9519_v1 = vld [vmem:[%s10531_s5 + $0x30] sm:$0xff]  ;;  %v5884_v7 = vld [vmem:[%s10542_s10] ss:$0 sm:$0xff] }
0x10bd   :  { %7067 = vmatprep.subr.mxu1 %v10605_v47  ;;  %2899 = vmatmul.mubr.f32.gmra.mxu1 %v2788_v8  ;;  %v9526_v45 = vld [vmem:[%s10531_s5 + $0x10] sm:$0xff] }
0x10be   :  { %7068 = vmatpush3.msra.mxu1 %v9301_v13  ;;  %7095 = vmatprep.mubr.msk.f32.mxu1 %vm7728_vm0, %v10605_v47  ;;  %10639 = vst [vmem:[#allocation17_spill] sm:$0xff] %v9526_v45 }
0x10bf   :  { %7069 = vmatprep.subr.mxu1 %v10605_v47  ;;  %7114 = vmatprep.subr.mxu0 %v10605_v47 }
0x10c0   :  { %7070 = vmatpush3.msra.mxu1 %v9308_v14  ;;  %7115 = vmatpush3.msra.mxu0 %v9477_v35 }
0x10c1   :  { %7071 = vmatprep.subr.mxu1 %v10605_v47  ;;  %7116 = vmatprep.subr.mxu0 %v10605_v47 }
0x10c2   :  { %7072 = vmatpush3.msra.mxu1 %v9317_v2  ;;  %7117 = vmatpush3.msra.mxu0 %v9484_v62 }
0x10c3   :  { %7073 = vmatprep.subr.mxu1 %v10605_v47  ;;  %7118 = vmatprep.subr.mxu0 %v10605_v47 }
0x10c4   :  { %7074 = vmatpush3.msra.mxu1 %v9324_v3  ;;  %7119 = vmatpush3.msra.mxu0 %v9491_v43 }
0x10c5   :  { %7075 = vmatprep.subr.mxu1 %v10605_v47  ;;  %7120 = vmatprep.subr.mxu0 %v10605_v47 }
0x10c6   :  { %7076 = vmatpush3.msra.mxu1 %v9331_v4  ;;  %7121 = vmatpush3.msra.mxu0 %v9498_v58 }
0x10c7   :  { %7077 = vmatprep.subr.mxu1 %v10605_v47  ;;  %7122 = vmatprep.subr.mxu0 %v10605_v47 }
0x10c8   :  { %7078 = vmatpush3.msra.mxu1 %v9338_v5  ;;  %7123 = vmatpush3.msra.mxu0 %v9505_v42 }
0x10c9   :  { %7079 = vmatprep.subr.mxu1 %v10605_v47  ;;  %7124 = vmatprep.subr.mxu0 %v10605_v47 }
0x10ca   :  { %7080 = vmatpush3.msra.mxu1 %v9345_v9  ;;  %7125 = vmatpush3.msra.mxu0 %v9512_v51 }
0x10cb   :  { %7081 = vmatprep.subr.mxu1 %v10605_v47  ;;  %7126 = vmatprep.subr.mxu0 %v10605_v47 }
0x10cc   :  { %7082 = vmatpush3.msra.mxu1 %v9352_v10  ;;  %7127 = vmatpush3.msra.mxu0 %v9519_v1 }
0x10cd   :  { %7083 = vmatprep.subr.mxu1 %v10605_v47  ;;  %7128 = vmatprep.subr.mxu0 %v10605_v47 }
0x10ce   :  { %7084 = vmatpush3.msra.mxu1 %v9359_v11  ;;  %7129 = vmatpush3.msra.mxu0 %v9526_v45 }
0x10cf   :  { %7085 = vmatprep.subr.mxu1 %v10605_v47  ;;  %7131 = vmatmul.mubr.f32.vlgmr.msra.gmra.mxu0 %v9385_v6 }
0x10d0   :  { %7086 = vmatpush3.msra.mxu1 %v9366_v44  ;;  %7178 = vmatprep.subr.mxu0 %v10605_v47 }
0x10d1   :  { %7087 = vmatprep.subr.mxu1 %v10605_v47  ;;  %7210 = vmatprep.mubr.msk.f32.mxu0 %vm7728_vm0, %v10605_v47 }
0x10d2   :  { %7088 = vmatpush3.msra.mxu1 %v9373_v15 }
0x10d3   :  { %7089 = vmatprep.subr.mxu1 %v10605_v47  ;;  %v9411_v22 = vpop.f32.mrf.mxu0 }
0x10d4   :  { %7090 = vmatpush3.msra.mxu1 %v9380_v17 }
0x10d5   :  { %7091 = vmatprep.subr.mxu1 %v10605_v47  ;;  %v3087_v24 = vpop.f32.mrf.mxu0 }
0x10d6   :  { %7092 = vmatpush3.msra.mxu1 %v9395_v12  ;;  %v3088_v26 = vadd.f32 %v9416_v23, %v3087_v24 }
0x10d7   :  { %7093 = vmatprep.subr.mxu1 %v10605_v47 }
0x10d8   :  { %7094 = vmatpush3.msra.mxu1 %v9405_v21 }
0x10d9   :  { %7096 = vmatmul.mubr.f32.vlgmr.msra.gmra.mxu1 %v9399_v20 }
0x10da   :  { %7135 = vmatprep.mubr.msk.f32.mxu1 %vm341_vm1, %v3088_v26 }
0x1179   :  { %v6224_v50 = vpop.f32.mrf.mxu1 }
0x117b   :  { %v6225_v8 = vpop.f32.mrf.mxu1 }
0x117c   :  { %v6226_v19 = vadd.f32 %v6225_v8, %v6224_v50  ;;  %v3093_v50 = vadd.f32 %v9411_v22, %v9416_v23  ;;  %v5893_v22 = vld [vmem:[%s10537_s4 + $0x1] sm:$0x1] }
0x117d   :  { %v6227_v24 = vpop.f32.mrf.mxu1 }
0x117e   :  { %v9538_v26 = vadd.f32 %v6226_v19, %v5884_v7  ;;  %v2959_v19 = vmul.f32 -1e+09, %v5893_v22 }
0x117f   :  { %v6228_v61 = vpop.f32.mrf.mxu1 }
0x1180   :  { %10640 = vst [vmem:[#allocation14_spill] sm:$0xff] %v9538_v26  ;;  %v9540_v18 = vadd.f32 %v6228_v61, %v6227_v24  ;;  %v9553_v61 = vpop.permute.xlu1 %3498  ;;  %v9569_v24 = vrot.slane %v2959_v19, %v10630_v63 }
0x1182   :  { %10641 = vst [vmem:[#allocation19_spill] sm:$0xff] %v9540_v18 }
0x1184   :  { %v3641_v7 = vpop.permute.xlu1 %3640 }
0x1185   :  { %7179 = vmatpush3.msra.mxu0 %v3641_v7 }
0x1186   :  { %7180 = vmatprep.subr.mxu0 %v10605_v47 }
0x1199   :  { %v3168_v33 = vpop.f32.mrf.mxu1 }
0x119a   :  { %v3169_v0 = vadd.f32 %v9545_v49, %v3168_v33  ;;  %v9559_v33 = vld [vmem:[%s10536_s6 + $0x2] ss:$0 sm:$0xff] }
0x119b   :  { %v7097_v37 = vpop.f32.mrf.mxu1 }
0x119c   :  { %7133 = vmatprep.subr.msk.mxu1 %vm341_vm1, %v3169_v0  ;;  %v3244_v37 = vpop.f32.mrf.mxu0 }
0x119d   :  { %7134 = vmatpush3.xpose.msk.msra.mxu1 %vm341_vm1, %v3169_v0  ;;  %v3245_v8 = vadd.f32 %v9559_v33, %v3244_v37 }
0x119e   :  { %v7132_v0 = vpop.f32.mrf.mxu0 }
0x119f   :  { %7138 = vmatprep.subr.msk.mxu1 %vm465_vm3, %v3245_v8 }
0x11a0   :  { %7136 = vmatmul.mubr.msk.f32.vlgmr.msra.gmra.mxu1 %vm341_vm1, %v3093_v50 }
0x11a1   :  { %7139 = vmatpush3.msk.msra.mxu1 %vm465_vm3, %v3245_v8 }
0x11a2   :  { %7143 = vmatprep.subr.mxu1 %v9553_v61 }
0x1260   :  { %v7137_v50 = vpop.f32.mrf.mxu1 }
0x1261   :  { %v3333_v7 = vmul.f32 0.17677669, %v7137_v50 }
0x1262   :  { %v3323_v26 = vpop.f32.mrf.mxu1 }
0x1263   :  { %v3341_v37 = vadd.f32 %v9569_v24, %v3333_v7  ;;  %v3332_v0 = vmul.f32 0.17677669, %v3323_v26  ;;  %v9594_v26 = vpop.permute.xlu1 %3496 }
0x1265   :  { %v3340_v18 = vadd.f32 %v9569_v24, %v3332_v0  ;;  %v3345_v8 = vsel %vm436_vm2, %v3341_v37, -inf }
0x1266   :  { %3346 = vmax.xlane.f32.xlu1 %v3345_v8 }
0x1267   :  { %v3342_v30 = vsel %vm436_vm2, %v3340_v18, -inf }
0x126a   :  { %3343 = vmax.xlane.f32.xlu1 %v3342_v30  ;;  %v3639_v30 = vpop.permute.xlu0 %3638 }
0x126b   :  { %7181 = vmatpush3.msra.mxu0 %v3639_v30 }
0x126c   :  { %7182 = vmatprep.subr.mxu0 %v10605_v47 }
0x127b   :  { %3494 = vrot.lane.b32.xlu1 %v9156_v27, %s7729_s15 }
0x127f   :  { %3636 = vrot.lane.b32.xlu1 %v9301_v13, %s7729_s15 }
0x1283   :  { %3492 = vrot.lane.b32.xlu1 %v9170_v32, %s7729_s15 }
0x1287   :  { %3634 = vrot.lane.b32.xlu1 %v9308_v14, %s7729_s15 }
0x128b   :  { %3490 = vrot.lane.b32.xlu1 %v9179_v29, %s7729_s15 }
0x128f   :  { %3632 = vrot.lane.b32.xlu1 %v9317_v2, %s7729_s15 }
0x1293   :  { %3630 = vrot.lane.b32.xlu1 %v9324_v3, %s7729_s15 }
0x1297   :  { %3628 = vrot.lane.b32.xlu1 %v9331_v4, %s7729_s15 }
0x129b   :  { %3626 = vrot.lane.b32.xlu1 %v9338_v5, %s7729_s15 }
0x12ef   :  { %v3347_v22 = vpop.xlane.xlu1 %3346 }
0x12f0   :  { %v3349_v19 = vsub.f32 %v3341_v37, %v3347_v22 }
0x12f2   :  { %v3352_v50 = vmul.f32 1.442695, %v3349_v19 }
0x12f3   :  { %v3344_v7 = vpop.xlane.xlu1 %3343 }
0x12f4   :  { %7573 = vpow2.f32 %v3352_v50  ;;  %v3348_v0 = vsub.f32 %v3340_v18, %v3344_v7 }
0x12f6   :  { %v3350_v8 = vmul.f32 1.442695, %v3348_v0  ;;  %v3489_v0 = vpop.permute.xlu0 %3488 }
0x12f7   :  { %v9596_v63 = vpop.permute.xlu1 %3494 }
0x12f8   :  { %7575 = vpow2.f32 %v3350_v8 }
0x12fa   :  { %v3487_v8 = vpop.permute.xlu0 %3486 }
0x12fb   :  { %v3637_v4 = vpop.permute.xlu1 %3636 }
0x12fc   :  { %7183 = vmatpush3.msra.mxu0 %v3637_v4 }
0x12fd   :  { %7184 = vmatprep.subr.mxu0 %v10605_v47 }
0x12ff   :  { %v9599_v5 = vpop.permute.xlu1 %3492 }
0x1301   :  { %v9601_v30 = vpop.eup %7573 }
0x1302   :  { %v3357_v3 = vsel %vm436_vm2, %v9601_v30, 0.0 }
0x1303   :  { %3358 = vadd.xlane.f32.xlu1 %v3357_v3  ;;  %v3635_v37 = vpop.permute.xlu1 %3634 }
0x1304   :  { %7185 = vmatpush3.msra.mxu0 %v3635_v37  ;;  %v3485_v37 = vpop.permute.xlu0 %3484 }
0x1305   :  { %v9605_v22 = vpop.eup %7575  ;;  %7186 = vmatprep.subr.mxu0 %v10605_v47 }
0x1306   :  { %v3354_v18 = vsel %vm436_vm2, %v9605_v22, 0.0 }
0x1307   :  { %3355 = vadd.xlane.f32.xlu0 %v3354_v18  ;;  %v9610_v4 = vpop.permute.xlu1 %3490 }
0x130b   :  { %v3633_v19 = vpop.permute.xlu1 %3632 }
0x130c   :  { %7187 = vmatpush3.msra.mxu0 %v3633_v19 }
0x130d   :  { %7188 = vmatprep.subr.mxu0 %v10605_v47 }
0x130f   :  { %v3631_v50 = vpop.permute.xlu1 %3630 }
0x1310   :  { %7189 = vmatpush3.msra.mxu0 %v3631_v50 }
0x1311   :  { %7190 = vmatprep.subr.mxu0 %v10605_v47 }
0x1313   :  { %v3629_v3 = vpop.permute.xlu1 %3628 }
0x1314   :  { %3624 = vrot.lane.b32.xlu1 %v9345_v9, %s7729_s15  ;;  %7191 = vmatpush3.msra.mxu0 %v3629_v3 }
0x1315   :  { %7192 = vmatprep.subr.mxu0 %v10605_v47 }
0x1317   :  { %v3627_v7 = vpop.permute.xlu1 %3626 }
0x1318   :  { %3622 = vrot.lane.b32.xlu1 %v9352_v10, %s7729_s15  ;;  %7193 = vmatpush3.msra.mxu0 %v3627_v7 }
0x1319   :  { %7194 = vmatprep.subr.mxu0 %v10605_v47 }
0x131c   :  { %3620 = vrot.lane.b32.xlu1 %v9359_v11, %s7729_s15 }
0x131d   :  { %3482 = vrot.lane.b32.xlu0 %v9213_v38, %s7729_s15 }
0x1320   :  { %3618 = vrot.lane.b32.xlu1 %v9366_v44, %s7729_s15 }
0x1321   :  { %3480 = vrot.lane.b32.xlu0 %v9220_v46, %s7729_s15 }
0x1324   :  { %3616 = vrot.lane.b32.xlu1 %v9373_v15, %s7729_s15 }
0x1325   :  { %3478 = vrot.lane.b32.xlu0 %v9229_v52, %s7729_s15 }
0x1328   :  { %3614 = vrot.lane.b32.xlu1 %v9380_v17, %s7729_s15 }
0x1329   :  { %3476 = vrot.lane.b32.xlu0 %v9236_v54, %s7729_s15 }
0x132c   :  { %3612 = vrot.lane.b32.xlu1 %v9395_v12, %s7729_s15 }
0x132d   :  { %3474 = vrot.lane.b32.xlu0 %v9243_v57, %s7729_s15 }
0x1330   :  { %3610 = vrot.lane.b32.xlu1 %v9405_v21, %s7729_s15 }
0x1331   :  { %3472 = vrot.lane.b32.xlu0 %v9250_v59, %s7729_s15 }
0x1334   :  { %3516 = vrot.lane.b32.xlu1 %v9416_v23, %s7729_s15 }
0x1335   :  { %3470 = vrot.lane.b32.xlu0 %v9257_v34, %s7729_s15 }
0x1338   :  { %3775 = vrot.lane.b32.xlu1 %v9428_v16, %s7729_s15 }
0x1339   :  { %3468 = vrot.lane.b32.xlu0 %v9270_v40, %s7729_s15 }
0x133c   :  { %3771 = vrot.lane.b32.xlu1 %v9442_v39, %s7729_s15 }
0x133d   :  { %3658 = vrot.lane.b32.xlu0 %v9545_v49, %s7729_s15 }
0x1340   :  { %3767 = vrot.lane.b32.xlu1 %v9456_v36, %s7729_s15 }
0x1341   :  { %3777 = vrot.lane.b32.xlu0 %v9423_v48, %s7729_s15 }
0x1344   :  { %3763 = vrot.lane.b32.xlu1 %v9470_v41, %s7729_s15 }
0x1345   :  { %3773 = vrot.lane.b32.xlu0 %v9435_v53, %s7729_s15 }
0x1348   :  { %3759 = vrot.lane.b32.xlu1 %v9484_v62, %s7729_s15 }
0x1349   :  { %3769 = vrot.lane.b32.xlu0 %v9449_v31, %s7729_s15 }
0x134c   :  { %3755 = vrot.lane.b32.xlu1 %v9498_v58, %s7729_s15 }
0x134d   :  { %3765 = vrot.lane.b32.xlu0 %v9463_v56, %s7729_s15 }
0x1350   :  { %3751 = vrot.lane.b32.xlu1 %v9512_v51, %s7729_s15 }
0x1351   :  { %3761 = vrot.lane.b32.xlu0 %v9477_v35, %s7729_s15 }
0x1354   :  { %3747 = vrot.lane.b32.xlu1 %v9526_v45, %s7729_s15 }
0x1355   :  { %3757 = vrot.lane.b32.xlu0 %v9491_v43, %s7729_s15 }
0x1359   :  { %3753 = vrot.lane.b32.xlu0 %v9505_v42, %s7729_s15 }
0x135d   :  { %3749 = vrot.lane.b32.xlu0 %v9519_v1, %s7729_s15 }
0x138c   :  { %v3359_v18 = vpop.xlane.xlu1 %3358 }
0x138d   :  { %7577 = vrcp.f32 %v3359_v18 }
0x1390   :  { %v3356_v19 = vpop.xlane.xlu0 %3355  ;;  %v3625_v50 = vpop.permute.xlu1 %3624 }
0x1391   :  { %7579 = vrcp.f32 %v3356_v19  ;;  %7195 = vmatpush3.msra.mxu0 %v3625_v50 }
0x1392   :  { %7196 = vmatprep.subr.mxu0 %v10605_v47 }
0x1394   :  { %v3483_v3 = vpop.permute.xlu0 %3482  ;;  %v3623_v7 = vpop.permute.xlu1 %3622 }
0x1395   :  { %7197 = vmatpush3.msra.mxu0 %v3623_v7 }
0x1396   :  { %7198 = vmatprep.subr.mxu0 %v10605_v47 }
0x1398   :  { %v3481_v45 = vpop.permute.xlu0 %3480  ;;  %v3621_v51 = vpop.permute.xlu1 %3620 }
0x1399   :  { %7199 = vmatpush3.msra.mxu0 %v3621_v51 }
0x139a   :  { %7200 = vmatprep.subr.mxu0 %v10605_v47  ;;  %v7578_v41 = vpop.eup %7577 }
0x139b   :  { %v3363_v50 = vmul.f32 %v7578_v41, %v9601_v30 }
0x139c   :  { %v3479_v58 = vpop.permute.xlu0 %3478  ;;  %v3619_v62 = vpop.permute.xlu1 %3618 }
0x139d   :  { %7201 = vmatpush3.msra.mxu0 %v3619_v62 }
0x139e   :  { %v7580_v18 = vpop.eup %7579  ;;  %7202 = vmatprep.subr.mxu0 %v10605_v47 }
0x139f   :  { %v3362_v19 = vmul.f32 %v7580_v18, %v9605_v22 }
0x13a0   :  { %v3477_v36 = vpop.permute.xlu0 %3476  ;;  %v3617_v7 = vpop.permute.xlu1 %3616 }
0x13a1   :  { %7140 = vmatprep.mubr.msk.f32.mxu1 %vm436_vm2, %v3362_v19  ;;  %7203 = vmatpush3.msra.mxu0 %v3617_v7 }
0x13a2   :  { %7141 = vmatmul.mubr.msk.f32.vlgmr.msra.gmra.mxu1 %vm436_vm2, %v3363_v50  ;;  %7204 = vmatprep.subr.mxu0 %v10605_v47 }
0x13a3   :  { %7144 = vmatpush3.msra.mxu1 %v9553_v61  ;;  %7175 = vmatprep.mubr.f32.mxu1 %v9272_v60 }
0x13a4   :  { %7145 = vmatprep.subr.mxu1 %v9594_v26  ;;  %v3475_v62 = vpop.permute.xlu0 %3474  ;;  %v3615_v51 = vpop.permute.xlu1 %3614 }
0x13a5   :  { %7146 = vmatpush3.msra.mxu1 %v9594_v26  ;;  %7205 = vmatpush3.msra.mxu0 %v3615_v51 }
0x13a6   :  { %7147 = vmatprep.subr.mxu1 %v9596_v63  ;;  %7206 = vmatprep.subr.mxu0 %v10605_v47 }
0x13a7   :  { %7148 = vmatpush3.msra.mxu1 %v9596_v63 }
0x13a8   :  { %7149 = vmatprep.subr.mxu1 %v9599_v5  ;;  %v3473_v41 = vpop.permute.xlu0 %3472  ;;  %v3613_v30 = vpop.permute.xlu1 %3612 }
0x13a9   :  { %7150 = vmatpush3.msra.mxu1 %v9599_v5  ;;  %7207 = vmatpush3.msra.mxu0 %v3613_v30 }
0x13aa   :  { %7151 = vmatprep.subr.mxu1 %v9610_v4  ;;  %7208 = vmatprep.subr.mxu0 %v10605_v47 }
0x13ab   :  { %7152 = vmatpush3.msra.mxu1 %v9610_v4 }
0x13ac   :  { %7153 = vmatprep.subr.mxu1 %v3489_v0  ;;  %v3471_v61 = vpop.permute.xlu0 %3470  ;;  %v3611_v26 = vpop.permute.xlu1 %3610 }
0x13ad   :  { %7154 = vmatpush3.msra.mxu1 %v3489_v0  ;;  %7209 = vmatpush3.msra.mxu0 %v3611_v26  ;;  %v3010_v26 = vld [vmem:[%s10531_s5 + $0x58] sm:$0xff] }
0x13ae   :  { %7155 = vmatprep.subr.mxu1 %v3487_v8  ;;  %7211 = vmatmul.mubr.f32.vlgmr.msra.gmra.mxu0 %v9399_v20 }
0x13af   :  { %7156 = vmatpush3.msra.mxu1 %v3487_v8 }
0x13b0   :  { %7157 = vmatprep.subr.mxu1 %v3485_v37  ;;  %v3469_v63 = vpop.permute.xlu0 %3468  ;;  %v9706_v22 = vpop.permute.xlu1 %3516 }
0x13b1   :  { %7158 = vmatpush3.msra.mxu1 %v3485_v37 }
0x13b2   :  { %7159 = vmatprep.subr.mxu1 %v3483_v3 }
0x13b3   :  { %7160 = vmatpush3.msra.mxu1 %v3483_v3 }
0x13b4   :  { %7161 = vmatprep.subr.mxu1 %v3481_v45  ;;  %v9708_v5 = vpop.permute.xlu0 %3658  ;;  %v3776_v4 = vpop.permute.xlu1 %3775 }
0x13b5   :  { %7162 = vmatpush3.msra.mxu1 %v3481_v45 }
0x13b6   :  { %7163 = vmatprep.subr.mxu1 %v3479_v58 }
0x13b7   :  { %7164 = vmatpush3.msra.mxu1 %v3479_v58 }
0x13b8   :  { %7165 = vmatprep.subr.mxu1 %v3477_v36  ;;  %v3778_v0 = vpop.permute.xlu0 %3777  ;;  %v3772_v18 = vpop.permute.xlu1 %3771 }
0x13b9   :  { %7166 = vmatpush3.msra.mxu1 %v3477_v36 }
0x13ba   :  { %7167 = vmatprep.subr.mxu1 %v3475_v62 }
0x13bb   :  { %7168 = vmatpush3.msra.mxu1 %v3475_v62 }
0x13bc   :  { %7169 = vmatprep.subr.mxu1 %v3473_v41  ;;  %v3774_v8 = vpop.permute.xlu0 %3773  ;;  %v3768_v3 = vpop.permute.xlu1 %3767 }
0x13bd   :  { %7170 = vmatpush3.msra.mxu1 %v3473_v41 }
0x13be   :  { %7171 = vmatprep.subr.mxu1 %v3471_v61 }
0x13bf   :  { %7172 = vmatpush3.msra.mxu1 %v3471_v61  ;;  %v3011_v61 = vld [vmem:[%s10531_s5 + $0x78] sm:$0xff] }
0x13c0   :  { %7173 = vmatprep.subr.mxu1 %v3469_v63  ;;  %v3770_v37 = vpop.permute.xlu0 %3769  ;;  %v3764_v58 = vpop.permute.xlu1 %3763 }
0x13c1   :  { %7174 = vmatpush3.msra.mxu1 %v3469_v63  ;;  %v3009_v63 = vld [vmem:[%s10531_s5 + $0x38] sm:$0xff] }
0x13c2   :  { %7176 = vmatmul.mubr.f32.vlgmr.msra.gmra.mxu1 %v9283_v55  ;;  %7213 = vmatprep.subr.mxu1 %v10605_v47 }
0x13c3   :  { %7214 = vmatpush3.msra.mxu1 %v3778_v0  ;;  %7245 = vmatprep.mubr.msk.f32.mxu1 %vm7728_vm0, %v10605_v47 }
0x13c4   :  { %7215 = vmatprep.subr.mxu1 %v10605_v47  ;;  %v3766_v36 = vpop.permute.xlu0 %3765  ;;  %v3760_v19 = vpop.permute.xlu1 %3759 }
0x13c5   :  { %7216 = vmatpush3.msra.mxu1 %v3776_v4  ;;  %v3008_v4 = vld [vmem:[%s10531_s5 + $0x18] sm:$0xff] }
0x13c6   :  { %7217 = vmatprep.subr.mxu1 %v10605_v47 }
0x13c7   :  { %7218 = vmatpush3.msra.mxu1 %v3774_v8 }
0x13c8   :  { %7219 = vmatprep.subr.mxu1 %v10605_v47  ;;  %v3762_v45 = vpop.permute.xlu0 %3761  ;;  %v3756_v7 = vpop.permute.xlu1 %3755 }
0x13c9   :  { %7220 = vmatpush3.msra.mxu1 %v3772_v18 }
0x13ca   :  { %7221 = vmatprep.subr.mxu1 %v10605_v47 }
0x13cb   :  { %7222 = vmatpush3.msra.mxu1 %v3770_v37 }
0x13cc   :  { %7223 = vmatprep.subr.mxu1 %v10605_v47  ;;  %v3758_v50 = vpop.permute.xlu0 %3757  ;;  %v3752_v51 = vpop.permute.xlu1 %3751 }
0x13cd   :  { %7224 = vmatpush3.msra.mxu1 %v3768_v3 }
0x13ce   :  { %7225 = vmatprep.subr.mxu1 %v10605_v47 }
0x13cf   :  { %7226 = vmatpush3.msra.mxu1 %v3766_v36 }
0x13d0   :  { %7227 = vmatprep.subr.mxu1 %v10605_v47  ;;  %v3754_v62 = vpop.permute.xlu0 %3753  ;;  %v3748_v30 = vpop.permute.xlu1 %3747 }
0x13d1   :  { %7228 = vmatpush3.msra.mxu1 %v3764_v58 }
0x13d2   :  { %7229 = vmatprep.subr.mxu1 %v10605_v47 }
0x13d3   :  { %7230 = vmatpush3.msra.mxu1 %v3762_v45 }
0x13d4   :  { %7231 = vmatprep.subr.mxu1 %v10605_v47  ;;  %v3750_v41 = vpop.permute.xlu0 %3749 }
0x13d5   :  { %7232 = vmatpush3.msra.mxu1 %v3760_v19 }
0x13d6   :  { %7233 = vmatprep.subr.mxu1 %v10605_v47 }
0x13d7   :  { %7234 = vmatpush3.msra.mxu1 %v3758_v50 }
0x13d8   :  { %7235 = vmatprep.subr.mxu1 %v10605_v47 }
0x13d9   :  { %7236 = vmatpush3.msra.mxu1 %v3756_v7 }
0x13da   :  { %7237 = vmatprep.subr.mxu1 %v10605_v47 }
0x13db   :  { %7238 = vmatpush3.msra.mxu1 %v3754_v62 }
0x13dc   :  { %7239 = vmatprep.subr.mxu1 %v10605_v47 }
0x13dd   :  { %7240 = vmatpush3.msra.mxu1 %v3752_v51 }
0x13de   :  { %7241 = vmatprep.subr.mxu1 %v10605_v47 }
0x13df   :  { %7242 = vmatpush3.msra.mxu1 %v3750_v41 }
0x13e0   :  { %7243 = vmatprep.subr.mxu1 %v10605_v47 }
0x13e1   :  { %7244 = vmatpush3.msra.mxu1 %v3748_v30 }
0x13e2   :  { %7269 = vmatprep.subr.mxu1 %v3011_v61  ;;  %7246 = vmatmul.mubr.f32.vlgmr.msra.gmra.mxu1 %v9385_v6 }
0x13e3   :  { %7270 = vmatpush3.msra.mxu1 %v3011_v61 }
0x13e4   :  { %7271 = vmatprep.subr.mxu1 %v3010_v26 }
0x13e5   :  { %7272 = vmatpush3.msra.mxu1 %v3010_v26 }
0x13e6   :  { %7273 = vmatprep.subr.mxu1 %v3009_v63 }
0x13e7   :  { %7274 = vmatpush3.msra.mxu1 %v3009_v63 }
0x13e8   :  { %7275 = vmatprep.subr.mxu1 %v3008_v4 }
0x13e9   :  { %7276 = vmatpush3.msra.mxu1 %v3008_v4  ;;  %v3449_v4 = vld [vmem:[%s10531_s5 + $0xb8] sm:$0xff] }
0x13ea   :  { %7315 = vmatprep.subr.mxu1 %v10605_v47 }
0x1462   :  { %v7142_v0 = vpop.f32.mrf.mxu1 }
0x1464   :  { %v3439_v18 = vpop.f32.mrf.mxu1 }
0x1465   :  { %7277 = vmatprep.mubr.msk.f32.mxu1 %vm341_vm1, %v3439_v18 }
0x1466   :  { %7278 = vmatmul.mubr.msk.f32.vlgmr.msra.gmra.mxu1 %vm341_vm1, %v7142_v0  ;;  %v3448_v0 = vld [vmem:[%s10531_s5 + $0x98] sm:$0xff] }
0x1467   :  { %7347 = vmatprep.mubr.msk.f32.mxu1 %vm7728_vm0, %v10605_v47 }
0x146e   :  { %v3727_v6 = vpop.f32.mrf.mxu0 }
0x146f   :  { %v3728_v8 = vadd.f32 %v3727_v6, %v9708_v5 }
0x1470   :  { %v7212_v37 = vpop.f32.mrf.mxu0 }
0x1471   :  { %7248 = vmatprep.subr.msk.mxu0 %vm341_vm1, %v3728_v8 }
0x1472   :  { %7249 = vmatpush3.xpose.msk.msra.mxu0 %vm341_vm1, %v3728_v8 }
0x1482   :  { %v7177_v3 = vpop.f32.mrf.mxu1 }
0x1483   :  { %v3591_v45 = vadd.f32 %v7177_v3, %v9706_v22 }
0x1484   :  { %v3585_v36 = vpop.f32.mrf.mxu1 }
0x1485   :  { %v3586_v58 = vadd.f32 %v3585_v36, %v9706_v22  ;;  %v10642_v22 = vld [vmem:[#allocation4_spill] sm:$0xff] }
0x1487   :  { %7250 = vmatprep.mubr.msk.f32.mxu0 %vm341_vm1, %v3586_v58 }
0x1488   :  { %7251 = vmatmul.mubr.msk.f32.vlgmr.msra.gmra.mxu0 %vm341_vm1, %v3591_v45 }
0x14a2   :  { %v3864_v19 = vpop.f32.mrf.mxu1 }
0x14a4   :  { %v7247_v50 = vpop.f32.mrf.mxu1 }
0x1548   :  { %v7252_v7 = vpop.f32.mrf.mxu0 }
0x1549   :  { %v3953_v62 = vmul.f32 0.17677669, %v7252_v7 }
0x154a   :  { %v3943_v5 = vpop.f32.mrf.mxu0 }
0x154b   :  { %v3955_v51 = vadd.f32 %v3953_v62, %v9569_v24  ;;  %v3952_v41 = vmul.f32 0.17677669, %v3943_v5 }
0x154d   :  { %v3954_v30 = vadd.f32 %v3952_v41, %v9569_v24  ;;  %v3959_v61 = vsel %vm436_vm2, %v3955_v51, -inf }
0x154e   :  { %3960 = vmax.xlane.f32.xlu1 %v3959_v61 }
0x154f   :  { %v3956_v26 = vsel %vm436_vm2, %v3954_v30, -inf }
0x1550   :  { %3957 = vmax.xlane.f32.xlu0 %v3956_v26 }
0x155f   :  { %3795 = vrot.lane.b32.xlu1 %v9559_v33, %s7729_s15  ;;  %v10643_v33 = vld [vmem:[#allocation7_spill] sm:$0xff] }
0x1563   :  { %4384 = vrot.lane.b32.xlu1 %v9161_v28, %s7730_s22  ;;  %v10644_v28 = vld [vmem:[#allocation5_spill] sm:$0xff] }
0x1567   :  { %4256 = vrot.lane.b32.xlu1 %v9143_v25, %s7730_s22 }
0x156b   :  { %4254 = vrot.lane.b32.xlu1 %v9156_v27, %s7730_s22 }
0x156f   :  { %4252 = vrot.lane.b32.xlu1 %v9170_v32, %s7730_s22 }
0x1573   :  { %4250 = vrot.lane.b32.xlu1 %v9179_v29, %s7730_s22 }
0x1577   :  { %4248 = vrot.lane.b32.xlu1 %v10642_v22, %s7730_s22 }
0x157b   :  { %4246 = vrot.lane.b32.xlu1 %v10643_v33, %s7730_s22 }
0x157f   :  { %4244 = vrot.lane.b32.xlu1 %v10644_v28, %s7730_s22 }
0x1583   :  { %4242 = vrot.lane.b32.xlu1 %v9213_v38, %s7730_s22 }
0x1587   :  { %4240 = vrot.lane.b32.xlu1 %v9220_v46, %s7730_s22 }
0x158b   :  { %4238 = vrot.lane.b32.xlu1 %v9229_v52, %s7730_s22 }
0x158f   :  { %4236 = vrot.lane.b32.xlu1 %v9236_v54, %s7730_s22 }
0x1593   :  { %4234 = vrot.lane.b32.xlu1 %v9243_v57, %s7730_s22 }
0x1597   :  { %4232 = vrot.lane.b32.xlu1 %v9250_v59, %s7730_s22 }
0x159b   :  { %4230 = vrot.lane.b32.xlu1 %v9257_v34, %s7730_s22 }
0x159f   :  { %4228 = vrot.lane.b32.xlu1 %v9270_v40, %s7730_s22  ;;  %v9817_v40 = vld [vmem:[%s10531_s5 + $0x1e0] sm:$0xff] }
0x15a3   :  { %4402 = vrot.lane.b32.xlu1 %v9545_v49, %s7730_s22 }
0x15a7   :  { %4505 = vrot.lane.b32.xlu1 %v9423_v48, %s7730_s22  ;;  %v9824_v48 = vld [vmem:[%s10531_s5 + $0x1c8] sm:$0xff] }
0x15ab   :  { %4501 = vrot.lane.b32.xlu1 %v9435_v53, %s7730_s22  ;;  %v3451_v53 = vld [vmem:[%s10531_s5 + $0xf8] sm:$0xff] }
0x15af   :  { %4497 = vrot.lane.b32.xlu1 %v9449_v31, %s7730_s22 }
0x15b3   :  { %4493 = vrot.lane.b32.xlu1 %v9463_v56, %s7730_s22  ;;  %v10645_v56 = vld [vmem:[#allocation9_spill] sm:$0xff] }
0x15b7   :  { %4489 = vrot.lane.b32.xlu1 %v9477_v35, %s7730_s22  ;;  %v10646_v35 = vld [vmem:[#allocation6_spill] sm:$0xff] }
0x15bb   :  { %4485 = vrot.lane.b32.xlu1 %v9491_v43, %s7730_s22  ;;  %v10647_v43 = vld [vmem:[#allocation11_spill] sm:$0xff] }
0x15bf   :  { %4481 = vrot.lane.b32.xlu1 %v9505_v42, %s7730_s22 }
0x15c3   :  { %4477 = vrot.lane.b32.xlu1 %v9519_v1, %s7730_s22  ;;  %v3450_v1 = vld [vmem:[%s10531_s5 + $0xd8] sm:$0xff] }
0x15d7   :  { %v3961_v49 = vpop.xlane.xlu1 %3960 }
0x15d8   :  { %v3963_v25 = vsub.f32 %v3955_v51, %v3961_v49 }
0x15d9   :  { %v3958_v27 = vpop.xlane.xlu0 %3957 }
0x15da   :  { %v3962_v32 = vsub.f32 %v3954_v30, %v3958_v27  ;;  %v3966_v29 = vmul.f32 1.442695, %v3963_v25 }
0x15db   :  { %v3796_v59 = vpop.permute.xlu1 %3795 }
0x15dc   :  { %v3964_v38 = vmul.f32 1.442695, %v3962_v32  ;;  %v3865_v34 = vadd.f32 %v3864_v19, %v3796_v59 }
0x15de   :  { %7581 = vpow2.f32 %v3964_v38  ;;  %7253 = vmatprep.subr.msk.mxu0 %vm465_vm3, %v3865_v34 }
0x15df   :  { %7583 = vpow2.f32 %v3966_v29  ;;  %7254 = vmatpush3.msk.msra.mxu0 %vm465_vm3, %v3865_v34  ;;  %v4385_v31 = vpop.permute.xlu1 %4384 }
0x15e0   :  { %7258 = vmatprep.subr.mxu0 %v3451_v53  ;;  %7316 = vmatpush3.msra.mxu1 %v4385_v31 }
0x15e1   :  { %7317 = vmatprep.subr.mxu1 %v10605_v47 }
0x15e3   :  { %v4257_v5 = vpop.permute.xlu1 %4256 }
0x15e7   :  { %v4255_v51 = vpop.permute.xlu1 %4254 }
0x15eb   :  { %v7582_v46 = vpop.eup %7581  ;;  %v4253_v41 = vpop.permute.xlu1 %4252 }
0x15ec   :  { %v3968_v52 = vsel %vm436_vm2, %v7582_v46, 0.0  ;;  %v7584_v54 = vpop.eup %7583 }
0x15ed   :  { %3969 = vadd.xlane.f32.xlu0 %v3968_v52  ;;  %v3971_v57 = vsel %vm436_vm2, %v7584_v54, 0.0 }
0x15ef   :  { %v4251_v30 = vpop.permute.xlu1 %4250 }
0x15f1   :  { %3972 = vadd.xlane.f32.xlu0 %v3971_v57 }
0x15f3   :  { %v4249_v61 = vpop.permute.xlu1 %4248 }
0x15f7   :  { %v4247_v26 = vpop.permute.xlu1 %4246 }
0x15fb   :  { %v4245_v22 = vpop.permute.xlu1 %4244 }
0x15ff   :  { %v4243_v33 = vpop.permute.xlu1 %4242 }
0x1603   :  { %v4241_v28 = vpop.permute.xlu1 %4240 }
0x1607   :  { %4258 = vrot.lane.b32.xlu0 %v9817_v40, %s7730_s22  ;;  %v4239_v25 = vpop.permute.xlu1 %4238 }
0x160b   :  { %4382 = vrot.lane.b32.xlu0 %v9824_v48, %s7730_s22  ;;  %v4237_v32 = vpop.permute.xlu1 %4236 }
0x160f   :  { %4380 = vrot.lane.b32.xlu0 %v9301_v13, %s7730_s22  ;;  %v10648_v13 = vld [vmem:[#allocation8_spill] sm:$0xff]  ;;  %v4235_v29 = vpop.permute.xlu1 %4234 }
0x1613   :  { %4378 = vrot.lane.b32.xlu0 %v9308_v14, %s7730_s22  ;;  %v10649_v14 = vld [vmem:[#allocation13_spill] sm:$0xff]  ;;  %v4233_v38 = vpop.permute.xlu1 %4232 }
0x1617   :  { %4376 = vrot.lane.b32.xlu0 %v9317_v2, %s7730_s22  ;;  %v10650_v2 = vld [vmem:[#allocation10_spill] sm:$0xff] }
0x161b   :  { %4374 = vrot.lane.b32.xlu0 %v10645_v56, %s7730_s22 }
0x161f   :  { %4372 = vrot.lane.b32.xlu0 %v10646_v35, %s7730_s22 }
0x1623   :  { %4370 = vrot.lane.b32.xlu0 %v10647_v43, %s7730_s22 }
0x1627   :  { %4368 = vrot.lane.b32.xlu0 %v9345_v9, %s7730_s22  ;;  %v10651_v9 = vld [vmem:[#allocation15_spill] sm:$0xff] }
0x162b   :  { %4366 = vrot.lane.b32.xlu0 %v9352_v10, %s7730_s22  ;;  %v10652_v10 = vld [vmem:[#allocation12_spill] sm:$0xff] }
0x162f   :  { %4364 = vrot.lane.b32.xlu0 %v9359_v11, %s7730_s22  ;;  %v10653_v11 = vld [vmem:[#allocation17_spill] sm:$0xff] }
0x1633   :  { %4362 = vrot.lane.b32.xlu0 %v9366_v44, %s7730_s22 }
0x1637   :  { %4360 = vrot.lane.b32.xlu0 %v9373_v15, %s7730_s22 }
0x163b   :  { %4358 = vrot.lane.b32.xlu0 %v9380_v17, %s7730_s22 }
0x163f   :  { %4356 = vrot.lane.b32.xlu0 %v9395_v12, %s7730_s22 }
0x1643   :  { %4354 = vrot.lane.b32.xlu0 %v9405_v21, %s7730_s22 }
0x1647   :  { %4276 = vrot.lane.b32.xlu0 %v9416_v23, %s7730_s22 }
0x164b   :  { %4503 = vrot.lane.b32.xlu0 %v9428_v16, %s7730_s22 }
0x164f   :  { %4499 = vrot.lane.b32.xlu0 %v9442_v39, %s7730_s22 }
0x1653   :  { %4495 = vrot.lane.b32.xlu0 %v10648_v13, %s7730_s22 }
0x1657   :  { %4491 = vrot.lane.b32.xlu0 %v10649_v14, %s7730_s22 }
0x165b   :  { %4487 = vrot.lane.b32.xlu0 %v10650_v2, %s7730_s22 }
0x165f   :  { %4483 = vrot.lane.b32.xlu0 %v10651_v9, %s7730_s22 }
0x1663   :  { %4479 = vrot.lane.b32.xlu0 %v10652_v10, %s7730_s22 }
0x1667   :  { %4475 = vrot.lane.b32.xlu0 %v10653_v11, %s7730_s22 }
0x1676   :  { %v3970_v44 = vpop.xlane.xlu0 %3969 }
0x1677   :  { %7585 = vrcp.f32 %v3970_v44 }
0x167a   :  { %v3973_v15 = vpop.xlane.xlu0 %3972 }
0x167b   :  { %7587 = vrcp.f32 %v3973_v15 }
0x167e   :  { %v9878_v17 = vpop.permute.xlu0 %4258 }
0x1682   :  { %v4383_v12 = vpop.permute.xlu0 %4382 }
0x1683   :  { %7318 = vmatpush3.msra.mxu1 %v4383_v12 }
0x1684   :  { %v7586_v21 = vpop.eup %7585  ;;  %7319 = vmatprep.subr.mxu1 %v10605_v47 }
0x1685   :  { %v3976_v23 = vmul.f32 %v7586_v21, %v7582_v46  ;;  %v4231_v46 = vpop.permute.xlu1 %4230 }
0x1686   :  { %v4381_v16 = vpop.permute.xlu0 %4380 }
0x1687   :  { %7255 = vmatprep.mubr.msk.f32.mxu0 %vm436_vm2, %v3976_v23  ;;  %7320 = vmatpush3.msra.mxu1 %v4381_v16 }
0x1688   :  { %v7588_v39 = vpop.eup %7587  ;;  %7321 = vmatprep.subr.mxu1 %v10605_v47 }
0x1689   :  { %v3977_v42 = vmul.f32 %v7588_v39, %v7584_v54  ;;  %v4229_v52 = vpop.permute.xlu1 %4228  ;;  %v9915_v54 = vpop.f32.mrf.mxu1 }
0x168a   :  { %v4379_v63 = vpop.permute.xlu0 %4378 }
0x168b   :  { %7256 = vmatmul.mubr.msk.f32.vlgmr.msra.gmra.mxu0 %vm436_vm2, %v3977_v42  ;;  %7322 = vmatpush3.msra.mxu1 %v4379_v63  ;;  %v9917_v57 = vpop.f32.mrf.mxu1 }
0x168c   :  { %7259 = vmatpush3.msra.mxu0 %v3451_v53  ;;  %7323 = vmatprep.subr.mxu1 %v10605_v47 }
0x168d   :  { %7260 = vmatprep.subr.mxu0 %v3450_v1  ;;  %v4403_v59 = vpop.permute.xlu1 %4402 }
0x168e   :  { %7261 = vmatpush3.msra.mxu0 %v3450_v1  ;;  %v4377_v18 = vpop.permute.xlu0 %4376 }
0x168f   :  { %7262 = vmatprep.subr.mxu0 %v3449_v4  ;;  %7324 = vmatpush3.msra.mxu1 %v4377_v18 }
0x1690   :  { %7263 = vmatpush3.msra.mxu0 %v3449_v4  ;;  %7325 = vmatprep.subr.mxu1 %v10605_v47 }
0x1691   :  { %7264 = vmatprep.subr.mxu0 %v3448_v0  ;;  %v4506_v10 = vpop.permute.xlu1 %4505 }
0x1692   :  { %7265 = vmatpush3.msra.mxu0 %v3448_v0  ;;  %v4375_v6 = vpop.permute.xlu0 %4374 }
0x1693   :  { %7280 = vmatprep.subr.mxu0 %v9878_v17  ;;  %7326 = vmatpush3.msra.mxu1 %v4375_v6  ;;  %v9945_v6 = vld [vmem:[%s10534_s2 + $0x4] sm:$0xf] }
0x1694   :  { %7327 = vmatprep.subr.mxu1 %v10605_v47 }
0x1695   :  { %v4502_v44 = vpop.permute.xlu1 %4501 }
0x1696   :  { %v4373_v8 = vpop.permute.xlu0 %4372 }
0x1697   :  { %7328 = vmatpush3.msra.mxu1 %v4373_v8 }
0x1698   :  { %7329 = vmatprep.subr.mxu1 %v10605_v47 }
0x169a   :  { %v4371_v37 = vpop.permute.xlu0 %4370 }
0x169b   :  { %7330 = vmatpush3.msra.mxu1 %v4371_v37 }
0x169c   :  { %7331 = vmatprep.subr.mxu1 %v10605_v47 }
0x169e   :  { %v4369_v3 = vpop.permute.xlu0 %4368 }
0x169f   :  { %7332 = vmatpush3.msra.mxu1 %v4369_v3 }
0x16a0   :  { %7333 = vmatprep.subr.mxu1 %v10605_v47 }
0x16a2   :  { %v4367_v36 = vpop.permute.xlu0 %4366 }
0x16a3   :  { %7334 = vmatpush3.msra.mxu1 %v4367_v36 }
0x16a4   :  { %7335 = vmatprep.subr.mxu1 %v10605_v47 }
0x16a6   :  { %v4365_v58 = vpop.permute.xlu0 %4364 }
0x16a7   :  { %7336 = vmatpush3.msra.mxu1 %v4365_v58 }
0x16a8   :  { %7337 = vmatprep.subr.mxu1 %v10605_v47 }
0x16aa   :  { %v4363_v45 = vpop.permute.xlu0 %4362 }
0x16ab   :  { %7338 = vmatpush3.msra.mxu1 %v4363_v45 }
0x16ac   :  { %7339 = vmatprep.subr.mxu1 %v10605_v47 }
0x16ae   :  { %v4361_v19 = vpop.permute.xlu0 %4360 }
0x16af   :  { %7340 = vmatpush3.msra.mxu1 %v4361_v19 }
0x16b0   :  { %7341 = vmatprep.subr.mxu1 %v10605_v47 }
0x16b2   :  { %v4359_v50 = vpop.permute.xlu0 %4358 }
0x16b3   :  { %7342 = vmatpush3.msra.mxu1 %v4359_v50 }
0x16b4   :  { %7343 = vmatprep.subr.mxu1 %v10605_v47 }
0x16b6   :  { %v4357_v7 = vpop.permute.xlu0 %4356 }
0x16b7   :  { %7344 = vmatpush3.msra.mxu1 %v4357_v7 }
0x16b8   :  { %7345 = vmatprep.subr.mxu1 %v10605_v47 }
0x16ba   :  { %v4355_v62 = vpop.permute.xlu0 %4354 }
0x16bb   :  { %7346 = vmatpush3.msra.mxu1 %v4355_v62 }
0x16bc   :  { %7348 = vmatmul.mubr.f32.vlgmr.msra.gmra.mxu1 %v9399_v20 }
0x16be   :  { %v4277_v13 = vpop.permute.xlu0 %4276 }
0x16c2   :  { %v4504_v11 = vpop.permute.xlu0 %4503 }
0x16c6   :  { %v4500_v15 = vpop.permute.xlu0 %4499 }
0x16ca   :  { %v4496_v12 = vpop.permute.xlu0 %4495 }
0x16ce   :  { %v4492_v23 = vpop.permute.xlu0 %4491 }
0x16d2   :  { %v4488_v39 = vpop.permute.xlu0 %4487 }
0x16d6   :  { %v4484_v1 = vpop.permute.xlu0 %4483 }
0x16da   :  { %v4480_v4 = vpop.permute.xlu0 %4479 }
0x16de   :  { %v4476_v18 = vpop.permute.xlu0 %4475 }
0x174b   :  { %v7257_v49 = vpop.f32.mrf.mxu0 }
0x174d   :  { %v4053_v27 = vpop.f32.mrf.mxu0 }
0x174e   :  { %7266 = vmatprep.mubr.msk.f32.mxu0 %vm341_vm1, %v4053_v27  ;;  %v9974_v27 = vld [vmem:[%s10536_s6 + $0x2] ss:$0 sm:$0xff] }
0x174f   :  { %7267 = vmatmul.mubr.msk.f32.vlgmr.msra.gmra.mxu0 %vm341_vm1, %v7257_v49 }
0x1750   :  { %7281 = vmatpush3.msra.mxu0 %v9878_v17  ;;  %7312 = vmatprep.mubr.f32.mxu0 %v9272_v60  ;;  %v4498_v17 = vpop.permute.xlu1 %4497 }
0x1751   :  { %7282 = vmatprep.subr.mxu0 %v4257_v5 }
0x1752   :  { %7283 = vmatpush3.msra.mxu0 %v4257_v5 }
0x1753   :  { %7284 = vmatprep.subr.mxu0 %v4255_v51 }
0x1754   :  { %7285 = vmatpush3.msra.mxu0 %v4255_v51  ;;  %v4494_v21 = vpop.permute.xlu1 %4493 }
0x1755   :  { %7286 = vmatprep.subr.mxu0 %v4253_v41 }
0x1756   :  { %7287 = vmatpush3.msra.mxu0 %v4253_v41 }
0x1757   :  { %7288 = vmatprep.subr.mxu0 %v4251_v30 }
0x1758   :  { %7289 = vmatpush3.msra.mxu0 %v4251_v30  ;;  %v4490_v16 = vpop.permute.xlu1 %4489 }
0x1759   :  { %7290 = vmatprep.subr.mxu0 %v4249_v61 }
0x175a   :  { %7291 = vmatpush3.msra.mxu0 %v4249_v61 }
0x175b   :  { %7292 = vmatprep.subr.mxu0 %v4247_v26 }
0x175c   :  { %7293 = vmatpush3.msra.mxu0 %v4247_v26  ;;  %v4486_v42 = vpop.permute.xlu1 %4485 }
0x175d   :  { %7294 = vmatprep.subr.mxu0 %v4245_v22 }
0x175e   :  { %7295 = vmatpush3.msra.mxu0 %v4245_v22 }
0x175f   :  { %7296 = vmatprep.subr.mxu0 %v4243_v33 }
0x1760   :  { %7297 = vmatpush3.msra.mxu0 %v4243_v33  ;;  %v4482_v63 = vpop.permute.xlu1 %4481 }
0x1761   :  { %7298 = vmatprep.subr.mxu0 %v4241_v28 }
0x1762   :  { %7299 = vmatpush3.msra.mxu0 %v4241_v28 }
0x1763   :  { %7300 = vmatprep.subr.mxu0 %v4239_v25 }
0x1764   :  { %7301 = vmatpush3.msra.mxu0 %v4239_v25  ;;  %v4478_v0 = vpop.permute.xlu1 %4477  ;;  %v7674_v25 = vld [vmem:[%s10531_s5 + $0x1e8] sm:$0xff] }
0x1765   :  { %7302 = vmatprep.subr.mxu0 %v4237_v32 }
0x1766   :  { %7303 = vmatpush3.msra.mxu0 %v4237_v32  ;;  %v7677_v32 = vld [vmem:[%s10531_s5 + $0x1a8] sm:$0xff] }
0x1767   :  { %7304 = vmatprep.subr.mxu0 %v4235_v29 }
0x1768   :  { %7305 = vmatpush3.msra.mxu0 %v4235_v29  ;;  %v7678_v29 = vld [vmem:[%s10531_s5 + $0x1a0] sm:$0xff] }
0x1769   :  { %7306 = vmatprep.subr.mxu0 %v4233_v38 }
0x176a   :  { %7307 = vmatpush3.msra.mxu0 %v4233_v38  ;;  %v7680_v38 = vld [vmem:[%s10531_s5 + $0x180] sm:$0xff] }
0x176b   :  { %7308 = vmatprep.subr.mxu0 %v4231_v46 }
0x176c   :  { %7309 = vmatpush3.msra.mxu0 %v4231_v46  ;;  %v7681_v46 = vld [vmem:[%s10531_s5 + $0x168] sm:$0xff] }
0x176d   :  { %7310 = vmatprep.subr.mxu0 %v4229_v52 }
0x176e   :  { %7311 = vmatpush3.msra.mxu0 %v4229_v52  ;;  %v7682_v52 = vld [vmem:[%s10531_s5 + $0x160] sm:$0xff] }
0x176f   :  { %7313 = vmatmul.mubr.f32.vlgmr.msra.gmra.mxu0 %v9283_v55  ;;  %7350 = vmatprep.subr.mxu0 %v10605_v47 }
0x1770   :  { %7382 = vmatprep.mubr.msk.f32.mxu0 %vm7728_vm0, %v10605_v47  ;;  %7351 = vmatpush3.msra.mxu0 %v4506_v10  ;;  %v7692_v10 = vld [vmem:[%s10531_s5 + $0xc0] sm:$0xff] }
0x1771   :  { %7352 = vmatprep.subr.mxu0 %v10605_v47 }
0x1772   :  { %7353 = vmatpush3.msra.mxu0 %v4504_v11  ;;  %v7693_v11 = vld [vmem:[%s10531_s5 + $0xa8] sm:$0xff] }
0x1773   :  { %7354 = vmatprep.subr.mxu0 %v10605_v47 }
0x1774   :  { %7355 = vmatpush3.msra.mxu0 %v4502_v44  ;;  %v7694_v44 = vld [vmem:[%s10531_s5 + $0xa0] sm:$0xff] }
0x1775   :  { %7356 = vmatprep.subr.mxu0 %v10605_v47 }
0x1776   :  { %7357 = vmatpush3.msra.mxu0 %v4500_v15  ;;  %v7695_v15 = vld [vmem:[%s10531_s5 + $0x88] sm:$0xff] }
0x1777   :  { %7358 = vmatprep.subr.mxu0 %v10605_v47 }
0x1778   :  { %7359 = vmatpush3.msra.mxu0 %v4498_v17  ;;  %v7696_v17 = vld [vmem:[%s10531_s5 + $0x80] sm:$0xff] }
0x1779   :  { %7360 = vmatprep.subr.mxu0 %v10605_v47 }
0x177a   :  { %7361 = vmatpush3.msra.mxu0 %v4496_v12  ;;  %v7697_v12 = vld [vmem:[%s10531_s5 + $0x68] sm:$0xff] }
0x177b   :  { %7362 = vmatprep.subr.mxu0 %v10605_v47 }
0x177c   :  { %v4471_v34 = vpop.f32.mrf.mxu1  ;;  %7363 = vmatpush3.msra.mxu0 %v4494_v21  ;;  %v7698_v21 = vld [vmem:[%s10531_s5 + $0x60] sm:$0xff] }
0x177d   :  { %v4472_v53 = vadd.f32 %v4471_v34, %v4403_v59  ;;  %7364 = vmatprep.subr.mxu0 %v10605_v47  ;;  %v7683_v59 = vld [vmem:[%s10531_s5 + $0x148] sm:$0xff]  ;;  %v7684_v34 = vld [vmem:[%s10531_s5 + $0x140] sm:$0xff] }
0x177e   :  { %v7349_v31 = vpop.f32.mrf.mxu1  ;;  %7365 = vmatpush3.msra.mxu0 %v4492_v23  ;;  %v7699_v23 = vld [vmem:[%s10531_s5 + $0x48] sm:$0xff] }
0x177f   :  { %7385 = vmatprep.subr.msk.mxu1 %vm341_vm1, %v4472_v53  ;;  %7366 = vmatprep.subr.mxu0 %v10605_v47  ;;  %v7686_v31 = vld [vmem:[%s10531_s5 + $0x120] sm:$0xff] }
0x1780   :  { %7386 = vmatpush3.xpose.msk.msra.mxu1 %vm341_vm1, %v4472_v53  ;;  %7367 = vmatpush3.msra.mxu0 %v4490_v16  ;;  %v7685_v53 = vld [vmem:[%s10531_s5 + $0x128] sm:$0xff]  ;;  %v7700_v16 = vld [vmem:[%s10531_s5 + $0x40] sm:$0xff] }
0x1781   :  { %7368 = vmatprep.subr.mxu0 %v10605_v47 }
0x1782   :  { %7369 = vmatpush3.msra.mxu0 %v4488_v39  ;;  %v7701_v39 = vld [vmem:[%s10531_s5 + $0x28] sm:$0xff] }
0x1783   :  { %7370 = vmatprep.subr.mxu0 %v10605_v47 }
0x1784   :  { %7371 = vmatpush3.msra.mxu0 %v4486_v42  ;;  %v7702_v42 = vld [vmem:[%s10531_s5 + $0x20] sm:$0xff] }
0x1785   :  { %7372 = vmatprep.subr.mxu0 %v10605_v47 }
0x1786   :  { %7373 = vmatpush3.msra.mxu0 %v4484_v1  ;;  %v7703_v1 = vld [vmem:[%s10531_s5 + $0x8] sm:$0xff] }
0x1787   :  { %7374 = vmatprep.subr.mxu0 %v10605_v47 }
0x1788   :  { %7375 = vmatpush3.msra.mxu0 %v4482_v63  ;;  %v7704_v63 = vld [vmem:[%s10531_s5] sm:$0xff] }
0x1789   :  { %7376 = vmatprep.subr.mxu0 %v10605_v47 }
0x178a   :  { %7377 = vmatpush3.msra.mxu0 %v4480_v4  ;;  %v7705_v4 = vld [vmem:[%s10536_s6] ss:$0 sm:$0xff] }
0x178b   :  { %7378 = vmatprep.subr.mxu0 %v10605_v47 }
0x178c   :  { %7379 = vmatpush3.msra.mxu0 %v4478_v0  ;;  %v7706_v0 = vld [vmem:[%s10536_s6 + $0x1] ss:$0 sm:$0xff] }
0x178d   :  { %7380 = vmatprep.subr.mxu0 %v10605_v47 }
0x178e   :  { %7381 = vmatpush3.msra.mxu0 %v4476_v18  ;;  %v7707_v18 = vld [vmem:[%s10531_s5 + $0x1d0] sm:$0xff] }
0x178f   :  { %7383 = vmatmul.mubr.f32.vlgmr.msra.gmra.mxu0 %v9945_v6  ;;  %7441 = vmatprep.subr.mxu0 %v10605_v47 }
0x1790   :  { %7473 = vmatprep.mubr.msk.f32.mxu0 %vm7728_vm0, %v10605_v47 }
0x180f   :  { %v9921_v56 = vpop.f32.mrf.mxu0 }
0x1811   :  { %v9923_v35 = vpop.f32.mrf.mxu0 }
0x182f   :  { %v7314_v43 = vpop.f32.mrf.mxu0 }
0x1830   :  { %v4351_v9 = vadd.f32 %v7314_v43, %v4277_v13  ;;  %v7687_v43 = vld [vmem:[%s10531_s5 + $0x108] sm:$0xff] }
0x1831   :  { %v4345_v14 = vpop.f32.mrf.mxu0 }
0x1832   :  { %v4346_v2 = vadd.f32 %v4345_v14, %v4277_v13  ;;  %v7688_v13 = vld [vmem:[%s10531_s5 + $0x100] sm:$0xff]  ;;  %v7689_v14 = vld [vmem:[%s10531_s5 + $0xe8] sm:$0xff] }
0x1834   :  { %7387 = vmatprep.mubr.msk.f32.mxu1 %vm341_vm1, %v4346_v2  ;;  %v7690_v2 = vld [vmem:[%s10531_s5 + $0xe0] sm:$0xff] }
0x1835   :  { %7388 = vmatmul.mubr.msk.f32.vlgmr.msra.gmra.mxu1 %vm341_vm1, %v4351_v9  ;;  %v7691_v9 = vld [vmem:[%s10531_s5 + $0xc8] sm:$0xff] }
0x184f   :  { %v9963_v28 = vpop.f32.mrf.mxu0 }
0x1851   :  { %v7384_v49 = vpop.f32.mrf.mxu0 }
0x18f5   :  { %v7389_v8 = vpop.f32.mrf.mxu1 }
0x18f6   :  { %v4681_v37 = vmul.f32 0.17677669, %v7389_v8  ;;  %v7708_v8 = vld [vmem:[%s10531_s5 + $0x1f0] sm:$0xff] }
0x18f7   :  { %v4671_v3 = vpop.f32.mrf.mxu1 }
0x18f8   :  { %v4683_v36 = vadd.f32 %v4681_v37, %v9569_v24  ;;  %v4680_v58 = vmul.f32 0.17677669, %v4671_v3  ;;  %v7709_v37 = vld [vmem:[%s10531_s5 + $0x190] sm:$0xff] }
0x18f9   :  { %v7710_v3 = vld [vmem:[%s10531_s5 + $0x1b0] sm:$0xff] }
0x18fa   :  { %v4682_v45 = vadd.f32 %v4680_v58, %v9569_v24  ;;  %v4687_v19 = vsel %vm436_vm2, %v4683_v36, -inf  ;;  %v7712_v58 = vld [vmem:[%s10531_s5 + $0x170] sm:$0xff] }
0x18fb   :  { %4688 = vmax.xlane.f32.xlu0 %v4687_v19  ;;  %v7714_v19 = vld [vmem:[%s10531_s5 + $0x130] sm:$0xff] }
0x18fc   :  { %v4684_v50 = vsel %vm436_vm2, %v4682_v45, -inf }
0x18fd   :  { %4685 = vmax.xlane.f32.xlu1 %v4684_v50  ;;  %v7715_v50 = vld [vmem:[%s10531_s5 + $0xd0] sm:$0xff] }
0x1984   :  { %v4689_v7 = vpop.xlane.xlu0 %4688 }
0x1985   :  { %v4691_v62 = vsub.f32 %v4683_v36, %v4689_v7  ;;  %v7711_v36 = vld [vmem:[%s10531_s5 + $0x150] sm:$0xff] }
0x1986   :  { %v4686_v5 = vpop.xlane.xlu1 %4685  ;;  %v7716_v7 = vld [vmem:[%s10531_s5 + $0xf0] sm:$0xff] }
0x1987   :  { %v4694_v51 = vmul.f32 1.442695, %v4691_v62  ;;  %v4690_v41 = vsub.f32 %v4682_v45, %v4686_v5  ;;  %v7713_v45 = vld [vmem:[%s10531_s5 + $0x110] sm:$0xff] }
0x1988   :  { %v7717_v62 = vld [vmem:[%s10531_s5 + $0x90] sm:$0xff] }
0x1989   :  { %7589 = vpow2.f32 %v4694_v51  ;;  %v4692_v30 = vmul.f32 1.442695, %v4690_v41  ;;  %v7718_v5 = vld [vmem:[%s10531_s5 + $0xb0] sm:$0xff] }
0x198a   :  { %v7719_v51 = vld [vmem:[%s10531_s5 + $0x50] sm:$0xff] }
0x198b   :  { %7591 = vpow2.f32 %v4692_v30  ;;  %v7720_v41 = vld [vmem:[%s10531_s5 + $0x70] sm:$0xff] }
0x198c   :  { %v7721_v30 = vld [vmem:[%s10531_s5 + $0x10] sm:$0xff] }
0x1996   :  { %v9955_v61 = vpop.eup %7589 }
0x1997   :  { %v4699_v26 = vsel %vm436_vm2, %v9955_v61, 0.0 }
0x1998   :  { %v9959_v22 = vpop.eup %7591  ;;  %4700 = vadd.xlane.f32.xlu1 %v4699_v26  ;;  %v7722_v26 = vld [vmem:[%s10531_s5 + $0x30] sm:$0xff] }
0x1999   :  { %v4696_v33 = vsel %vm436_vm2, %v9959_v22, 0.0 }
0x199a   :  { %4697 = vadd.xlane.f32.xlu0 %v4696_v33 }
0x19a9   :  { %4907 = vrot.lane.b32.xlu1 %v9817_v40, %s7731_s20  ;;  %v7676_v40 = vld [vmem:[%s10531_s5 + $0x1c0] sm:$0xff] }
0x19ad   :  { %5033 = vrot.lane.b32.xlu1 %v7674_v25, %s7731_s20 }
0x19b0   :  { %4523 = vrot.lane.b32.xlu0 %v9974_v27, %s7730_s22 }
0x19b1   :  { %5031 = vrot.lane.b32.xlu1 %v9824_v48, %s7731_s20  ;;  %v7679_v48 = vld [vmem:[%s10531_s5 + $0x188] sm:$0xff] }
0x19b4   :  { %4905 = vrot.lane.b32.xlu0 %v7676_v40, %s7731_s20 }
0x19b5   :  { %5029 = vrot.lane.b32.xlu1 %v7677_v32, %s7731_s20 }
0x19b8   :  { %4903 = vrot.lane.b32.xlu0 %v7678_v29, %s7731_s20  ;;  %v4227_v29 = vld [vmem:[%s10531_s5 + $0x178] sm:$0xff] }
0x19b9   :  { %5027 = vrot.lane.b32.xlu1 %v7679_v48, %s7731_s20 }
0x19bc   :  { %4901 = vrot.lane.b32.xlu0 %v7680_v38, %s7731_s20 }
0x19bd   :  { %5025 = vrot.lane.b32.xlu1 %v7681_v46, %s7731_s20 }
0x19c0   :  { %4899 = vrot.lane.b32.xlu0 %v7682_v52, %s7731_s20 }
0x19c1   :  { %5023 = vrot.lane.b32.xlu1 %v7683_v59, %s7731_s20 }
0x19c4   :  { %4897 = vrot.lane.b32.xlu0 %v7684_v34, %s7731_s20 }
0x19c5   :  { %5021 = vrot.lane.b32.xlu1 %v7685_v53, %s7731_s20  ;;  %v4226_v53 = vld [vmem:[%s10531_s5 + $0x158] sm:$0xff] }
0x19c8   :  { %4895 = vrot.lane.b32.xlu0 %v7686_v31, %s7731_s20 }
0x19c9   :  { %5019 = vrot.lane.b32.xlu1 %v7687_v43, %s7731_s20  ;;  %v4225_v43 = vld [vmem:[%s10531_s5 + $0x138] sm:$0xff] }
0x19cc   :  { %4893 = vrot.lane.b32.xlu0 %v7688_v13, %s7731_s20 }
0x19cd   :  { %5017 = vrot.lane.b32.xlu1 %v7689_v14, %s7731_s20 }
0x19d0   :  { %4891 = vrot.lane.b32.xlu0 %v7690_v2, %s7731_s20 }
0x19d1   :  { %5015 = vrot.lane.b32.xlu1 %v7691_v9, %s7731_s20 }
0x19d4   :  { %4889 = vrot.lane.b32.xlu0 %v7692_v10, %s7731_s20 }
0x19d5   :  { %5013 = vrot.lane.b32.xlu1 %v7693_v11, %s7731_s20 }
0x19d8   :  { %4887 = vrot.lane.b32.xlu0 %v7694_v44, %s7731_s20 }
0x19d9   :  { %5011 = vrot.lane.b32.xlu1 %v7695_v15, %s7731_s20 }
0x19dc   :  { %4885 = vrot.lane.b32.xlu0 %v7696_v17, %s7731_s20 }
0x19dd   :  { %5009 = vrot.lane.b32.xlu1 %v7697_v12, %s7731_s20 }
0x19e0   :  { %4883 = vrot.lane.b32.xlu0 %v7698_v21, %s7731_s20 }
0x19e1   :  { %5007 = vrot.lane.b32.xlu1 %v7699_v23, %s7731_s20 }
0x19e4   :  { %4881 = vrot.lane.b32.xlu0 %v7700_v16, %s7731_s20 }
0x19e5   :  { %5005 = vrot.lane.b32.xlu1 %v7701_v39, %s7731_s20 }
0x19e8   :  { %4879 = vrot.lane.b32.xlu0 %v7702_v42, %s7731_s20 }
0x19e9   :  { %5003 = vrot.lane.b32.xlu1 %v7703_v1, %s7731_s20 }
0x19ec   :  { %4877 = vrot.lane.b32.xlu0 %v7704_v63, %s7731_s20 }
0x19ed   :  { %4925 = vrot.lane.b32.xlu1 %v7705_v4, %s7731_s20 }
0x19f0   :  { %5051 = vrot.lane.b32.xlu0 %v7706_v0, %s7731_s20 }
0x19f1   :  { %5152 = vrot.lane.b32.xlu1 %v7707_v18, %s7731_s20 }
0x19f4   :  { %5154 = vrot.lane.b32.xlu0 %v7708_v8, %s7731_s20 }
0x19f5   :  { %5148 = vrot.lane.b32.xlu1 %v7709_v37, %s7731_s20 }
0x19f8   :  { %5150 = vrot.lane.b32.xlu0 %v7710_v3, %s7731_s20 }
0x19f9   :  { %5144 = vrot.lane.b32.xlu1 %v7711_v36, %s7731_s20 }
0x19fc   :  { %5146 = vrot.lane.b32.xlu0 %v7712_v58, %s7731_s20 }
0x19fd   :  { %5140 = vrot.lane.b32.xlu1 %v7713_v45, %s7731_s20 }
0x1a00   :  { %5142 = vrot.lane.b32.xlu0 %v7714_v19, %s7731_s20 }
0x1a01   :  { %5136 = vrot.lane.b32.xlu1 %v7715_v50, %s7731_s20 }
0x1a04   :  { %5138 = vrot.lane.b32.xlu0 %v7716_v7, %s7731_s20 }
0x1a05   :  { %5132 = vrot.lane.b32.xlu1 %v7717_v62, %s7731_s20 }
0x1a08   :  { %5134 = vrot.lane.b32.xlu0 %v7718_v5, %s7731_s20  ;;  %v4221_v5 = vadd.f32 %v9915_v54, %v9921_v56 }
0x1a09   :  { %5128 = vrot.lane.b32.xlu1 %v7719_v51, %s7731_s20 }
0x1a0c   :  { %5130 = vrot.lane.b32.xlu0 %v7720_v41, %s7731_s20 }
0x1a0d   :  { %5124 = vrot.lane.b32.xlu1 %v7721_v30, %s7731_s20 }
0x1a10   :  { %5126 = vrot.lane.b32.xlu0 %v7722_v26, %s7731_s20 }
0x1a21   :  { %v4701_v33 = vpop.xlane.xlu1 %4700 }
0x1a22   :  { %7593 = vrcp.f32 %v4701_v33 }
0x1a23   :  { %v4698_v49 = vpop.xlane.xlu0 %4697 }
0x1a24   :  { %7595 = vrcp.f32 %v4698_v49 }
0x1a25   :  { %v10168_v25 = vpop.permute.xlu1 %4907 }
0x1a27   :  { %v4524_v40 = vpop.permute.xlu0 %4523 }
0x1a28   :  { %v4593_v32 = vadd.f32 %v9963_v28, %v4524_v40 }
0x1a29   :  { %v5034_v48 = vpop.permute.xlu1 %5033 }
0x1a2a   :  { %7390 = vmatprep.subr.msk.mxu1 %vm465_vm3, %v4593_v32  ;;  %7442 = vmatpush3.msra.mxu0 %v5034_v48 }
0x1a2b   :  { %7391 = vmatpush3.msk.msra.mxu1 %vm465_vm3, %v4593_v32  ;;  %7443 = vmatprep.subr.mxu0 %v10605_v47  ;;  %v4906_v23 = vpop.permute.xlu0 %4905 }
0x1a2c   :  { %7395 = vmatprep.subr.mxu1 %v4227_v29 }
0x1a2d   :  { %v5032_v38 = vpop.permute.xlu1 %5031 }
0x1a2e   :  { %7444 = vmatpush3.msra.mxu0 %v5032_v38 }
0x1a2f   :  { %7445 = vmatprep.subr.mxu0 %v10605_v47  ;;  %v7594_v46 = vpop.eup %7593  ;;  %v4904_v16 = vpop.permute.xlu0 %4903 }
0x1a30   :  { %v4705_v34 = vmul.f32 %v7594_v46, %v9955_v61  ;;  %v4224_v61 = vld [vmem:[%s10531_s5 + $0x118] sm:$0xff] }
0x1a31   :  { %v7596_v52 = vpop.eup %7595  ;;  %v5030_v28 = vpop.permute.xlu1 %5029 }
0x1a32   :  { %v4704_v59 = vmul.f32 %v7596_v52, %v9959_v22  ;;  %7446 = vmatpush3.msra.mxu0 %v5030_v28 }
0x1a33   :  { %7447 = vmatprep.subr.mxu0 %v10605_v47  ;;  %v4902_v39 = vpop.permute.xlu0 %4901 }
0x1a34   :  { %7392 = vmatprep.mubr.msk.f32.mxu1 %vm436_vm2, %v4704_v59 }
0x1a35   :  { %7393 = vmatmul.mubr.msk.f32.vlgmr.msra.gmra.mxu1 %vm436_vm2, %v4705_v34  ;;  %v5028_v31 = vpop.permute.xlu1 %5027 }
0x1a36   :  { %7396 = vmatpush3.msra.mxu1 %v4227_v29  ;;  %7448 = vmatpush3.msra.mxu0 %v5028_v31 }
0x1a37   :  { %7397 = vmatprep.subr.mxu1 %v4226_v53  ;;  %7449 = vmatprep.subr.mxu0 %v10605_v47  ;;  %v4900_v42 = vpop.permute.xlu0 %4899 }
0x1a38   :  { %7398 = vmatpush3.msra.mxu1 %v4226_v53 }
0x1a39   :  { %7399 = vmatprep.subr.mxu1 %v4225_v43  ;;  %v5026_v22 = vpop.permute.xlu1 %5025 }
0x1a3a   :  { %7400 = vmatpush3.msra.mxu1 %v4225_v43  ;;  %7450 = vmatpush3.msra.mxu0 %v5026_v22 }
0x1a3b   :  { %7401 = vmatprep.subr.mxu1 %v4224_v61  ;;  %7451 = vmatprep.subr.mxu0 %v10605_v47  ;;  %v4898_v1 = vpop.permute.xlu0 %4897 }
0x1a3c   :  { %7402 = vmatpush3.msra.mxu1 %v4224_v61 }
0x1a3d   :  { %7406 = vmatprep.subr.mxu1 %v10168_v25  ;;  %v5024_v13 = vpop.permute.xlu1 %5023 }
0x1a3e   :  { %7452 = vmatpush3.msra.mxu0 %v5024_v13 }
0x1a3f   :  { %7453 = vmatprep.subr.mxu0 %v10605_v47  ;;  %v4896_v63 = vpop.permute.xlu0 %4895 }
0x1a41   :  { %v5022_v14 = vpop.permute.xlu1 %5021 }
0x1a42   :  { %7454 = vmatpush3.msra.mxu0 %v5022_v14 }
0x1a43   :  { %7455 = vmatprep.subr.mxu0 %v10605_v47  ;;  %v4894_v4 = vpop.permute.xlu0 %4893 }
0x1a45   :  { %v5020_v2 = vpop.permute.xlu1 %5019 }
0x1a46   :  { %7456 = vmatpush3.msra.mxu0 %v5020_v2 }
0x1a47   :  { %7457 = vmatprep.subr.mxu0 %v10605_v47  ;;  %v4892_v0 = vpop.permute.xlu0 %4891 }
0x1a49   :  { %v5018_v9 = vpop.permute.xlu1 %5017 }
0x1a4a   :  { %7458 = vmatpush3.msra.mxu0 %v5018_v9 }
0x1a4b   :  { %7459 = vmatprep.subr.mxu0 %v10605_v47  ;;  %v4890_v18 = vpop.permute.xlu0 %4889 }
0x1a4d   :  { %v5016_v10 = vpop.permute.xlu1 %5015 }
0x1a4e   :  { %7460 = vmatpush3.msra.mxu0 %v5016_v10 }
0x1a4f   :  { %7461 = vmatprep.subr.mxu0 %v10605_v47  ;;  %v4888_v37 = vpop.permute.xlu0 %4887 }
0x1a51   :  { %v5014_v11 = vpop.permute.xlu1 %5013 }
0x1a52   :  { %7462 = vmatpush3.msra.mxu0 %v5014_v11 }
0x1a53   :  { %7463 = vmatprep.subr.mxu0 %v10605_v47 }
0x1a55   :  { %v5012_v44 = vpop.permute.xlu1 %5011 }
0x1a56   :  { %7464 = vmatpush3.msra.mxu0 %v5012_v44 }
0x1a57   :  { %7465 = vmatprep.subr.mxu0 %v10605_v47 }
0x1a59   :  { %v5010_v15 = vpop.permute.xlu1 %5009 }
0x1a5a   :  { %7466 = vmatpush3.msra.mxu0 %v5010_v15  ;;  %v10654_v15 = vld [vmem:[#allocation19_spill] sm:$0xff] }
0x1a5b   :  { %7467 = vmatprep.subr.mxu0 %v10605_v47 }
0x1a5d   :  { %v5008_v17 = vpop.permute.xlu1 %5007 }
0x1a5e   :  { %7468 = vmatpush3.msra.mxu0 %v5008_v17 }
0x1a5f   :  { %7469 = vmatprep.subr.mxu0 %v10605_v47 }
0x1a61   :  { %v5006_v12 = vpop.permute.xlu1 %5005 }
0x1a62   :  { %7470 = vmatpush3.msra.mxu0 %v5006_v12  ;;  %v10655_v12 = vld [vmem:[#allocation3_spill] sm:$0xff] }
0x1a63   :  { %7471 = vmatprep.subr.mxu0 %v10605_v47 }
0x1a65   :  { %v5004_v21 = vpop.permute.xlu1 %5003 }
0x1a66   :  { %7472 = vmatpush3.msra.mxu0 %v5004_v21 }
0x1a67   :  { %7474 = vmatmul.mubr.f32.vlgmr.msra.gmra.mxu0 %v9399_v20  ;;  %v4886_v20 = vpop.permute.xlu0 %4885 }
0x1a69   :  { %v4926_v49 = vpop.permute.xlu1 %4925 }
0x1a6b   :  { %v4884_v36 = vpop.permute.xlu0 %4883 }
0x1a6d   :  { %v5153_v54 = vpop.permute.xlu1 %5152 }
0x1a6f   :  { %v4882_v58 = vpop.permute.xlu0 %4881 }
0x1a71   :  { %v5149_v56 = vpop.permute.xlu1 %5148 }
0x1a75   :  { %v5145_v48 = vpop.permute.xlu1 %5144 }
0x1a79   :  { %v5141_v46 = vpop.permute.xlu1 %5140 }
0x1a7d   :  { %v5137_v28 = vpop.permute.xlu1 %5136 }
0x1a81   :  { %v5133_v34 = vpop.permute.xlu1 %5132 }
0x1a85   :  { %v5129_v31 = vpop.permute.xlu1 %5128 }
0x1a89   :  { %v5125_v61 = vpop.permute.xlu1 %5124 }
0x1af5   :  { %v7394_v8 = vpop.f32.mrf.mxu1 }
0x1af7   :  { %v4781_v3 = vpop.f32.mrf.mxu1 }
0x1af8   :  { %7403 = vmatprep.mubr.msk.f32.mxu1 %vm341_vm1, %v4781_v3 }
0x1af9   :  { %7404 = vmatmul.mubr.msk.f32.vlgmr.msra.gmra.mxu1 %vm341_vm1, %v7394_v8 }
0x1afa   :  { %7407 = vmatpush3.msra.mxu1 %v10168_v25  ;;  %7438 = vmatprep.mubr.f32.mxu1 %v9272_v60  ;;  %v4880_v60 = vpop.permute.xlu0 %4879 }
0x1afb   :  { %7408 = vmatprep.subr.mxu1 %v4906_v23 }
0x1afc   :  { %7409 = vmatpush3.msra.mxu1 %v4906_v23 }
0x1afd   :  { %7410 = vmatprep.subr.mxu1 %v4904_v16 }
0x1afe   :  { %7411 = vmatpush3.msra.mxu1 %v4904_v16  ;;  %v4878_v45 = vpop.permute.xlu0 %4877 }
0x1aff   :  { %7412 = vmatprep.subr.mxu1 %v4902_v39 }
0x1b00   :  { %7413 = vmatpush3.msra.mxu1 %v4902_v39 }
0x1b01   :  { %7414 = vmatprep.subr.mxu1 %v4900_v42 }
0x1b02   :  { %7415 = vmatpush3.msra.mxu1 %v4900_v42  ;;  %v5052_v19 = vpop.permute.xlu0 %5051 }
0x1b03   :  { %7416 = vmatprep.subr.mxu1 %v4898_v1 }
0x1b04   :  { %7417 = vmatpush3.msra.mxu1 %v4898_v1 }
0x1b05   :  { %7418 = vmatprep.subr.mxu1 %v4896_v63 }
0x1b06   :  { %7419 = vmatpush3.msra.mxu1 %v4896_v63  ;;  %v5155_v29 = vpop.permute.xlu0 %5154 }
0x1b07   :  { %7420 = vmatprep.subr.mxu1 %v4894_v4 }
0x1b08   :  { %7421 = vmatpush3.msra.mxu1 %v4894_v4 }
0x1b09   :  { %7422 = vmatprep.subr.mxu1 %v4892_v0 }
0x1b0a   :  { %7423 = vmatpush3.msra.mxu1 %v4892_v0 }
0x1b0b   :  { %7424 = vmatprep.subr.mxu1 %v4890_v18 }
0x1b0c   :  { %7425 = vmatpush3.msra.mxu1 %v4890_v18 }
0x1b0d   :  { %7426 = vmatprep.subr.mxu1 %v4888_v37 }
0x1b0e   :  { %7427 = vmatpush3.msra.mxu1 %v4888_v37 }
0x1b0f   :  { %7428 = vmatprep.subr.mxu1 %v4886_v20 }
0x1b10   :  { %7429 = vmatpush3.msra.mxu1 %v4886_v20  ;;  %v4876_v20 = vld [vmem:[%s10531_s5 + $0x1f8] sm:$0xff] }
0x1b11   :  { %7430 = vmatprep.subr.mxu1 %v4884_v36 }
0x1b12   :  { %7431 = vmatpush3.msra.mxu1 %v4884_v36 }
0x1b13   :  { %7432 = vmatprep.subr.mxu1 %v4882_v58 }
0x1b14   :  { %7433 = vmatpush3.msra.mxu1 %v4882_v58 }
0x1b15   :  { %7434 = vmatprep.subr.mxu1 %v4880_v60 }
0x1b16   :  { %7435 = vmatpush3.msra.mxu1 %v4880_v60 }
0x1b17   :  { %7436 = vmatprep.subr.mxu1 %v4878_v45 }
0x1b18   :  { %7437 = vmatpush3.msra.mxu1 %v4878_v45 }
0x1b19   :  { %7439 = vmatmul.mubr.f32.vlgmr.msra.gmra.mxu1 %v9283_v55  ;;  %7476 = vmatprep.subr.mxu1 %v10605_v47  ;;  %v4216_v55 = vadd.f32 %v9917_v57, %v9923_v35  ;;  %v5151_v57 = vpop.permute.xlu0 %5150 }
0x1b1a   :  { %7508 = vmatprep.mubr.msk.f32.mxu1 %vm7728_vm0, %v10605_v47  ;;  %7477 = vmatpush3.msra.mxu1 %v5155_v29 }
0x1b1b   :  { %7478 = vmatprep.subr.mxu1 %v10605_v47 }
0x1b1c   :  { %7479 = vmatpush3.msra.mxu1 %v5153_v54  ;;  %v7725_v54 = vld [vmem:[%s10532_s0 + $0x10] sm:$0xff] }
0x1b1d   :  { %7480 = vmatprep.subr.mxu1 %v10605_v47  ;;  %v5147_v35 = vpop.permute.xlu0 %5146 }
0x1b1e   :  { %7481 = vmatpush3.msra.mxu1 %v5151_v57 }
0x1b1f   :  { %7482 = vmatprep.subr.mxu1 %v10605_v47 }
0x1b20   :  { %7483 = vmatpush3.msra.mxu1 %v5149_v56  ;;  %v7726_v56 = vld [vmem:[%s10532_s0 + $0x18] sm:$0xff] }
0x1b21   :  { %7484 = vmatprep.subr.mxu1 %v10605_v47  ;;  %v5143_v38 = vpop.permute.xlu0 %5142 }
0x1b22   :  { %7485 = vmatpush3.msra.mxu1 %v5147_v35 }
0x1b23   :  { %7486 = vmatprep.subr.mxu1 %v10605_v47 }
0x1b24   :  { %7487 = vmatpush3.msra.mxu1 %v5145_v48  ;;  %v5591_v48 = vld [vmem:[%s10538_s7 + $0xe8] sm:$0xff] }
0x1b25   :  { %7488 = vmatprep.subr.mxu1 %v10605_v47  ;;  %v5139_v52 = vpop.permute.xlu0 %5138 }
0x1b26   :  { %7489 = vmatpush3.msra.mxu1 %v5143_v38  ;;  %v5590_v38 = vld [vmem:[%s10538_s7 + $0xe0] sm:$0xff] }
0x1b27   :  { %v5120_v50 = vpop.f32.mrf.mxu0  ;;  %7490 = vmatprep.subr.mxu1 %v10605_v47 }
0x1b28   :  { %v5121_v7 = vadd.f32 %v5120_v50, %v5052_v19  ;;  %7491 = vmatpush3.msra.mxu1 %v5141_v46  ;;  %v5589_v46 = vld [vmem:[%s10538_s7 + $0xd8] sm:$0xff] }
0x1b29   :  { %v7475_v62 = vpop.f32.mrf.mxu0  ;;  %7492 = vmatprep.subr.mxu1 %v10605_v47  ;;  %v5135_v59 = vpop.permute.xlu0 %5134 }
0x1b2a   :  { %7511 = vmatprep.subr.msk.mxu0 %vm341_vm1, %v5121_v7  ;;  %7493 = vmatpush3.msra.mxu1 %v5139_v52  ;;  %v4874_v62 = vld [vmem:[%s10531_s5 + $0x1b8] sm:$0xff]  ;;  %v5588_v52 = vld [vmem:[%s10538_s7 + $0xd0] sm:$0xff] }
0x1b2b   :  { %7512 = vmatpush3.xpose.msk.msra.mxu0 %vm341_vm1, %v5121_v7  ;;  %7494 = vmatprep.subr.mxu1 %v10605_v47  ;;  %v4875_v7 = vld [vmem:[%s10531_s5 + $0x1d8] sm:$0xff] }
0x1b2c   :  { %7495 = vmatpush3.msra.mxu1 %v5137_v28  ;;  %v5587_v28 = vld [vmem:[%s10538_s7 + $0xc8] sm:$0xff] }
0x1b2d   :  { %7496 = vmatprep.subr.mxu1 %v10605_v47  ;;  %v5131_v53 = vpop.permute.xlu0 %5130 }
0x1b2e   :  { %7497 = vmatpush3.msra.mxu1 %v5135_v59  ;;  %v5586_v59 = vld [vmem:[%s10538_s7 + $0xc0] sm:$0xff] }
0x1b2f   :  { %7498 = vmatprep.subr.mxu1 %v10605_v47 }
0x1b30   :  { %7499 = vmatpush3.msra.mxu1 %v5133_v34 }
0x1b31   :  { %7500 = vmatprep.subr.mxu1 %v10605_v47  ;;  %v5127_v43 = vpop.permute.xlu0 %5126 }
0x1b32   :  { %7501 = vmatpush3.msra.mxu1 %v5131_v53 }
0x1b33   :  { %7502 = vmatprep.subr.mxu1 %v10605_v47 }
0x1b34   :  { %7503 = vmatpush3.msra.mxu1 %v5129_v31 }
0x1b35   :  { %7504 = vmatprep.subr.mxu1 %v10605_v47 }
0x1b36   :  { %7505 = vmatpush3.msra.mxu1 %v5127_v43 }
0x1b37   :  { %7506 = vmatprep.subr.mxu1 %v10605_v47 }
0x1b38   :  { %7507 = vmatpush3.msra.mxu1 %v5125_v61 }
0x1b39   :  { %7509 = vmatmul.mubr.f32.vlgmr.msra.gmra.mxu1 %v9945_v6  ;;  %v7723_v6 = vld [vmem:[%s10542_s10] ss:$0 sm:$0xff] }
0x1b3a   :  { %v2901_v17 = vadd.f32 %v7723_v6, %v10654_v15  ;;  %v5583_v6 = vld [vmem:[%s10538_s7 + $0xa8] sm:$0xff]  ;;  %v5582_v15 = vld [vmem:[%s10538_s7 + $0xa0] sm:$0xff] }
0x1b3c   :  { %v10253_v21 = vadd.f32 %v2901_v17, %v10655_v12  ;;  %v5581_v17 = vld [vmem:[%s10538_s7 + $0x98] sm:$0xff]  ;;  %v5580_v12 = vld [vmem:[%s10538_s7 + $0x90] sm:$0xff] }
0x1bb9   :  { %v7405_v51 = vpop.f32.mrf.mxu1 }
0x1bba   :  { %v10220_v41 = vadd.f32 %v7405_v51, %v4221_v5  ;;  %v4873_v5 = vld [vmem:[%s10531_s5 + $0x198] sm:$0xff] }
0x1bbb   :  { %v4862_v30 = vpop.f32.mrf.mxu1 }
0x1bbc   :  { %v10222_v26 = vadd.f32 %v4862_v30, %v4216_v55 }
0x1bd9   :  { %v7440_v33 = vpop.f32.mrf.mxu1 }
0x1bda   :  { %v5000_v32 = vadd.f32 %v7440_v33, %v4926_v49 }
0x1bdb   :  { %v4994_v25 = vpop.f32.mrf.mxu1 }
0x1bdc   :  { %v4995_v40 = vadd.f32 %v4994_v25, %v4926_v49 }
0x1bde   :  { %7513 = vmatprep.mubr.msk.f32.mxu0 %vm341_vm1, %v4995_v40  ;;  %v7724_v40 = vld [vmem:[%s10536_s6 + $0x3] ss:$0 sm:$0xff] }
0x1bdf   :  { %7514 = vmatmul.mubr.msk.f32.vlgmr.msra.gmra.mxu0 %vm341_vm1, %v5000_v32 }
0x1bf9   :  { %v5241_v8 = vpop.f32.mrf.mxu1 }
0x1bfb   :  { %v7510_v3 = vpop.f32.mrf.mxu1 }
0x1bfc   :  { %v5566_v3 = vld [vmem:[%s10538_s7 + $0x20] sm:$0xff] }
0x1c9f   :  { %v7515_v22 = vpop.f32.mrf.mxu0 }
0x1ca0   :  { %v5330_v13 = vmul.f32 0.17677669, %v7515_v22 }
0x1ca1   :  { %v5320_v14 = vpop.f32.mrf.mxu0 }
0x1ca2   :  { %v5332_v2 = vadd.f32 %v5330_v13, %v9569_v24  ;;  %v5329_v9 = vmul.f32 0.17677669, %v5320_v14 }
0x1ca4   :  { %v5331_v10 = vadd.f32 %v5329_v9, %v9569_v24  ;;  %v5336_v11 = vsel %vm436_vm2, %v5332_v2, -inf  ;;  %v10657_v9 = vld [vmem:[#allocation14_spill] sm:$0xff] }
0x1ca5   :  { %5337 = vmax.xlane.f32.xlu1 %v5336_v11  ;;  %v5585_v11 = vld [vmem:[%s10538_s7 + $0xb8] sm:$0xff] }
0x1ca6   :  { %v5333_v44 = vsel %vm436_vm2, %v5331_v10, -inf }
0x1ca7   :  { %5334 = vmax.xlane.f32.xlu0 %v5333_v44  ;;  %v5584_v44 = vld [vmem:[%s10538_s7 + $0xb0] sm:$0xff] }
0x1cb6   :  { %5172 = vrot.lane.b32.xlu1 %v9974_v27, %s7731_s20 }
0x1cda   :  { %2910 = vadd.xlane.f32.xlu1 %v10253_v21 }
0x1d2e   :  { %v5338_v24 = vpop.xlane.xlu1 %5337 }
0x1d2f   :  { %v5340_v23 = vsub.f32 %v5332_v2, %v5338_v24  ;;  %v10656_v2 = vld [vmem:[#allocation2_spill] sm:$0xff]  ;;  %v5579_v24 = vld [vmem:[%s10538_s7 + $0x88] sm:$0xff] }
0x1d30   :  { %v5335_v16 = vpop.xlane.xlu0 %5334 }
0x1d31   :  { %v5339_v39 = vsub.f32 %v5331_v10, %v5335_v16  ;;  %v5343_v42 = vmul.f32 1.442695, %v5340_v23  ;;  %v10322_v10 = vadd.f32 %v10657_v9, %v10656_v2  ;;  %v5578_v23 = vld [vmem:[%s10538_s7 + $0x80] sm:$0xff]  ;;  %v5577_v16 = vld [vmem:[%s10538_s7 + $0x78] sm:$0xff] }
0x1d32   :  { %v5173_v18 = vpop.permute.xlu1 %5172  ;;  %v5930_v2 = vld [vmem:[%s10540_s11 + $0x1] ss:$0 sm:$0xff] }
0x1d33   :  { %v5341_v1 = vmul.f32 1.442695, %v5339_v39  ;;  %v5242_v37 = vadd.f32 %v5241_v8, %v5173_v18  ;;  %v5576_v39 = vld [vmem:[%s10538_s7 + $0x70] sm:$0xff]  ;;  %v5569_v18 = vld [vmem:[%s10538_s7 + $0x38] sm:$0xff] }
0x1d34   :  { %v5568_v8 = vld [vmem:[%s10538_s7 + $0x30] sm:$0xff] }
0x1d35   :  { %7597 = vpow2.f32 %v5341_v1  ;;  %7516 = vmatprep.subr.msk.mxu0 %vm465_vm3, %v5242_v37  ;;  %v5574_v1 = vld [vmem:[%s10538_s7 + $0x60] sm:$0xff] }
0x1d36   :  { %7599 = vpow2.f32 %v5343_v42  ;;  %7517 = vmatpush3.msk.msra.mxu0 %vm465_vm3, %v5242_v37  ;;  %v5575_v42 = vld [vmem:[%s10538_s7 + $0x68] sm:$0xff] }
0x1d37   :  { %7521 = vmatprep.subr.mxu0 %v4876_v20  ;;  %v5567_v37 = vld [vmem:[%s10538_s7 + $0x28] sm:$0xff] }
0x1d42   :  { %v7598_v27 = vpop.eup %7597 }
0x1d43   :  { %v5345_v63 = vsel %vm436_vm2, %v7598_v27, 0.0  ;;  %v7600_v4 = vpop.eup %7599 }
0x1d44   :  { %5346 = vadd.xlane.f32.xlu0 %v5345_v63  ;;  %v5348_v0 = vsel %vm436_vm2, %v7600_v4, 0.0  ;;  %v5572_v63 = vld [vmem:[%s10538_s7 + $0x50] sm:$0xff] }
0x1d48   :  { %5349 = vadd.xlane.f32.xlu0 %v5348_v0  ;;  %v5570_v0 = vld [vmem:[%s10538_s7 + $0x40] sm:$0xff] }
0x1dcd   :  { %v5347_v36 = vpop.xlane.xlu0 %5346 }
0x1dce   :  { %7601 = vrcp.f32 %v5347_v36  ;;  %v5564_v36 = vld [vmem:[%s10538_s7 + $0x10] sm:$0xff] }
0x1dd1   :  { %v5350_v58 = vpop.xlane.xlu0 %5349 }
0x1dd2   :  { %7603 = vrcp.f32 %v5350_v58  ;;  %v5563_v58 = vld [vmem:[%s10538_s7 + $0x8] sm:$0xff] }
0x1ddb   :  { %v7602_v60 = vpop.eup %7601 }
0x1ddc   :  { %v5353_v45 = vmul.f32 %v7602_v60, %v7598_v27  ;;  %v5573_v27 = vld [vmem:[%s10538_s7 + $0x58] sm:$0xff]  ;;  %v5562_v60 = vld [vmem:[%s10538_s7] sm:$0xff] }
0x1dde   :  { %7518 = vmatprep.mubr.msk.f32.mxu0 %vm436_vm2, %v5353_v45  ;;  %v5718_v45 = vld [vmem:[%s10539_s9 + $0xf8] sm:$0xff] }
0x1ddf   :  { %v7604_v19 = vpop.eup %7603  ;;  %6486 = vmatprep.subr.mxu1 %v5718_v45 }
0x1de0   :  { %v5354_v50 = vmul.f32 %v7604_v19, %v7600_v4  ;;  %v5571_v4 = vld [vmem:[%s10538_s7 + $0x48] sm:$0xff]  ;;  %v5702_v19 = vld [vmem:[%s10539_s9 + $0x78] sm:$0xff] }
0x1de1   :  { %6487 = vmatpush3.msra.mxu1 %v5702_v19 }
0x1de2   :  { %7519 = vmatmul.mubr.msk.f32.vlgmr.msra.gmra.mxu0 %vm436_vm2, %v5354_v50  ;;  %v5717_v50 = vld [vmem:[%s10539_s9 + $0xf0] sm:$0xff] }
0x1de3   :  { %7522 = vmatpush3.msra.mxu0 %v4876_v20  ;;  %v5565_v20 = vld [vmem:[%s10538_s7 + $0x18] sm:$0xff]  ;;  %6488 = vmatprep.subr.mxu1 %v5717_v50 }
0x1de4   :  { %7523 = vmatprep.subr.mxu0 %v4875_v7 }
0x1de5   :  { %7524 = vmatpush3.msra.mxu0 %v4875_v7  ;;  %v5701_v7 = vld [vmem:[%s10539_s9 + $0x70] sm:$0xff] }
0x1de6   :  { %7525 = vmatprep.subr.mxu0 %v4874_v62  ;;  %6489 = vmatpush3.msra.mxu1 %v5701_v7 }
0x1de7   :  { %7526 = vmatpush3.msra.mxu0 %v4874_v62  ;;  %v5716_v62 = vld [vmem:[%s10539_s9 + $0xe8] sm:$0xff] }
0x1de8   :  { %7527 = vmatprep.subr.mxu0 %v4873_v5  ;;  %6490 = vmatprep.subr.mxu1 %v5716_v62 }
0x1de9   :  { %7528 = vmatpush3.msra.mxu0 %v4873_v5  ;;  %v5700_v5 = vld [vmem:[%s10539_s9 + $0x68] sm:$0xff] }
0x1dea   :  { %6491 = vmatpush3.msra.mxu1 %v5700_v5  ;;  %v5931_v5 = vld [vmem:[%s10542_s10] ss:$0 sm:$0xff] }
0x1ea2   :  { %v7520_v51 = vpop.f32.mrf.mxu0 }
0x1ea4   :  { %v5430_v55 = vpop.f32.mrf.mxu0 }
0x1ea5   :  { %7529 = vmatprep.mubr.msk.f32.mxu0 %vm341_vm1, %v5430_v55  ;;  %v5699_v55 = vld [vmem:[%s10539_s9 + $0x60] sm:$0xff] }
0x1ea6   :  { %7530 = vmatmul.mubr.msk.f32.vlgmr.msra.gmra.mxu0 %vm341_vm1, %v7520_v51  ;;  %v5715_v51 = vld [vmem:[%s10539_s9 + $0xe0] sm:$0xff] }
0x1ea7   :  { %5670 = vmatprep.mubr.f32.mxu0 %v10605_v47  ;;  %6492 = vmatprep.subr.mxu1 %v5715_v51 }
0x1ea8   :  { %6493 = vmatpush3.msra.mxu1 %v5699_v55 }
0x1f66   :  { %v7531_v30 = vpop.f32.mrf.mxu0 }
0x1f67   :  { %v5521_v49 = vadd.f32 %v7531_v30, %v10220_v41  ;;  %v5593_v41 = vld [vmem:[%s10538_s7 + $0xf8] sm:$0xff] }
0x1f68   :  { %v5511_v33 = vpop.f32.mrf.mxu0  ;;  %5606 = vmatprep.subr.mxu0 %v5593_v41  ;;  %v5714_v30 = vld [vmem:[%s10539_s9 + $0xd8] sm:$0xff]  ;;  %v5693_v41 = vld [vmem:[%s10539_s9 + $0x30] sm:$0xff] }
0x1f69   :  { %v5520_v25 = vadd.f32 %v5511_v33, %v10222_v26  ;;  %v5523_v29 = vadd.f32 %v7724_v40, %v5521_v49  ;;  %v5592_v26 = vld [vmem:[%s10538_s7 + $0xf0] sm:$0xff]  ;;  %v5698_v33 = vld [vmem:[%s10539_s9 + $0x58] sm:$0xff]  ;;  %6494 = vmatprep.subr.mxu1 %v5714_v30 }
0x1f6a   :  { %5607 = vmatpush1.msra.mxu0 %v5592_v26  ;;  %v5713_v49 = vld [vmem:[%s10539_s9 + $0xd0] sm:$0xff]  ;;  %6495 = vmatpush3.msra.mxu1 %v5698_v33  ;;  %v5708_v26 = vld [vmem:[%s10539_s9 + $0xa8] sm:$0xff] }
0x1f6b   :  { %v5522_v32 = vadd.f32 %v7724_v40, %v5520_v25  ;;  %v5525_v35 = vadd.f32 %v7726_v56, %v5523_v29  ;;  %5608 = vmatprep.subr.mxu0 %v5591_v48  ;;  %v5697_v25 = vld [vmem:[%s10539_s9 + $0x50] sm:$0xff]  ;;  %v5712_v40 = vld [vmem:[%s10539_s9 + $0xc8] sm:$0xff]  ;;  %6496 = vmatprep.subr.mxu1 %v5713_v49  ;;  %v5711_v29 = vld [vmem:[%s10539_s9 + $0xc0] sm:$0xff] }
0x1f6c   :  { %5609 = vmatpush1.msra.mxu0 %v5590_v38  ;;  %6497 = vmatpush3.msra.mxu1 %v5697_v25  ;;  %v5694_v56 = vld [vmem:[%s10539_s9 + $0x38] sm:$0xff]  ;;  %v5692_v48 = vld [vmem:[%s10539_s9 + $0x28] sm:$0xff]  ;;  %v5707_v38 = vld [vmem:[%s10539_s9 + $0xa0] sm:$0xff] }
0x1f6d   :  { %v5524_v57 = vadd.f32 %v7725_v54, %v5522_v32  ;;  %5610 = vmatprep.subr.mxu0 %v5589_v46  ;;  %v5696_v32 = vld [vmem:[%s10539_s9 + $0x48] sm:$0xff]  ;;  %6498 = vmatprep.subr.mxu1 %v5712_v40  ;;  %v5695_v54 = vld [vmem:[%s10539_s9 + $0x40] sm:$0xff] }
0x1f6e   :  { %5611 = vmatpush1.msra.mxu0 %v5588_v52  ;;  %6499 = vmatpush3.msra.mxu1 %v5696_v32  ;;  %v5691_v46 = vld [vmem:[%s10539_s9 + $0x20] sm:$0xff] }
0x1f6f   :  { %5528 = vadd.xlane.f32.xlu0 %v5524_v57  ;;  %5612 = vmatprep.subr.mxu0 %v5587_v28 }
0x1f70   :  { %5613 = vmatpush1.msra.mxu0 %v5586_v59  ;;  %6500 = vmatprep.subr.mxu1 %v5711_v29 }
0x1f71   :  { %5614 = vmatprep.subr.mxu0 %v5585_v11  ;;  %6501 = vmatpush3.msra.mxu1 %v5695_v54  ;;  %v2911_v54 = vpop.xlane.xlu1 %2910 }
0x1f72   :  { %5615 = vmatpush1.msra.mxu0 %v5584_v44 }
0x1f73   :  { %5530 = vadd.xlane.f32.xlu0 %v5525_v35  ;;  %5616 = vmatprep.subr.mxu0 %v5583_v6 }
0x1f74   :  { %5617 = vmatpush1.msra.mxu0 %v5582_v15 }
0x1f75   :  { %5618 = vmatprep.subr.mxu0 %v5581_v17 }
0x1f76   :  { %5619 = vmatpush1.msra.mxu0 %v5580_v12  ;;  %v5706_v12 = vld [vmem:[%s10539_s9 + $0x98] sm:$0xff] }
0x1f77   :  { %5620 = vmatprep.subr.mxu0 %v5579_v24  ;;  %v5704_v24 = vld [vmem:[%s10539_s9 + $0x88] sm:$0xff] }
0x1f78   :  { %5621 = vmatpush1.msra.mxu0 %v5578_v23  ;;  %v5688_v23 = vld [vmem:[%s10539_s9 + $0x8] sm:$0xff] }
0x1f79   :  { %5622 = vmatprep.subr.mxu0 %v5577_v16  ;;  %v5703_v16 = vld [vmem:[%s10539_s9 + $0x80] sm:$0xff] }
0x1f7a   :  { %5623 = vmatpush1.msra.mxu0 %v5576_v39  ;;  %v5687_v39 = vld [vmem:[%s10539_s9] sm:$0xff] }
0x1f7b   :  { %5624 = vmatprep.subr.mxu0 %v5575_v42  ;;  %v5594_v42 = vld [vmem:[%s10541_s8] sm:$0x3] }
0x1f7c   :  { %5625 = vmatpush1.msra.mxu0 %v5574_v1  ;;  %v10658_v1 = vld [vmem:[#allocation21_spill] sm:$0xff] }
0x1f7d   :  { %5626 = vmatprep.subr.mxu0 %v5573_v27  ;;  %v5599_v27 = vrot.slane %v5594_v42, %v10658_v1 }
0x1f7e   :  { %5627 = vmatpush1.msra.mxu0 %v5572_v63  ;;  %v10659_v63 = vld [vmem:[#allocation20_spill] sm:$0xff] }
0x1f7f   :  { %5628 = vmatprep.subr.mxu0 %v5571_v4  ;;  %v10660_v4 = vsub.s32 1, %v10659_v63 }
0x1f80   :  { %5629 = vmatpush1.msra.mxu0 %v5570_v0 }
0x1f81   :  { %5630 = vmatprep.subr.mxu0 %v5569_v18  ;;  %v5603_v0 = vrot.slane %v5594_v42, %v10660_v4 }
0x1f82   :  { %5631 = vmatpush1.msra.mxu0 %v5568_v8 }
0x1f83   :  { %5632 = vmatprep.subr.mxu0 %v5567_v37 }
0x1f84   :  { %5633 = vmatpush1.msra.mxu0 %v5566_v3 }
0x1f85   :  { %5634 = vmatprep.subr.mxu0 %v5565_v20 }
0x1f86   :  { %5635 = vmatpush1.msra.mxu0 %v5564_v36 }
0x1f87   :  { %5636 = vmatprep.subr.mxu0 %v5563_v58 }
0x1f88   :  { %5637 = vmatpush1.msra.mxu0 %v5562_v60 }
0x1ff8   :  { %v5529_v34 = vpop.xlane.xlu0 %5528 }
0x1ff9   :  { %v5532_v53 = vmul.f32 0.0078125, %v5529_v34 }
0x1ffb   :  { %v10312_v31 = vsub.f32 %v5524_v57, %v5532_v53  ;;  %v5710_v57 = vld [vmem:[%s10539_s9 + $0xb8] sm:$0xff] }
0x1ffc   :  { %v5531_v43 = vpop.xlane.xlu0 %5530  ;;  %6502 = vmatprep.subr.mxu1 %v5710_v57 }
0x1ffd   :  { %v5533_v61 = vmul.f32 0.0078125, %v5531_v43  ;;  %v5536_v22 = vmul.f32 %v10312_v31, %v10312_v31  ;;  %6503 = vmatpush3.msra.mxu1 %v5694_v56  ;;  %v2913_v56 = vmul.f32 0.0078125, %v2911_v54 }
0x1fff   :  { %v10316_v13 = vsub.f32 %v5525_v35, %v5533_v61  ;;  %5538 = vadd.xlane.f32.xlu0 %v5536_v22  ;;  %v5709_v35 = vld [vmem:[%s10539_s9 + $0xb0] sm:$0xff]  ;;  %v5929_v22 = vld [vmem:[%s10540_s11] ss:$0 sm:$0xff] }
0x2000   :  { %6504 = vmatprep.subr.mxu1 %v5709_v35 }
0x2001   :  { %v5537_v14 = vmul.f32 %v10316_v13, %v10316_v13  ;;  %6505 = vmatpush3.msra.mxu1 %v5693_v41 }
0x2002   :  { %6506 = vmatprep.subr.mxu1 %v5708_v26  ;;  %v2915_v26 = vsub.f32 %v10253_v21, %v2913_v56 }
0x2003   :  { %5540 = vadd.xlane.f32.xlu0 %v5537_v14  ;;  %6507 = vmatpush3.msra.mxu1 %v5692_v48 }
0x2004   :  { %6508 = vmatprep.subr.mxu1 %v5707_v38  ;;  %v2917_v38 = vmul.f32 %v2915_v26, %v2915_v26 }
0x2005   :  { %6509 = vmatpush3.msra.mxu1 %v5691_v46 }
0x2006   :  { %6510 = vmatprep.subr.mxu1 %v5706_v12 }
0x2007   :  { %2908 = vadd.xlane.f32.xlu0 %v10322_v10 }
0x2088   :  { %v5539_v52 = vpop.xlane.xlu0 %5538 }
0x2089   :  { %v5542_v28 = vmul.f32 0.0078125, %v5539_v52 }
0x208b   :  { %v5544_v59 = vadd.f32 1e-05, %v5542_v28 }
0x208c   :  { %v5541_v34 = vpop.xlane.xlu0 %5540 }
0x208d   :  { %7605 = vrsqrt.f32 %v5544_v59  ;;  %v5543_v53 = vmul.f32 0.0078125, %v5541_v34 }
0x208f   :  { %v5545_v43 = vadd.f32 1e-05, %v5543_v53 }
0x2090   :  { %v2909_v30 = vpop.xlane.xlu0 %2908 }
0x2091   :  { %7607 = vrsqrt.f32 %v5545_v43  ;;  %v2912_v40 = vmul.f32 0.0078125, %v2909_v30 }
0x2093   :  { %v2914_v35 = vsub.f32 %v10322_v10, %v2912_v40 }
0x2095   :  { %v2916_v48 = vmul.f32 %v2914_v35, %v2914_v35 }
0x209a   :  { %v7606_v61 = vpop.eup %7605 }
0x209b   :  { %v5548_v14 = vmul.f32 %v7606_v61, %v10312_v31  ;;  %v5690_v31 = vld [vmem:[%s10539_s9 + $0x18] sm:$0xff] }
0x209c   :  { %6511 = vmatpush3.msra.mxu1 %v5690_v31 }
0x209d   :  { %v5554_v9 = vmul.f32 %v5929_v22, %v5548_v14 }
0x209e   :  { %v7608_v11 = vpop.eup %7607 }
0x209f   :  { %v5560_v44 = vadd.f32 %v5930_v2, %v5554_v9  ;;  %v5549_v6 = vmul.f32 %v7608_v11, %v10316_v13  ;;  %v5705_v13 = vld [vmem:[%s10539_s9 + $0x90] sm:$0xff] }
0x20a0   :  { %6512 = vmatprep.subr.mxu1 %v5705_v13 }
0x20a1   :  { %5671 = vmatmul.mubr.f32.vlgmr.msra.gmra.mxu0 %v5560_v44  ;;  %v5555_v15 = vmul.f32 %v5929_v22, %v5549_v6 }
0x20a2   :  { %5676 = vmatprep.mubr.f32.mxu0 %v10605_v47  ;;  %v5689_v47 = vld [vmem:[%s10539_s9 + $0x10] sm:$0xff] }
0x20a3   :  { %v5561_v17 = vadd.f32 %v5930_v2, %v5555_v15  ;;  %6513 = vmatpush3.msra.mxu1 %v5689_v47  ;;  %v5886_v15 = vld [vmem:[%s10540_s11 + $0x3] ss:$0 sm:$0xff] }
0x20a4   :  { %6514 = vmatprep.subr.mxu1 %v5704_v24 }
0x20a5   :  { %5677 = vmatmul.mubr.f32.gmra.mxu0 %v5561_v17  ;;  %6515 = vmatpush3.msra.mxu1 %v5688_v23 }
0x20a6   :  { %6516 = vmatprep.subr.mxu1 %v5703_v16 }
0x20a7   :  { %6517 = vmatpush3.msra.mxu1 %v5687_v39 }
0x2161   :  { %v5672_v18 = vpop.f32.mrf.mxu0 }
0x2162   :  { %v5673_v8 = vadd.f32 %v5672_v18, %v5599_v27 }
0x2163   :  { %v5674_v37 = vpop.f32.mrf.mxu0 }
0x2164   :  { %v5675_v3 = vadd.f32 %v5674_v37, %v5603_v0  ;;  %v5683_v58 = vmax.f32 %v5673_v8, 0.0 }
0x2165   :  { %v5678_v20 = vpop.f32.mrf.mxu0 }
0x2166   :  { %v5684_v36 = vmax.f32 %v5675_v3, 0.0  ;;  %v5679_v60 = vadd.f32 %v5678_v20, %v5599_v27 }
0x2167   :  { %v5680_v45 = vpop.f32.mrf.mxu0 }
0x2168   :  { %v5681_v19 = vadd.f32 %v5680_v45, %v5603_v0  ;;  %5790 = vmatprep.mubr.f32.mxu1 %v5684_v36  ;;  %v5685_v7 = vmax.f32 %v5679_v60, 0.0 }
0x2169   :  { %5791 = vmatmul.mubr.f32.vlgmr.msra.gmra.mxu1 %v5683_v58 }
0x216a   :  { %v5686_v50 = vmax.f32 %v5681_v19, 0.0 }
0x216c   :  { %5795 = vmatprep.mubr.f32.mxu1 %v5686_v50 }
0x216d   :  { %5796 = vmatmul.mubr.f32.gmra.mxu1 %v5685_v7 }
0x2229   :  { %v6518_v62 = vpop.f32.mrf.mxu1 }
0x222b   :  { %v6519_v51 = vpop.f32.mrf.mxu1 }
0x222c   :  { %v6520_v55 = vadd.f32 %v6519_v51, %v6518_v62 }
0x222d   :  { %v6521_v33 = vpop.f32.mrf.mxu1 }
0x222e   :  { %v5793_v49 = vadd.f32 %v6520_v55, %v5931_v5 }
0x222f   :  { %v6522_v25 = vpop.f32.mrf.mxu1 }
0x2230   :  { %v6523_v32 = vadd.f32 %v6522_v25, %v6521_v33  ;;  %v5801_v29 = vadd.f32 %v5793_v49, %v5560_v44  ;;  %v5885_v44 = vld [vmem:[%s10540_s11 + $0x2] ss:$0 sm:$0xff] }
0x2232   :  { %v5798_v57 = vadd.f32 %v6523_v32, %v5931_v5  ;;  %5805 = vadd.xlane.f32.xlu0 %v5801_v29 }
0x2234   :  { %v5802_v41 = vadd.f32 %v5798_v57, %v5561_v17 }
0x2236   :  { %5807 = vadd.xlane.f32.xlu0 %v5802_v41 }
0x223a   :  { %2918 = vadd.xlane.f32.xlu0 %v2916_v48 }
0x223e   :  { %2920 = vadd.xlane.f32.xlu0 %v2917_v38 }
0x22bb   :  { %v5806_v46 = vpop.xlane.xlu0 %5805 }
0x22bc   :  { %v5809_v52 = vmul.f32 0.0078125, %v5806_v46 }
0x22be   :  { %v5811_v28 = vsub.f32 %v5801_v29, %v5809_v52 }
0x22bf   :  { %v5808_v59 = vpop.xlane.xlu0 %5807 }
0x22c0   :  { %v5810_v34 = vmul.f32 0.0078125, %v5808_v59  ;;  %v5813_v53 = vmul.f32 %v5811_v28, %v5811_v28 }
0x22c2   :  { %v5812_v43 = vsub.f32 %v5802_v41, %v5810_v34  ;;  %5815 = vadd.xlane.f32.xlu0 %v5813_v53 }
0x22c3   :  { %v2919_v61 = vpop.xlane.xlu0 %2918 }
0x22c4   :  { %v2922_v22 = vmul.f32 0.0078125, %v2919_v61  ;;  %v5814_v14 = vmul.f32 %v5812_v43, %v5812_v43 }
0x22c6   :  { %v2924_v10 = vadd.f32 1e-05, %v2922_v22  ;;  %5817 = vadd.xlane.f32.xlu0 %v5814_v14 }
0x22c7   :  { %v2921_v2 = vpop.xlane.xlu0 %2920 }
0x22c8   :  { %7609 = vrsqrt.f32 %v2924_v10  ;;  %v2923_v21 = vmul.f32 0.0078125, %v2921_v2 }
0x22ca   :  { %v2925_v9 = vadd.f32 1e-05, %v2923_v21 }
0x22cc   :  { %7611 = vrsqrt.f32 %v2925_v9 }
0x22d5   :  { %v7610_v11 = vpop.eup %7609 }
0x22d6   :  { %v2928_v6 = vmul.f32 %v7610_v11, %v2914_v35 }
0x22d8   :  { %v2934_v17 = vmul.f32 %v5885_v44, %v2928_v6 }
0x22d9   :  { %v7612_v12 = vpop.eup %7611 }
0x22da   :  { %v2940_v31 = vadd.f32 %v5886_v15, %v2934_v17  ;;  %v2929_v13 = vmul.f32 %v7612_v12, %v2915_v26 }
0x22dc   :  { %2942 = vst [vmem:[%s10543_s12] sm:$0xff] %v2940_v31  ;;  %v2935_v47 = vmul.f32 %v5885_v44, %v2929_v13 }
0x22de   :  { %v2941_v24 = vadd.f32 %v5886_v15, %v2935_v47 }
0x22e0   :  { %2943 = vst [vmem:[%s10543_s12 + $0x8] sm:$0xff] %v2941_v24 }
0x234b   :  { %v5816_v23 = vpop.xlane.xlu0 %5815 }
0x234c   :  { %v5819_v16 = vmul.f32 0.0078125, %v5816_v23 }
0x234e   :  { %v5821_v39 = vadd.f32 1e-05, %v5819_v16 }
0x234f   :  { %v5818_v42 = vpop.xlane.xlu0 %5817 }
0x2350   :  { %7613 = vrsqrt.f32 %v5821_v39  ;;  %v5820_v1 = vmul.f32 0.0078125, %v5818_v42 }
0x2352   :  { %v5822_v27 = vadd.f32 1e-05, %v5820_v1 }
0x2354   :  { %7615 = vrsqrt.f32 %v5822_v27 }
0x235d   :  { %v7614_v63 = vpop.eup %7613 }
0x235e   :  { %v5825_v4 = vmul.f32 %v7614_v63, %v5811_v28 }
0x2360   :  { %v5831_v0 = vmul.f32 %v5885_v44, %v5825_v4 }
0x2361   :  { %v7616_v18 = vpop.eup %7615 }
0x2362   :  { %v5837_v8 = vadd.f32 %v5886_v15, %v5831_v0  ;;  %v5826_v37 = vmul.f32 %v7616_v18, %v5812_v43 }
0x2364   :  { %5934 = vst [vmem:[%s10543_s12 + $0x10] sm:$0xff] %v5837_v8  ;;  %v5832_v3 = vmul.f32 %v5885_v44, %v5826_v37 }
0x2366   :  { %v5838_v20 = vadd.f32 %v5886_v15, %v5832_v3 }
0x2368   :  { %5935 = vst [vmem:[%s10543_s12 + $0x18] sm:$0xff] %v5838_v20 }

</bundles_post_ra>
